<compile_context>
chip_gen: v5e
topology: v5e:2x2
jax: 0.10.0
libtpu: 0.0.40
codegen_flags: <defaults>
</compile_context>

<pallas_src>
import functools

import jax
import jax.numpy as jnp
from jax.experimental import pallas as pl
from jax.experimental.pallas import tpu as pltpu


def _fused_head_kernel(x_ref, w3_ref, shift_ref, w1_ref, b1_ref, mask_ref,
                       out_ref, *, wp):
    """Fused 3-head kernel, single invocation.

    x_ref    : (Nflat, Cin)          bf16 zero-padded NHWC input, flattened
                                     over (b, hp, wp) with `wp+1` lead rows.
    w3_ref   : (9*Cin, Cmid_total)   bf16 3x3 weights (BN scale folded in),
                                     tap-major rows: tap t = dy*3+dx.
    shift_ref: (1, Cmid_total)       f32  folded BN shift.
    w1_ref   : (Cmid_total, Cout_p)  f32  block-diagonal 1x1 weights.
    b1_ref   : (1, Cout_p)           f32  1x1 bias (lane-padded).
    mask_ref : (1, Cout_p)           f32  1.0 on cls channels, 0.0 elsewhere.
    out_ref  : (Mrows, Cout_p)       f32  outputs over the padded spatial
                                     grid (valid rows extracted by wrapper).
    """
    m_rows = out_ref.shape[0]
    cin = x_ref.shape[1]
    cmid_t = w3_ref.shape[1]

    # 3x3 conv as 9 shifted GEMMs over the flat padded spatial axis.
    acc = jnp.zeros((m_rows, cmid_t), jnp.float32)
    for dy in range(3):
        for dx in range(3):
            off = dy * wp + dx                     # static sublane offset
            t = dy * 3 + dx
            lhs = x_ref[pl.ds(off, m_rows), :]     # (Mrows, Cin) bf16
            rhs = w3_ref[pl.ds(t * cin, cin), :]   # (Cin, Cmid_t) bf16
            acc = acc + jnp.dot(lhs, rhs, preferred_element_type=jnp.float32)

    # Folded BatchNorm shift + ReLU (scale already folded into w3).
    y = jnp.maximum(acc + shift_ref[...], 0.0)

    # Block-diagonal 1x1 conv (tiny) kept fully in f32 for accuracy.
    z = jnp.dot(y, w1_ref[...], preferred_element_type=jnp.float32)
    z = z + b1_ref[...]

    # Sigmoid only on the cls channel range (precomputed lane mask).
    mask = jnp.broadcast_to(mask_ref[...], z.shape) != 0.0
    out_ref[...] = jnp.where(mask, jax.nn.sigmoid(z), z).astype(out_ref.dtype)


def run_fused_heads(x_flat, w3_f, shift_f, w1_f, b1_f, sig_mask, *,
                    m_rows, wp):
    n_flat, cin = x_flat.shape
    k9, cmid_t = w3_f.shape
    cout_p = w1_f.shape[1]
    assert m_rows % 8 == 0 and n_flat % 8 == 0 and cin % 128 == 0
    kernel = functools.partial(_fused_head_kernel, wp=wp)
    return pl.pallas_call(
        kernel,
        out_shape=jax.ShapeDtypeStruct((m_rows, cout_p), jnp.float32),
        grid_spec=pltpu.PrefetchScalarGridSpec(
            num_scalar_prefetch=0,
            grid=(1,),
            in_specs=[
                pl.BlockSpec((n_flat, cin), lambda m: (0, 0)),
                pl.BlockSpec((k9, cmid_t), lambda m: (0, 0)),
                pl.BlockSpec((1, cmid_t), lambda m: (0, 0)),
                pl.BlockSpec((cmid_t, cout_p), lambda m: (0, 0)),
                pl.BlockSpec((1, cout_p), lambda m: (0, 0)),
                pl.BlockSpec((1, cout_p), lambda m: (0, 0)),
            ],
            out_specs=pl.BlockSpec((m_rows, cout_p), lambda m: (0, 0)),
        ),
        compiler_params=pltpu.CompilerParams(
            dimension_semantics=("arbitrary",)),
    )(x_flat, w3_f, shift_f, w1_f, b1_f, sig_mask)


def make_head_params(keys, cin, cmid, cout):
    """Deterministic synthetic parameters for one head (raw, BN unfolded)."""
    w3 = 0.05 * jax.random.normal(keys[0], (3, 3, cin, cmid), jnp.float32)
    gamma = 1.0 + 0.1 * jax.random.normal(keys[1], (cmid,), jnp.float32)
    beta = 0.1 * jax.random.normal(keys[2], (cmid,), jnp.float32)
    rmean = 0.1 * jax.random.normal(keys[3], (cmid,), jnp.float32)
    rvar = jnp.abs(jax.random.normal(keys[4], (cmid,), jnp.float32)) + 0.5
    eps = 1e-5
    scale = gamma / jnp.sqrt(rvar + eps)          # inference-mode BN fold
    shift = beta - rmean * scale
    w1 = 0.05 * jax.random.normal(keys[5], (cmid, cout), jnp.float32)
    b1 = 0.01 * jax.random.normal(keys[6], (cmid,), jnp.float32)[:cout] \
        if False else 0.01 * jax.random.normal(keys[6], (cout,), jnp.float32)
    return w3, scale, shift, w1, b1


def fuse_heads(head_params, cout_pad=128):
    """Fuse per-head params into one tap-major 3x3 weight + block-diag 1x1."""
    cmid = head_params[0][0].shape[-1]
    n_heads = len(head_params)
    # Fold BN scale into the 3x3 weights, concat along mid channels.
    w3_cat = jnp.concatenate([w3 * scale for (w3, scale, _, _, _)
                              in head_params], axis=-1)        # (3,3,Cin,192)
    kdim = w3_cat.shape[0] * w3_cat.shape[1] * w3_cat.shape[2]
    w3_f = w3_cat.reshape(kdim, n_heads * cmid)                # (9*Cin, 192)
    shift_f = jnp.concatenate([p[2] for p in head_params]
                              ).reshape(1, n_heads * cmid)
    # Block-diagonal 1x1 weights + bias, lane-padded output channels (f32).
    w1_f = jnp.zeros((n_heads * cmid, cout_pad), jnp.float32)
    b1_f = jnp.zeros((1, cout_pad), jnp.float32)
    col = 0
    for i, (_, _, _, w1, b1) in enumerate(head_params):
        co = w1.shape[1]
        w1_f = w1_f.at[i * cmid:(i + 1) * cmid, col:col + co].set(w1)
        b1_f = b1_f.at[0, col:col + co].set(b1)
        col += co
    return w3_f.astype(jnp.bfloat16), shift_f, w1_f, b1_f, col


def _ref_head(x_nchw, w3, scale, shift, w1, b1, apply_sigmoid):
    """Pure-JAX f32 reference for one head (real conv, unfolded BN math)."""
    y = jax.lax.conv_general_dilated(
        x_nchw, w3, window_strides=(1, 1), padding="SAME",
        dimension_numbers=("NCHW", "HWIO", "NCHW"))
    y = jnp.maximum(y * scale[None, :, None, None]
                    + shift[None, :, None, None], 0.0)
    z = jnp.einsum("bchw,cd->bdhw", y, w1) + b1[None, :, None, None]
    return jax.nn.sigmoid(z) if apply_sigmoid else z


if __name__ == "__main__":
    key = jax.random.PRNGKey(0)
    B, Cin, H, W = 2, 256, 8, 8        # Cin fixed at 256 by the module
    channel, num_classes = 64, 80

    keys = jax.random.split(key, 22)
    x_nchw = jax.random.normal(keys[0], (B, Cin, H, W), jnp.float32)

    cls_p = make_head_params(keys[1:8], Cin, channel, num_classes)
    wh_p = make_head_params(keys[8:15], Cin, channel, 2)
    reg_p = make_head_params(keys[15:22], Cin, channel, 2)

    w3_f, shift_f, w1_f, b1_f, cout_total = fuse_heads(
        [cls_p, wh_p, reg_p], cout_pad=128)
    sig_mask = (jnp.arange(128) < num_classes).astype(jnp.float32
                                                      ).reshape(1, 128)

    # Cheap input prep: bf16 cast, NCHW->NHWC, zero-pad spatial by 1, flatten
    # over (b, hp, wp), pad the flat axis so every 3x3 tap is a static
    # in-bounds row window inside the kernel.
    Hp, Wp = H + 2, W + 2
    pre = Wp + 1
    m_rows = B * Hp * Wp                           # 200 virtual output rows
    n_flat = ((m_rows + 2 * pre + 7) // 8) * 8
    x_nhwc = jnp.transpose(x_nchw.astype(jnp.bfloat16), (0, 2, 3, 1))
    x_pad = jnp.pad(x_nhwc, ((0, 0), (1, 1), (1, 1), (0, 0)))
    x_flat = jnp.pad(x_pad.reshape(m_rows, Cin),
                     ((pre, n_flat - m_rows - pre), (0, 0)))

    out = run_fused_heads(x_flat, w3_f, shift_f, w1_f, b1_f, sig_mask,
                          m_rows=m_rows, wp=Wp)
    out = jax.block_until_ready(out)

    # Keep only the valid (non-halo) rows, split heads, go back to NCHW.
    out_valid = out.reshape(B, Hp, Wp, -1)[:, 1:H + 1, 1:W + 1, :]
    hm = jnp.transpose(out_valid[..., :num_classes], (0, 3, 1, 2))
    wh = jnp.transpose(out_valid[..., num_classes:num_classes + 2],
                       (0, 3, 1, 2))
    offset = jnp.transpose(out_valid[..., num_classes + 2:num_classes + 4],
                           (0, 3, 1, 2))
    jax.block_until_ready((hm, wh, offset))

    # Shape / range checks and a loose numerical check vs. an f32 reference
    # (kernel uses bf16 input / 3x3 weights with f32 accumulation).
    assert hm.shape == (B, num_classes, H, W)
    assert wh.shape == (B, 2, H, W)
    assert offset.shape == (B, 2, H, W)
    assert bool(jnp.all((hm >= 0.0) & (hm <= 1.0)))

    hm_ref = _ref_head(x_nchw, *cls_p, True)
    wh_ref = _ref_head(x_nchw, *wh_p, False)
    reg_ref = _ref_head(x_nchw, *reg_p, False)
    assert float(jnp.max(jnp.abs(hm - hm_ref))) < 0.1
    assert float(jnp.max(jnp.abs(wh - wh_ref))) < 0.1
    assert float(jnp.max(jnp.abs(offset - reg_ref))) < 0.1

    print("KERNEL_OK")
</pallas_src>

<mosaic_0001>
module attributes {stable_mosaic.version = 11 : i64} {
  func.func @_fused_head_kernel(%arg0: i32, %arg1: memref<224x256xbf16, #tpu.memory_space<vmem>>, %arg2: memref<2304x192xbf16, #tpu.memory_space<vmem>>, %arg3: memref<1x192xf32, #tpu.memory_space<vmem>>, %arg4: memref<192x128xf32, #tpu.memory_space<vmem>>, %arg5: memref<1x128xf32, #tpu.memory_space<vmem>>, %arg6: memref<1x128xf32, #tpu.memory_space<vmem>>, %arg7: memref<200x128xf32, #tpu.memory_space<vmem>>) attributes {dimension_semantics = [#tpu.dimension_semantics<arbitrary>], iteration_bounds = array<i64: 1>, scalar_prefetch = 0 : i64, scratch_operands = 0 : i64, tpu.core_type = #tpu.core_type<tc>, window_params = [{pipeline_mode = #tpu.pipeline_mode<synchronous>, transform_indices = @transform_0, window_bounds = array<i64: 224, 256>}, {pipeline_mode = #tpu.pipeline_mode<synchronous>, transform_indices = @transform_1, window_bounds = array<i64: 2304, 192>}, {pipeline_mode = #tpu.pipeline_mode<synchronous>, transform_indices = @transform_2, window_bounds = array<i64: 1, 192>}, {pipeline_mode = #tpu.pipeline_mode<synchronous>, transform_indices = @transform_3, window_bounds = array<i64: 192, 128>}, {pipeline_mode = #tpu.pipeline_mode<synchronous>, transform_indices = @transform_4, window_bounds = array<i64: 1, 128>}, {pipeline_mode = #tpu.pipeline_mode<synchronous>, transform_indices = @transform_5, window_bounds = array<i64: 1, 128>}, {pipeline_mode = #tpu.pipeline_mode<synchronous>, transform_indices = @transform_6, window_bounds = array<i64: 200, 128>}]} {
    %cst = arith.constant 0.000000e+00 : f32
    %0 = vector.broadcast %cst : f32 to vector<200x192xf32>
    %c0 = arith.constant 0 : index
    %c0_0 = arith.constant 0 : index
    %1 = vector.load %arg1[%c0, %c0_0] : memref<224x256xbf16, #tpu.memory_space<vmem>>, vector<200x256xbf16>
    %c0_1 = arith.constant 0 : index
    %c0_2 = arith.constant 0 : index
    %2 = vector.load %arg2[%c0_1, %c0_2] : memref<2304x192xbf16, #tpu.memory_space<vmem>>, vector<256x192xbf16>
    %cst_3 = arith.constant dense<0.000000e+00> : vector<200x192xf32>
    %3 = tpu.matmul %1, %2, %cst_3 {dimension_numbers = #tpu.dot_dimension_numbers<[1], [0], [0], [1], [0, 0, 1, 1], [], []>} : vector<200x256xbf16>, vector<256x192xbf16>, vector<200x192xf32> -> vector<200x192xf32>
    %4 = arith.addf %0, %3 : vector<200x192xf32>
    %c1 = arith.constant 1 : index
    %c0_4 = arith.constant 0 : index
    %5 = vector.load %arg1[%c1, %c0_4] : memref<224x256xbf16, #tpu.memory_space<vmem>>, vector<200x256xbf16>
    %c256 = arith.constant 256 : index
    %c0_5 = arith.constant 0 : index
    %6 = vector.load %arg2[%c256, %c0_5] : memref<2304x192xbf16, #tpu.memory_space<vmem>>, vector<256x192xbf16>
    %cst_6 = arith.constant dense<0.000000e+00> : vector<200x192xf32>
    %7 = tpu.matmul %5, %6, %cst_6 {dimension_numbers = #tpu.dot_dimension_numbers<[1], [0], [0], [1], [0, 0, 1, 1], [], []>} : vector<200x256xbf16>, vector<256x192xbf16>, vector<200x192xf32> -> vector<200x192xf32>
    %8 = arith.addf %4, %7 : vector<200x192xf32>
    %c2 = arith.constant 2 : index
    %c0_7 = arith.constant 0 : index
    %9 = vector.load %arg1[%c2, %c0_7] : memref<224x256xbf16, #tpu.memory_space<vmem>>, vector<200x256xbf16>
    %c512 = arith.constant 512 : index
    %c0_8 = arith.constant 0 : index
    %10 = vector.load %arg2[%c512, %c0_8] : memref<2304x192xbf16, #tpu.memory_space<vmem>>, vector<256x192xbf16>
    %cst_9 = arith.constant dense<0.000000e+00> : vector<200x192xf32>
    %11 = tpu.matmul %9, %10, %cst_9 {dimension_numbers = #tpu.dot_dimension_numbers<[1], [0], [0], [1], [0, 0, 1, 1], [], []>} : vector<200x256xbf16>, vector<256x192xbf16>, vector<200x192xf32> -> vector<200x192xf32>
    %12 = arith.addf %8, %11 : vector<200x192xf32>
    %c10 = arith.constant 10 : index
    %c0_10 = arith.constant 0 : index
    %13 = vector.load %arg1[%c10, %c0_10] : memref<224x256xbf16, #tpu.memory_space<vmem>>, vector<200x256xbf16>
    %c768 = arith.constant 768 : index
    %c0_11 = arith.constant 0 : index
    %14 = vector.load %arg2[%c768, %c0_11] : memref<2304x192xbf16, #tpu.memory_space<vmem>>, vector<256x192xbf16>
    %cst_12 = arith.constant dense<0.000000e+00> : vector<200x192xf32>
    %15 = tpu.matmul %13, %14, %cst_12 {dimension_numbers = #tpu.dot_dimension_numbers<[1], [0], [0], [1], [0, 0, 1, 1], [], []>} : vector<200x256xbf16>, vector<256x192xbf16>, vector<200x192xf32> -> vector<200x192xf32>
    %16 = arith.addf %12, %15 : vector<200x192xf32>
    %c11 = arith.constant 11 : index
    %c0_13 = arith.constant 0 : index
    %17 = vector.load %arg1[%c11, %c0_13] : memref<224x256xbf16, #tpu.memory_space<vmem>>, vector<200x256xbf16>
    %c1024 = arith.constant 1024 : index
    %c0_14 = arith.constant 0 : index
    %18 = vector.load %arg2[%c1024, %c0_14] : memref<2304x192xbf16, #tpu.memory_space<vmem>>, vector<256x192xbf16>
    %cst_15 = arith.constant dense<0.000000e+00> : vector<200x192xf32>
    %19 = tpu.matmul %17, %18, %cst_15 {dimension_numbers = #tpu.dot_dimension_numbers<[1], [0], [0], [1], [0, 0, 1, 1], [], []>} : vector<200x256xbf16>, vector<256x192xbf16>, vector<200x192xf32> -> vector<200x192xf32>
    %20 = arith.addf %16, %19 : vector<200x192xf32>
    %c12 = arith.constant 12 : index
    %c0_16 = arith.constant 0 : index
    %21 = vector.load %arg1[%c12, %c0_16] : memref<224x256xbf16, #tpu.memory_space<vmem>>, vector<200x256xbf16>
    %c1280 = arith.constant 1280 : index
    %c0_17 = arith.constant 0 : index
    %22 = vector.load %arg2[%c1280, %c0_17] : memref<2304x192xbf16, #tpu.memory_space<vmem>>, vector<256x192xbf16>
    %cst_18 = arith.constant dense<0.000000e+00> : vector<200x192xf32>
    %23 = tpu.matmul %21, %22, %cst_18 {dimension_numbers = #tpu.dot_dimension_numbers<[1], [0], [0], [1], [0, 0, 1, 1], [], []>} : vector<200x256xbf16>, vector<256x192xbf16>, vector<200x192xf32> -> vector<200x192xf32>
    %24 = arith.addf %20, %23 : vector<200x192xf32>
    %c20 = arith.constant 20 : index
    %c0_19 = arith.constant 0 : index
    %25 = vector.load %arg1[%c20, %c0_19] : memref<224x256xbf16, #tpu.memory_space<vmem>>, vector<200x256xbf16>
    %c1536 = arith.constant 1536 : index
    %c0_20 = arith.constant 0 : index
    %26 = vector.load %arg2[%c1536, %c0_20] : memref<2304x192xbf16, #tpu.memory_space<vmem>>, vector<256x192xbf16>
    %cst_21 = arith.constant dense<0.000000e+00> : vector<200x192xf32>
    %27 = tpu.matmul %25, %26, %cst_21 {dimension_numbers = #tpu.dot_dimension_numbers<[1], [0], [0], [1], [0, 0, 1, 1], [], []>} : vector<200x256xbf16>, vector<256x192xbf16>, vector<200x192xf32> -> vector<200x192xf32>
    %28 = arith.addf %24, %27 : vector<200x192xf32>
    %c21 = arith.constant 21 : index
    %c0_22 = arith.constant 0 : index
    %29 = vector.load %arg1[%c21, %c0_22] : memref<224x256xbf16, #tpu.memory_space<vmem>>, vector<200x256xbf16>
    %c1792 = arith.constant 1792 : index
    %c0_23 = arith.constant 0 : index
    %30 = vector.load %arg2[%c1792, %c0_23] : memref<2304x192xbf16, #tpu.memory_space<vmem>>, vector<256x192xbf16>
    %cst_24 = arith.constant dense<0.000000e+00> : vector<200x192xf32>
    %31 = tpu.matmul %29, %30, %cst_24 {dimension_numbers = #tpu.dot_dimension_numbers<[1], [0], [0], [1], [0, 0, 1, 1], [], []>} : vector<200x256xbf16>, vector<256x192xbf16>, vector<200x192xf32> -> vector<200x192xf32>
    %32 = arith.addf %28, %31 : vector<200x192xf32>
    %c22 = arith.constant 22 : index
    %c0_25 = arith.constant 0 : index
    %33 = vector.load %arg1[%c22, %c0_25] : memref<224x256xbf16, #tpu.memory_space<vmem>>, vector<200x256xbf16>
    %c2048 = arith.constant 2048 : index
    %c0_26 = arith.constant 0 : index
    %34 = vector.load %arg2[%c2048, %c0_26] : memref<2304x192xbf16, #tpu.memory_space<vmem>>, vector<256x192xbf16>
    %cst_27 = arith.constant dense<0.000000e+00> : vector<200x192xf32>
    %35 = tpu.matmul %33, %34, %cst_27 {dimension_numbers = #tpu.dot_dimension_numbers<[1], [0], [0], [1], [0, 0, 1, 1], [], []>} : vector<200x256xbf16>, vector<256x192xbf16>, vector<200x192xf32> -> vector<200x192xf32>
    %36 = arith.addf %32, %35 : vector<200x192xf32>
    %c0_28 = arith.constant 0 : index
    %c0_29 = arith.constant 0 : index
    %37 = vector.load %arg3[%c0_28, %c0_29] : memref<1x192xf32, #tpu.memory_space<vmem>>, vector<1x192xf32>
    %38 = vector.broadcast %37 : vector<1x192xf32> to vector<200x192xf32>
    %39 = arith.addf %36, %38 : vector<200x192xf32>
    %cst_30 = arith.constant 0.000000e+00 : f32
    %40 = vector.broadcast %cst_30 : f32 to vector<200x192xf32>
    %41 = arith.maximumf %39, %40 : vector<200x192xf32>
    %c0_31 = arith.constant 0 : index
    %c0_32 = arith.constant 0 : index
    %42 = vector.load %arg4[%c0_31, %c0_32] : memref<192x128xf32, #tpu.memory_space<vmem>>, vector<192x128xf32>
    %cst_33 = arith.constant dense<0.000000e+00> : vector<200x128xf32>
    %43 = tpu.matmul %41, %42, %cst_33 {dimension_numbers = #tpu.dot_dimension_numbers<[1], [0], [0], [1], [0, 0, 1, 1], [], []>} : vector<200x192xf32>, vector<192x128xf32>, vector<200x128xf32> -> vector<200x128xf32>
    %c0_34 = arith.constant 0 : index
    %c0_35 = arith.constant 0 : index
    %44 = vector.load %arg5[%c0_34, %c0_35] : memref<1x128xf32, #tpu.memory_space<vmem>>, vector<1x128xf32>
    %45 = vector.broadcast %44 : vector<1x128xf32> to vector<200x128xf32>
    %46 = arith.addf %43, %45 : vector<200x128xf32>
    %c0_36 = arith.constant 0 : index
    %c0_37 = arith.constant 0 : index
    %47 = vector.load %arg6[%c0_36, %c0_37] : memref<1x128xf32, #tpu.memory_space<vmem>>, vector<1x128xf32>
    %48 = vector.shape_cast %47 : vector<1x128xf32> to vector<1x128xf32>
    %49 = vector.broadcast %48 : vector<1x128xf32> to vector<200x128xf32>
    %cst_38 = arith.constant 0.000000e+00 : f32
    %50 = vector.broadcast %cst_38 : f32 to vector<200x128xf32>
    %51 = arith.cmpf one, %49, %50 : vector<200x128xf32>
    %52 = arith.negf %46 : vector<200x128xf32>
    %53 = math.exp %52 : vector<200x128xf32>
    %cst_39 = arith.constant 1.000000e+00 : f32
    %54 = vector.broadcast %cst_39 : f32 to vector<200x128xf32>
    %55 = arith.addf %54, %53 : vector<200x128xf32>
    %56 = arith.divf %54, %55 : vector<200x128xf32>
    %57 = arith.select %51, %56, %46 : vector<200x128xi1>, vector<200x128xf32>
    %c0_40 = arith.constant 0 : index
    %c0_41 = arith.constant 0 : index
    %58 = vector.load %arg7[%c0_40, %c0_41] : memref<200x128xf32, #tpu.memory_space<vmem>>, vector<200x128xf32>
    tpu.vector_store %arg7[%c0_40, %c0_41], %57 {strides = array<i32>} : memref<200x128xf32, #tpu.memory_space<vmem>>, vector<200x128xf32>,
    return
  }
  func.func @transform_0(%arg0: i32) -> (i32, i32) {
    %c0_i32 = arith.constant 0 : i32
    %c0_i32_0 = arith.constant 0 : i32
    %c0_i32_1 = arith.constant 0 : i32
    return %c0_i32, %c0_i32_0 : i32, i32
  }
  func.func @transform_1(%arg0: i32) -> (i32, i32) {
    %c0_i32 = arith.constant 0 : i32
    %c0_i32_0 = arith.constant 0 : i32
    %c0_i32_1 = arith.constant 0 : i32
    return %c0_i32, %c0_i32_0 : i32, i32
  }
  func.func @transform_2(%arg0: i32) -> (i32, i32) {
    %c0_i32 = arith.constant 0 : i32
    %c0_i32_0 = arith.constant 0 : i32
    %c0_i32_1 = arith.constant 0 : i32
    return %c0_i32, %c0_i32_0 : i32, i32
  }
  func.func @transform_3(%arg0: i32) -> (i32, i32) {
    %c0_i32 = arith.constant 0 : i32
    %c0_i32_0 = arith.constant 0 : i32
    %c0_i32_1 = arith.constant 0 : i32
    return %c0_i32, %c0_i32_0 : i32, i32
  }
  func.func @transform_4(%arg0: i32) -> (i32, i32) {
    %c0_i32 = arith.constant 0 : i32
    %c0_i32_0 = arith.constant 0 : i32
    %c0_i32_1 = arith.constant 0 : i32
    return %c0_i32, %c0_i32_0 : i32, i32
  }
  func.func @transform_5(%arg0: i32) -> (i32, i32) {
    %c0_i32 = arith.constant 0 : i32
    %c0_i32_0 = arith.constant 0 : i32
    %c0_i32_1 = arith.constant 0 : i32
    return %c0_i32, %c0_i32_0 : i32, i32
  }
  func.func @transform_6(%arg0: i32) -> (i32, i32) {
    %c0_i32 = arith.constant 0 : i32
    %c0_i32_0 = arith.constant 0 : i32
    %c0_i32_1 = arith.constant 0 : i32
    return %c0_i32, %c0_i32_0 : i32, i32
  }
}

</mosaic_0001>

<bundles_post_ra>
// kernel: tpu_custom_call.1
= control target key start
LH: loop header
LB: loop body
LE: loop exit
PB: predicated region body
PF: predicated region fallthrough
CT: control target
= control target key end

     0   :  { %vm218_vm0 = vsmask.f32 7424  ;;  %s14911_s0 = inlined_call_operand.vmem [shape: bf16[224,256], index: 0, kind: input, shape index: {}]   ;;  %s14912_s1 = inlined_call_operand.vmem [shape: bf16[2304,192], index: 1, kind: input, shape index: {}]   ;;  %s14913_s2 = inlined_call_operand.vmem [shape: f32[1,192], index: 2, kind: input, shape index: {}]   ;;  %s14914_s3 = inlined_call_operand.vmem [shape: f32[192,128], index: 3, kind: input, shape index: {}]   ;;  %s14915_s4 = inlined_call_operand.vmem [shape: f32[1,128], index: 4, kind: input, shape index: {}]   ;;  %s14916_s5 = inlined_call_operand.vmem [shape: f32[1,128], index: 5, kind: input, shape index: {}]   ;;  %s14917_s6 = inlined_call_operand.hbm [shape: f32[200,128], index: 6, kind: output, shape index: {}]  }
   0x1   :  { %v7400_v0 = vld [vmem:[%s14912_s1 + $0x170] sm:$0xf]  ;;  %v8789_v1 = vld [vmem:[%s14912_s1 + $0x174] sm:$0xf0]  ;;  %v7392_v5 = vld [vmem:[%s14912_s1 + $0x160] sm:$0xf] }
   0x2   :  { %v7464_v2 = vld [vmem:[%s14912_s1 + $0x1f0] sm:$0xf]  ;;  %v7401_v3 = vor.u32 %v8789_v1, %v7400_v0  ;;  %v8805_v4 = vld [vmem:[%s14912_s1 + $0x1f4] sm:$0xf0]  ;;  %v8787_v6 = vld [vmem:[%s14912_s1 + $0x164] sm:$0xf0] }
   0x3   :  { %v7465_v7 = vor.u32 %v8805_v4, %v7464_v2  ;;  %v7456_v8 = vld [vmem:[%s14912_s1 + $0x1e0] sm:$0xf]  ;;  %v8803_v9 = vld [vmem:[%s14912_s1 + $0x1e4] sm:$0xf0]  ;;  %v7393_v10 = vor.u32 %v8787_v6, %v7392_v5  ;;  %v7384_v12 = vld [vmem:[%s14912_s1 + $0x150] sm:$0xf] }
   0x4   :  { %611 = vmatpush.bf16.msra.mxu0 %v7401_v3  ;;  %9074 = vmatpush.bf16.msra.mxu2 %v7401_v3  ;;  %v7457_v11 = vor.u32 %v8803_v9, %v7456_v8  ;;  %v8785_v13 = vld [vmem:[%s14912_s1 + $0x154] sm:$0xf0]  ;;  %v7448_v14 = vld [vmem:[%s14912_s1 + $0x1d0] sm:$0xf]  ;;  %v7376_v18 = vld [vmem:[%s14912_s1 + $0x140] sm:$0xf] }
   0x5   :  { %684 = vmatpush.bf16.msra.mxu1 %v7465_v7  ;;  %9082 = vmatpush.bf16.msra.mxu3 %v7465_v7  ;;  %v8801_v15 = vld [vmem:[%s14912_s1 + $0x1d4] sm:$0xf0]  ;;  %v7385_v16 = vor.u32 %v8785_v13, %v7384_v12  ;;  %v8783_v19 = vld [vmem:[%s14912_s1 + $0x144] sm:$0xf0]  ;;  %v7440_v20 = vld [vmem:[%s14912_s1 + $0x1c0] sm:$0xf] }
   0x6   :  { %v7449_v17 = vor.u32 %v8801_v15, %v7448_v14  ;;  %v8799_v21 = vld [vmem:[%s14912_s1 + $0x1c4] sm:$0xf0]  ;;  %v24_v22 = vld [vmem:[%s14911_s0] sm:$0xff]  ;;  %v7377_v23 = vor.u32 %v8783_v19, %v7376_v18  ;;  %v7368_v24 = vld [vmem:[%s14912_s1 + $0x130] sm:$0xf] }
   0x7   :  { %v9317_v25 = vld [vmem:[%s14911_s0 + $0x8] sm:$0xff]  ;;  %v140_v26 = vunpack.c.l.b16 %v24_v22  ;;  %v7441_v27 = vor.u32 %v8799_v21, %v7440_v20  ;;  %v8781_v28 = vld [vmem:[%s14912_s1 + $0x134] sm:$0xf0]  ;;  %v7304_v30 = vld [vmem:[%s14911_s0 + $0x70] sm:$0xf]  ;;  %v141_v32 = vunpack.c.h.b16 %v24_v22 }
   0x8   :  { %612 = vmatpush.bf16.msra.mxu0 %v7393_v10  ;;  %9075 = vmatpush.bf16.msra.mxu2 %v7393_v10  ;;  %15082 = vst [vmem:[#allocation5_spill] sm:$0xff] %v9317_v25  ;;  %v14919_v29 = vunpack.c.l.b16 %v9317_v25  ;;  %v8733_v31 = vld [vmem:[%s14911_s0 + $0x74] sm:$0xf0]  ;;  %v14918_v33 = vunpack.c.h.b16 %v9317_v25  ;;  %v7432_v34 = vld [vmem:[%s14912_s1 + $0x1b0] sm:$0xf]  ;;  %v7369_v41 = vor.u32 %v8781_v28, %v7368_v24 }
   0x9   :  { %685 = vmatpush.bf16.msra.mxu1 %v7457_v11  ;;  %9083 = vmatpush.bf16.msra.mxu3 %v7457_v11  ;;  %v8797_v35 = vld [vmem:[%s14912_s1 + $0x1b4] sm:$0xf0]  ;;  %v7360_v36 = vld [vmem:[%s14912_s1 + $0x120] sm:$0xf]  ;;  %v8779_v37 = vld [vmem:[%s14912_s1 + $0x124] sm:$0xf0]  ;;  %v9361_v45 = vor.u32 %v8733_v31, %v7304_v30 }
   0xa   :  { %v7256_v38 = vld [vmem:[%s14911_s0 + $0x10] sm:$0xf]  ;;  %v8721_v39 = vld [vmem:[%s14911_s0 + $0x14] sm:$0xf0]  ;;  %v7312_v40 = vld [vmem:[%s14911_s0 + $0x80] sm:$0xf]  ;;  %v9356_v43 = vpack.c.b16 %v14919_v29, %v140_v26  ;;  %v7433_v48 = vor.u32 %v8797_v35, %v7432_v34  ;;  %v9380_v52 = vpack.c.b16 %v14918_v33, %v141_v32  ;;  %v7361_v62 = vor.u32 %v8779_v37, %v7360_v36 }
   0xb   :  { %v7424_v42 = vld [vmem:[%s14912_s1 + $0x1a0] sm:$0xf]  ;;  %v8735_v44 = vld [vmem:[%s14911_s0 + $0x84] sm:$0xf0]  ;;  %v8732_v46 = vld [vmem:[%s14911_s0 + $0x74] sm:$0xf]  ;;  %v9400_v59 = vor.u32 %v8721_v39, %v7256_v38 }
   0xc   :  { %613 = vmatpush.bf16.msra.mxu0 %v7385_v16  ;;  %9076 = vmatpush.bf16.msra.mxu2 %v7385_v16  ;;  %v7306_v47 = vld [vmem:[%s14911_s0 + $0x78] sm:$0xf0]  ;;  %v8795_v49 = vld [vmem:[%s14912_s1 + $0x1a4] sm:$0xf0]  ;;  %v8720_v50 = vld [vmem:[%s14911_s0 + $0x14] sm:$0xf]  ;;  %v9402_v60 = vor.u32 %v8735_v44, %v7312_v40 }
   0xd   :  { %686 = vmatpush.bf16.msra.mxu1 %v7449_v17  ;;  %9084 = vmatpush.bf16.msra.mxu3 %v7449_v17  ;;  %v7258_v51 = vld [vmem:[%s14911_s0 + $0x18] sm:$0xf0]  ;;  %v7352_v53 = vld [vmem:[%s14912_s1 + $0x110] sm:$0xf]  ;;  %v8734_v54 = vld [vmem:[%s14911_s0 + $0x84] sm:$0xf]  ;;  %v9404_v61 = vor.u32 %v8732_v46, %v7306_v47  ;;  %v7425_v2 = vor.u32 %v8795_v49, %v7424_v42 }
   0xe   :  { %v7314_v55 = vld [vmem:[%s14911_s0 + $0x88] sm:$0xf0]  ;;  %v8777_v56 = vld [vmem:[%s14912_s1 + $0x114] sm:$0xf0]  ;;  %v7416_v57 = vld [vmem:[%s14912_s1 + $0x190] sm:$0xf]  ;;  %v9408_v1 = vor.u32 %v8720_v50, %v7258_v51 }
   0xf   :  { %v8793_v58 = vld [vmem:[%s14912_s1 + $0x194] sm:$0xf0]  ;;  %v222_v63 = vshll.u32 %v9356_v43, 16  ;;  %v327_v0 = vshll.u32 %v9361_v45, 16  ;;  %v234_v3 = vshll.u32 %v9380_v52, 16  ;;  %v9411_v4 = vor.u32 %v8734_v54, %v7314_v55 }
  0x10   :  { %614 = vmatpush.bf16.msra.mxu0 %v7377_v23  ;;  %9077 = vmatpush.bf16.msra.mxu2 %v7377_v23  ;;  %v335_v5 = vshll.u32 %v9404_v61, 16  ;;  %v7353_v6 = vor.u32 %v8777_v56, %v7352_v53  ;;  %v7417_v7 = vor.u32 %v8793_v58, %v7416_v57  ;;  %v7344_v8 = vld [vmem:[%s14912_s1 + $0x100] sm:$0xf]  ;;  %v8775_v9 = vld [vmem:[%s14912_s1 + $0x104] sm:$0xf0]  ;;  %v220_v11 = vshrl.u32 %v9356_v43, 16 }
  0x11   :  { %687 = vmatpush.bf16.msra.mxu1 %v7441_v27  ;;  %9085 = vmatpush.bf16.msra.mxu3 %v7441_v27  ;;  %v7408_v10 = vld [vmem:[%s14912_s1 + $0x180] sm:$0xf]  ;;  %v227_v12 = vshll.u32 %v9400_v59, 16  ;;  %v339_v13 = vshrl.u32 %v9361_v45, 16  ;;  %v343_v14 = vshll.u32 %v9402_v60, 16  ;;  %v224_v16 = vrot.slane %v222_v63, 1 }
  0x12   :  { %v8791_v15 = vld [vmem:[%s14912_s1 + $0x184] sm:$0xf0]  ;;  %v9430_v17 = vrot.slane %v327_v0, 1  ;;  %v232_v18 = vshrl.u32 %v9380_v52, 16  ;;  %v239_v19 = vshll.u32 %v9408_v1, 16  ;;  %v236_v20 = vrot.slane %v234_v3, 1 }
  0x13   :  { %v9434_v21 = vrot.slane %v335_v5, 1  ;;  %v347_v22 = vshrl.u32 %v9404_v61, 16  ;;  %v351_v23 = vshll.u32 %v9411_v4, 16  ;;  %v8788_v24 = vld [vmem:[%s14912_s1 + $0x174] sm:$0xf]  ;;  %v7345_v26 = vor.u32 %v8775_v9, %v7344_v8 }
  0x14   :  { %615 = vmatpush.bf16.msra.mxu0 %v7369_v41  ;;  %9078 = vmatpush.bf16.msra.mxu2 %v7369_v41  ;;  %v7409_v27 = vor.u32 %v8791_v15, %v7408_v10  ;;  %v7402_v28 = vld [vmem:[%s14912_s1 + $0x178] sm:$0xf0]  ;;  %v8804_v30 = vld [vmem:[%s14912_s1 + $0x1f4] sm:$0xf]  ;;  %v225_v32 = vor.u32 %v224_v16, %v220_v11  ;;  %v9450_v34 = vrot.slane %v227_v12, 1  ;;  %v341_v35 = vor.u32 %v339_v13, %v9430_v17 }
  0x15   :  { %688 = vmatpush.bf16.msra.mxu1 %v7433_v48  ;;  %9086 = vmatpush.bf16.msra.mxu3 %v7433_v48  ;;  %v7466_v31 = vld [vmem:[%s14912_s1 + $0x1f8] sm:$0xf0]  ;;  %v9453_v36 = vrot.slane %v343_v14, 1  ;;  %v237_v37 = vor.u32 %v236_v20, %v232_v18  ;;  %v9455_v38 = vrot.slane %v239_v19, 1  ;;  %v349_v39 = vor.u32 %v347_v22, %v9434_v21  ;;  %v8786_v41 = vld [vmem:[%s14912_s1 + $0x164] sm:$0xf] }
  0x16   :  { %v9458_v40 = vrot.slane %v351_v23, 1  ;;  %v7405_v42 = vor.u32 %v8788_v24, %v7402_v28  ;;  %v7469_v44 = vor.u32 %v8804_v30, %v7466_v31  ;;  %v7394_v46 = vld [vmem:[%s14912_s1 + $0x168] sm:$0xf0]  ;;  %v8802_v47 = vld [vmem:[%s14912_s1 + $0x1e4] sm:$0xf]  ;;  %v9483_v53 = vsel %vm218_vm0, %v225_v32, %v9450_v34 }
  0x17   :  { %v7458_v48 = vld [vmem:[%s14912_s1 + $0x1e8] sm:$0xf0]  ;;  %v7264_v49 = vld [vmem:[%s14911_s0 + $0x20] sm:$0xf]  ;;  %v8723_v50 = vld [vmem:[%s14911_s0 + $0x24] sm:$0xf0]  ;;  %v9487_v54 = vsel %vm218_vm0, %v341_v35, %v9453_v36  ;;  %v9500_v58 = vsel %vm218_vm0, %v237_v37, %v9455_v38  ;;  %v7397_v0 = vor.u32 %v8786_v41, %v7394_v46 }
  0x18   :  { %616 = vmatpush.bf16.msra.mxu0 %v7361_v62  ;;  %9079 = vmatpush.bf16.msra.mxu2 %v7361_v62  ;;  %v7320_v51 = vld [vmem:[%s14911_s0 + $0x90] sm:$0xf]  ;;  %v8737_v55 = vld [vmem:[%s14911_s0 + $0x94] sm:$0xf0]  ;;  %v8722_v56 = vld [vmem:[%s14911_s0 + $0x24] sm:$0xf]  ;;  %v9504_v62 = vsel %vm218_vm0, %v349_v39, %v9458_v40 }
  0x19   :  { %689 = vmatpush.bf16.msra.mxu1 %v7425_v2  ;;  %9087 = vmatpush.bf16.msra.mxu3 %v7425_v2  ;;  %v7266_v57 = vld [vmem:[%s14911_s0 + $0x28] sm:$0xf0]  ;;  %v8736_v63 = vld [vmem:[%s14911_s0 + $0x94] sm:$0xf]  ;;  %v7461_v2 = vor.u32 %v8802_v47, %v7458_v48  ;;  %v7322_v3 = vld [vmem:[%s14911_s0 + $0x98] sm:$0xf0] }
  0x1a   :  { %v8784_v5 = vld [vmem:[%s14912_s1 + $0x154] sm:$0xf] }
  0x1c   :  { %617 = vmatpush.bf16.msra.mxu0 %v7353_v6  ;;  %9080 = vmatpush.bf16.msra.mxu2 %v7353_v6 }
  0x1d   :  { %690 = vmatpush.bf16.msra.mxu1 %v7417_v7  ;;  %9088 = vmatpush.bf16.msra.mxu3 %v7417_v7 }
  0x20   :  { %618 = vmatpush.bf16.msra.mxu0 %v7345_v26  ;;  %9081 = vmatpush.bf16.msra.mxu2 %v7345_v26 }
  0x21   :  { %691 = vmatpush.bf16.msra.mxu1 %v7409_v27  ;;  %9089 = vmatpush.bf16.msra.mxu3 %v7409_v27 }
  0x24   :  { %757 = vmatpush.bf16.msrb.mxu2 %v7405_v42 }
  0x25   :  { %830 = vmatpush.bf16.msrb.mxu3 %v7469_v44 }
  0x26   :  { %11 = vsyncpa [#allocation3], 0  ;;  %619 = vmatmul.bf16.vlgmr.msra.gmra.mxu0 %v9483_v53  ;;  %654 = vmatmul.bf16.vlgmr.msra.gmra.mxu2 %v9487_v54  ;;  %v7386_v6 = vld [vmem:[%s14912_s1 + $0x158] sm:$0xf0]  ;;  %v8800_v7 = vld [vmem:[%s14912_s1 + $0x1d4] sm:$0xf]  ;;  %v9528_v9 = vor.u32 %v8723_v50, %v7264_v49  ;;  %v9530_v10 = vor.u32 %v8737_v55, %v7320_v51  ;;  %v9532_v11 = vor.u32 %v8722_v56, %v7266_v57 }
  0x27   :  { %v7450_v8 = vld [vmem:[%s14912_s1 + $0x1d8] sm:$0xf0]  ;;  %692 = vmatmul.bf16.vlgmr.msra.gmra.mxu1 %v9500_v58  ;;  %727 = vmatmul.bf16.vlgmr.msra.gmra.mxu3 %v9504_v62  ;;  %v9534_v12 = vor.u32 %v8736_v63, %v7322_v3  ;;  %v7389_v13 = vor.u32 %v8784_v5, %v7386_v6  ;;  %v8782_v15 = vld [vmem:[%s14912_s1 + $0x144] sm:$0xf]  ;;  %v7378_v16 = vld [vmem:[%s14912_s1 + $0x148] sm:$0xf0] }
  0x28   :  { %758 = vmatpush.bf16.msrb.mxu2 %v7397_v0  ;;  %v7453_v14 = vor.u32 %v8800_v7, %v7450_v8  ;;  %v8798_v18 = vld [vmem:[%s14912_s1 + $0x1c4] sm:$0xf]  ;;  %v7442_v19 = vld [vmem:[%s14912_s1 + $0x1c8] sm:$0xf0]  ;;  %v243_v20 = vshrl.u32 %v9400_v59, 16  ;;  %v247_v22 = vshll.u32 %v9528_v9, 16  ;;  %v7381_v31 = vor.u32 %v8782_v15, %v7378_v16 }
  0x29   :  { %15083 = vst [vmem:[#allocation6_spill] sm:$0xff] %v9534_v12  ;;  %831 = vmatpush.bf16.msrb.mxu3 %v7461_v2  ;;  %v355_v23 = vshrl.u32 %v9402_v60, 16  ;;  %v359_v24 = vshll.u32 %v9530_v10, 16  ;;  %v251_v26 = vshrl.u32 %v9408_v1, 16  ;;  %v255_v27 = vshll.u32 %v9532_v11, 16  ;;  %s7242_s8 = sshll.u32 %s14917_s6, 4  ;;  %s7243_s8 = int_to_ptr.hbm [resolvable:$true] %s7242_s8 }
  0x2a   :  { %v363_v28 = vshrl.u32 %v9411_v4, 16  ;;  %v367_v30 = vshll.u32 %v9534_v12, 16  ;;  %v7445_v32 = vor.u32 %v8798_v18, %v7442_v19  ;;  %v245_v35 = vor.u32 %v243_v20, %v9450_v34  ;;  %v7272_v34 = vld [vmem:[%s14911_s0 + $0x30] sm:$0xf]  ;;  %v7328_v50 = vld [vmem:[%s14911_s0 + $0xa0] sm:$0xf] }
  0x2b   :  { %v249_v37 = vrot.slane %v247_v22, 1  ;;  %v357_v39 = vor.u32 %v355_v23, %v9453_v36  ;;  %v361_v41 = vrot.slane %v359_v24, 1  ;;  %v253_v42 = vor.u32 %v251_v26, %v9455_v38  ;;  %v8725_v36 = vld [vmem:[%s14911_s0 + $0x34] sm:$0xf0]  ;;  %v8739_v51 = vld [vmem:[%s14911_s0 + $0xa4] sm:$0xf0] }
  0x2c   :  { %759 = vmatpush.bf16.msrb.mxu2 %v7389_v13  ;;  %v257_v44 = vrot.slane %v255_v27, 1  ;;  %v365_v46 = vor.u32 %v363_v28, %v9458_v40  ;;  %v369_v47 = vrot.slane %v367_v30, 1  ;;  %v8724_v55 = vld [vmem:[%s14911_s0 + $0x34] sm:$0xf]  ;;  %v7274_v56 = vld [vmem:[%s14911_s0 + $0x38] sm:$0xf0]  ;;  %v9600_v0 = vor.u32 %v8725_v36, %v7272_v34 }
  0x2d   :  { %832 = vmatpush.bf16.msrb.mxu3 %v7453_v14  ;;  %v9561_v48 = vsel %vm218_vm0, %v245_v35, %v249_v37  ;;  %v9564_v49 = vsel %vm218_vm0, %v357_v39, %v361_v41  ;;  %v8738_v57 = vld [vmem:[%s14911_s0 + $0xa4] sm:$0xf]  ;;  %v7330_v63 = vld [vmem:[%s14911_s0 + $0xa8] sm:$0xf0]  ;;  %v9602_v2 = vor.u32 %v8739_v51, %v7328_v50  ;;  %v8780_v3 = vld [vmem:[%s14912_s1 + $0x134] sm:$0xf]  ;;  %v9613_v7 = vor.u32 %v8724_v55, %v7274_v56 }
  0x2e   :  { %v9573_v38 = vsel %vm218_vm0, %v253_v42, %v257_v44  ;;  %v9576_v40 = vsel %vm218_vm0, %v365_v46, %v369_v47  ;;  %v7370_v5 = vld [vmem:[%s14912_s1 + $0x138] sm:$0xf0]  ;;  %v8796_v6 = vld [vmem:[%s14912_s1 + $0x1b4] sm:$0xf]  ;;  %v9615_v8 = vor.u32 %v8738_v57, %v7330_v63  ;;  %v8778_v15 = vld [vmem:[%s14912_s1 + $0x124] sm:$0xf] }
  0x2f   :  { %15084 = vst [vmem:[#allocation7_spill] sm:$0xff] %v9602_v2  ;;  %v7373_v13 = vor.u32 %v8780_v3, %v7370_v5  ;;  %v7434_v14 = vld [vmem:[%s14912_s1 + $0x1b8] sm:$0xf0]  ;;  %v7362_v16 = vld [vmem:[%s14912_s1 + $0x128] sm:$0xf0]  ;;  %v259_v22 = vshrl.u32 %v9528_v9, 16 }
  0x30   :  { %760 = vmatpush.bf16.msrb.mxu2 %v7381_v31  ;;  %15085 = vst [vmem:[#allocation8_spill] sm:$0xff] %v9615_v8  ;;  %v7437_v18 = vor.u32 %v8796_v6, %v7434_v14  ;;  %v8794_v19 = vld [vmem:[%s14912_s1 + $0x1a4] sm:$0xf]  ;;  %v7426_v20 = vld [vmem:[%s14912_s1 + $0x1a8] sm:$0xf0]  ;;  %v7365_v23 = vor.u32 %v8778_v15, %v7362_v16  ;;  %v263_v24 = vshll.u32 %v9600_v0, 16 }
  0x31   :  { %833 = vmatpush.bf16.msrb.mxu3 %v7445_v32  ;;  %v371_v26 = vshrl.u32 %v9530_v10, 16  ;;  %v375_v27 = vshll.u32 %v9602_v2, 16  ;;  %v7429_v28 = vor.u32 %v8794_v19, %v7426_v20  ;;  %v267_v30 = vshrl.u32 %v9532_v11, 16  ;;  %v7280_v63 = vld [vmem:[%s14911_s0 + $0x40] sm:$0xf]  ;;  %s9223_s9 = smov 128  }
  0x32   :  { %v271_v31 = vshll.u32 %v9613_v7, 16  ;;  %v379_v32 = vshrl.u32 %v9534_v12, 16  ;;  %v383_v35 = vshll.u32 %v9615_v8, 16  ;;  %v261_v39 = vor.u32 %v259_v22, %v249_v37  ;;  %v8727_v37 = vld [vmem:[%s14911_s0 + $0x44] sm:$0xf0]  ;;  %s9224_s10 = smov 8  }
  0x33   :  { %v265_v42 = vrot.slane %v263_v24, 1  ;;  %v373_v46 = vor.u32 %v371_v26, %v361_v41  ;;  %v377_v34 = vrot.slane %v375_v27, 1  ;;  %v269_v36 = vor.u32 %v267_v30, %v257_v44  ;;  %v8741_v3 = vld [vmem:[%s14911_s0 + $0xb4] sm:$0xf0]  ;;  %v8726_v5 = vld [vmem:[%s14911_s0 + $0x44] sm:$0xf] }
  0x34   :  { %761 = vmatpush.bf16.msrb.mxu2 %v7373_v13  ;;  %v273_v50 = vrot.slane %v271_v31, 1  ;;  %v381_v51 = vor.u32 %v379_v32, %v369_v47  ;;  %v385_v55 = vrot.slane %v383_v35, 1  ;;  %v7336_v47 = vld [vmem:[%s14911_s0 + $0xb0] sm:$0xf]  ;;  %v7282_v6 = vld [vmem:[%s14911_s0 + $0x48] sm:$0xf0]  ;;  %v9680_v15 = vor.u32 %v8727_v37, %v7280_v63 }
  0x35   :  { %834 = vmatpush.bf16.msrb.mxu3 %v7437_v18  ;;  %v9641_v56 = vsel %vm218_vm0, %v261_v39, %v265_v42  ;;  %v9644_v57 = vsel %vm218_vm0, %v373_v46, %v377_v34  ;;  %v8740_v13 = vld [vmem:[%s14911_s0 + $0xb4] sm:$0xf]  ;;  %v7338_v14 = vld [vmem:[%s14911_s0 + $0xb8] sm:$0xf0]  ;;  %v9682_v16 = vor.u32 %v8741_v3, %v7336_v47  ;;  %v9693_v22 = vor.u32 %v8726_v5, %v7282_v6 }
  0x36   :  { %624 = vmatmul.bf16.gmra.mxu0 %v9561_v48  ;;  %659 = vmatmul.bf16.gmra.mxu2 %v9564_v49  ;;  %v9653_v41 = vsel %vm218_vm0, %v269_v36, %v273_v50  ;;  %v9656_v44 = vsel %vm218_vm0, %v381_v51, %v385_v55  ;;  %v8776_v18 = vld [vmem:[%s14912_s1 + $0x114] sm:$0xf]  ;;  %v7354_v19 = vld [vmem:[%s14912_s1 + $0x118] sm:$0xf0]  ;;  %v279_v30 = vshll.u32 %v9680_v15, 16  ;;  %v387_v31 = vshrl.u32 %v9602_v2, 16 }
  0x37   :  { %697 = vmatmul.bf16.gmra.mxu1 %v9573_v38  ;;  %732 = vmatmul.bf16.gmra.mxu3 %v9576_v40  ;;  %15086 = vst [vmem:[#allocation9_spill] sm:$0xff] %v9682_v16  ;;  %v8792_v20 = vld [vmem:[%s14912_s1 + $0x194] sm:$0xf]  ;;  %v7357_v24 = vor.u32 %v8776_v18, %v7354_v19  ;;  %v7418_v26 = vld [vmem:[%s14912_s1 + $0x198] sm:$0xf0]  ;;  %v391_v32 = vshll.u32 %v9682_v16, 16 }
  0x38   :  { %762 = vmatpush.bf16.msrb.mxu2 %v7365_v23  ;;  %v9695_v23 = vor.u32 %v8740_v13, %v7338_v14  ;;  %v7421_v27 = vor.u32 %v8792_v20, %v7418_v26  ;;  %v283_v35 = vshrl.u32 %v9613_v7, 16  ;;  %v287_v39 = vshll.u32 %v9693_v22, 16  ;;  %v48_v14 = vld [vmem:[%s14911_s0 + $0xc0] sm:$0xff]  ;;  %v81_v18 = vld [vmem:[%s14911_s0 + $0xc8] sm:$0x11] }
  0x39   :  { %835 = vmatpush.bf16.msrb.mxu3 %v7429_v28  ;;  %v275_v28 = vshrl.u32 %v9600_v0, 16  ;;  %v395_v46 = vshrl.u32 %v9615_v8, 16  ;;  %v9708_v63 = vrot.slane %v279_v30, 1  ;;  %v389_v37 = vor.u32 %v387_v31, %v377_v34  ;;  %v8729_v26 = vld [vmem:[%s14911_s0 + $0x54] sm:$0xf0] }
  0x3a   :  { %15087 = vst [vmem:[#allocation10_spill] sm:$0xff] %v9695_v23  ;;  %v399_v36 = vshll.u32 %v9695_v23, 16  ;;  %v9710_v47 = vrot.slane %v391_v32, 1  ;;  %v285_v3 = vor.u32 %v283_v35, %v273_v50  ;;  %v9712_v5 = vrot.slane %v287_v39, 1  ;;  %v7288_v50 = vld [vmem:[%s14911_s0 + $0x50] sm:$0xf] }
  0x3b   :  { %v277_v51 = vor.u32 %v275_v28, %v265_v42  ;;  %v397_v6 = vor.u32 %v395_v46, %v385_v55  ;;  %v9733_v55 = vunpack.c.l.b16 %v48_v14  ;;  %v190_v19 = vunpack.c.l.b16 %v81_v18  ;;  %v7290_v28 = vld [vmem:[%s14911_s0 + $0x58] sm:$0xf0]  ;;  %v7528_v32 = vld [vmem:[%s14912_s1 + $0x70] sm:$0xf]  ;;  %v8757_v35 = vld [vmem:[%s14912_s1 + $0x74] sm:$0xf0] }
  0x3c   :  { %763 = vmatpush.bf16.msrb.mxu2 %v7357_v24  ;;  %v9714_v13 = vrot.slane %v399_v36, 1  ;;  %v9728_v34 = vsel %vm218_vm0, %v389_v37, %v9710_v47  ;;  %v9737_v20 = vsel %vm218_vm0, %v285_v3, %v9712_v5  ;;  %v9752_v30 = vunpack.c.h.b16 %v48_v14  ;;  %v7592_v39 = vld [vmem:[%s14912_s1 + $0xf0] sm:$0xf]  ;;  %v8774_v14 = vld [vmem:[%s14912_s1 + $0x104] sm:$0xf] }
  0x3d   :  { %836 = vmatpush.bf16.msrb.mxu3 %v7421_v27  ;;  %v9724_v42 = vsel %vm218_vm0, %v277_v51, %v9708_v63  ;;  %15088 = vst [vmem:[#allocation11_spill] sm:$0xff] %v9733_v55  ;;  %v8728_v27 = vld [vmem:[%s14911_s0 + $0x54] sm:$0xf]  ;;  %v191_v31 = vunpack.c.h.b16 %v81_v18  ;;  %v291_v46 = vshrl.u32 %v9680_v15, 16  ;;  %v7529_v36 = vor.u32 %v8757_v35, %v7528_v32  ;;  %v8773_v51 = vld [vmem:[%s14912_s1 + $0xf4] sm:$0xf0] }
  0x3e   :  { %v9741_v24 = vsel %vm218_vm0, %v397_v6, %v9714_v13  ;;  %15090 = vst [vmem:[#allocation13_spill] sm:$0xff] %v9752_v30  ;;  %v9771_v37 = vor.u32 %v8729_v26, %v7288_v50  ;;  %v9774_v3 = vpack.c.b16 %v190_v19, %v9733_v55  ;;  %v7593_v6 = vor.u32 %v8773_v51, %v7592_v39  ;;  %v7346_v18 = vld [vmem:[%s14912_s1 + $0x108] sm:$0xf0]  ;;  %v8790_v32 = vld [vmem:[%s14912_s1 + $0x184] sm:$0xf] }
  0x3f   :  { %15089 = vst [vmem:[#allocation12_spill] sm:$0xff] %v9741_v24  ;;  %v9785_v35 = vor.u32 %v8728_v27, %v7290_v28  ;;  %v9788_v50 = vpack.c.b16 %v191_v31, %v9752_v30  ;;  %1091 = vmatpush.bf16.msrb.mxu0 %v7529_v36  ;;  %v7349_v19 = vor.u32 %v8774_v14, %v7346_v18  ;;  %v7410_v26 = vld [vmem:[%s14912_s1 + $0x188] sm:$0xf0]  ;;  %v7520_v39 = vld [vmem:[%s14912_s1 + $0x60] sm:$0xf]  ;;  %vm1421_vm1 = vcmask 1046528  }
  0x40   :  { %15091 = vst [vmem:[#allocation14_spill] sm:$0xff] %v9774_v3  ;;  %v8755_v51 = vld [vmem:[%s14912_s1 + $0x64] sm:$0xf0]  ;;  %1164 = vmatpush.bf16.msrb.mxu1 %v7593_v6  ;;  %v7413_v27 = vor.u32 %v8790_v32, %v7410_v26  ;;  %v7584_v31 = vld [vmem:[%s14912_s1 + $0xe0] sm:$0xf]  ;;  %v407_v33 = vshll.u32 %v9774_v3, 16 }
  0x41   :  { %15092 = vst [vmem:[#allocation15_spill] sm:$0xff] %v9788_v50  ;;  %v7521_v28 = vor.u32 %v8755_v51, %v7520_v39  ;;  %v8771_v36 = vld [vmem:[%s14912_s1 + $0xe4] sm:$0xf0]  ;;  %v7512_v14 = vld [vmem:[%s14912_s1 + $0x50] sm:$0xf]  ;;  %764 = vmatpush.bf16.msrb.mxu2 %v7349_v19  ;;  %v295_v39 = vshll.u32 %v9771_v37, 16 }
  0x42   :  { %v7585_v18 = vor.u32 %v8771_v36, %v7584_v31  ;;  %v8753_v6 = vld [vmem:[%s14912_s1 + $0x54] sm:$0xf0]  ;;  %v7576_v32 = vld [vmem:[%s14912_s1 + $0xd0] sm:$0xf]  ;;  %v403_v51 = vshrl.u32 %v9682_v16, 16  ;;  %v299_v19 = vshrl.u32 %v9693_v22, 16  ;;  %837 = vmatpush.bf16.msrb.mxu3 %v7413_v27  ;;  %v293_v27 = vor.u32 %v291_v46, %v9708_v63 }
  0x43   :  { %v8769_v26 = vld [vmem:[%s14912_s1 + $0xd4] sm:$0xf0]  ;;  %v303_v31 = vshll.u32 %v9785_v35, 16  ;;  %v411_v36 = vshrl.u32 %v9695_v23, 16  ;;  %v415_v29 = vshll.u32 %v9788_v50, 16  ;;  %1092 = vmatpush.bf16.msrb.mxu0 %v7521_v28  ;;  %v7513_v25 = vor.u32 %v8753_v6, %v7512_v14 }
  0x44   :  { %1165 = vmatpush.bf16.msrb.mxu1 %v7585_v18  ;;  %v7577_v30 = vor.u32 %v8769_v26, %v7576_v32  ;;  %v7504_v55 = vld [vmem:[%s14912_s1 + $0x40] sm:$0xf]  ;;  %v8751_v16 = vld [vmem:[%s14912_s1 + $0x44] sm:$0xf0]  ;;  %v9837_v14 = vrot.slane %v295_v39, 1  ;;  %v405_v18 = vor.u32 %v403_v51, %v9710_v47  ;;  %v9840_v6 = vrot.slane %v407_v33, 1 }
  0x45   :  { %v7568_v23 = vld [vmem:[%s14912_s1 + $0xc0] sm:$0xf]  ;;  %v8767_v28 = vld [vmem:[%s14912_s1 + $0xc4] sm:$0xf0]  ;;  %v301_v32 = vor.u32 %v299_v19, %v9712_v5  ;;  %v9843_v26 = vrot.slane %v303_v31, 1  ;;  %v413_v63 = vor.u32 %v411_v36, %v9714_v13  ;;  %v9846_v46 = vrot.slane %v415_v29, 1 }
  0x46   :  { %629 = vmatmul.bf16.gmra.mxu0 %v9641_v56  ;;  %664 = vmatmul.bf16.gmra.mxu2 %v9644_v57  ;;  %v7505_v8 = vor.u32 %v8751_v16, %v7504_v55  ;;  %v7569_v2 = vor.u32 %v8767_v28, %v7568_v23  ;;  %v9850_v39 = vsel %vm218_vm0, %v293_v27, %v9837_v14  ;;  %v7296_v47 = vld [vmem:[%s14911_s0 + $0x60] sm:$0xf]  ;;  %v8731_v16 = vld [vmem:[%s14911_s0 + $0x64] sm:$0xf0]  ;;  %v8730_v23 = vld [vmem:[%s14911_s0 + $0x64] sm:$0xf] }
  0x47   :  { %702 = vmatmul.bf16.gmra.mxu1 %v9653_v41  ;;  %737 = vmatmul.bf16.gmra.mxu3 %v9656_v44  ;;  %v9854_v33 = vsel %vm218_vm0, %v405_v18, %v9840_v6  ;;  %v9861_v29 = vsel %vm218_vm0, %v301_v32, %v9843_v26  ;;  %v7298_v5 = vld [vmem:[%s14911_s0 + $0x68] sm:$0xf0]  ;;  %v7496_v13 = vld [vmem:[%s14912_s1 + $0x30] sm:$0xf]  ;;  %v8749_v55 = vld [vmem:[%s14912_s1 + $0x34] sm:$0xf0] }
  0x48   :  { %1093 = vmatpush.bf16.msrb.mxu0 %v7513_v25  ;;  %1166 = vmatpush.bf16.msrb.mxu1 %v7577_v30  ;;  %15093 = vst [vmem:[#allocation16_spill] sm:$0xff] %v9854_v33  ;;  %v9865_v25 = vsel %vm218_vm0, %v413_v63, %v9846_v46  ;;  %v7560_v30 = vld [vmem:[%s14912_s1 + $0xb0] sm:$0xf]  ;;  %v7497_v51 = vor.u32 %v8749_v55, %v7496_v13  ;;  %v8756_v19 = vld [vmem:[%s14912_s1 + $0x74] sm:$0xf]  ;;  %vm3577_vm3 = vcmask 1045504  }
  0x49   :  { %15094 = vst [vmem:[#allocation17_spill] sm:$0xff] %v9865_v25  ;;  %v7530_v31 = vld [vmem:[%s14912_s1 + $0x78] sm:$0xf0]  ;;  %v8772_v36 = vld [vmem:[%s14912_s1 + $0xf4] sm:$0xf]  ;;  %v9903_v28 = vor.u32 %v8730_v23, %v7298_v5  ;;  %vm5733_vm5 = vcmask 1044480  }
  0x4a   :  { %v7533_v18 = vor.u32 %v8756_v19, %v7530_v31  ;;  %v7594_v32 = vld [vmem:[%s14912_s1 + $0xf8] sm:$0xf0]  ;;  %v7488_v63 = vld [vmem:[%s14912_s1 + $0x20] sm:$0xf]  ;;  %v8763_v5 = vld [vmem:[%s14912_s1 + $0xa4] sm:$0xf0] }
  0x4b   :  { %v7552_v23 = vld [vmem:[%s14912_s1 + $0xa0] sm:$0xf]  ;;  %v7480_v55 = vld [vmem:[%s14912_s1 + $0x10] sm:$0xf]  ;;  %v8761_v19 = vld [vmem:[%s14912_s1 + $0x94] sm:$0xf0] }
  0x4c   :  { %1094 = vmatpush.bf16.msrb.mxu0 %v7505_v8  ;;  %1167 = vmatpush.bf16.msrb.mxu1 %v7569_v2  ;;  %v8765_v2 = vld [vmem:[%s14912_s1 + $0xb4] sm:$0xf0]  ;;  %v9892_v8 = vor.u32 %v8731_v16, %v7296_v47  ;;  %v8747_v47 = vld [vmem:[%s14912_s1 + $0x24] sm:$0xf0]  ;;  %v7597_v16 = vor.u32 %v8772_v36, %v7594_v32  ;;  %v307_v31 = vshrl.u32 %v9771_v37, 16  ;;  %vm6446_vm6 = vcmask 523264  }
  0x4d   :  { %v7561_v27 = vor.u32 %v8765_v2, %v7560_v30  ;;  %v7489_v13 = vor.u32 %v8747_v47, %v7488_v63  ;;  %1237 = vmatpush.bf16.msra.mxu2 %v7533_v18  ;;  %v7553_v30 = vor.u32 %v8763_v5, %v7552_v23  ;;  %v7544_v2 = vld [vmem:[%s14912_s1 + $0x90] sm:$0xf]  ;;  %v319_v18 = vshll.u32 %v9903_v28, 16  ;;  %v7472_v47 = vld [vmem:[%s14912_s1] sm:$0xf] }
  0x4e   :  { %v311_v36 = vshll.u32 %v9892_v8, 16  ;;  %1310 = vmatpush.bf16.msra.mxu3 %v7597_v16  ;;  %v7545_v63 = vor.u32 %v8761_v19, %v7544_v2  ;;  %v8743_v23 = vld [vmem:[%s14912_s1 + $0x4] sm:$0xf0]  ;;  %v419_v5 = vshrl.u32 %v9774_v3, 16  ;;  %v7536_v16 = vld [vmem:[%s14912_s1 + $0x80] sm:$0xf] }
  0x4f   :  { %v321_v19 = vrot.slane %v319_v18, 1  ;;  %vm2778_vm2 = vsmask.f32 6400  ;;  %vm4934_vm4 = vsmask.f32 5376 }
  0x50   :  { %1095 = vmatpush.bf16.msrb.mxu0 %v7497_v51  ;;  %1168 = vmatpush.bf16.msrb.mxu1 %v7561_v27  ;;  %v8745_v51 = vld [vmem:[%s14912_s1 + $0x14] sm:$0xf0]  ;;  %v315_v27 = vshrl.u32 %v9785_v35, 16 }
  0x51   :  { %v7481_v32 = vor.u32 %v8745_v51, %v7480_v55  ;;  %v309_v55 = vor.u32 %v307_v31, %v9837_v14  ;;  %v422_v51 = vshrl.u32 %v9788_v50, 16  ;;  %v7632_v50 = vld [vmem:[%s14912_s1 + $0x240] sm:$0xf] }
  0x52   :  { %v317_v2 = vor.u32 %v315_v27, %v9843_v26  ;;  %v7522_v26 = vld [vmem:[%s14912_s1 + $0x68] sm:$0xf0]  ;;  %v331_v27 = vshrl.u32 %v9903_v28, 16 }
  0x54   :  { %1096 = vmatpush.bf16.msrb.mxu0 %v7489_v13  ;;  %1169 = vmatpush.bf16.msrb.mxu1 %v7553_v30  ;;  %v8759_v13 = vld [vmem:[%s14912_s1 + $0x84] sm:$0xf0]  ;;  %v313_v30 = vrot.slane %v311_v36, 1  ;;  %v9962_v14 = vsel %vm218_vm0, %v317_v2, %v321_v19  ;;  %v323_v36 = vshrl.u32 %v9892_v8, 16 }
  0x55   :  { %v7537_v3 = vor.u32 %v8759_v13, %v7536_v16 }
  0x56   :  { %634 = vmatmul.bf16.gmra.mxu0 %v9724_v42  ;;  %669 = vmatmul.bf16.gmra.mxu2 %v9728_v34  ;;  %v9956_v12 = vsel %vm218_vm0, %v309_v55, %v313_v30  ;;  %v325_v18 = vor.u32 %v323_v36, %v313_v30  ;;  %v8766_v36 = vld [vmem:[%s14912_s1 + $0xc4] sm:$0xf] }
  0x57   :  { %707 = vmatmul.bf16.gmra.mxu1 %v9737_v20  ;;  %742 = vmatmul.bf16.gmra.mxu3 %v9741_v24  ;;  %v9959_v24 = vor.u32 %v422_v51, %v9846_v46 }
  0x58   :  { %1097 = vmatpush.bf16.msrb.mxu0 %v7481_v32  ;;  %1170 = vmatpush.bf16.msrb.mxu1 %v7545_v63  ;;  %v333_v32 = vor.u32 %v331_v27, %v321_v19  ;;  %v9984_v63 = vsel %vm218_vm0, %v325_v18, %v9430_v17  ;;  %v8752_v17 = vld [vmem:[%s14912_s1 + $0x54] sm:$0xf]  ;;  %v7570_v18 = vld [vmem:[%s14912_s1 + $0xc8] sm:$0xf0] }
  0x5c   :  { %1171 = vmatpush.bf16.msrb.mxu1 %v7537_v3  ;;  %v8770_v3 = vld [vmem:[%s14912_s1 + $0xe4] sm:$0xf] }
  0x66   :  { %639 = vmatmul.bf16.gmra.mxu0 %v9850_v39  ;;  %674 = vmatmul.bf16.gmra.mxu2 %v9854_v33  ;;  %v9953_v33 = vor.u32 %v419_v5, %v9840_v6  ;;  %v8754_v6 = vld [vmem:[%s14912_s1 + $0x64] sm:$0xf] }
  0x67   :  { %712 = vmatmul.bf16.gmra.mxu1 %v9861_v29  ;;  %747 = vmatmul.bf16.gmra.mxu3 %v9865_v25  ;;  %v7473_v25 = vor.u32 %v8743_v23, %v7472_v47  ;;  %v7525_v46 = vor.u32 %v8754_v6, %v7522_v26  ;;  %v9988_v47 = vsel %vm218_vm0, %v333_v32, %v9434_v21  ;;  %v7514_v21 = vld [vmem:[%s14912_s1 + $0x58] sm:$0xf0] }
  0x68   :  { %v7573_v32 = vor.u32 %v8766_v36, %v7570_v18  ;;  %v7562_v36 = vld [vmem:[%s14912_s1 + $0xb8] sm:$0xf0] }
  0x69   :  { %1098 = vmatpush.bf16.msrb.mxu0 %v7473_v25  ;;  %v7586_v25 = vld [vmem:[%s14912_s1 + $0xe8] sm:$0xf0]  ;;  %1238 = vmatpush.bf16.msra.mxu2 %v7525_v46 }
  0x6a   :  { %v7589_v31 = vor.u32 %v8770_v3, %v7586_v25 }
  0x6c   :  { %1311 = vmatpush.bf16.msra.mxu3 %v7589_v31  ;;  %v7506_v31 = vld [vmem:[%s14912_s1 + $0x48] sm:$0xf0] }
  0x76   :  { %644 = vmatmul.bf16.gmra.mxu0 %v9956_v12  ;;  %679 = vmatmul.bf16.gmra.mxu2 %v9953_v33 }
  0x77   :  { %717 = vmatmul.bf16.gmra.mxu1 %v9962_v14  ;;  %752 = vmatmul.bf16.gmra.mxu3 %v9959_v24 }
  0x86   :  { %649 = vmatmul.bf16.gmra.mxu0 %v9984_v63  ;;  %765 = vmatmul.bf16.vlgmr.msrb.gmra.mxu2 %v9483_v53  ;;  %v8768_v53 = vld [vmem:[%s14912_s1 + $0xd4] sm:$0xf] }
  0x87   :  { %722 = vmatmul.bf16.gmra.mxu1 %v9988_v47  ;;  %838 = vmatmul.bf16.vlgmr.msrb.gmra.mxu3 %v9500_v58  ;;  %v7517_v58 = vor.u32 %v8752_v17, %v7514_v21 }
  0x89   :  { %1239 = vmatpush.bf16.msra.mxu2 %v7517_v58 }
  0x96   :  { %770 = vmatmul.bf16.gmra.mxu2 %v9561_v48  ;;  %1099 = vmatmul.bf16.vlgmr.msrb.gmra.mxu0 %v9356_v43  ;;  %v7578_v48 = vld [vmem:[%s14912_s1 + $0xd8] sm:$0xf0] }
  0x97   :  { %843 = vmatmul.bf16.gmra.mxu3 %v9573_v38  ;;  %1172 = vmatmul.bf16.vlgmr.msrb.gmra.mxu1 %v9380_v52  ;;  %v7581_v38 = vor.u32 %v8768_v53, %v7578_v48 }
  0x99   :  { %1312 = vmatpush.bf16.msra.mxu3 %v7581_v38 }
  0x9d   :  { %1313 = vmatpush.bf16.msra.mxu3 %v7573_v32 }
  0xa3   :  { %v620_v23 = vpop.f32.mrf.mxu0 }
  0xa4   :  { %v693_v5 = vpop.f32.mrf.mxu1 }
  0xa5   :  { %v10010_v16 = vadd.f32 %v693_v5, %v620_v23 }
  0xa6   :  { %775 = vmatmul.bf16.gmra.mxu2 %v9641_v56  ;;  %1104 = vmatmul.bf16.gmra.mxu0 %v9400_v59 }
  0xa7   :  { %848 = vmatmul.bf16.gmra.mxu3 %v9653_v41  ;;  %1177 = vmatmul.bf16.gmra.mxu1 %v9408_v1  ;;  %v8750_v41 = vld [vmem:[%s14912_s1 + $0x44] sm:$0xf] }
  0xa8   :  { %v7509_v27 = vor.u32 %v8750_v41, %v7506_v31  ;;  %v8748_v41 = vld [vmem:[%s14912_s1 + $0x34] sm:$0xf] }
  0xa9   :  { %v655_v13 = vpop.f32.mrf.mxu2 }
  0xaa   :  { %v728_v55 = vpop.f32.mrf.mxu3  ;;  %1240 = vmatpush.bf16.msra.mxu2 %v7509_v27 }
  0xab   :  { %v10016_v30 = vadd.f32 %v728_v55, %v655_v13  ;;  %v622_v51 = vpop.f32.mrf.mxu0 }
  0xac   :  { %v695_v2 = vpop.f32.mrf.mxu1 }
  0xad   :  { %v10018_v19 = vadd.f32 %v695_v2, %v622_v51 }
  0xb1   :  { %v657_v6 = vpop.f32.mrf.mxu2 }
  0xb2   :  { %v730_v26 = vpop.f32.mrf.mxu3 }
  0xb3   :  { %v10020_v3 = vadd.f32 %v730_v26, %v657_v6  ;;  %v625_v46 = vpop.f32.mrf.mxu0 }
  0xb4   :  { %v698_v56 = vpop.f32.mrf.mxu1 }
  0xb5   :  { %v10022_v25 = vadd.f32 %v698_v56, %v625_v46 }
  0xb6   :  { %780 = vmatmul.bf16.gmra.mxu2 %v9724_v42  ;;  %1109 = vmatmul.bf16.gmra.mxu0 %v9528_v9 }
  0xb7   :  { %853 = vmatmul.bf16.gmra.mxu3 %v9737_v20  ;;  %1182 = vmatmul.bf16.gmra.mxu1 %v9532_v11 }
  0xb9   :  { %v660_v17 = vpop.f32.mrf.mxu2 }
  0xba   :  { %v733_v21 = vpop.f32.mrf.mxu3 }
  0xbb   :  { %v10040_v53 = vadd.f32 %v733_v21, %v660_v17  ;;  %v627_v58 = vpop.f32.mrf.mxu0 }
  0xbc   :  { %v700_v42 = vpop.f32.mrf.mxu1 }
  0xbd   :  { %v10042_v48 = vadd.f32 %v700_v42, %v627_v58 }
  0xc1   :  { %v662_v38 = vpop.f32.mrf.mxu2 }
  0xc2   :  { %v735_v23 = vpop.f32.mrf.mxu3 }
  0xc3   :  { %v10044_v5 = vadd.f32 %v735_v23, %v662_v38  ;;  %v630_v13 = vpop.f32.mrf.mxu0 }
  0xc4   :  { %v703_v55 = vpop.f32.mrf.mxu1 }
  0xc5   :  { %v10046_v20 = vadd.f32 %v703_v55, %v630_v13 }
  0xc6   :  { %785 = vmatmul.bf16.gmra.mxu2 %v9850_v39  ;;  %1114 = vmatmul.bf16.gmra.mxu0 %v9600_v0  ;;  %v7498_v39 = vld [vmem:[%s14912_s1 + $0x38] sm:$0xf0] }
  0xc7   :  { %858 = vmatmul.bf16.gmra.mxu3 %v9861_v29  ;;  %1187 = vmatmul.bf16.gmra.mxu1 %v9613_v7  ;;  %v8764_v29 = vld [vmem:[%s14912_s1 + $0xb4] sm:$0xf]  ;;  %v7501_v31 = vor.u32 %v8748_v41, %v7498_v39 }
  0xc8   :  { %v7565_v27 = vor.u32 %v8764_v29, %v7562_v36  ;;  %v8762_v36 = vld [vmem:[%s14912_s1 + $0xa4] sm:$0xf] }
  0xc9   :  { %v665_v51 = vpop.f32.mrf.mxu2  ;;  %1241 = vmatpush.bf16.msra.mxu2 %v7501_v31  ;;  %v7490_v31 = vld [vmem:[%s14912_s1 + $0x28] sm:$0xf0] }
  0xca   :  { %v738_v2 = vpop.f32.mrf.mxu3  ;;  %1314 = vmatpush.bf16.msra.mxu3 %v7565_v27 }
  0xcb   :  { %v10052_v6 = vadd.f32 %v738_v2, %v665_v51  ;;  %v632_v26 = vpop.f32.mrf.mxu0 }
  0xcc   :  { %v705_v46 = vpop.f32.mrf.mxu1 }
  0xcd   :  { %v10054_v56 = vadd.f32 %v705_v46, %v632_v26 }
  0xd1   :  { %v667_v18 = vpop.f32.mrf.mxu2 }
  0xd2   :  { %v740_v32 = vpop.f32.mrf.mxu3 }
  0xd3   :  { %v10068_v17 = vadd.f32 %v740_v32, %v667_v18  ;;  %v635_v21 = vpop.f32.mrf.mxu0 }
  0xd4   :  { %v708_v58 = vpop.f32.mrf.mxu1 }
  0xd5   :  { %v10070_v42 = vadd.f32 %v708_v58, %v635_v21 }
  0xd6   :  { %790 = vmatmul.bf16.gmra.mxu2 %v9956_v12  ;;  %1119 = vmatmul.bf16.gmra.mxu0 %v9680_v15 }
  0xd7   :  { %863 = vmatmul.bf16.gmra.mxu3 %v9962_v14  ;;  %1192 = vmatmul.bf16.gmra.mxu1 %v9693_v22  ;;  %v8746_v14 = vld [vmem:[%s14912_s1 + $0x24] sm:$0xf] }
  0xd8   :  { %v7493_v27 = vor.u32 %v8746_v14, %v7490_v31  ;;  %v7720_v31 = vld [vmem:[%s14912_s1 + $0x2f0] sm:$0xf] }
  0xd9   :  { %v670_v38 = vpop.f32.mrf.mxu2 }
  0xda   :  { %v743_v23 = vpop.f32.mrf.mxu3  ;;  %1242 = vmatpush.bf16.msra.mxu2 %v7493_v27 }
  0xdb   :  { %v10076_v13 = vadd.f32 %v743_v23, %v670_v38  ;;  %v637_v55 = vpop.f32.mrf.mxu0 }
  0xdc   :  { %v710_v51 = vpop.f32.mrf.mxu1 }
  0xdd   :  { %v10078_v2 = vadd.f32 %v710_v51, %v637_v55  ;;  %v7656_v55 = vld [vmem:[%s14912_s1 + $0x270] sm:$0xf]  ;;  %v8821_v51 = vld [vmem:[%s14912_s1 + $0x274] sm:$0xf0] }
  0xe1   :  { %v672_v26 = vpop.f32.mrf.mxu2 }
  0xe2   :  { %v745_v46 = vpop.f32.mrf.mxu3 }
  0xe3   :  { %v10080_v41 = vadd.f32 %v745_v46, %v672_v26  ;;  %v640_v39 = vpop.f32.mrf.mxu0  ;;  %v7657_v26 = vor.u32 %v8821_v51, %v7656_v55 }
  0xe4   :  { %v713_v12 = vpop.f32.mrf.mxu1 }
  0xe5   :  { %v10082_v29 = vadd.f32 %v713_v12, %v640_v39  ;;  %1658 = vmatpush.bf16.msra.mxu0 %v7657_v26 }
  0xe6   :  { %795 = vmatmul.bf16.gmra.mxu2 %v9984_v63  ;;  %1124 = vmatmul.bf16.gmra.mxu0 %v9771_v37  ;;  %v7554_v63 = vld [vmem:[%s14912_s1 + $0xa8] sm:$0xf0] }
  0xe7   :  { %868 = vmatmul.bf16.gmra.mxu3 %v9988_v47  ;;  %1197 = vmatmul.bf16.gmra.mxu1 %v9785_v35  ;;  %v7557_v18 = vor.u32 %v8762_v36, %v7554_v63  ;;  %v8837_v36 = vld [vmem:[%s14912_s1 + $0x2f4] sm:$0xf0] }
  0xe8   :  { %v7721_v63 = vor.u32 %v8837_v36, %v7720_v31 }
  0xe9   :  { %v675_v47 = vpop.f32.mrf.mxu2  ;;  %1315 = vmatpush.bf16.msra.mxu3 %v7557_v18 }
  0xea   :  { %v748_v32 = vpop.f32.mrf.mxu3  ;;  %1731 = vmatpush.bf16.msra.mxu1 %v7721_v63 }
  0xeb   :  { %v10100_v21 = vadd.f32 %v748_v32, %v675_v47  ;;  %v642_v58 = vpop.f32.mrf.mxu0 }
  0xec   :  { %v715_v38 = vpop.f32.mrf.mxu1 }
  0xed   :  { %v10102_v23 = vadd.f32 %v715_v38, %v642_v58 }
  0xf1   :  { %v677_v46 = vpop.f32.mrf.mxu2 }
  0xf2   :  { %v750_v39 = vpop.f32.mrf.mxu3 }
  0xf3   :  { %v10110_v12 = vadd.f32 %v750_v39, %v677_v46  ;;  %v645_v14 = vpop.f32.mrf.mxu0 }
  0xf4   :  { %v718_v27 = vpop.f32.mrf.mxu1 }
  0xf5   :  { %v10118_v47 = vadd.f32 %v718_v27, %v645_v14  ;;  %v8760_v14 = vld [vmem:[%s14912_s1 + $0x94] sm:$0xf]  ;;  %v7546_v27 = vld [vmem:[%s14912_s1 + $0x98] sm:$0xf0] }
  0xf6   :  { %800 = vmatmul.bf16.gmra.mxu2 %v9487_v54  ;;  %1129 = vmatmul.bf16.gmra.mxu0 %v9892_v8  ;;  %v8744_v54 = vld [vmem:[%s14912_s1 + $0x14] sm:$0xf] }
  0xf7   :  { %873 = vmatmul.bf16.gmra.mxu3 %v9504_v62  ;;  %1202 = vmatmul.bf16.gmra.mxu1 %v9903_v28  ;;  %v7482_v62 = vld [vmem:[%s14912_s1 + $0x18] sm:$0xf0] }
  0xf8   :  { %v7485_v36 = vor.u32 %v8744_v54, %v7482_v62  ;;  %v7712_v62 = vld [vmem:[%s14912_s1 + $0x2e0] sm:$0xf] }
  0xf9   :  { %v680_v18 = vpop.f32.mrf.mxu2 }
  0xfa   :  { %v753_v32 = vpop.f32.mrf.mxu3  ;;  %1243 = vmatpush.bf16.msra.mxu2 %v7485_v36 }
  0xfb   :  { %v10124_v58 = vadd.f32 %v753_v32, %v680_v18  ;;  %v647_v38 = vpop.f32.mrf.mxu0  ;;  %v7549_v18 = vor.u32 %v8760_v14, %v7546_v27  ;;  %v8835_v14 = vld [vmem:[%s14912_s1 + $0x2e4] sm:$0xf0] }
  0xfc   :  { %v720_v55 = vpop.f32.mrf.mxu1 }
  0xfd   :  { %v10126_v51 = vadd.f32 %v720_v55, %v647_v38  ;;  %1316 = vmatpush.bf16.msra.mxu3 %v7549_v18 }
 0x101   :  { %v682_v26 = vpop.f32.mrf.mxu2 }
 0x102   :  { %v755_v46 = vpop.f32.mrf.mxu3 }
 0x103   :  { %v650_v39 = vpop.f32.mrf.mxu0  ;;  %v7648_v46 = vld [vmem:[%s14912_s1 + $0x260] sm:$0xf] }
 0x104   :  { %v723_v31 = vpop.f32.mrf.mxu1 }
 0x105   :  { %v10140_v63 = vadd.f32 %v723_v31, %v650_v39  ;;  %v7713_v31 = vor.u32 %v8835_v14, %v7712_v62 }
 0x106   :  { %805 = vmatmul.bf16.gmra.mxu2 %v9564_v49  ;;  %1134 = vmatmul.bf16.gmra.mxu0 %v9361_v45  ;;  %v8819_v49 = vld [vmem:[%s14912_s1 + $0x264] sm:$0xf0] }
 0x107   :  { %878 = vmatmul.bf16.gmra.mxu3 %v9576_v40  ;;  %1207 = vmatmul.bf16.gmra.mxu1 %v9404_v61  ;;  %v7649_v54 = vor.u32 %v8819_v49, %v7648_v46 }
 0x108   :  { %1732 = vmatpush.bf16.msra.mxu1 %v7713_v31 }
 0x109   :  { %v766_v32 = vpop.f32.mrf.mxu2  ;;  %1659 = vmatpush.bf16.msra.mxu0 %v7649_v54 }
 0x10a   :  { %v839_v38 = vpop.f32.mrf.mxu3 }
 0x10b   :  { %v10146_v55 = vadd.f32 %v839_v38, %v766_v32  ;;  %v652_v26 = vpop.f32.mrf.mxu0 }
 0x10c   :  { %v725_v39 = vpop.f32.mrf.mxu1 }
 0x10d   :  { %v10154_v40 = vadd.f32 %v725_v39, %v652_v26 }
 0x111   :  { %v768_v36 = vpop.f32.mrf.mxu2 }
 0x112   :  { %v841_v27 = vpop.f32.mrf.mxu3 }
 0x113   :  { %v10162_v18 = vadd.f32 %v841_v27, %v768_v36  ;;  %v1100_v32 = vpop.f32.mrf.mxu0  ;;  %v8758_v36 = vld [vmem:[%s14912_s1 + $0x84] sm:$0xf] }
 0x114   :  { %v1101_v38 = vadd.f32 %v1100_v32, %v10010_v16  ;;  %v1173_v26 = vpop.f32.mrf.mxu1 }
 0x116   :  { %v10165_v46 = vadd.f32 %v1173_v26, %v1101_v38  ;;  %810 = vmatmul.bf16.gmra.mxu2 %v9644_v57  ;;  %1139 = vmatmul.bf16.gmra.mxu0 %v9402_v60  ;;  %v8742_v57 = vld [vmem:[%s14912_s1 + $0x4] sm:$0xf] }
 0x117   :  { %883 = vmatmul.bf16.gmra.mxu3 %v9656_v44  ;;  %1212 = vmatmul.bf16.gmra.mxu1 %v9411_v4  ;;  %v7474_v44 = vld [vmem:[%s14912_s1 + $0x8] sm:$0xf0] }
 0x118   :  { %v7477_v27 = vor.u32 %v8742_v57, %v7474_v44  ;;  %v7640_v57 = vld [vmem:[%s14912_s1 + $0x250] sm:$0xf]  ;;  %v8817_v44 = vld [vmem:[%s14912_s1 + $0x254] sm:$0xf0] }
 0x119   :  { %v771_v49 = vpop.f32.mrf.mxu2 }
 0x11a   :  { %v844_v39 = vpop.f32.mrf.mxu3  ;;  %1244 = vmatpush.bf16.msra.mxu2 %v7477_v27  ;;  %v15098_v27 = vld [vmem:[#allocation6_spill] sm:$0xff] }
 0x11b   :  { %v10171_v54 = vadd.f32 %v844_v39, %v771_v49  ;;  %v1102_v62 = vpop.f32.mrf.mxu0 }
 0x11c   :  { %v1103_v14 = vadd.f32 %v1102_v62, %v10018_v19  ;;  %v1175_v31 = vpop.f32.mrf.mxu1  ;;  %v7538_v19 = vld [vmem:[%s14912_s1 + $0x88] sm:$0xf0] }
 0x11d   :  { %v7541_v32 = vor.u32 %v8758_v36, %v7538_v19  ;;  %v15097_v36 = vld [vmem:[#allocation12_spill] sm:$0xff]  ;;  %v7704_v19 = vld [vmem:[%s14912_s1 + $0x2d0] sm:$0xf] }
 0x11e   :  { %v10174_v16 = vadd.f32 %v1175_v31, %v1103_v14 }
 0x11f   :  { %1317 = vmatpush.bf16.msra.mxu3 %v7541_v32 }
 0x121   :  { %v773_v38 = vpop.f32.mrf.mxu2 }
 0x122   :  { %v846_v26 = vpop.f32.mrf.mxu3 }
 0x123   :  { %v10188_v49 = vadd.f32 %v846_v26, %v773_v38  ;;  %v1105_v39 = vpop.f32.mrf.mxu0 }
 0x124   :  { %v1106_v62 = vadd.f32 %v1105_v39, %v10022_v25  ;;  %v1178_v14 = vpop.f32.mrf.mxu1  ;;  %v7641_v25 = vor.u32 %v8817_v44, %v7640_v57 }
 0x125   :  { %15095 = vst [vmem:[#allocation18_spill] sm:$0xff] %v10188_v49  ;;  %v7608_v49 = vld [vmem:[%s14912_s1 + $0x210] sm:$0xf] }
 0x126   :  { %v10191_v31 = vadd.f32 %v1178_v14, %v1106_v62  ;;  %815 = vmatmul.bf16.gmra.mxu2 %v9728_v34  ;;  %1144 = vmatmul.bf16.gmra.mxu0 %v9530_v10  ;;  %v8833_v34 = vld [vmem:[%s14912_s1 + $0x2d4] sm:$0xf0] }
 0x127   :  { %888 = vmatmul.bf16.gmra.mxu3 %v15097_v36  ;;  %1217 = vmatmul.bf16.gmra.mxu1 %v15098_v27  ;;  %v7705_v32 = vor.u32 %v8833_v34, %v7704_v19  ;;  %v8815_v19 = vld [vmem:[%s14912_s1 + $0x244] sm:$0xf0] }
 0x128   :  { %15096 = vst [vmem:[#allocation19_spill] sm:$0xff] %v10191_v31  ;;  %1660 = vmatpush.bf16.msra.mxu0 %v7641_v25  ;;  %v7696_v25 = vld [vmem:[%s14912_s1 + $0x2c0] sm:$0xf] }
 0x129   :  { %v776_v38 = vpop.f32.mrf.mxu2  ;;  %1733 = vmatpush.bf16.msra.mxu1 %v7705_v32  ;;  %v7633_v32 = vor.u32 %v8815_v19, %v7632_v50  ;;  %v8813_v50 = vld [vmem:[%s14912_s1 + $0x234] sm:$0xf0] }
 0x12a   :  { %v849_v26 = vpop.f32.mrf.mxu3 }
 0x12b   :  { %v10209_v39 = vadd.f32 %v849_v26, %v776_v38  ;;  %v1107_v62 = vpop.f32.mrf.mxu0 }
 0x12c   :  { %v1108_v14 = vadd.f32 %v1107_v62, %v10042_v48  ;;  %v1180_v36 = vpop.f32.mrf.mxu1  ;;  %v8831_v48 = vld [vmem:[%s14912_s1 + $0x2c4] sm:$0xf0]  ;;  %1661 = vmatpush.bf16.msra.mxu0 %v7633_v32  ;;  %v8829_v32 = vld [vmem:[%s14912_s1 + $0x2b4] sm:$0xf0] }
 0x12d   :  { %15099 = vst [vmem:[#allocation12_spill] sm:$0xff] %v10209_v39  ;;  %v7697_v62 = vor.u32 %v8831_v48, %v7696_v25  ;;  %v15103_v25 = vld [vmem:[#allocation16_spill] sm:$0xff]  ;;  %v15105_v48 = vld [vmem:[#allocation17_spill] sm:$0xff] }
 0x12e   :  { %v10212_v57 = vadd.f32 %v1180_v36, %v1108_v14  ;;  %v8811_v39 = vld [vmem:[%s14912_s1 + $0x224] sm:$0xf0] }
 0x12f   :  { %1734 = vmatpush.bf16.msra.mxu1 %v7697_v62  ;;  %v8820_v62 = vld [vmem:[%s14912_s1 + $0x274] sm:$0xf] }
 0x130   :  { %15100 = vst [vmem:[#allocation6_spill] sm:$0xff] %v10212_v57  ;;  %v7624_v57 = vld [vmem:[%s14912_s1 + $0x230] sm:$0xf] }
 0x131   :  { %v778_v44 = vpop.f32.mrf.mxu2 }
 0x132   :  { %v851_v34 = vpop.f32.mrf.mxu3 }
 0x133   :  { %v10226_v38 = vadd.f32 %v851_v34, %v778_v44  ;;  %v1110_v26 = vpop.f32.mrf.mxu0  ;;  %v7688_v44 = vld [vmem:[%s14912_s1 + $0x2b0] sm:$0xf]  ;;  %v7625_v34 = vor.u32 %v8813_v50, %v7624_v57  ;;  %v8836_v57 = vld [vmem:[%s14912_s1 + $0x2f4] sm:$0xf] }
 0x134   :  { %v1111_v14 = vadd.f32 %v1110_v26, %v10046_v20  ;;  %v1183_v36 = vpop.f32.mrf.mxu1  ;;  %v15104_v20 = vld [vmem:[#allocation7_spill] sm:$0xff]  ;;  %v15106_v26 = vld [vmem:[#allocation8_spill] sm:$0xff] }
 0x135   :  { %15101 = vst [vmem:[#allocation20_spill] sm:$0xff] %v10226_v38  ;;  %1662 = vmatpush.bf16.msra.mxu0 %v7625_v34  ;;  %v7616_v38 = vld [vmem:[%s14912_s1 + $0x220] sm:$0xf]  ;;  %v8827_v34 = vld [vmem:[%s14912_s1 + $0x2a4] sm:$0xf0] }
 0x136   :  { %v10238_v19 = vadd.f32 %v1183_v36, %v1111_v14  ;;  %820 = vmatmul.bf16.gmra.mxu2 %v15103_v25  ;;  %1149 = vmatmul.bf16.gmra.mxu0 %v15104_v20  ;;  %v7658_v14 = vld [vmem:[%s14912_s1 + $0x278] sm:$0xf0]  ;;  %v7689_v36 = vor.u32 %v8829_v32, %v7688_v44  ;;  %v7680_v44 = vld [vmem:[%s14912_s1 + $0x2a0] sm:$0xf] }
 0x137   :  { %893 = vmatmul.bf16.gmra.mxu3 %v15105_v48  ;;  %1222 = vmatmul.bf16.gmra.mxu1 %v15106_v26  ;;  %v7661_v50 = vor.u32 %v8820_v62, %v7658_v14  ;;  %v7722_v25 = vld [vmem:[%s14912_s1 + $0x2f8] sm:$0xf0]  ;;  %v7617_v62 = vor.u32 %v8811_v39, %v7616_v38  ;;  %v8809_v39 = vld [vmem:[%s14912_s1 + $0x214] sm:$0xf0]  ;;  %v7672_v38 = vld [vmem:[%s14912_s1 + $0x290] sm:$0xf] }
 0x138   :  { %15102 = vst [vmem:[#allocation21_spill] sm:$0xff] %v10238_v19  ;;  %v7725_v19 = vor.u32 %v8836_v57, %v7722_v25  ;;  %1735 = vmatpush.bf16.msra.mxu1 %v7689_v36  ;;  %v7681_v36 = vor.u32 %v8827_v34, %v7680_v44 }
 0x139   :  { %v781_v48 = vpop.f32.mrf.mxu2  ;;  %1804 = vmatpush.bf16.msrb.mxu2 %v7661_v50  ;;  %1663 = vmatpush.bf16.msra.mxu0 %v7617_v62  ;;  %v8807_v62 = vld [vmem:[%s14912_s1 + $0x204] sm:$0xf0] }
 0x13a   :  { %v854_v32 = vpop.f32.mrf.mxu3  ;;  %1877 = vmatpush.bf16.msrb.mxu3 %v7725_v19  ;;  %v7609_v19 = vor.u32 %v8809_v39, %v7608_v49  ;;  %v7664_v49 = vld [vmem:[%s14912_s1 + $0x280] sm:$0xf] }
 0x13b   :  { %v10271_v14 = vadd.f32 %v854_v32, %v781_v48  ;;  %v1112_v57 = vpop.f32.mrf.mxu0  ;;  %v7600_v32 = vld [vmem:[%s14912_s1 + $0x200] sm:$0xf] }
 0x13c   :  { %v1113_v25 = vadd.f32 %v1112_v57, %v10054_v56  ;;  %v1185_v31 = vpop.f32.mrf.mxu1  ;;  %1736 = vmatpush.bf16.msra.mxu1 %v7681_v36  ;;  %v8825_v56 = vld [vmem:[%s14912_s1 + $0x294] sm:$0xf0]  ;;  %v7601_v34 = vor.u32 %v8807_v62, %v7600_v32  ;;  %v8823_v57 = vld [vmem:[%s14912_s1 + $0x284] sm:$0xf0]  ;;  %v15109_v32 = vld [vmem:[#allocation10_spill] sm:$0xff] }
 0x13d   :  { %v7673_v48 = vor.u32 %v8825_v56, %v7672_v38  ;;  %1664 = vmatpush.bf16.msra.mxu0 %v7609_v19  ;;  %v7665_v39 = vor.u32 %v8823_v57, %v7664_v49 }
 0x13e   :  { %v10283_v50 = vadd.f32 %v1185_v31, %v1113_v25 }
 0x140   :  { %1737 = vmatpush.bf16.msra.mxu1 %v7673_v48  ;;  %v15108_v48 = vld [vmem:[#allocation9_spill] sm:$0xff] }
 0x141   :  { %v783_v44 = vpop.f32.mrf.mxu2  ;;  %1665 = vmatpush.bf16.msra.mxu0 %v7601_v34 }
 0x142   :  { %v856_v31 = vpop.f32.mrf.mxu3 }
 0x143   :  { %v10300_v36 = vadd.f32 %v856_v31, %v783_v44  ;;  %v1115_v25 = vpop.f32.mrf.mxu0 }
 0x144   :  { %v1116_v38 = vadd.f32 %v1115_v25, %v10070_v42  ;;  %v1188_v19 = vpop.f32.mrf.mxu1  ;;  %1738 = vmatpush.bf16.msra.mxu1 %v7665_v39  ;;  %v8834_v25 = vld [vmem:[%s14912_s1 + $0x2e4] sm:$0xf] }
 0x146   :  { %v10303_v56 = vadd.f32 %v1188_v19, %v1116_v38  ;;  %825 = vmatmul.bf16.gmra.mxu2 %v9953_v33  ;;  %1154 = vmatmul.bf16.gmra.mxu0 %v15108_v48  ;;  %v8818_v33 = vld [vmem:[%s14912_s1 + $0x264] sm:$0xf] }
 0x147   :  { %898 = vmatmul.bf16.gmra.mxu3 %v9959_v24  ;;  %1227 = vmatmul.bf16.gmra.mxu1 %v15109_v32  ;;  %v7650_v24 = vld [vmem:[%s14912_s1 + $0x268] sm:$0xf0] }
 0x148   :  { %15107 = vst [vmem:[#allocation16_spill] sm:$0xff] %v10303_v56  ;;  %v7653_v39 = vor.u32 %v8818_v33, %v7650_v24 }
 0x149   :  { %v786_v62 = vpop.f32.mrf.mxu2 }
 0x14a   :  { %v859_v44 = vpop.f32.mrf.mxu3  ;;  %1805 = vmatpush.bf16.msrb.mxu2 %v7653_v39 }
 0x14b   :  { %v10309_v31 = vadd.f32 %v859_v44, %v786_v62  ;;  %v1117_v49 = vpop.f32.mrf.mxu0  ;;  %v15112_v44 = vld [vmem:[#allocation11_spill] sm:$0xff] }
 0x14c   :  { %v1118_v42 = vadd.f32 %v1117_v49, %v10078_v2  ;;  %v1190_v57 = vpop.f32.mrf.mxu1  ;;  %v7714_v2 = vld [vmem:[%s14912_s1 + $0x2e8] sm:$0xf0]  ;;  %v10328_v49 = vpack.c.b16 %v15112_v44, %v15112_v44 }
 0x14d   :  { %15110 = vst [vmem:[#allocation7_spill] sm:$0xff] %v10309_v31  ;;  %v7717_v38 = vor.u32 %v8834_v25, %v7714_v2  ;;  %v1383_v25 = vld [vmem:[%s14911_s0] sm:$0xee]  ;;  %v15119_v44 = vld [vmem:[#allocation5_spill] sm:$0xff] }
 0x14e   :  { %v10312_v34 = vadd.f32 %v1190_v57, %v1118_v42  ;;  %15113 = vst [vmem:[#allocation8_spill] sm:$0xff] %v10328_v49  ;;  %v1417_v2 = vunpack.c.l.b16 %v1383_v25 }
 0x14f   :  { %1878 = vmatpush.bf16.msrb.mxu3 %v7717_v38 }
 0x150   :  { %15111 = vst [vmem:[#allocation17_spill] sm:$0xff] %v10312_v34  ;;  %v15115_v34 = vld [vmem:[#allocation13_spill] sm:$0xff] }
 0x151   :  { %v788_v19 = vpop.f32.mrf.mxu2  ;;  %v10334_v31 = vpack.c.b16 %v15115_v34, %v15115_v34  ;;  %v1418_v34 = vunpack.c.h.b16 %v1383_v25 }
 0x152   :  { %v861_v62 = vpop.f32.mrf.mxu3 }
 0x153   :  { %v10330_v42 = vadd.f32 %v861_v62, %v788_v19  ;;  %v1120_v57 = vpop.f32.mrf.mxu0  ;;  %15116 = vst [vmem:[#allocation10_spill] sm:$0xff] %v10334_v31 }
 0x154   :  { %v1121_v33 = vadd.f32 %v1120_v57, %v10082_v29  ;;  %v1193_v24 = vpop.f32.mrf.mxu1  ;;  %v15120_v57 = vunpack.c.l.b16 %v15119_v44 }
 0x155   :  { %15114 = vst [vmem:[#allocation9_spill] sm:$0xff] %v10330_v42 }
 0x156   :  { %v10340_v39 = vadd.f32 %v1193_v24, %v1121_v33  ;;  %1159 = vmatmul.bf16.gmra.mxu0 %v10328_v49  ;;  %1245 = vmatmul.bf16.vlgmr.msra.gmra.mxu2 %v9356_v43  ;;  %v1419_v42 = vpack.c.b16 %v15120_v57, %v1417_v2 }
 0x157   :  { %1232 = vmatmul.bf16.gmra.mxu1 %v10334_v31  ;;  %1318 = vmatmul.bf16.vlgmr.msra.gmra.mxu3 %v9380_v52  ;;  %v1423_v52 = vrot.slane %v9400_v59, 1 }
 0x158   :  { %15117 = vst [vmem:[#allocation11_spill] sm:$0xff] %v10340_v39  ;;  %v15121_v39 = vunpack.c.h.b16 %v15119_v44  ;;  %v1422_v31 = vrot.slane %v1419_v42, 1 }
 0x159   :  { %v791_v38 = vpop.f32.mrf.mxu2 }
 0x15a   :  { %v864_v19 = vpop.f32.mrf.mxu3  ;;  %v1420_v43 = vpack.c.b16 %v15121_v39, %v1418_v34 }
 0x15b   :  { %v10346_v29 = vadd.f32 %v864_v19, %v791_v38  ;;  %v1122_v62 = vpop.f32.mrf.mxu0  ;;  %v1426_v38 = vrot.slane %v9408_v1, 1 }
 0x15c   :  { %v1123_v33 = vadd.f32 %v1122_v62, %v10102_v23  ;;  %v1195_v24 = vpop.f32.mrf.mxu1  ;;  %v1425_v25 = vrot.slane %v1420_v43, 1  ;;  %v10360_v23 = vsel %vm1421_vm1, %v1422_v31, %v1423_v52 }
 0x15d   :  { %15118 = vst [vmem:[#allocation13_spill] sm:$0xff] %v10346_v29 }
 0x15e   :  { %v10353_v56 = vadd.f32 %v1195_v24, %v1123_v33  ;;  %v10364_v34 = vsel %vm1421_vm1, %v1425_v25, %v1426_v38  ;;  %v7642_v33 = vld [vmem:[%s14912_s1 + $0x258] sm:$0xf0] }
 0x15f   :  { %v7706_v25 = vld [vmem:[%s14912_s1 + $0x2d8] sm:$0xf0] }
 0x161   :  { %v793_v19 = vpop.f32.mrf.mxu2 }
 0x162   :  { %v866_v29 = vpop.f32.mrf.mxu3 }
 0x163   :  { %v10357_v49 = vadd.f32 %v866_v29, %v793_v19  ;;  %v1125_v2 = vpop.f32.mrf.mxu0 }
 0x164   :  { %v1126_v62 = vadd.f32 %v1125_v2, %v10118_v47  ;;  %v1198_v39 = vpop.f32.mrf.mxu1  ;;  %v8816_v47 = vld [vmem:[%s14912_s1 + $0x254] sm:$0xf] }
 0x165   :  { %v7645_v43 = vor.u32 %v8816_v47, %v7642_v33 }
 0x166   :  { %v10366_v42 = vadd.f32 %v1198_v39, %v1126_v62  ;;  %1250 = vmatmul.bf16.gmra.mxu2 %v9400_v59  ;;  %1666 = vmatmul.bf16.vlgmr.msra.gmra.mxu0 %v10360_v23  ;;  %v8832_v59 = vld [vmem:[%s14912_s1 + $0x2d4] sm:$0xf]  ;;  %v1428_v62 = vrot.slane %v9528_v9, 1  ;;  %v1430_v39 = vrot.slane %v9532_v11, 1 }
 0x167   :  { %1323 = vmatmul.bf16.gmra.mxu3 %v9408_v1  ;;  %1739 = vmatmul.bf16.vlgmr.msra.gmra.mxu1 %v10364_v34  ;;  %v7709_v19 = vor.u32 %v8832_v59, %v7706_v25 }
 0x168   :  { %1806 = vmatpush.bf16.msrb.mxu2 %v7645_v43  ;;  %v10398_v59 = vsel %vm1421_vm1, %v1426_v38, %v1430_v39 }
 0x169   :  { %v796_v29 = vpop.f32.mrf.mxu2  ;;  %1879 = vmatpush.bf16.msrb.mxu3 %v7709_v19 }
 0x16a   :  { %v869_v44 = vpop.f32.mrf.mxu3 }
 0x16b   :  { %v10372_v31 = vadd.f32 %v869_v44, %v796_v29  ;;  %v1127_v57 = vpop.f32.mrf.mxu0 }
 0x16c   :  { %v1128_v1 = vadd.f32 %v1127_v57, %v10126_v51  ;;  %v1200_v24 = vpop.f32.mrf.mxu1  ;;  %v10394_v57 = vsel %vm1421_vm1, %v1423_v52, %v1428_v62 }
 0x16d   :  { %15122 = vst [vmem:[#allocation5_spill] sm:$0xff] %v10372_v31 }
 0x16e   :  { %v10387_v2 = vadd.f32 %v1200_v24, %v1128_v1 }
 0x171   :  { %v798_v29 = vpop.f32.mrf.mxu2 }
 0x172   :  { %v871_v44 = vpop.f32.mrf.mxu3 }
 0x173   :  { %v10391_v31 = vadd.f32 %v871_v44, %v798_v29  ;;  %v1130_v51 = vpop.f32.mrf.mxu0  ;;  %v1432_v29 = vrot.slane %v9600_v0, 1 }
 0x174   :  { %v1131_v47 = vadd.f32 %v1130_v51, %v10140_v63  ;;  %v1203_v33 = vpop.f32.mrf.mxu1 }
 0x176   :  { %v10400_v1 = vadd.f32 %v1203_v33, %v1131_v47  ;;  %1255 = vmatmul.bf16.gmra.mxu2 %v9528_v9  ;;  %1671 = vmatmul.bf16.gmra.mxu0 %v10394_v57  ;;  %v1434_v9 = vrot.slane %v9613_v7, 1  ;;  %v10416_v33 = vsel %vm1421_vm1, %v1428_v62, %v1432_v29  ;;  %v7634_v62 = vld [vmem:[%s14912_s1 + $0x248] sm:$0xf0] }
 0x177   :  { %1328 = vmatmul.bf16.gmra.mxu3 %v9532_v11  ;;  %1744 = vmatmul.bf16.gmra.mxu1 %v10398_v59 }
 0x179   :  { %v801_v24 = vpop.f32.mrf.mxu2 }
 0x17a   :  { %v874_v43 = vpop.f32.mrf.mxu3 }
 0x17b   :  { %v10406_v52 = vadd.f32 %v874_v43, %v801_v24  ;;  %v1132_v25 = vpop.f32.mrf.mxu0 }
 0x17c   :  { %v1133_v63 = vadd.f32 %v1132_v25, %v10154_v40  ;;  %v1205_v19 = vpop.f32.mrf.mxu1  ;;  %v10420_v40 = vsel %vm1421_vm1, %v1430_v39, %v1434_v9 }
 0x17d   :  { %15123 = vst [vmem:[#allocation22_spill] sm:$0xff] %v10406_v52 }
 0x17e   :  { %v10409_v38 = vadd.f32 %v1205_v19, %v1133_v63  ;;  %v8814_v63 = vld [vmem:[%s14912_s1 + $0x244] sm:$0xf] }
 0x17f   :  { %v7637_v39 = vor.u32 %v8814_v63, %v7634_v62  ;;  %v1438_v63 = vrot.slane %v9693_v22, 1 }
 0x180   :  { %15124 = vst [vmem:[#allocation23_spill] sm:$0xff] %v10409_v38 }
 0x181   :  { %v803_v44 = vpop.f32.mrf.mxu2  ;;  %1807 = vmatpush.bf16.msrb.mxu2 %v7637_v39 }
 0x182   :  { %v876_v51 = vpop.f32.mrf.mxu3 }
 0x183   :  { %v10413_v47 = vadd.f32 %v876_v51, %v803_v44  ;;  %v1135_v11 = vpop.f32.mrf.mxu0 }
 0x184   :  { %v1136_v24 = vadd.f32 %v1135_v11, %v10016_v30  ;;  %v1208_v43 = vpop.f32.mrf.mxu1  ;;  %v8830_v30 = vld [vmem:[%s14912_s1 + $0x2c4] sm:$0xf] }
 0x185   :  { %15125 = vst [vmem:[#allocation24_spill] sm:$0xff] %v10413_v47 }
 0x186   :  { %v10422_v25 = vadd.f32 %v1208_v43, %v1136_v24  ;;  %1260 = vmatmul.bf16.gmra.mxu2 %v9600_v0  ;;  %1676 = vmatmul.bf16.gmra.mxu0 %v10416_v33  ;;  %v7698_v0 = vld [vmem:[%s14912_s1 + $0x2c8] sm:$0xf0] }
 0x187   :  { %1333 = vmatmul.bf16.gmra.mxu3 %v9613_v7  ;;  %1749 = vmatmul.bf16.gmra.mxu1 %v10420_v40  ;;  %v7701_v19 = vor.u32 %v8830_v30, %v7698_v0  ;;  %v1436_v7 = vrot.slane %v9680_v15, 1 }
 0x188   :  { %15126 = vst [vmem:[#allocation25_spill] sm:$0xff] %v10422_v25 }
 0x189   :  { %v806_v44 = vpop.f32.mrf.mxu2  ;;  %1880 = vmatpush.bf16.msrb.mxu3 %v7701_v19  ;;  %v10450_v39 = vsel %vm1421_vm1, %v1432_v29, %v1436_v7 }
 0x18a   :  { %v879_v51 = vpop.f32.mrf.mxu3 }
 0x18b   :  { %v10440_v11 = vadd.f32 %v879_v51, %v806_v44  ;;  %v1137_v24 = vpop.f32.mrf.mxu0 }
 0x18c   :  { %v1138_v43 = vadd.f32 %v1137_v24, %v10020_v3  ;;  %v1210_v25 = vpop.f32.mrf.mxu1  ;;  %v10454_v3 = vsel %vm1421_vm1, %v1434_v9, %v1438_v63 }
 0x18e   :  { %v10443_v47 = vadd.f32 %v1210_v25, %v1138_v43  ;;  %v8828_v43 = vld [vmem:[%s14912_s1 + $0x2b4] sm:$0xf] }
 0x191   :  { %v808_v62 = vpop.f32.mrf.mxu2 }
 0x192   :  { %v881_v38 = vpop.f32.mrf.mxu3 }
 0x193   :  { %v10447_v52 = vadd.f32 %v881_v38, %v808_v62  ;;  %v1140_v30 = vpop.f32.mrf.mxu0  ;;  %v1440_v62 = vrot.slane %v9771_v37, 1 }
 0x194   :  { %v1141_v0 = vadd.f32 %v1140_v30, %v10040_v53  ;;  %v1213_v19 = vpop.f32.mrf.mxu1 }
 0x196   :  { %v10456_v25 = vadd.f32 %v1213_v19, %v1141_v0  ;;  %1265 = vmatmul.bf16.gmra.mxu2 %v9680_v15  ;;  %1681 = vmatmul.bf16.gmra.mxu0 %v10450_v39  ;;  %v8812_v15 = vld [vmem:[%s14912_s1 + $0x234] sm:$0xf]  ;;  %v1442_v0 = vrot.slane %v9785_v35, 1 }
 0x197   :  { %1338 = vmatmul.bf16.gmra.mxu3 %v9693_v22  ;;  %1754 = vmatmul.bf16.gmra.mxu1 %v10454_v3  ;;  %v7626_v22 = vld [vmem:[%s14912_s1 + $0x238] sm:$0xf0] }
 0x198   :  { %v7629_v30 = vor.u32 %v8812_v15, %v7626_v22  ;;  %v10488_v22 = vsel %vm1421_vm1, %v1438_v63, %v1442_v0 }
 0x199   :  { %v811_v38 = vpop.f32.mrf.mxu2 }
 0x19a   :  { %v884_v44 = vpop.f32.mrf.mxu3  ;;  %1808 = vmatpush.bf16.msrb.mxu2 %v7629_v30 }
 0x19b   :  { %v10462_v29 = vadd.f32 %v884_v44, %v811_v38  ;;  %v1142_v51 = vpop.f32.mrf.mxu0 }
 0x19c   :  { %v1143_v53 = vadd.f32 %v1142_v51, %v10044_v5  ;;  %v1215_v24 = vpop.f32.mrf.mxu1  ;;  %v7690_v5 = vld [vmem:[%s14912_s1 + $0x2b8] sm:$0xf0] }
 0x19d   :  { %15127 = vst [vmem:[#allocation26_spill] sm:$0xff] %v10462_v29  ;;  %v7693_v19 = vor.u32 %v8828_v43, %v7690_v5 }
 0x19e   :  { %v10465_v9 = vadd.f32 %v1215_v24, %v1143_v53  ;;  %v10484_v24 = vsel %vm1421_vm1, %v1436_v7, %v1440_v62 }
 0x19f   :  { %1881 = vmatpush.bf16.msrb.mxu3 %v7693_v19 }
 0x1a0   :  { %15128 = vst [vmem:[#allocation27_spill] sm:$0xff] %v10465_v9 }
 0x1a1   :  { %v813_v38 = vpop.f32.mrf.mxu2 }
 0x1a2   :  { %v886_v44 = vpop.f32.mrf.mxu3 }
 0x1a3   :  { %v10481_v51 = vadd.f32 %v886_v44, %v813_v38  ;;  %v1145_v53 = vpop.f32.mrf.mxu0 }
 0x1a4   :  { %v1146_v9 = vadd.f32 %v1145_v53, %v10052_v6  ;;  %v1218_v15 = vpop.f32.mrf.mxu1 }
 0x1a6   :  { %v10490_v29 = vadd.f32 %v1218_v15, %v1146_v9  ;;  %1270 = vmatmul.bf16.gmra.mxu2 %v9771_v37  ;;  %1686 = vmatmul.bf16.gmra.mxu0 %v10484_v24  ;;  %v1444_v9 = vrot.slane %v9892_v8, 1  ;;  %v1446_v37 = vrot.slane %v9903_v28, 1 }
 0x1a7   :  { %1343 = vmatmul.bf16.gmra.mxu3 %v9785_v35  ;;  %1759 = vmatmul.bf16.gmra.mxu1 %v10488_v22 }
 0x1a8   :  { %v10506_v15 = vsel %vm1421_vm1, %v1440_v62, %v1444_v9  ;;  %v8810_v62 = vld [vmem:[%s14912_s1 + $0x224] sm:$0xf] }
 0x1a9   :  { %v816_v43 = vpop.f32.mrf.mxu2 }
 0x1aa   :  { %v889_v30 = vpop.f32.mrf.mxu3 }
 0x1ab   :  { %v10496_v7 = vadd.f32 %v889_v30, %v816_v43  ;;  %v1147_v5 = vpop.f32.mrf.mxu0 }
 0x1ac   :  { %v1148_v6 = vadd.f32 %v1147_v5, %v10068_v17  ;;  %v1220_v19 = vpop.f32.mrf.mxu1  ;;  %v10510_v17 = vsel %vm1421_vm1, %v1442_v0, %v1446_v37  ;;  %v8826_v0 = vld [vmem:[%s14912_s1 + $0x2a4] sm:$0xf] }
 0x1ae   :  { %v10499_v63 = vadd.f32 %v1220_v19, %v1148_v6 }
 0x1b1   :  { %v818_v38 = vpop.f32.mrf.mxu2 }
 0x1b2   :  { %v891_v44 = vpop.f32.mrf.mxu3 }
 0x1b3   :  { %v10503_v53 = vadd.f32 %v891_v44, %v818_v38  ;;  %v1150_v35 = vpop.f32.mrf.mxu0 }
 0x1b4   :  { %v1151_v43 = vadd.f32 %v1150_v35, %v10076_v13  ;;  %v1223_v30 = vpop.f32.mrf.mxu1  ;;  %v7618_v13 = vld [vmem:[%s14912_s1 + $0x228] sm:$0xf0] }
 0x1b5   :  { %15129 = vst [vmem:[#allocation28_spill] sm:$0xff] %v10503_v53  ;;  %v7621_v6 = vor.u32 %v8810_v62, %v7618_v13  ;;  %v8875_v62 = vld [vmem:[%s14912_s1 + $0x374] sm:$0xf0] }
 0x1b6   :  { %v10512_v5 = vadd.f32 %v1223_v30, %v1151_v43  ;;  %1275 = vmatmul.bf16.gmra.mxu2 %v9892_v8  ;;  %1691 = vmatmul.bf16.gmra.mxu0 %v10506_v15  ;;  %v7682_v8 = vld [vmem:[%s14912_s1 + $0x2a8] sm:$0xf0] }
 0x1b7   :  { %1348 = vmatmul.bf16.gmra.mxu3 %v9903_v28  ;;  %1764 = vmatmul.bf16.gmra.mxu1 %v10510_v17  ;;  %v7685_v19 = vor.u32 %v8826_v0, %v7682_v8  ;;  %v1448_v0 = vrot.slane %v9361_v45, 1 }
 0x1b8   :  { %15130 = vst [vmem:[#allocation29_spill] sm:$0xff] %v10512_v5  ;;  %1809 = vmatpush.bf16.msrb.mxu2 %v7621_v6  ;;  %v7872_v5 = vld [vmem:[%s14912_s1 + $0x370] sm:$0xf]  ;;  %v1450_v6 = vrot.slane %v9404_v61, 1 }
 0x1b9   :  { %v821_v28 = vpop.f32.mrf.mxu2  ;;  %1882 = vmatpush.bf16.msrb.mxu3 %v7685_v19  ;;  %v7873_v13 = vor.u32 %v8875_v62, %v7872_v5 }
 0x1ba   :  { %v894_v38 = vpop.f32.mrf.mxu3  ;;  %v10550_v5 = vsel %vm1421_vm1, %v1446_v37, %v1450_v6 }
 0x1bb   :  { %v10530_v44 = vadd.f32 %v894_v38, %v821_v28  ;;  %v1152_v35 = vpop.f32.mrf.mxu0  ;;  %2398 = vmatpush.bf16.msrb.mxu0 %v7873_v13  ;;  %v10546_v38 = vsel %vm1421_vm1, %v1444_v9, %v1448_v0 }
 0x1bc   :  { %v1153_v43 = vadd.f32 %v1152_v35, %v10080_v41  ;;  %v1225_v30 = vpop.f32.mrf.mxu1 }
 0x1bd   :  { %15131 = vst [vmem:[#allocation30_spill] sm:$0xff] %v10530_v44 }
 0x1be   :  { %v10539_v53 = vadd.f32 %v1225_v30, %v1153_v43  ;;  %v7936_v43 = vld [vmem:[%s14912_s1 + $0x3f0] sm:$0xf]  ;;  %v8891_v30 = vld [vmem:[%s14912_s1 + $0x3f4] sm:$0xf0] }
 0x1bf   :  { %v7937_v62 = vor.u32 %v8891_v30, %v7936_v43 }
 0x1c1   :  { %v823_v8 = vpop.f32.mrf.mxu2  ;;  %2471 = vmatpush.bf16.msrb.mxu1 %v7937_v62 }
 0x1c2   :  { %v896_v28 = vpop.f32.mrf.mxu3 }
 0x1c3   :  { %v10543_v41 = vadd.f32 %v896_v28, %v823_v8  ;;  %v1155_v19 = vpop.f32.mrf.mxu0 }
 0x1c4   :  { %v1156_v35 = vadd.f32 %v1155_v19, %v10100_v21  ;;  %v1228_v44 = vpop.f32.mrf.mxu1 }
 0x1c6   :  { %v10558_v13 = vadd.f32 %v1228_v44, %v1156_v35  ;;  %1280 = vmatmul.bf16.gmra.mxu2 %v9361_v45  ;;  %1696 = vmatmul.bf16.gmra.mxu0 %v10546_v38  ;;  %v1452_v44 = vrot.slane %v9402_v60, 1  ;;  %v1454_v45 = vrot.slane %v9411_v4, 1 }
 0x1c7   :  { %1353 = vmatmul.bf16.gmra.mxu3 %v9404_v61  ;;  %1769 = vmatmul.bf16.gmra.mxu1 %v10550_v5 }
 0x1c8   :  { %15132 = vst [vmem:[#allocation31_spill] sm:$0xff] %v10558_v13  ;;  %v10572_v13 = vsel %vm1421_vm1, %v1448_v0, %v1452_v44 }
 0x1c9   :  { %v826_v21 = vpop.f32.mrf.mxu2 }
 0x1ca   :  { %v899_v9 = vpop.f32.mrf.mxu3 }
 0x1cb   :  { %v10564_v37 = vadd.f32 %v899_v9, %v826_v21  ;;  %v1157_v8 = vpop.f32.mrf.mxu0  ;;  %v10576_v9 = vsel %vm1421_vm1, %v1450_v6, %v1454_v45 }
 0x1cc   :  { %v1158_v28 = vadd.f32 %v1157_v8, %v10110_v12  ;;  %v1230_v19 = vpop.f32.mrf.mxu1  ;;  %v8808_v12 = vld [vmem:[%s14912_s1 + $0x214] sm:$0xf]  ;;  %v7610_v8 = vld [vmem:[%s14912_s1 + $0x218] sm:$0xf0] }
 0x1cd   :  { %v7613_v0 = vor.u32 %v8808_v12, %v7610_v8 }
 0x1ce   :  { %v10567_v43 = vadd.f32 %v1230_v19, %v1158_v28  ;;  %v8824_v28 = vld [vmem:[%s14912_s1 + $0x294] sm:$0xf] }
 0x1cf   :  { %1810 = vmatpush.bf16.msrb.mxu2 %v7613_v0  ;;  %v8889_v0 = vld [vmem:[%s14912_s1 + $0x3e4] sm:$0xf0] }
 0x1d1   :  { %v828_v35 = vpop.f32.mrf.mxu2 }
 0x1d2   :  { %v901_v30 = vpop.f32.mrf.mxu3 }
 0x1d3   :  { %v1160_v61 = vpop.f32.mrf.mxu0 }
 0x1d4   :  { %v1161_v62 = vadd.f32 %v1160_v61, %v10124_v58  ;;  %v1233_v21 = vpop.f32.mrf.mxu1  ;;  %v7674_v58 = vld [vmem:[%s14912_s1 + $0x298] sm:$0xf0] }
 0x1d5   :  { %v7677_v6 = vor.u32 %v8824_v28, %v7674_v58  ;;  %v1456_v28 = vrot.slane %v9530_v10, 1  ;;  %v1458_v58 = vrot.slane %v15098_v27, 1 }
 0x1d6   :  { %v10590_v19 = vadd.f32 %v1233_v21, %v1161_v62  ;;  %1285 = vmatmul.bf16.gmra.mxu2 %v9402_v60  ;;  %1701 = vmatmul.bf16.gmra.mxu0 %v10572_v13  ;;  %v7864_v60 = vld [vmem:[%s14912_s1 + $0x360] sm:$0xf] }
 0x1d7   :  { %1358 = vmatmul.bf16.gmra.mxu3 %v9411_v4  ;;  %1774 = vmatmul.bf16.gmra.mxu1 %v10576_v9  ;;  %v8873_v4 = vld [vmem:[%s14912_s1 + $0x364] sm:$0xf0] }
 0x1d8   :  { %1883 = vmatpush.bf16.msrb.mxu3 %v7677_v6  ;;  %v7865_v21 = vor.u32 %v8873_v4, %v7864_v60 }
 0x1d9   :  { %v1246_v35 = vpop.f32.mrf.mxu2 }
 0x1da   :  { %v1247_v30 = vadd.f32 %v1246_v35, %v10146_v55  ;;  %v1319_v61 = vpop.f32.mrf.mxu3  ;;  %2399 = vmatpush.bf16.msrb.mxu0 %v7865_v21  ;;  %v7928_v55 = vld [vmem:[%s14912_s1 + $0x3e0] sm:$0xf]  ;;  %v10620_v21 = vsel %vm1421_vm1, %v1454_v45, %v1458_v58 }
 0x1db   :  { %v1162_v12 = vpop.f32.mrf.mxu0  ;;  %v7929_v6 = vor.u32 %v8889_v0, %v7928_v55 }
 0x1dc   :  { %v10597_v8 = vadd.f32 %v1319_v61, %v1247_v30  ;;  %v1235_v62 = vpop.f32.mrf.mxu1 }
 0x1dd   :  { %2472 = vmatpush.bf16.msrb.mxu1 %v7929_v6  ;;  %v10615_v62 = vsel %vm1421_vm1, %v1452_v44, %v1456_v28 }
 0x1de   :  { %15133 = vst [vmem:[#allocation32_spill] sm:$0xff] %v10597_v8 }
 0x1e1   :  { %v1248_v35 = vpop.f32.mrf.mxu2 }
 0x1e2   :  { %v1249_v30 = vadd.f32 %v1248_v35, %v10162_v18  ;;  %v1321_v61 = vpop.f32.mrf.mxu3 }
 0x1e3   :  { %v1667_v12 = vpop.f32.mrf.mxu0 }
 0x1e4   :  { %v10617_v60 = vadd.f32 %v1321_v61, %v1249_v30  ;;  %v1740_v4 = vpop.f32.mrf.mxu1 }
 0x1e5   :  { %v1741_v8 = vadd.f32 %v1740_v4, %v1667_v12 }
 0x1e6   :  { %1290 = vmatmul.bf16.gmra.mxu2 %v9530_v10  ;;  %1706 = vmatmul.bf16.gmra.mxu0 %v10615_v62  ;;  %v1460_v10 = vrot.slane %v15104_v20, 1 }
 0x1e7   :  { %v10625_v55 = vadd.f32 %v1741_v8, %v10165_v46  ;;  %1363 = vmatmul.bf16.gmra.mxu3 %v15098_v27  ;;  %1779 = vmatmul.bf16.gmra.mxu1 %v10620_v21  ;;  %v8806_v46 = vld [vmem:[%s14912_s1 + $0x204] sm:$0xf]  ;;  %v7602_v27 = vld [vmem:[%s14912_s1 + $0x208] sm:$0xf0]  ;;  %v1462_v8 = vrot.slane %v15106_v26, 1 }
 0x1e8   :  { %v7605_v12 = vor.u32 %v8806_v46, %v7602_v27 }
 0x1e9   :  { %v1251_v18 = vpop.f32.mrf.mxu2  ;;  %v10656_v46 = vsel %vm1421_vm1, %v1458_v58, %v1462_v8  ;;  %v8871_v58 = vld [vmem:[%s14912_s1 + $0x354] sm:$0xf0] }
 0x1ea   :  { %v1252_v44 = vadd.f32 %v1251_v18, %v10171_v54  ;;  %v1324_v0 = vpop.f32.mrf.mxu3  ;;  %v8822_v54 = vld [vmem:[%s14912_s1 + $0x284] sm:$0xf]  ;;  %1811 = vmatpush.bf16.msrb.mxu2 %v7605_v12  ;;  %15138 = vst [vmem:[#allocation35_spill] sm:$0xff] %v10656_v46  ;;  %v8887_v12 = vld [vmem:[%s14912_s1 + $0x3d4] sm:$0xf0] }
 0x1eb   :  { %v1669_v6 = vpop.f32.mrf.mxu0 }
 0x1ec   :  { %v10630_v35 = vadd.f32 %v1324_v0, %v1252_v44  ;;  %v1742_v45 = vpop.f32.mrf.mxu1  ;;  %v15136_v44 = vld [vmem:[#allocation18_spill] sm:$0xff] }
 0x1ed   :  { %v1743_v30 = vadd.f32 %v1742_v45, %v1669_v6 }
 0x1ee   :  { %15134 = vst [vmem:[#allocation33_spill] sm:$0xff] %v10630_v35 }
 0x1ef   :  { %v10634_v61 = vadd.f32 %v1743_v30, %v10174_v16  ;;  %v7666_v16 = vld [vmem:[%s14912_s1 + $0x288] sm:$0xf0]  ;;  %v10651_v30 = vsel %vm1421_vm1, %v1456_v28, %v1460_v10  ;;  %v7856_v28 = vld [vmem:[%s14912_s1 + $0x350] sm:$0xf] }
 0x1f0   :  { %v7669_v18 = vor.u32 %v8822_v54, %v7666_v16  ;;  %v15139_v54 = vld [vmem:[#allocation19_spill] sm:$0xff] }
 0x1f1   :  { %15135 = vst [vmem:[#allocation34_spill] sm:$0xff] %v10634_v61  ;;  %v1253_v4 = vpop.f32.mrf.mxu2 }
 0x1f2   :  { %v1254_v0 = vadd.f32 %v1253_v4, %v15136_v44  ;;  %v1326_v6 = vpop.f32.mrf.mxu3  ;;  %1884 = vmatpush.bf16.msrb.mxu3 %v7669_v18  ;;  %v15141_v18 = vld [vmem:[#allocation12_spill] sm:$0xff] }
 0x1f3   :  { %v1672_v45 = vpop.f32.mrf.mxu0 }
 0x1f4   :  { %v10653_v61 = vadd.f32 %v1326_v6, %v1254_v0  ;;  %v1745_v35 = vpop.f32.mrf.mxu1 }
 0x1f5   :  { %v1746_v27 = vadd.f32 %v1745_v35, %v1672_v45  ;;  %v7857_v35 = vor.u32 %v8871_v58, %v7856_v28  ;;  %v14942_v28 = vrot.slane %v15108_v48, 1 }
 0x1f6   :  { %15137 = vst [vmem:[#allocation18_spill] sm:$0xff] %v10653_v61  ;;  %1295 = vmatmul.bf16.gmra.mxu2 %v15104_v20  ;;  %1711 = vmatmul.bf16.gmra.mxu0 %v10651_v30  ;;  %v7920_v20 = vld [vmem:[%s14912_s1 + $0x3d0] sm:$0xf] }
 0x1f7   :  { %v10661_v16 = vadd.f32 %v1746_v27, %v15139_v54  ;;  %1368 = vmatmul.bf16.gmra.mxu3 %v15106_v26  ;;  %1784 = vmatmul.bf16.gmra.mxu1 %v10656_v46  ;;  %v7921_v4 = vor.u32 %v8887_v12, %v7920_v20  ;;  %v7848_v20 = vld [vmem:[%s14912_s1 + $0x340] sm:$0xf] }
 0x1f8   :  { %2400 = vmatpush.bf16.msrb.mxu0 %v7857_v35  ;;  %v8869_v35 = vld [vmem:[%s14912_s1 + $0x344] sm:$0xf0]  ;;  %v7912_v12 = vld [vmem:[%s14912_s1 + $0x3c0] sm:$0xf] }
 0x1f9   :  { %15140 = vst [vmem:[#allocation19_spill] sm:$0xff] %v10661_v16  ;;  %v1256_v26 = vpop.f32.mrf.mxu2  ;;  %2473 = vmatpush.bf16.msrb.mxu1 %v7921_v4  ;;  %v15142_v16 = vld [vmem:[#allocation6_spill] sm:$0xff] }
 0x1fa   :  { %v1257_v44 = vadd.f32 %v1256_v26, %v15141_v18  ;;  %v1329_v0 = vpop.f32.mrf.mxu3  ;;  %v15144_v26 = vld [vmem:[#allocation20_spill] sm:$0xff]  ;;  %v7849_v18 = vor.u32 %v8869_v35, %v7848_v20  ;;  %v7840_v35 = vld [vmem:[%s14912_s1 + $0x330] sm:$0xf] }
 0x1fb   :  { %v1674_v6 = vpop.f32.mrf.mxu0 }
 0x1fc   :  { %v10678_v45 = vadd.f32 %v1329_v0, %v1257_v44  ;;  %v1747_v27 = vpop.f32.mrf.mxu1  ;;  %v8885_v44 = vld [vmem:[%s14912_s1 + $0x3c4] sm:$0xf0]  ;;  %2401 = vmatpush.bf16.msrb.mxu0 %v7849_v18  ;;  %v8890_v18 = vld [vmem:[%s14912_s1 + $0x3f4] sm:$0xf] }
 0x1fd   :  { %v1748_v54 = vadd.f32 %v1747_v27, %v1674_v6  ;;  %v10701_v6 = vsel %vm1421_vm1, %v1460_v10, %v14942_v28  ;;  %v7913_v27 = vor.u32 %v8885_v44, %v7912_v12  ;;  %v8867_v10 = vld [vmem:[%s14912_s1 + $0x334] sm:$0xf0]  ;;  %v7904_v12 = vld [vmem:[%s14912_s1 + $0x3b0] sm:$0xf] }
 0x1ff   :  { %v10681_v61 = vadd.f32 %v1748_v54, %v15142_v16  ;;  %2474 = vmatpush.bf16.msrb.mxu1 %v7913_v27  ;;  %v7938_v27 = vld [vmem:[%s14912_s1 + $0x3f8] sm:$0xf0] }
 0x201   :  { %15143 = vst [vmem:[#allocation12_spill] sm:$0xff] %v10681_v61  ;;  %v1258_v46 = vpop.f32.mrf.mxu2  ;;  %v15145_v61 = vrot.slane %v15109_v32, 1 }
 0x202   :  { %v1259_v16 = vadd.f32 %v1258_v46, %v15144_v26  ;;  %v1331_v4 = vpop.f32.mrf.mxu3 }
 0x203   :  { %v1677_v0 = vpop.f32.mrf.mxu0  ;;  %v10708_v46 = vsel %vm1421_vm1, %v1462_v8, %v15145_v61  ;;  %v7841_v61 = vor.u32 %v8867_v10, %v7840_v35  ;;  %v8883_v8 = vld [vmem:[%s14912_s1 + $0x3b4] sm:$0xf0]  ;;  %v7941_v35 = vor.u32 %v8890_v18, %v7938_v27  ;;  %v7832_v10 = vld [vmem:[%s14912_s1 + $0x320] sm:$0xf] }
 0x204   :  { %v10703_v54 = vadd.f32 %v1331_v4, %v1259_v16  ;;  %v1750_v58 = vpop.f32.mrf.mxu1  ;;  %v8874_v16 = vld [vmem:[%s14912_s1 + $0x374] sm:$0xf]  ;;  %v7874_v4 = vld [vmem:[%s14912_s1 + $0x378] sm:$0xf0]  ;;  %v7905_v44 = vor.u32 %v8883_v8, %v7904_v12  ;;  %v7896_v12 = vld [vmem:[%s14912_s1 + $0x3a0] sm:$0xf] }
 0x205   :  { %v1751_v20 = vadd.f32 %v1750_v58, %v1677_v0  ;;  %v15146_v58 = vld [vmem:[#allocation21_spill] sm:$0xff]  ;;  %v7877_v0 = vor.u32 %v8874_v16, %v7874_v4  ;;  %2402 = vmatpush.bf16.msrb.mxu0 %v7841_v61  ;;  %2617 = vmatpush.bf16.msra.mxu3 %v7941_v35 }
 0x206   :  { %1300 = vmatmul.bf16.gmra.mxu2 %v15108_v48  ;;  %1716 = vmatmul.bf16.gmra.mxu0 %v10701_v6  ;;  %v8881_v4 = vld [vmem:[%s14912_s1 + $0x3a4] sm:$0xf0] }
 0x207   :  { %v10725_v26 = vadd.f32 %v1751_v20, %v15146_v58  ;;  %1373 = vmatmul.bf16.gmra.mxu3 %v15109_v32  ;;  %1789 = vmatmul.bf16.gmra.mxu1 %v10708_v46  ;;  %v8865_v58 = vld [vmem:[%s14912_s1 + $0x324] sm:$0xf0] }
 0x208   :  { %2475 = vmatpush.bf16.msrb.mxu1 %v7905_v44  ;;  %2544 = vmatpush.bf16.msra.mxu2 %v7877_v0  ;;  %v7833_v61 = vor.u32 %v8865_v58, %v7832_v10  ;;  %v7897_v44 = vor.u32 %v8881_v4, %v7896_v12  ;;  %v8863_v0 = vld [vmem:[%s14912_s1 + $0x314] sm:$0xf0]  ;;  %v15150_v58 = vld [vmem:[#allocation14_spill] sm:$0xff] }
 0x209   :  { %15147 = vst [vmem:[#allocation6_spill] sm:$0xff] %v10725_v26  ;;  %v1261_v20 = vpop.f32.mrf.mxu2  ;;  %v8879_v10 = vld [vmem:[%s14912_s1 + $0x394] sm:$0xf0]  ;;  %v10772_v12 = vrot.slane %v15150_v58, 1 }
 0x20a   :  { %v1262_v8 = vadd.f32 %v1261_v20, %v10271_v14  ;;  %v1334_v16 = vpop.f32.mrf.mxu3  ;;  %2403 = vmatpush.bf16.msrb.mxu0 %v7833_v61  ;;  %v7824_v14 = vld [vmem:[%s14912_s1 + $0x310] sm:$0xf] }
 0x20b   :  { %v1679_v18 = vpop.f32.mrf.mxu0  ;;  %v7888_v20 = vld [vmem:[%s14912_s1 + $0x390] sm:$0xf]  ;;  %v7825_v35 = vor.u32 %v8863_v0, %v7824_v14  ;;  %15151 = vst [vmem:[#allocation14_spill] sm:$0xff] %v10772_v12 }
 0x20c   :  { %v10754_v27 = vadd.f32 %v1334_v16, %v1262_v8  ;;  %v1752_v28 = vpop.f32.mrf.mxu1  ;;  %2476 = vmatpush.bf16.msrb.mxu1 %v7897_v44  ;;  %v7889_v8 = vor.u32 %v8879_v10, %v7888_v20  ;;  %v15152_v16 = vld [vmem:[#allocation15_spill] sm:$0xff]  ;;  %v8861_v44 = vld [vmem:[%s14912_s1 + $0x304] sm:$0xf0]  ;;  %v15154_v10 = vrot.slane %v15108_v48, 1  ;;  %v15159_v48 = vld [vmem:[#allocation16_spill] sm:$0xff] }
 0x20d   :  { %v1753_v26 = vadd.f32 %v1752_v28, %v1679_v18  ;;  %v10775_v61 = vrot.slane %v15152_v16, 1  ;;  %v7816_v18 = vld [vmem:[%s14912_s1 + $0x300] sm:$0xf]  ;;  %v8877_v20 = vld [vmem:[%s14912_s1 + $0x384] sm:$0xf0] }
 0x20e   :  { %15148 = vst [vmem:[#allocation20_spill] sm:$0xff] %v10754_v27  ;;  %2404 = vmatpush.bf16.msrb.mxu0 %v7825_v35  ;;  %v7817_v0 = vor.u32 %v8861_v44, %v7816_v18  ;;  %v10794_v58 = vsel %vm1421_vm1, %v15154_v10, %v10772_v12  ;;  %v15158_v44 = vld [vmem:[#allocation8_spill] sm:$0xff] }
 0x20f   :  { %v10769_v28 = vadd.f32 %v1753_v26, %v10283_v50  ;;  %15153 = vst [vmem:[#allocation15_spill] sm:$0xff] %v10775_v61  ;;  %v7880_v50 = vld [vmem:[%s14912_s1 + $0x380] sm:$0xf] }
 0x210   :  { %2477 = vmatpush.bf16.msrb.mxu1 %v7889_v8  ;;  %v7881_v8 = vor.u32 %v8877_v20, %v7880_v50  ;;  %v15161_v50 = vld [vmem:[#allocation10_spill] sm:$0xff] }
 0x211   :  { %15149 = vst [vmem:[#allocation21_spill] sm:$0xff] %v10769_v28  ;;  %v1263_v4 = vpop.f32.mrf.mxu2 }
 0x212   :  { %v1264_v26 = vadd.f32 %v1263_v4, %v10300_v36  ;;  %v1336_v14 = vpop.f32.mrf.mxu3  ;;  %v15156_v36 = vrot.slane %v15109_v32, 1  ;;  %2405 = vmatpush.bf16.msrb.mxu0 %v7817_v0 }
 0x213   :  { %v1682_v35 = vpop.f32.mrf.mxu0 }
 0x214   :  { %v10796_v16 = vadd.f32 %v1336_v14, %v1264_v26  ;;  %v1755_v28 = vpop.f32.mrf.mxu1  ;;  %v10802_v4 = vsel %vm1421_vm1, %v15156_v36, %v10775_v61  ;;  %2478 = vmatpush.bf16.msrb.mxu1 %v7881_v8  ;;  %v15162_v14 = vld [vmem:[#allocation7_spill] sm:$0xff] }
 0x215   :  { %15157 = vst [vmem:[#allocation37_spill] sm:$0xff] %v10802_v4  ;;  %v1756_v18 = vadd.f32 %v1755_v28, %v1682_v35  ;;  %v15164_v35 = vld [vmem:[#allocation17_spill] sm:$0xff] }
 0x216   :  { %15155 = vst [vmem:[#allocation36_spill] sm:$0xff] %v10796_v16  ;;  %1305 = vmatmul.bf16.gmra.mxu2 %v15158_v44  ;;  %1721 = vmatmul.bf16.gmra.mxu0 %v10794_v58  ;;  %v7866_v44 = vld [vmem:[%s14912_s1 + $0x368] sm:$0xf0] }
 0x217   :  { %v10807_v10 = vadd.f32 %v1756_v18, %v15159_v48  ;;  %1378 = vmatmul.bf16.gmra.mxu3 %v15161_v50  ;;  %1794 = vmatmul.bf16.gmra.mxu1 %v10802_v4  ;;  %v8872_v18 = vld [vmem:[%s14912_s1 + $0x364] sm:$0xf] }
 0x218   :  { %v8888_v48 = vld [vmem:[%s14912_s1 + $0x3e4] sm:$0xf]  ;;  %v7869_v50 = vor.u32 %v8872_v18, %v7866_v44  ;;  %v10838_v18 = vld [vmem:[%s14911_s0 + $0x10] sm:$0xff] }
 0x219   :  { %15160 = vst [vmem:[#allocation8_spill] sm:$0xff] %v10807_v10  ;;  %v1266_v26 = vpop.f32.mrf.mxu2  ;;  %v15174_v10 = vunpack.c.h.b16 %v10838_v18 }
 0x21a   :  { %v1267_v32 = vadd.f32 %v1266_v26, %v15162_v14  ;;  %v1339_v20 = vpop.f32.mrf.mxu3  ;;  %v7930_v26 = vld [vmem:[%s14912_s1 + $0x3e8] sm:$0xf0]  ;;  %2545 = vmatpush.bf16.msra.mxu2 %v7869_v50  ;;  %15168 = vst [vmem:[#allocation17_spill] sm:$0xff] %v10838_v18 }
 0x21b   :  { %v1684_v36 = vpop.f32.mrf.mxu0 }
 0x21c   :  { %v10812_v16 = vadd.f32 %v1339_v20, %v1267_v32  ;;  %v1757_v28 = vpop.f32.mrf.mxu1  ;;  %v7933_v32 = vor.u32 %v8888_v48, %v7930_v26  ;;  %v15166_v20 = vld [vmem:[#allocation9_spill] sm:$0xff]  ;;  %v15169_v48 = vld [vmem:[#allocation11_spill] sm:$0xff] }
 0x21d   :  { %v1758_v0 = vadd.f32 %v1757_v28, %v1684_v36 }
 0x21e   :  { %15163 = vst [vmem:[#allocation16_spill] sm:$0xff] %v10812_v16  ;;  %2618 = vmatpush.bf16.msra.mxu3 %v7933_v32  ;;  %v2000_v16 = vld [vmem:[%s14911_s0 + $0x8] sm:$0xee]  ;;  %v7728_v32 = vld [vmem:[%s14911_s0 + $0x18] sm:$0xf] }
 0x21f   :  { %v10815_v8 = vadd.f32 %v1758_v0, %v15164_v35  ;;  %v2084_v26 = vunpack.c.l.b16 %v2000_v16 }
 0x221   :  { %15165 = vst [vmem:[#allocation10_spill] sm:$0xff] %v10815_v8  ;;  %v1268_v14 = vpop.f32.mrf.mxu2 }
 0x222   :  { %v1269_v36 = vadd.f32 %v1268_v14, %v15166_v20  ;;  %v1341_v28 = vpop.f32.mrf.mxu3  ;;  %v2085_v20 = vunpack.c.h.b16 %v2000_v16 }
 0x223   :  { %v1687_v0 = vpop.f32.mrf.mxu0 }
 0x224   :  { %v10830_v35 = vadd.f32 %v1341_v28, %v1269_v36  ;;  %v1760_v8 = vpop.f32.mrf.mxu1  ;;  %v8838_v28 = vld [vmem:[%s14911_s0 + $0x1c] sm:$0xf] }
 0x225   :  { %v1761_v44 = vadd.f32 %v1760_v8, %v1687_v0  ;;  %v8839_v8 = vld [vmem:[%s14911_s0 + $0x1c] sm:$0xf0]  ;;  %v15171_v0 = vld [vmem:[#allocation13_spill] sm:$0xff] }
 0x226   :  { %15167 = vst [vmem:[#allocation7_spill] sm:$0xff] %v10830_v35  ;;  %1726 = vmatmul.bf16.gmra.mxu0 %v10772_v12  ;;  %1812 = vmatmul.bf16.vlgmr.msrb.gmra.mxu2 %v10360_v23  ;;  %v10866_v16 = vor.u32 %v8839_v8, %v7728_v32  ;;  %v10872_v12 = vpack.c.b16 %v15174_v10, %v2085_v20 }
 0x227   :  { %v10843_v50 = vadd.f32 %v1761_v44, %v15169_v48  ;;  %1799 = vmatmul.bf16.gmra.mxu1 %v10775_v61  ;;  %1885 = vmatmul.bf16.vlgmr.msrb.gmra.mxu3 %v10364_v34  ;;  %v7730_v34 = vld [vmem:[%s14911_s0 + $0x20] sm:$0xf0] }
 0x228   :  { %15173 = vst [vmem:[#allocation11_spill] sm:$0xff] %v10866_v16  ;;  %v10874_v27 = vor.u32 %v8838_v28, %v7730_v34  ;;  %v8841_v34 = vld [vmem:[%s14911_s0 + $0x2c] sm:$0xf0] }
 0x229   :  { %15170 = vst [vmem:[#allocation9_spill] sm:$0xff] %v10843_v50  ;;  %v1271_v36 = vpop.f32.mrf.mxu2  ;;  %v15172_v50 = vunpack.c.l.b16 %v10838_v18  ;;  %v8870_v18 = vld [vmem:[%s14912_s1 + $0x354] sm:$0xf] }
 0x22a   :  { %v1272_v44 = vadd.f32 %v1271_v36, %v15171_v0  ;;  %v1344_v48 = vpop.f32.mrf.mxu3  ;;  %15175 = vst [vmem:[#allocation13_spill] sm:$0xff] %v10874_v27  ;;  %v2166_v32 = vrot.slane %v10874_v27, 1 }
 0x22b   :  { %v1689_v14 = vpop.f32.mrf.mxu0  ;;  %v10864_v35 = vpack.c.b16 %v15172_v50, %v2084_v26  ;;  %v2163_v50 = vrot.slane %v10866_v16, 1  ;;  %v2165_v26 = vrot.slane %v10872_v12, 1 }
 0x22c   :  { %v10868_v23 = vadd.f32 %v1344_v48, %v1272_v44  ;;  %v1762_v61 = vpop.f32.mrf.mxu1 }
 0x22d   :  { %v1763_v4 = vadd.f32 %v1762_v61, %v1689_v14  ;;  %v2162_v0 = vrot.slane %v10864_v35, 1 }
 0x22f   :  { %v10877_v36 = vadd.f32 %v1763_v4, %v10353_v56  ;;  %v10885_v20 = vsel %vm1421_vm1, %v2162_v0, %v2163_v50  ;;  %v10890_v4 = vsel %vm1421_vm1, %v2165_v26, %v2166_v32 }
 0x231   :  { %15176 = vst [vmem:[#allocation38_spill] sm:$0xff] %v10877_v36  ;;  %v1273_v8 = vpop.f32.mrf.mxu2 }
 0x232   :  { %v1274_v44 = vadd.f32 %v1273_v8, %v10357_v49  ;;  %v1346_v48 = vpop.f32.mrf.mxu3  ;;  %v7736_v49 = vld [vmem:[%s14911_s0 + $0x28] sm:$0xf] }
 0x233   :  { %v1692_v10 = vpop.f32.mrf.mxu0 }
 0x234   :  { %v10887_v61 = vadd.f32 %v1346_v48, %v1274_v44  ;;  %v1765_v56 = vpop.f32.mrf.mxu1  ;;  %v10912_v48 = vor.u32 %v8841_v34, %v7736_v49  ;;  %v7922_v34 = vld [vmem:[%s14912_s1 + $0x3d8] sm:$0xf0] }
 0x235   :  { %v1766_v14 = vadd.f32 %v1765_v56, %v1692_v10 }
 0x236   :  { %15177 = vst [vmem:[#allocation39_spill] sm:$0xff] %v10887_v61  ;;  %1817 = vmatmul.bf16.gmra.mxu2 %v10394_v57  ;;  %2406 = vmatmul.bf16.vlgmr.msrb.gmra.mxu0 %v10885_v20  ;;  %v8840_v57 = vld [vmem:[%s14911_s0 + $0x2c] sm:$0xf] }
 0x237   :  { %v10895_v28 = vadd.f32 %v1766_v14, %v10366_v42  ;;  %1890 = vmatmul.bf16.gmra.mxu3 %v10398_v59  ;;  %2479 = vmatmul.bf16.vlgmr.msrb.gmra.mxu1 %v10890_v4  ;;  %v7738_v42 = vld [vmem:[%s14911_s0 + $0x30] sm:$0xf0]  ;;  %v15179_v59 = vld [vmem:[#allocation5_spill] sm:$0xff] }
 0x238   :  { %15180 = vst [vmem:[#allocation5_spill] sm:$0xff] %v10912_v48  ;;  %v10916_v14 = vor.u32 %v8840_v57, %v7738_v42 }
 0x239   :  { %15178 = vst [vmem:[#allocation40_spill] sm:$0xff] %v10895_v28  ;;  %v1276_v0 = vpop.f32.mrf.mxu2  ;;  %v7858_v28 = vld [vmem:[%s14912_s1 + $0x358] sm:$0xf0] }
 0x23a   :  { %v1277_v26 = vadd.f32 %v1276_v0, %v15179_v59  ;;  %v1349_v8 = vpop.f32.mrf.mxu3  ;;  %15182 = vst [vmem:[#allocation42_spill] sm:$0xff] %v10916_v14  ;;  %v8886_v0 = vld [vmem:[%s14912_s1 + $0x3d4] sm:$0xf]  ;;  %v7861_v49 = vor.u32 %v8870_v18, %v7858_v28 }
 0x23b   :  { %v1694_v44 = vpop.f32.mrf.mxu0  ;;  %v7925_v57 = vor.u32 %v8886_v0, %v7922_v34 }
 0x23c   :  { %v10914_v10 = vadd.f32 %v1349_v8, %v1277_v26  ;;  %v1767_v56 = vpop.f32.mrf.mxu1  ;;  %v2168_v26 = vrot.slane %v10912_v48, 1  ;;  %2546 = vmatpush.bf16.msra.mxu2 %v7861_v49  ;;  %v2170_v8 = vrot.slane %v10916_v14, 1  ;;  %v15193_v48 = vld [vmem:[#allocation24_spill] sm:$0xff] }
 0x23d   :  { %v1768_v59 = vadd.f32 %v1767_v56, %v1694_v44  ;;  %2619 = vmatpush.bf16.msra.mxu3 %v7925_v57 }
 0x23e   :  { %15181 = vst [vmem:[#allocation41_spill] sm:$0xff] %v10914_v10  ;;  %v10937_v18 = vsel %vm1421_vm1, %v2163_v50, %v2168_v26 }
 0x23f   :  { %v10931_v42 = vadd.f32 %v1768_v59, %v10387_v2  ;;  %v10942_v2 = vsel %vm1421_vm1, %v2166_v32, %v2170_v8 }
 0x240   :  { %15185 = vst [vmem:[#allocation45_spill] sm:$0xff] %v10942_v2 }
 0x241   :  { %15183 = vst [vmem:[#allocation43_spill] sm:$0xff] %v10931_v42  ;;  %v1278_v10 = vpop.f32.mrf.mxu2 }
 0x242   :  { %v1279_v61 = vadd.f32 %v1278_v10, %v10391_v31  ;;  %v1351_v36 = vpop.f32.mrf.mxu3  ;;  %v7744_v31 = vld [vmem:[%s14911_s0 + $0x38] sm:$0xf] }
 0x243   :  { %v1697_v44 = vpop.f32.mrf.mxu0 }
 0x244   :  { %v10939_v28 = vadd.f32 %v1351_v36, %v1279_v61  ;;  %v1770_v56 = vpop.f32.mrf.mxu1  ;;  %v8843_v36 = vld [vmem:[%s14911_s0 + $0x3c] sm:$0xf0] }
 0x245   :  { %v1771_v0 = vadd.f32 %v1770_v56, %v1697_v44  ;;  %v10964_v49 = vor.u32 %v8843_v36, %v7744_v31 }
 0x246   :  { %15184 = vst [vmem:[#allocation44_spill] sm:$0xff] %v10939_v28  ;;  %1822 = vmatmul.bf16.gmra.mxu2 %v10416_v33  ;;  %2411 = vmatmul.bf16.gmra.mxu0 %v10937_v18  ;;  %v8842_v33 = vld [vmem:[%s14911_s0 + $0x3c] sm:$0xf] }
 0x247   :  { %v10947_v59 = vadd.f32 %v1771_v0, %v10400_v1  ;;  %1895 = vmatmul.bf16.gmra.mxu3 %v10420_v40  ;;  %2484 = vmatmul.bf16.gmra.mxu1 %v10942_v2  ;;  %v7746_v1 = vld [vmem:[%s14911_s0 + $0x40] sm:$0xf0]  ;;  %v15187_v40 = vld [vmem:[#allocation22_spill] sm:$0xff]  ;;  %v15191_v0 = vld [vmem:[#allocation23_spill] sm:$0xff]  ;;  %v2172_v28 = vrot.slane %v10964_v49, 1 }
 0x248   :  { %15188 = vst [vmem:[#allocation22_spill] sm:$0xff] %v10964_v49  ;;  %v10968_v44 = vor.u32 %v8842_v33, %v7746_v1 }
 0x249   :  { %15186 = vst [vmem:[#allocation46_spill] sm:$0xff] %v10947_v59  ;;  %v1281_v50 = vpop.f32.mrf.mxu2  ;;  %v10977_v31 = vsel %vm1421_vm1, %v2168_v26, %v2172_v28  ;;  %v7752_v26 = vld [vmem:[%s14911_s0 + $0x48] sm:$0xf] }
 0x24a   :  { %v1282_v32 = vadd.f32 %v1281_v50, %v15187_v40  ;;  %v1354_v61 = vpop.f32.mrf.mxu3  ;;  %15190 = vst [vmem:[#allocation48_spill] sm:$0xff] %v10968_v44  ;;  %v2174_v42 = vrot.slane %v10968_v44, 1 }
 0x24b   :  { %v1699_v10 = vpop.f32.mrf.mxu0 }
 0x24c   :  { %v10966_v34 = vadd.f32 %v1354_v61, %v1282_v32  ;;  %v1772_v57 = vpop.f32.mrf.mxu1  ;;  %v10982_v1 = vsel %vm1421_vm1, %v2170_v8, %v2174_v42  ;;  %v15195_v61 = vld [vmem:[#allocation25_spill] sm:$0xff] }
 0x24d   :  { %v1773_v56 = vadd.f32 %v1772_v57, %v1699_v10 }
 0x24e   :  { %15189 = vst [vmem:[#allocation47_spill] sm:$0xff] %v10966_v34 }
 0x24f   :  { %v10971_v59 = vadd.f32 %v1773_v56, %v15191_v0  ;;  %v8844_v56 = vld [vmem:[%s14911_s0 + $0x4c] sm:$0xf]  ;;  %v7754_v0 = vld [vmem:[%s14911_s0 + $0x50] sm:$0xf0] }
 0x251   :  { %15192 = vst [vmem:[#allocation23_spill] sm:$0xff] %v10971_v59  ;;  %v1283_v14 = vpop.f32.mrf.mxu2 }
 0x252   :  { %v1284_v50 = vadd.f32 %v1283_v14, %v15193_v48  ;;  %v1356_v40 = vpop.f32.mrf.mxu3  ;;  %v8868_v48 = vld [vmem:[%s14912_s1 + $0x344] sm:$0xf]  ;;  %v7850_v14 = vld [vmem:[%s14912_s1 + $0x348] sm:$0xf0] }
 0x253   :  { %v1702_v2 = vpop.f32.mrf.mxu0  ;;  %v7853_v8 = vor.u32 %v8868_v48, %v7850_v14 }
 0x254   :  { %v10979_v36 = vadd.f32 %v1356_v40, %v1284_v50  ;;  %v1775_v33 = vpop.f32.mrf.mxu1 }
 0x255   :  { %v1776_v32 = vadd.f32 %v1775_v33, %v1702_v2  ;;  %v7914_v2 = vld [vmem:[%s14912_s1 + $0x3c8] sm:$0xf0]  ;;  %2547 = vmatpush.bf16.msra.mxu2 %v7853_v8 }
 0x256   :  { %15194 = vst [vmem:[#allocation24_spill] sm:$0xff] %v10979_v36  ;;  %1827 = vmatmul.bf16.gmra.mxu2 %v10450_v39  ;;  %2416 = vmatmul.bf16.gmra.mxu0 %v10977_v31  ;;  %v8884_v39 = vld [vmem:[%s14912_s1 + $0x3c4] sm:$0xf] }
 0x257   :  { %v10987_v10 = vadd.f32 %v1776_v32, %v15195_v61  ;;  %1900 = vmatmul.bf16.gmra.mxu3 %v10454_v3  ;;  %2489 = vmatmul.bf16.gmra.mxu1 %v10982_v1  ;;  %v8845_v3 = vld [vmem:[%s14911_s0 + $0x4c] sm:$0xf0]  ;;  %v7917_v50 = vor.u32 %v8884_v39, %v7914_v2 }
 0x258   :  { %v11016_v61 = vor.u32 %v8845_v3, %v7752_v26 }
 0x259   :  { %15196 = vst [vmem:[#allocation25_spill] sm:$0xff] %v10987_v10  ;;  %v1286_v57 = vpop.f32.mrf.mxu2  ;;  %2620 = vmatpush.bf16.msra.mxu3 %v7917_v50  ;;  %v11020_v10 = vor.u32 %v8844_v56, %v7754_v0 }
 0x25a   :  { %v1287_v40 = vadd.f32 %v1286_v57, %v10440_v11  ;;  %v1359_v33 = vpop.f32.mrf.mxu3  ;;  %15197 = vst [vmem:[#allocation49_spill] sm:$0xff] %v11016_v61  ;;  %v2176_v34 = vrot.slane %v11016_v61, 1 }
 0x25b   :  { %v1704_v32 = vpop.f32.mrf.mxu0  ;;  %15198 = vst [vmem:[#allocation50_spill] sm:$0xff] %v11020_v10  ;;  %v2178_v39 = vrot.slane %v11020_v10, 1 }
 0x25c   :  { %v11018_v48 = vadd.f32 %v1359_v33, %v1287_v40  ;;  %v1777_v14 = vpop.f32.mrf.mxu1  ;;  %v11029_v3 = vsel %vm1421_vm1, %v2172_v28, %v2176_v34 }
 0x25d   :  { %v1778_v36 = vadd.f32 %v1777_v14, %v1704_v32  ;;  %v11034_v0 = vsel %vm1421_vm1, %v2174_v42, %v2178_v39  ;;  %v8847_v42 = vld [vmem:[%s14911_s0 + $0x5c] sm:$0xf0] }
 0x25f   :  { %v11023_v59 = vadd.f32 %v1778_v36, %v10443_v47 }
 0x261   :  { %v1288_v11 = vpop.f32.mrf.mxu2 }
 0x262   :  { %v1289_v8 = vadd.f32 %v1288_v11, %v10447_v52  ;;  %v1361_v2 = vpop.f32.mrf.mxu3  ;;  %v7760_v52 = vld [vmem:[%s14911_s0 + $0x58] sm:$0xf] }
 0x263   :  { %v1707_v26 = vpop.f32.mrf.mxu0  ;;  %v11056_v33 = vor.u32 %v8847_v42, %v7760_v52  ;;  %v7842_v52 = vld [vmem:[%s14912_s1 + $0x338] sm:$0xf0]  ;;  %v8882_v42 = vld [vmem:[%s14912_s1 + $0x3b4] sm:$0xf] }
 0x264   :  { %v11031_v57 = vadd.f32 %v1361_v2, %v1289_v8  ;;  %v1780_v56 = vpop.f32.mrf.mxu1 }
 0x265   :  { %v1781_v47 = vadd.f32 %v1780_v56, %v1707_v26  ;;  %v2180_v26 = vrot.slane %v11056_v33, 1  ;;  %v15204_v56 = vld [vmem:[#allocation27_spill] sm:$0xff] }
 0x266   :  { %1832 = vmatmul.bf16.gmra.mxu2 %v10484_v24  ;;  %2421 = vmatmul.bf16.gmra.mxu0 %v11029_v3  ;;  %v8846_v24 = vld [vmem:[%s14911_s0 + $0x5c] sm:$0xf] }
 0x267   :  { %v11039_v36 = vadd.f32 %v1781_v47, %v10456_v25  ;;  %1905 = vmatmul.bf16.gmra.mxu3 %v10488_v22  ;;  %2494 = vmatmul.bf16.gmra.mxu1 %v11034_v0  ;;  %v7762_v25 = vld [vmem:[%s14911_s0 + $0x60] sm:$0xf0]  ;;  %v15200_v22 = vld [vmem:[#allocation26_spill] sm:$0xff] }
 0x268   :  { %15201 = vst [vmem:[#allocation26_spill] sm:$0xff] %v11056_v33  ;;  %v11060_v8 = vor.u32 %v8846_v24, %v7762_v25  ;;  %v7906_v25 = vld [vmem:[%s14912_s1 + $0x3b8] sm:$0xf0] }
 0x269   :  { %15199 = vst [vmem:[#allocation51_spill] sm:$0xff] %v11039_v36  ;;  %v1291_v28 = vpop.f32.mrf.mxu2  ;;  %v8866_v36 = vld [vmem:[%s14912_s1 + $0x334] sm:$0xf] }
 0x26a   :  { %v1292_v50 = vadd.f32 %v1291_v28, %v15200_v22  ;;  %v1364_v40 = vpop.f32.mrf.mxu3  ;;  %15203 = vst [vmem:[#allocation53_spill] sm:$0xff] %v11060_v8  ;;  %v2182_v28 = vrot.slane %v11060_v8, 1  ;;  %v7845_v24 = vor.u32 %v8866_v36, %v7842_v52 }
 0x26b   :  { %v1709_v32 = vpop.f32.mrf.mxu0 }
 0x26c   :  { %v11058_v14 = vadd.f32 %v1364_v40, %v1292_v50  ;;  %v1782_v11 = vpop.f32.mrf.mxu1  ;;  %v7909_v50 = vor.u32 %v8882_v42, %v7906_v25  ;;  %2548 = vmatpush.bf16.msra.mxu2 %v7845_v24  ;;  %v11086_v36 = vsel %vm1421_vm1, %v2178_v39, %v2182_v28  ;;  %v8849_v39 = vld [vmem:[%s14911_s0 + $0x6c] sm:$0xf0] }
 0x26d   :  { %v1783_v2 = vadd.f32 %v1782_v11, %v1709_v32 }
 0x26e   :  { %15202 = vst [vmem:[#allocation52_spill] sm:$0xff] %v11058_v14  ;;  %2621 = vmatpush.bf16.msra.mxu3 %v7909_v50  ;;  %v15212_v14 = vld [vmem:[#allocation28_spill] sm:$0xff] }
 0x26f   :  { %v11064_v47 = vadd.f32 %v1783_v2, %v15204_v56  ;;  %v11081_v2 = vsel %vm1421_vm1, %v2176_v34, %v2180_v26  ;;  %v7768_v34 = vld [vmem:[%s14911_s0 + $0x68] sm:$0xf] }
 0x270   :  { %v11108_v25 = vor.u32 %v8849_v39, %v7768_v34 }
 0x271   :  { %15205 = vst [vmem:[#allocation27_spill] sm:$0xff] %v11064_v47  ;;  %v1293_v22 = vpop.f32.mrf.mxu2 }
 0x272   :  { %v1294_v40 = vadd.f32 %v1293_v22, %v10481_v51  ;;  %v1366_v32 = vpop.f32.mrf.mxu3  ;;  %15208 = vst [vmem:[#allocation56_spill] sm:$0xff] %v11108_v25 }
 0x273   :  { %v1712_v11 = vpop.f32.mrf.mxu0 }
 0x274   :  { %v11083_v56 = vadd.f32 %v1366_v32, %v1294_v40  ;;  %v1785_v47 = vpop.f32.mrf.mxu1 }
 0x275   :  { %v1786_v52 = vadd.f32 %v1785_v47, %v1712_v11 }
 0x276   :  { %15206 = vst [vmem:[#allocation54_spill] sm:$0xff] %v11083_v56  ;;  %1837 = vmatmul.bf16.gmra.mxu2 %v10506_v15  ;;  %2426 = vmatmul.bf16.gmra.mxu0 %v11081_v2  ;;  %v8848_v15 = vld [vmem:[%s14911_s0 + $0x6c] sm:$0xf] }
 0x277   :  { %v11091_v51 = vadd.f32 %v1786_v52, %v10490_v29  ;;  %1910 = vmatmul.bf16.gmra.mxu3 %v10510_v17  ;;  %2499 = vmatmul.bf16.gmra.mxu1 %v11086_v36  ;;  %v7770_v29 = vld [vmem:[%s14911_s0 + $0x70] sm:$0xf0]  ;;  %v2184_v52 = vrot.slane %v11108_v25, 1 }
 0x278   :  { %v11112_v40 = vor.u32 %v8848_v15, %v7770_v29 }
 0x279   :  { %15207 = vst [vmem:[#allocation55_spill] sm:$0xff] %v11091_v51  ;;  %v1296_v47 = vpop.f32.mrf.mxu2  ;;  %v11121_v34 = vsel %vm1421_vm1, %v2180_v26, %v2184_v52  ;;  %v7834_v26 = vld [vmem:[%s14912_s1 + $0x328] sm:$0xf0] }
 0x27a   :  { %v1297_v17 = vadd.f32 %v1296_v47, %v10496_v7  ;;  %v1369_v42 = vpop.f32.mrf.mxu3  ;;  %15210 = vst [vmem:[#allocation58_spill] sm:$0xff] %v11112_v40  ;;  %v2186_v51 = vrot.slane %v11112_v40, 1 }
 0x27b   :  { %v1714_v24 = vpop.f32.mrf.mxu0 }
 0x27c   :  { %v11110_v22 = vadd.f32 %v1369_v42, %v1297_v17  ;;  %v1787_v50 = vpop.f32.mrf.mxu1  ;;  %v11126_v29 = vsel %vm1421_vm1, %v2182_v28, %v2186_v51  ;;  %v15214_v17 = vld [vmem:[#allocation29_spill] sm:$0xff] }
 0x27d   :  { %v1788_v32 = vadd.f32 %v1787_v50, %v1714_v24  ;;  %v8850_v50 = vld [vmem:[%s14911_s0 + $0x7c] sm:$0xf] }
 0x27e   :  { %15209 = vst [vmem:[#allocation57_spill] sm:$0xff] %v11110_v22  ;;  %v8000_v22 = vld [vmem:[%s14912_s1 + $0x470] sm:$0xf] }
 0x27f   :  { %v11115_v11 = vadd.f32 %v1788_v32, %v10499_v63  ;;  %v7778_v32 = vld [vmem:[%s14911_s0 + $0x80] sm:$0xf0] }
 0x281   :  { %15211 = vst [vmem:[#allocation59_spill] sm:$0xff] %v11115_v11  ;;  %v1298_v56 = vpop.f32.mrf.mxu2 }
 0x282   :  { %v1299_v7 = vadd.f32 %v1298_v56, %v15212_v14  ;;  %v1371_v47 = vpop.f32.mrf.mxu3  ;;  %v8864_v14 = vld [vmem:[%s14912_s1 + $0x324] sm:$0xf]  ;;  %v7898_v56 = vld [vmem:[%s14912_s1 + $0x3a8] sm:$0xf0] }
 0x283   :  { %v1717_v8 = vpop.f32.mrf.mxu0  ;;  %v7837_v28 = vor.u32 %v8864_v14, %v7834_v26 }
 0x284   :  { %v11123_v39 = vadd.f32 %v1371_v47, %v1299_v7  ;;  %v1790_v15 = vpop.f32.mrf.mxu1  ;;  %v15216_v47 = vld [vmem:[#allocation30_spill] sm:$0xff] }
 0x285   :  { %v1791_v63 = vadd.f32 %v1790_v15, %v1717_v8  ;;  %v7776_v8 = vld [vmem:[%s14911_s0 + $0x78] sm:$0xf]  ;;  %2549 = vmatpush.bf16.msra.mxu2 %v7837_v28 }
 0x286   :  { %15213 = vst [vmem:[#allocation28_spill] sm:$0xff] %v11123_v39  ;;  %1842 = vmatmul.bf16.gmra.mxu2 %v10546_v38  ;;  %2431 = vmatmul.bf16.gmra.mxu0 %v11121_v34  ;;  %v8880_v38 = vld [vmem:[%s14912_s1 + $0x3a4] sm:$0xf]  ;;  %v11164_v39 = vor.u32 %v8850_v50, %v7778_v32 }
 0x287   :  { %v11131_v42 = vadd.f32 %v1791_v63, %v15214_v17  ;;  %1915 = vmatmul.bf16.gmra.mxu3 %v10550_v5  ;;  %2504 = vmatmul.bf16.gmra.mxu1 %v11126_v29  ;;  %v8851_v5 = vld [vmem:[%s14911_s0 + $0x7c] sm:$0xf0]  ;;  %v7901_v7 = vor.u32 %v8880_v38, %v7898_v56  ;;  %v8907_v38 = vld [vmem:[%s14912_s1 + $0x474] sm:$0xf0] }
 0x288   :  { %v11160_v14 = vor.u32 %v8851_v5, %v7776_v8  ;;  %15217 = vst [vmem:[#allocation30_spill] sm:$0xff] %v11164_v39  ;;  %v8001_v56 = vor.u32 %v8907_v38, %v8000_v22  ;;  %v2190_v5 = vrot.slane %v11164_v39, 1  ;;  %v8853_v38 = vld [vmem:[%s14911_s0 + $0x8c] sm:$0xf0] }
 0x289   :  { %15215 = vst [vmem:[#allocation29_spill] sm:$0xff] %v11131_v42  ;;  %v1301_v24 = vpop.f32.mrf.mxu2  ;;  %2622 = vmatpush.bf16.msra.mxu3 %v7901_v7 }
 0x28a   :  { %v1302_v15 = vadd.f32 %v1301_v24, %v15216_v47  ;;  %v1374_v63 = vpop.f32.mrf.mxu3  ;;  %v2188_v8 = vrot.slane %v11160_v14, 1  ;;  %3197 = vmatpush.bf16.msra.mxu0 %v8001_v56  ;;  %v11184_v22 = vsel %vm1421_vm1, %v2186_v51, %v2190_v5  ;;  %v7784_v51 = vld [vmem:[%s14911_s0 + $0x88] sm:$0xf]  ;;  %v8852_v56 = vld [vmem:[%s14911_s0 + $0x8c] sm:$0xf] }
 0x28b   :  { %v1719_v17 = vpop.f32.mrf.mxu0 }
 0x28c   :  { %v11162_v26 = vadd.f32 %v1374_v63, %v1302_v15  ;;  %v1792_v42 = vpop.f32.mrf.mxu1  ;;  %v11179_v7 = vsel %vm1421_vm1, %v2184_v52, %v2188_v8  ;;  %v15220_v63 = vld [vmem:[#allocation31_spill] sm:$0xff] }
 0x28d   :  { %v1793_v11 = vadd.f32 %v1792_v42, %v1719_v17 }
 0x28f   :  { %v11173_v28 = vadd.f32 %v1793_v11, %v10539_v53  ;;  %v8064_v11 = vld [vmem:[%s14912_s1 + $0x4f0] sm:$0xf] }
 0x291   :  { %15218 = vst [vmem:[#allocation60_spill] sm:$0xff] %v11173_v28  ;;  %v1303_v24 = vpop.f32.mrf.mxu2 }
 0x292   :  { %v1304_v42 = vadd.f32 %v1303_v24, %v10543_v41  ;;  %v1376_v50 = vpop.f32.mrf.mxu3  ;;  %v8923_v41 = vld [vmem:[%s14912_s1 + $0x4f4] sm:$0xf0] }
 0x293   :  { %v1722_v32 = vpop.f32.mrf.mxu0  ;;  %v8065_v52 = vor.u32 %v8923_v41, %v8064_v11 }
 0x294   :  { %v11181_v47 = vadd.f32 %v1376_v50, %v1304_v42  ;;  %v1795_v15 = vpop.f32.mrf.mxu1 }
 0x295   :  { %v1796_v53 = vadd.f32 %v1795_v15, %v1722_v32  ;;  %3270 = vmatpush.bf16.msra.mxu1 %v8065_v52  ;;  %v11212_v32 = vor.u32 %v8853_v38, %v7784_v51 }
 0x296   :  { %15219 = vst [vmem:[#allocation61_spill] sm:$0xff] %v11181_v47  ;;  %1847 = vmatmul.bf16.gmra.mxu2 %v10572_v13  ;;  %2436 = vmatmul.bf16.gmra.mxu0 %v11179_v7 }
 0x297   :  { %v11195_v17 = vadd.f32 %v1796_v53, %v15220_v63  ;;  %1920 = vmatmul.bf16.gmra.mxu3 %v10576_v9  ;;  %2509 = vmatmul.bf16.gmra.mxu1 %v11184_v22  ;;  %v7786_v9 = vld [vmem:[%s14911_s0 + $0x90] sm:$0xf0]  ;;  %15222 = vst [vmem:[#allocation62_spill] sm:$0xff] %v11212_v32  ;;  %v2192_v63 = vrot.slane %v11212_v32, 1 }
 0x298   :  { %v11216_v11 = vor.u32 %v8852_v56, %v7786_v9  ;;  %v7826_v9 = vld [vmem:[%s14912_s1 + $0x318] sm:$0xf0] }
 0x299   :  { %15221 = vst [vmem:[#allocation31_spill] sm:$0xff] %v11195_v17  ;;  %v1306_v13 = vpop.f32.mrf.mxu2 }
 0x29a   :  { %v1307_v24 = vadd.f32 %v1306_v13, %v10564_v37  ;;  %v1379_v42 = vpop.f32.mrf.mxu3  ;;  %15223 = vst [vmem:[#allocation63_spill] sm:$0xff] %v11216_v11  ;;  %v2194_v17 = vrot.slane %v11216_v11, 1  ;;  %v11224_v13 = vsel %vm1421_vm1, %v2188_v8, %v2192_v63 }
 0x29b   :  { %v1724_v50 = vpop.f32.mrf.mxu0 }
 0x29c   :  { %v11214_v15 = vadd.f32 %v1379_v42, %v1307_v24  ;;  %v1797_v53 = vpop.f32.mrf.mxu1  ;;  %v11227_v38 = vsel %vm1421_vm1, %v2190_v5, %v2194_v17  ;;  %v7890_v5 = vld [vmem:[%s14912_s1 + $0x398] sm:$0xf0]  ;;  %v7792_v42 = vld [vmem:[%s14911_s0 + $0x98] sm:$0xf] }
 0x29d   :  { %v1798_v41 = vadd.f32 %v1797_v53, %v1724_v50 }
 0x29f   :  { %v11219_v52 = vadd.f32 %v1798_v41, %v10567_v43  ;;  %v8862_v43 = vld [vmem:[%s14912_s1 + $0x314] sm:$0xf] }
 0x2a0   :  { %v7829_v8 = vor.u32 %v8862_v43, %v7826_v9  ;;  %v15226_v9 = vld [vmem:[#allocation32_spill] sm:$0xff] }
 0x2a1   :  { %v1308_v47 = vpop.f32.mrf.mxu2 }
 0x2a2   :  { %v1381_v28 = vpop.f32.mrf.mxu3  ;;  %2550 = vmatpush.bf16.msra.mxu2 %v7829_v8  ;;  %v7992_v8 = vld [vmem:[%s14912_s1 + $0x460] sm:$0xf] }
 0x2a3   :  { %v1727_v37 = vpop.f32.mrf.mxu0  ;;  %v8878_v28 = vld [vmem:[%s14912_s1 + $0x394] sm:$0xf] }
 0x2a4   :  { %v1800_v51 = vpop.f32.mrf.mxu1  ;;  %v7893_v24 = vor.u32 %v8878_v28, %v7890_v5  ;;  %v8905_v5 = vld [vmem:[%s14912_s1 + $0x464] sm:$0xf0] }
 0x2a5   :  { %v1801_v56 = vadd.f32 %v1800_v51, %v1727_v37 }
 0x2a6   :  { %1852 = vmatmul.bf16.gmra.mxu2 %v10615_v62  ;;  %2441 = vmatmul.bf16.gmra.mxu0 %v11224_v13  ;;  %v8855_v62 = vld [vmem:[%s14911_s0 + $0x9c] sm:$0xf0] }
 0x2a7   :  { %v11244_v47 = vadd.f32 %v1801_v56, %v10590_v19  ;;  %1925 = vmatmul.bf16.gmra.mxu3 %v10620_v21  ;;  %2514 = vmatmul.bf16.gmra.mxu1 %v11227_v38  ;;  %v8854_v19 = vld [vmem:[%s14911_s0 + $0x9c] sm:$0xf]  ;;  %v7794_v21 = vld [vmem:[%s14911_s0 + $0xa0] sm:$0xf0]  ;;  %v11260_v51 = vor.u32 %v8855_v62, %v7792_v42  ;;  %v8056_v42 = vld [vmem:[%s14912_s1 + $0x4e0] sm:$0xf] }
 0x2a8   :  { %2623 = vmatpush.bf16.msra.mxu3 %v7893_v24  ;;  %v11262_v43 = vor.u32 %v8854_v19, %v7794_v21  ;;  %v7993_v24 = vor.u32 %v8905_v5, %v7992_v8  ;;  %v8921_v62 = vld [vmem:[%s14912_s1 + $0x4e4] sm:$0xf0] }
 0x2a9   :  { %v1813_v50 = vpop.f32.mrf.mxu2  ;;  %15224 = vst [vmem:[#allocation64_spill] sm:$0xff] %v11260_v51  ;;  %v8057_v21 = vor.u32 %v8921_v62, %v8056_v42  ;;  %v15231_v42 = vld [vmem:[#allocation35_spill] sm:$0xff] }
 0x2aa   :  { %v1886_v53 = vpop.f32.mrf.mxu3  ;;  %15225 = vst [vmem:[#allocation65_spill] sm:$0xff] %v11262_v43  ;;  %v2198_v19 = vrot.slane %v11262_v43, 1  ;;  %3198 = vmatpush.bf16.msra.mxu0 %v7993_v24 }
 0x2ab   :  { %v1887_v41 = vadd.f32 %v1886_v53, %v1813_v50  ;;  %v1729_v37 = vpop.f32.mrf.mxu0  ;;  %v2196_v50 = vrot.slane %v11260_v51, 1  ;;  %3271 = vmatpush.bf16.msra.mxu1 %v8057_v21 }
 0x2ac   :  { %v1802_v56 = vpop.f32.mrf.mxu1  ;;  %v11285_v5 = vsel %vm1421_vm1, %v2194_v17, %v2198_v19  ;;  %v7800_v17 = vld [vmem:[%s14911_s0 + $0xa8] sm:$0xf] }
 0x2ad   :  { %v11265_v28 = vadd.f32 %v1887_v41, %v15226_v9  ;;  %v11282_v9 = vsel %vm1421_vm1, %v2192_v63, %v2196_v50  ;;  %15228 = vst [vmem:[#allocation66_spill] sm:$0xff] %v11285_v5 }
 0x2af   :  { %15227 = vst [vmem:[#allocation32_spill] sm:$0xff] %v11265_v28 }
 0x2b1   :  { %v1815_v53 = vpop.f32.mrf.mxu2 }
 0x2b2   :  { %v1888_v41 = vpop.f32.mrf.mxu3 }
 0x2b3   :  { %v1889_v37 = vadd.f32 %v1888_v41, %v1815_v53  ;;  %v2407_v56 = vpop.f32.mrf.mxu0 }
 0x2b4   :  { %v2480_v8 = vpop.f32.mrf.mxu1 }
 0x2b5   :  { %v11288_v28 = vadd.f32 %v1889_v37, %v10617_v60  ;;  %v2481_v51 = vadd.f32 %v2480_v8, %v2407_v56  ;;  %v8857_v60 = vld [vmem:[%s14911_s0 + $0xac] sm:$0xf0]  ;;  %v15234_v56 = vld [vmem:[#allocation33_spill] sm:$0xff] }
 0x2b6   :  { %1857 = vmatmul.bf16.gmra.mxu2 %v10651_v30  ;;  %2446 = vmatmul.bf16.gmra.mxu0 %v11282_v9  ;;  %v8856_v30 = vld [vmem:[%s14911_s0 + $0xac] sm:$0xf]  ;;  %v11309_v62 = vor.u32 %v8857_v60, %v7800_v17  ;;  %v8876_v60 = vld [vmem:[%s14912_s1 + $0x384] sm:$0xf] }
 0x2b7   :  { %15229 = vst [vmem:[#allocation67_spill] sm:$0xff] %v11288_v28  ;;  %v11293_v24 = vadd.f32 %v2481_v51, %v10625_v55  ;;  %1930 = vmatmul.bf16.gmra.mxu3 %v15231_v42  ;;  %2519 = vmatmul.bf16.gmra.mxu1 %v11285_v5  ;;  %v7802_v55 = vld [vmem:[%s14911_s0 + $0xb0] sm:$0xf0]  ;;  %v8860_v5 = vld [vmem:[%s14912_s1 + $0x304] sm:$0xf] }
 0x2b8   :  { %15232 = vst [vmem:[#allocation35_spill] sm:$0xff] %v11309_v62  ;;  %v11311_v37 = vor.u32 %v8856_v30, %v7802_v55  ;;  %v15236_v28 = vld [vmem:[#allocation34_spill] sm:$0xff]  ;;  %v7818_v17 = vld [vmem:[%s14912_s1 + $0x308] sm:$0xf0] }
 0x2b9   :  { %15230 = vst [vmem:[#allocation68_spill] sm:$0xff] %v11293_v24  ;;  %v1818_v63 = vpop.f32.mrf.mxu2  ;;  %v2200_v24 = vrot.slane %v11309_v62, 1  ;;  %v7821_v30 = vor.u32 %v8860_v5, %v7818_v17  ;;  %v15247_v62 = vld [vmem:[#allocation12_spill] sm:$0xff] }
 0x2ba   :  { %v1891_v51 = vpop.f32.mrf.mxu3  ;;  %15233 = vst [vmem:[#allocation69_spill] sm:$0xff] %v11311_v37 }
 0x2bb   :  { %v1892_v21 = vadd.f32 %v1891_v51, %v1818_v63  ;;  %v2409_v53 = vpop.f32.mrf.mxu0  ;;  %v2202_v63 = vrot.slane %v11311_v37, 1  ;;  %2551 = vmatpush.bf16.msra.mxu2 %v7821_v30 }
 0x2bc   :  { %v2482_v41 = vpop.f32.mrf.mxu1 }
 0x2bd   :  { %v11314_v8 = vadd.f32 %v1892_v21, %v15234_v56  ;;  %v2483_v42 = vadd.f32 %v2482_v41, %v2409_v53  ;;  %v11334_v56 = vsel %vm1421_vm1, %v2196_v50, %v2200_v24  ;;  %v7808_v50 = vld [vmem:[%s14911_s0 + $0xb8] sm:$0xf] }
 0x2be   :  { %15238 = vst [vmem:[#allocation70_spill] sm:$0xff] %v11334_v56 }
 0x2bf   :  { %15235 = vst [vmem:[#allocation33_spill] sm:$0xff] %v11314_v8  ;;  %v11318_v43 = vadd.f32 %v2483_v42, %v15236_v28  ;;  %v7882_v28 = vld [vmem:[%s14912_s1 + $0x388] sm:$0xf0]  ;;  %v15240_v8 = vld [vmem:[#allocation18_spill] sm:$0xff] }
 0x2c0   :  { %v7885_v51 = vor.u32 %v8876_v60, %v7882_v28  ;;  %v15242_v60 = vld [vmem:[#allocation19_spill] sm:$0xff] }
 0x2c1   :  { %15237 = vst [vmem:[#allocation34_spill] sm:$0xff] %v11318_v43  ;;  %v1820_v55 = vpop.f32.mrf.mxu2  ;;  %v11337_v43 = vsel %vm1421_vm1, %v2198_v19, %v2202_v63  ;;  %v7984_v19 = vld [vmem:[%s14912_s1 + $0x450] sm:$0xf] }
 0x2c2   :  { %v1893_v21 = vpop.f32.mrf.mxu3  ;;  %2624 = vmatpush.bf16.msra.mxu3 %v7885_v51  ;;  %15239 = vst [vmem:[#allocation71_spill] sm:$0xff] %v11337_v43 }
 0x2c3   :  { %v1894_v53 = vadd.f32 %v1893_v21, %v1820_v55  ;;  %v2412_v41 = vpop.f32.mrf.mxu0  ;;  %v8919_v55 = vld [vmem:[%s14912_s1 + $0x4d4] sm:$0xf0]  ;;  %v8858_v21 = vld [vmem:[%s14911_s0 + $0xbc] sm:$0xf] }
 0x2c4   :  { %v2485_v42 = vpop.f32.mrf.mxu1 }
 0x2c5   :  { %v11340_v5 = vadd.f32 %v1894_v53, %v15240_v8  ;;  %v2486_v17 = vadd.f32 %v2485_v42, %v2412_v41  ;;  %v8859_v8 = vld [vmem:[%s14911_s0 + $0xbc] sm:$0xf0]  ;;  %v7810_v53 = vld [vmem:[%s14911_s0 + $0xc0] sm:$0xf0] }
 0x2c6   :  { %1862 = vmatmul.bf16.gmra.mxu2 %v10701_v6  ;;  %2451 = vmatmul.bf16.gmra.mxu0 %v11334_v56  ;;  %v8903_v6 = vld [vmem:[%s14912_s1 + $0x454] sm:$0xf0] }
 0x2c7   :  { %15241 = vst [vmem:[#allocation18_spill] sm:$0xff] %v11340_v5  ;;  %v11345_v30 = vadd.f32 %v2486_v17, %v15242_v60  ;;  %1935 = vmatmul.bf16.gmra.mxu3 %v10708_v46  ;;  %2524 = vmatmul.bf16.gmra.mxu1 %v11337_v43  ;;  %v7985_v28 = vor.u32 %v8903_v6, %v7984_v19  ;;  %v8048_v46 = vld [vmem:[%s14912_s1 + $0x4d0] sm:$0xf] }
 0x2c8   :  { %v8049_v41 = vor.u32 %v8919_v55, %v8048_v46  ;;  %v11373_v19 = vor.u32 %v8859_v8, %v7808_v50  ;;  %v7976_v50 = vld [vmem:[%s14912_s1 + $0x440] sm:$0xf]  ;;  %v8901_v8 = vld [vmem:[%s14912_s1 + $0x444] sm:$0xf0] }
 0x2c9   :  { %15243 = vst [vmem:[#allocation19_spill] sm:$0xff] %v11345_v30  ;;  %v1823_v51 = vpop.f32.mrf.mxu2  ;;  %3199 = vmatpush.bf16.msra.mxu0 %v7985_v28  ;;  %v11375_v30 = vor.u32 %v8858_v21, %v7810_v53 }
 0x2ca   :  { %v1896_v42 = vpop.f32.mrf.mxu3  ;;  %15244 = vst [vmem:[#allocation72_spill] sm:$0xff] %v11373_v19  ;;  %3272 = vmatpush.bf16.msra.mxu1 %v8049_v41  ;;  %v14967_v56 = vrot.slane %v11373_v19, 1 }
 0x2cb   :  { %v1897_v17 = vadd.f32 %v1896_v42, %v1823_v51  ;;  %v2414_v60 = vpop.f32.mrf.mxu0  ;;  %15245 = vst [vmem:[#allocation73_spill] sm:$0xff] %v11375_v30  ;;  %v14966_v46 = vrot.slane %v11375_v30, 1 }
 0x2cc   :  { %v2487_v6 = vpop.f32.mrf.mxu1  ;;  %v11400_v53 = vsel %vm1421_vm1, %v2200_v24, %v14967_v56 }
 0x2cd   :  { %v11378_v5 = vadd.f32 %v1897_v17, %v10678_v45  ;;  %v2488_v37 = vadd.f32 %v2487_v6, %v2414_v60  ;;  %v8040_v45 = vld [vmem:[%s14912_s1 + $0x4c0] sm:$0xf]  ;;  %v11405_v17 = vsel %vm1421_vm1, %v2202_v63, %v14966_v46  ;;  %v11410_v60 = vld [vmem:[%s14911_s0 + $0xc8] sm:$0xff]  ;;  %v2025_v6 = vld [vmem:[%s14911_s0 + $0xd0] sm:$0x11] }
 0x2ce   :  { %15249 = vst [vmem:[#allocation75_spill] sm:$0xff] %v11405_v17  ;;  %v7968_v63 = vld [vmem:[%s14912_s1 + $0x430] sm:$0xf] }
 0x2cf   :  { %15246 = vst [vmem:[#allocation74_spill] sm:$0xff] %v11378_v5  ;;  %v11381_v43 = vadd.f32 %v2488_v37, %v15247_v62  ;;  %v7977_v62 = vor.u32 %v8901_v8, %v7976_v50  ;;  %v8917_v37 = vld [vmem:[%s14912_s1 + $0x4c4] sm:$0xf0]  ;;  %v8899_v50 = vld [vmem:[%s14912_s1 + $0x434] sm:$0xf0]  ;;  %v15256_v5 = vld [vmem:[#allocation20_spill] sm:$0xff] }
 0x2d0   :  { %v8041_v41 = vor.u32 %v8917_v37, %v8040_v45  ;;  %v8032_v8 = vld [vmem:[%s14912_s1 + $0x4b0] sm:$0xf]  ;;  %v8915_v45 = vld [vmem:[%s14912_s1 + $0x4b4] sm:$0xf0]  ;;  %v15253_v37 = vld [vmem:[#allocation37_spill] sm:$0xff] }
 0x2d1   :  { %15248 = vst [vmem:[#allocation12_spill] sm:$0xff] %v11381_v43  ;;  %v1825_v28 = vpop.f32.mrf.mxu2  ;;  %3200 = vmatpush.bf16.msra.mxu0 %v7977_v62 }
 0x2d2   :  { %v1898_v55 = vpop.f32.mrf.mxu3  ;;  %3273 = vmatpush.bf16.msra.mxu1 %v8041_v41  ;;  %v8002_v41 = vld [vmem:[%s14912_s1 + $0x478] sm:$0xf0] }
 0x2d3   :  { %v1899_v51 = vadd.f32 %v1898_v55, %v1825_v28  ;;  %v2417_v21 = vpop.f32.mrf.mxu0  ;;  %v15251_v55 = vld [vmem:[#allocation6_spill] sm:$0xff] }
 0x2d4   :  { %v2490_v42 = vpop.f32.mrf.mxu1 }
 0x2d5   :  { %v11416_v24 = vadd.f32 %v1899_v51, %v10703_v54  ;;  %v2491_v28 = vadd.f32 %v2490_v42, %v2417_v21  ;;  %v7969_v54 = vor.u32 %v8899_v50, %v7968_v63  ;;  %v2134_v21 = vunpack.c.l.b16 %v2025_v6  ;;  %v8922_v42 = vld [vmem:[%s14912_s1 + $0x4f4] sm:$0xf]  ;;  %v7960_v51 = vld [vmem:[%s14912_s1 + $0x420] sm:$0xf] }
 0x2d6   :  { %1867 = vmatmul.bf16.gmra.mxu2 %v10794_v58  ;;  %2456 = vmatmul.bf16.gmra.mxu0 %v11400_v53  ;;  %v8906_v58 = vld [vmem:[%s14912_s1 + $0x474] sm:$0xf]  ;;  %v2135_v50 = vunpack.c.h.b16 %v2025_v6  ;;  %v8024_v6 = vld [vmem:[%s14912_s1 + $0x4a0] sm:$0xf] }
 0x2d7   :  { %15250 = vst [vmem:[#allocation76_spill] sm:$0xff] %v11416_v24  ;;  %v11433_v62 = vadd.f32 %v2491_v28, %v15251_v55  ;;  %1940 = vmatmul.bf16.gmra.mxu3 %v15253_v37  ;;  %2529 = vmatmul.bf16.gmra.mxu1 %v11405_v17  ;;  %v8033_v28 = vor.u32 %v8915_v45, %v8032_v8  ;;  %v8066_v37 = vld [vmem:[%s14912_s1 + $0x4f8] sm:$0xf0]  ;;  %v8897_v8 = vld [vmem:[%s14912_s1 + $0x424] sm:$0xf0]  ;;  %v15255_v24 = vunpack.c.h.b16 %v11410_v60 }
 0x2d8   :  { %v8005_v55 = vor.u32 %v8906_v58, %v8002_v41  ;;  %3201 = vmatpush.bf16.msra.mxu0 %v7969_v54  ;;  %v8069_v56 = vor.u32 %v8922_v42, %v8066_v37  ;;  %v7961_v58 = vor.u32 %v8897_v8, %v7960_v51  ;;  %v8913_v54 = vld [vmem:[%s14912_s1 + $0x4a4] sm:$0xf0] }
 0x2d9   :  { %15252 = vst [vmem:[#allocation6_spill] sm:$0xff] %v11433_v62  ;;  %v1828_v46 = vpop.f32.mrf.mxu2  ;;  %3274 = vmatpush.bf16.msra.mxu1 %v8033_v28  ;;  %v15254_v28 = vunpack.c.l.b16 %v11410_v60  ;;  %v8025_v63 = vor.u32 %v8913_v54, %v8024_v6  ;;  %v2161_v43 = vpack.c.b16 %v2135_v50, %v15255_v24  ;;  %v15258_v24 = vld [vmem:[#allocation21_spill] sm:$0xff]  ;;  %v8008_v54 = vld [vmem:[%s14912_s1 + $0x480] sm:$0xf] }
 0x2da   :  { %v1901_v45 = vpop.f32.mrf.mxu3  ;;  %3343 = vmatpush.bf16.msrb.mxu2 %v8005_v55  ;;  %3416 = vmatpush.bf16.msrb.mxu3 %v8069_v56  ;;  %v8016_v56 = vld [vmem:[%s14912_s1 + $0x490] sm:$0xf] }
 0x2db   :  { %v1902_v41 = vadd.f32 %v1901_v45, %v1828_v46  ;;  %v2419_v42 = vpop.f32.mrf.mxu0  ;;  %v2160_v37 = vpack.c.b16 %v2134_v21, %v15254_v28  ;;  %v7952_v46 = vld [vmem:[%s14912_s1 + $0x410] sm:$0xf]  ;;  %v8895_v21 = vld [vmem:[%s14912_s1 + $0x414] sm:$0xf0]  ;;  %v11487_v8 = vrot.slane %v2161_v43, 1 }
 0x2dc   :  { %v2492_v62 = vpop.f32.mrf.mxu1  ;;  %3202 = vmatpush.bf16.msra.mxu0 %v7961_v58  ;;  %v7953_v55 = vor.u32 %v8895_v21, %v7952_v46  ;;  %v7944_v45 = vld [vmem:[%s14912_s1 + $0x400] sm:$0xf]  ;;  %v8893_v58 = vld [vmem:[%s14912_s1 + $0x404] sm:$0xf0] }
 0x2dd   :  { %v11468_v17 = vadd.f32 %v1902_v41, %v15256_v5  ;;  %v2493_v51 = vadd.f32 %v2492_v62, %v2419_v42  ;;  %3275 = vmatpush.bf16.msra.mxu1 %v8025_v63  ;;  %v8911_v5 = vld [vmem:[%s14912_s1 + $0x494] sm:$0xf0]  ;;  %v11485_v63 = vrot.slane %v2160_v37, 1  ;;  %15261 = vst [vmem:[#allocation77_spill] sm:$0xff] %v11487_v8  ;;  %v7945_v42 = vor.u32 %v8893_v58, %v7944_v45  ;;  %v8909_v43 = vld [vmem:[%s14912_s1 + $0x484] sm:$0xf0] }
 0x2de   :  { %v8017_v50 = vor.u32 %v8911_v5, %v8016_v56  ;;  %v8009_v21 = vor.u32 %v8909_v43, %v8008_v54  ;;  %v15268_v45 = vld [vmem:[#allocation14_spill] sm:$0xff]  ;;  %v15269_v58 = vld [vmem:[#allocation8_spill] sm:$0xff]  ;;  %v15271_v54 = vld [vmem:[#allocation15_spill] sm:$0xff] }
 0x2df   :  { %15257 = vst [vmem:[#allocation37_spill] sm:$0xff] %v11468_v17  ;;  %v11483_v62 = vadd.f32 %v2493_v51, %v15258_v24  ;;  %v15262_v51 = vrot.slane %v11373_v19, 1  ;;  %v15266_v24 = vld [vmem:[#allocation36_spill] sm:$0xff]  ;;  %v15280_v17 = vld [vmem:[#allocation38_spill] sm:$0xff] }
 0x2e0   :  { %15260 = vst [vmem:[#allocation21_spill] sm:$0xff] %v11485_v63  ;;  %3203 = vmatpush.bf16.msra.mxu0 %v7953_v55  ;;  %v15264_v55 = vrot.slane %v11375_v30, 1 }
 0x2e1   :  { %15259 = vst [vmem:[#allocation20_spill] sm:$0xff] %v11483_v62  ;;  %v1830_v6 = vpop.f32.mrf.mxu2  ;;  %3276 = vmatpush.bf16.msra.mxu1 %v8017_v50  ;;  %v11505_v46 = vsel %vm1421_vm1, %v15262_v51, %v11485_v63 }
 0x2e2   :  { %v1903_v41 = vpop.f32.mrf.mxu3  ;;  %15263 = vst [vmem:[#allocation78_spill] sm:$0xff] %v11505_v46  ;;  %v11511_v5 = vsel %vm1421_vm1, %v15264_v55, %v11487_v8 }
 0x2e3   :  { %v1904_v28 = vadd.f32 %v1903_v41, %v1830_v6  ;;  %v2422_v37 = vpop.f32.mrf.mxu0  ;;  %15265 = vst [vmem:[#allocation79_spill] sm:$0xff] %v11511_v5 }
 0x2e4   :  { %v2495_v56 = vpop.f32.mrf.mxu1  ;;  %3204 = vmatpush.bf16.msra.mxu0 %v7945_v42 }
 0x2e5   :  { %v11514_v50 = vadd.f32 %v1904_v28, %v15266_v24  ;;  %v2496_v6 = vadd.f32 %v2495_v56, %v2422_v37  ;;  %3277 = vmatpush.bf16.msra.mxu1 %v8009_v21  ;;  %v15272_v28 = vld [vmem:[#allocation16_spill] sm:$0xff]  ;;  %v15274_v21 = vld [vmem:[#allocation10_spill] sm:$0xff] }
 0x2e6   :  { %1872 = vmatmul.bf16.gmra.mxu2 %v15268_v45  ;;  %2461 = vmatmul.bf16.gmra.mxu0 %v11505_v46  ;;  %v7994_v45 = vld [vmem:[%s14912_s1 + $0x468] sm:$0xf0] }
 0x2e7   :  { %15267 = vst [vmem:[#allocation36_spill] sm:$0xff] %v11514_v50  ;;  %v11519_v41 = vadd.f32 %v2496_v6, %v15269_v58  ;;  %1945 = vmatmul.bf16.gmra.mxu3 %v15271_v54  ;;  %2534 = vmatmul.bf16.gmra.mxu1 %v11511_v5  ;;  %v8904_v6 = vld [vmem:[%s14912_s1 + $0x464] sm:$0xf] }
 0x2e8   :  { %v8920_v58 = vld [vmem:[%s14912_s1 + $0x4e4] sm:$0xf]  ;;  %v7997_v54 = vor.u32 %v8904_v6, %v7994_v45  ;;  %v2780_v6 = vshrl.u32 %v10864_v35, 16  ;;  %v15278_v45 = vld [vmem:[#allocation9_spill] sm:$0xff] }
 0x2e9   :  { %15270 = vst [vmem:[#allocation14_spill] sm:$0xff] %v11519_v41  ;;  %v1833_v43 = vpop.f32.mrf.mxu2 }
 0x2ea   :  { %v1906_v51 = vpop.f32.mrf.mxu3  ;;  %3344 = vmatpush.bf16.msrb.mxu2 %v7997_v54  ;;  %v2788_v54 = vshrl.u32 %v10866_v16, 16 }
 0x2eb   :  { %v1907_v55 = vadd.f32 %v1906_v51, %v1833_v43  ;;  %v2424_v42 = vpop.f32.mrf.mxu0 }
 0x2ec   :  { %v2497_v62 = vpop.f32.mrf.mxu1 }
 0x2ed   :  { %v11524_v24 = vadd.f32 %v1907_v55, %v15272_v28  ;;  %v2498_v37 = vadd.f32 %v2497_v62, %v2424_v42  ;;  %v8058_v62 = vld [vmem:[%s14912_s1 + $0x4e8] sm:$0xf0] }
 0x2ee   :  { %v8061_v51 = vor.u32 %v8920_v58, %v8058_v62  ;;  %v2783_v58 = vshll.u32 %v10864_v35, 16  ;;  %v2791_v62 = vshll.u32 %v10866_v16, 16 }
 0x2ef   :  { %15273 = vst [vmem:[#allocation8_spill] sm:$0xff] %v11524_v24  ;;  %v11527_v56 = vadd.f32 %v2498_v37, %v15274_v21  ;;  %v15276_v21 = vld [vmem:[#allocation7_spill] sm:$0xff] }
 0x2f0   :  { %3417 = vmatpush.bf16.msrb.mxu3 %v8061_v51  ;;  %v2800_v51 = vshll.u32 %v10872_v12, 16  ;;  %v2793_v35 = vrot.slane %v2791_v62, 2 }
 0x2f1   :  { %15275 = vst [vmem:[#allocation15_spill] sm:$0xff] %v11527_v56  ;;  %v1835_v43 = vpop.f32.mrf.mxu2 }
 0x2f2   :  { %v1908_v55 = vpop.f32.mrf.mxu3 }
 0x2f3   :  { %v1909_v42 = vadd.f32 %v1908_v55, %v1835_v43  ;;  %v2427_v28 = vpop.f32.mrf.mxu0  ;;  %v2797_v43 = vshrl.u32 %v10872_v12, 16  ;;  %v2808_v55 = vshll.u32 %v10874_v27, 16 }
 0x2f4   :  { %v2500_v37 = vpop.f32.mrf.mxu1 }
 0x2f5   :  { %v11542_v56 = vadd.f32 %v1909_v42, %v15276_v21  ;;  %v2501_v24 = vadd.f32 %v2500_v37, %v2427_v28  ;;  %v2782_v28 = vrot.slane %v2780_v6, 1 }
 0x2f6   :  { %2466 = vmatmul.bf16.gmra.mxu0 %v11485_v63  ;;  %2552 = vmatmul.bf16.vlgmr.msra.gmra.mxu2 %v10885_v20  ;;  %v2805_v20 = vshrl.u32 %v10874_v27, 16  ;;  %v2810_v63 = vrot.slane %v2808_v55, 2 }
 0x2f7   :  { %15277 = vst [vmem:[#allocation16_spill] sm:$0xff] %v11542_v56  ;;  %v11548_v41 = vadd.f32 %v2501_v24, %v15278_v45  ;;  %2539 = vmatmul.bf16.gmra.mxu1 %v11487_v8  ;;  %2625 = vmatmul.bf16.vlgmr.msra.gmra.mxu3 %v10890_v4  ;;  %v2785_v4 = vrot.slane %v2783_v58, 2  ;;  %v2790_v45 = vrot.slane %v2788_v54, 1  ;;  %v2799_v56 = vrot.slane %v2797_v43, 1 }
 0x2f8   :  { %v2802_v8 = vrot.slane %v2800_v51, 2  ;;  %v2807_v16 = vrot.slane %v2805_v20, 1 }
 0x2f9   :  { %15279 = vst [vmem:[#allocation10_spill] sm:$0xff] %v11548_v41  ;;  %v1838_v24 = vpop.f32.mrf.mxu2  ;;  %v2786_v27 = vor.u32 %v2785_v4, %v2782_v28  ;;  %v2794_v46 = vor.u32 %v2793_v35, %v2790_v45  ;;  %v15286_v28 = vld [vmem:[#allocation42_spill] sm:$0xff] }
 0x2fa   :  { %v1911_v42 = vpop.f32.mrf.mxu3  ;;  %v2803_v6 = vor.u32 %v2802_v8, %v2799_v56  ;;  %v15284_v8 = vld [vmem:[#allocation45_spill] sm:$0xff] }
 0x2fb   :  { %v1912_v37 = vadd.f32 %v1911_v42, %v1838_v24  ;;  %v2429_v21 = vpop.f32.mrf.mxu0  ;;  %v2811_v24 = vor.u32 %v2810_v63, %v2807_v16  ;;  %v11566_v43 = vsel %vm2778_vm2, %v2786_v27, %v2794_v46  ;;  %v15282_v16 = vld [vmem:[#allocation40_spill] sm:$0xff]  ;;  %v15285_v27 = vld [vmem:[#allocation5_spill] sm:$0xff] }
 0x2fc   :  { %v2502_v41 = vpop.f32.mrf.mxu1  ;;  %v2814_v56 = vshrl.u32 %v15285_v27, 16  ;;  %v2817_v55 = vshll.u32 %v15285_v27, 16 }
 0x2fd   :  { %v11560_v50 = vadd.f32 %v1912_v37, %v10868_v23  ;;  %v2503_v12 = vadd.f32 %v2502_v41, %v2429_v21  ;;  %v11569_v23 = vsel %vm2778_vm2, %v2803_v6, %v2811_v24  ;;  %v15281_v41 = vld [vmem:[#allocation39_spill] sm:$0xff]  ;;  %v2823_v37 = vshrl.u32 %v15286_v28, 16 }
 0x2fe   :  { %v2826_v21 = vshll.u32 %v15286_v28, 16  ;;  %v2819_v6 = vrot.slane %v2817_v55, 2  ;;  %v8050_v55 = vld [vmem:[%s14912_s1 + $0x4d8] sm:$0xf0] }
 0x2ff   :  { %v11563_v5 = vadd.f32 %v2503_v12, %v15280_v17  ;;  %v2816_v12 = vrot.slane %v2814_v56, 1 }
 0x301   :  { %v1840_v58 = vpop.f32.mrf.mxu2 }
 0x302   :  { %v1913_v54 = vpop.f32.mrf.mxu3 }
 0x303   :  { %v1914_v62 = vadd.f32 %v1913_v54, %v1840_v58  ;;  %v2432_v42 = vpop.f32.mrf.mxu0  ;;  %v2825_v54 = vrot.slane %v2823_v37, 1  ;;  %v15289_v37 = vld [vmem:[#allocation43_spill] sm:$0xff] }
 0x304   :  { %v2505_v51 = vpop.f32.mrf.mxu1 }
 0x305   :  { %v11572_v20 = vadd.f32 %v1914_v62, %v15281_v41  ;;  %v2506_v17 = vadd.f32 %v2505_v51, %v2432_v42  ;;  %v2828_v62 = vrot.slane %v2826_v21, 2  ;;  %v15287_v42 = vld [vmem:[#allocation41_spill] sm:$0xff] }
 0x306   :  { %2557 = vmatmul.bf16.gmra.mxu2 %v10937_v18  ;;  %3205 = vmatmul.bf16.vlgmr.msra.gmra.mxu0 %v11566_v43 }
 0x307   :  { %v11577_v63 = vadd.f32 %v2506_v17, %v15282_v16  ;;  %2630 = vmatmul.bf16.gmra.mxu3 %v15284_v8  ;;  %3278 = vmatmul.bf16.vlgmr.msra.gmra.mxu1 %v11569_v23  ;;  %v8902_v17 = vld [vmem:[%s14912_s1 + $0x454] sm:$0xf]  ;;  %v7986_v16 = vld [vmem:[%s14912_s1 + $0x458] sm:$0xf0] }
 0x308   :  { %v8918_v8 = vld [vmem:[%s14912_s1 + $0x4d4] sm:$0xf]  ;;  %v7989_v56 = vor.u32 %v8902_v17, %v7986_v16 }
 0x309   :  { %15283 = vst [vmem:[#allocation7_spill] sm:$0xff] %v11577_v63  ;;  %v1843_v4 = vpop.f32.mrf.mxu2 }
 0x30a   :  { %v1916_v45 = vpop.f32.mrf.mxu3  ;;  %3345 = vmatpush.bf16.msrb.mxu2 %v7989_v56 }
 0x30b   :  { %v1917_v18 = vadd.f32 %v1916_v45, %v1843_v4  ;;  %v2434_v35 = vpop.f32.mrf.mxu0  ;;  %v2820_v4 = vor.u32 %v2819_v6, %v2816_v12  ;;  %v8053_v45 = vor.u32 %v8918_v8, %v8050_v55  ;;  %v15293_v12 = vld [vmem:[#allocation46_spill] sm:$0xff] }
 0x30c   :  { %v2507_v58 = vpop.f32.mrf.mxu1 }
 0x30d   :  { %v11586_v51 = vadd.f32 %v1917_v18, %v15287_v42  ;;  %v2508_v41 = vadd.f32 %v2507_v58, %v2434_v35  ;;  %v2829_v18 = vor.u32 %v2828_v62, %v2825_v54  ;;  %3418 = vmatpush.bf16.msrb.mxu3 %v8053_v45  ;;  %v11604_v27 = vsel %vm2778_vm2, %v2794_v46, %v2820_v4 }
 0x30e   :  { %v2832_v46 = vshrl.u32 %v10964_v49, 16  ;;  %v2841_v54 = vshrl.u32 %v10968_v44, 16  ;;  %v2844_v62 = vshll.u32 %v10968_v44, 16 }
 0x30f   :  { %15288 = vst [vmem:[#allocation9_spill] sm:$0xff] %v11586_v51  ;;  %v11601_v21 = vadd.f32 %v2508_v41, %v15289_v37  ;;  %v11607_v16 = vsel %vm2778_vm2, %v2811_v24, %v2829_v18  ;;  %v15291_v51 = vld [vmem:[#allocation44_spill] sm:$0xff]  ;;  %v2835_v24 = vshll.u32 %v10964_v49, 16 }
 0x310   :  { %v2834_v56 = vrot.slane %v2832_v46, 1  ;;  %v2843_v45 = vrot.slane %v2841_v54, 1  ;;  %v15297_v54 = vld [vmem:[#allocation24_spill] sm:$0xff] }
 0x311   :  { %15290 = vst [vmem:[#allocation38_spill] sm:$0xff] %v11601_v21  ;;  %v1845_v35 = vpop.f32.mrf.mxu2  ;;  %v2837_v55 = vrot.slane %v2835_v24, 2 }
 0x312   :  { %v1918_v58 = vpop.f32.mrf.mxu3 }
 0x313   :  { %v1919_v42 = vadd.f32 %v1918_v58, %v1845_v35  ;;  %v2437_v28 = vpop.f32.mrf.mxu0  ;;  %v2846_v35 = vrot.slane %v2844_v62, 2 }
 0x314   :  { %v2510_v17 = vpop.f32.mrf.mxu1 }
 0x315   :  { %v11610_v63 = vadd.f32 %v1919_v42, %v15291_v51  ;;  %v2511_v41 = vadd.f32 %v2510_v17, %v2437_v28  ;;  %v15296_v17 = vld [vmem:[#allocation23_spill] sm:$0xff]  ;;  %v2847_v49 = vor.u32 %v2846_v35, %v2843_v45 }
 0x316   :  { %2562 = vmatmul.bf16.gmra.mxu2 %v10977_v31  ;;  %3210 = vmatmul.bf16.gmra.mxu0 %v11604_v27 }
 0x317   :  { %15292 = vst [vmem:[#allocation39_spill] sm:$0xff] %v11610_v63  ;;  %v11615_v6 = vadd.f32 %v2511_v41, %v15293_v12  ;;  %2635 = vmatmul.bf16.gmra.mxu3 %v10982_v1  ;;  %3283 = vmatmul.bf16.gmra.mxu1 %v11607_v16  ;;  %v15295_v1 = vld [vmem:[#allocation47_spill] sm:$0xff]  ;;  %v2838_v12 = vor.u32 %v2837_v55, %v2834_v56 }
 0x318   :  { %v11633_v24 = vsel %vm2778_vm2, %v2829_v18, %v2847_v49  ;;  %v2862_v18 = vshll.u32 %v11020_v10, 16 }
 0x319   :  { %15294 = vst [vmem:[#allocation40_spill] sm:$0xff] %v11615_v6  ;;  %v1848_v28 = vpop.f32.mrf.mxu2 }
 0x31a   :  { %v1921_v51 = vpop.f32.mrf.mxu3 }
 0x31b   :  { %v1922_v31 = vadd.f32 %v1921_v51, %v1848_v28  ;;  %v2439_v8 = vpop.f32.mrf.mxu0  ;;  %v11630_v28 = vsel %vm2778_vm2, %v2820_v4, %v2838_v12  ;;  %v2859_v4 = vshrl.u32 %v11020_v10, 16 }
 0x31c   :  { %v2512_v37 = vpop.f32.mrf.mxu1 }
 0x31d   :  { %v11624_v58 = vadd.f32 %v1922_v31, %v15295_v1  ;;  %v2513_v42 = vadd.f32 %v2512_v37, %v2439_v8  ;;  %v2850_v31 = vshrl.u32 %v11016_v61, 16 }
 0x31f   :  { %v11627_v41 = vadd.f32 %v2513_v42, %v15296_v17  ;;  %v2852_v42 = vrot.slane %v2850_v31, 1 }
 0x321   :  { %v1850_v6 = vpop.f32.mrf.mxu2 }
 0x322   :  { %v1923_v44 = vpop.f32.mrf.mxu3 }
 0x323   :  { %v1924_v63 = vadd.f32 %v1923_v44, %v1850_v6  ;;  %v2442_v21 = vpop.f32.mrf.mxu0  ;;  %v2853_v44 = vshll.u32 %v11016_v61, 16  ;;  %v15298_v6 = vld [vmem:[#allocation25_spill] sm:$0xff] }
 0x324   :  { %v2515_v46 = vpop.f32.mrf.mxu1 }
 0x325   :  { %v11636_v62 = vadd.f32 %v1924_v63, %v15297_v54  ;;  %v2516_v51 = vadd.f32 %v2515_v46, %v2442_v21  ;;  %v8900_v63 = vld [vmem:[%s14912_s1 + $0x444] sm:$0xf]  ;;  %v2855_v17 = vrot.slane %v2853_v44, 2  ;;  %v2861_v54 = vrot.slane %v2859_v4, 1 }
 0x326   :  { %2567 = vmatmul.bf16.gmra.mxu2 %v11029_v3  ;;  %3215 = vmatmul.bf16.gmra.mxu0 %v11630_v28  ;;  %v7978_v3 = vld [vmem:[%s14912_s1 + $0x448] sm:$0xf0]  ;;  %v8916_v21 = vld [vmem:[%s14912_s1 + $0x4c4] sm:$0xf] }
 0x327   :  { %v11643_v8 = vadd.f32 %v2516_v51, %v15298_v6  ;;  %2640 = vmatmul.bf16.gmra.mxu3 %v11034_v0  ;;  %3288 = vmatmul.bf16.gmra.mxu1 %v11633_v24  ;;  %v7981_v56 = vor.u32 %v8900_v63, %v7978_v3  ;;  %v8042_v0 = vld [vmem:[%s14912_s1 + $0x4c8] sm:$0xf0]  ;;  %v2864_v51 = vrot.slane %v2862_v18, 2  ;;  %v2856_v10 = vor.u32 %v2855_v17, %v2852_v42 }
 0x328   :  { %v8045_v37 = vor.u32 %v8916_v21, %v8042_v0 }
 0x329   :  { %v1853_v55 = vpop.f32.mrf.mxu2  ;;  %3346 = vmatpush.bf16.msrb.mxu2 %v7981_v56  ;;  %v2865_v61 = vor.u32 %v2864_v51, %v2861_v54  ;;  %v11668_v31 = vsel %vm2778_vm2, %v2838_v12, %v2856_v10  ;;  %v2868_v12 = vshrl.u32 %v11056_v33, 16 }
 0x32a   :  { %v1926_v45 = vpop.f32.mrf.mxu3  ;;  %3419 = vmatpush.bf16.msrb.mxu3 %v8045_v37 }
 0x32b   :  { %v1927_v35 = vadd.f32 %v1926_v45, %v1853_v55  ;;  %v2444_v1 = vpop.f32.mrf.mxu0  ;;  %v11671_v4 = vsel %vm2778_vm2, %v2847_v49, %v2865_v61  ;;  %v2871_v49 = vshll.u32 %v11056_v33, 16  ;;  %v15300_v45 = vld [vmem:[#allocation53_spill] sm:$0xff] }
 0x32c   :  { %v2517_v46 = vpop.f32.mrf.mxu1 }
 0x32d   :  { %v11662_v6 = vadd.f32 %v1927_v35, %v11018_v48  ;;  %v2518_v63 = vadd.f32 %v2517_v46, %v2444_v1  ;;  %v2877_v35 = vshrl.u32 %v15300_v45, 16  ;;  %v2870_v46 = vrot.slane %v2868_v12, 1  ;;  %v7970_v12 = vld [vmem:[%s14912_s1 + $0x438] sm:$0xf0] }
 0x32e   :  { %v2873_v54 = vrot.slane %v2871_v49, 2  ;;  %v8914_v49 = vld [vmem:[%s14912_s1 + $0x4b4] sm:$0xf] }
 0x32f   :  { %v11665_v3 = vadd.f32 %v2518_v63, %v11023_v59  ;;  %v15299_v59 = vld [vmem:[#allocation51_spill] sm:$0xff]  ;;  %v2879_v63 = vrot.slane %v2877_v35, 1 }
 0x331   :  { %v1855_v21 = vpop.f32.mrf.mxu2 }
 0x332   :  { %v1928_v0 = vpop.f32.mrf.mxu3 }
 0x333   :  { %v1929_v56 = vadd.f32 %v1928_v0, %v1855_v21  ;;  %v2447_v55 = vpop.f32.mrf.mxu0 }
 0x334   :  { %v2520_v44 = vpop.f32.mrf.mxu1 }
 0x335   :  { %v11674_v48 = vadd.f32 %v1929_v56, %v11031_v57  ;;  %v2521_v18 = vadd.f32 %v2520_v44, %v2447_v55  ;;  %v2880_v57 = vshll.u32 %v15300_v45, 16  ;;  %v15303_v55 = vld [vmem:[#allocation27_spill] sm:$0xff] }
 0x336   :  { %2572 = vmatmul.bf16.gmra.mxu2 %v11081_v2  ;;  %3220 = vmatmul.bf16.gmra.mxu0 %v11668_v31 }
 0x337   :  { %v11679_v37 = vadd.f32 %v2521_v18, %v15299_v59  ;;  %2645 = vmatmul.bf16.gmra.mxu3 %v11086_v36  ;;  %3293 = vmatmul.bf16.gmra.mxu1 %v11671_v4  ;;  %v2882_v21 = vrot.slane %v2880_v57, 2  ;;  %v15301_v36 = vld [vmem:[#allocation52_spill] sm:$0xff]  ;;  %v2874_v18 = vor.u32 %v2873_v54, %v2870_v46  ;;  %v8898_v59 = vld [vmem:[%s14912_s1 + $0x434] sm:$0xf] }
 0x338   :  { %v7973_v57 = vor.u32 %v8898_v59, %v7970_v12  ;;  %v15307_v59 = vld [vmem:[#allocation55_spill] sm:$0xff] }
 0x339   :  { %v1858_v1 = vpop.f32.mrf.mxu2  ;;  %v2883_v35 = vor.u32 %v2882_v21, %v2879_v63  ;;  %v15305_v63 = vld [vmem:[#allocation54_spill] sm:$0xff] }
 0x33a   :  { %v1931_v42 = vpop.f32.mrf.mxu3  ;;  %3347 = vmatpush.bf16.msrb.mxu2 %v7973_v57  ;;  %v2898_v57 = vshll.u32 %v11112_v40, 16 }
 0x33b   :  { %v1932_v2 = vadd.f32 %v1931_v42, %v1858_v1  ;;  %v2449_v17 = vpop.f32.mrf.mxu0  ;;  %v8034_v1 = vld [vmem:[%s14912_s1 + $0x4b8] sm:$0xf0] }
 0x33c   :  { %v2522_v51 = vpop.f32.mrf.mxu1 }
 0x33d   :  { %v11688_v0 = vadd.f32 %v1932_v2, %v15301_v36  ;;  %v2523_v56 = vadd.f32 %v2522_v51, %v2449_v17  ;;  %v8037_v2 = vor.u32 %v8914_v49, %v8034_v1  ;;  %v11706_v51 = vsel %vm2778_vm2, %v2856_v10, %v2874_v18 }
 0x33e   :  { %v2886_v10 = vshrl.u32 %v11108_v25, 16  ;;  %v2895_v49 = vshrl.u32 %v11112_v40, 16 }
 0x33f   :  { %15302 = vst [vmem:[#allocation45_spill] sm:$0xff] %v11688_v0  ;;  %v11691_v44 = vadd.f32 %v2523_v56, %v15303_v55  ;;  %3420 = vmatpush.bf16.msrb.mxu3 %v8037_v2  ;;  %v11709_v56 = vsel %vm2778_vm2, %v2865_v61, %v2883_v35  ;;  %v2889_v61 = vshll.u32 %v11108_v25, 16 }
 0x341   :  { %15304 = vst [vmem:[#allocation41_spill] sm:$0xff] %v11691_v44  ;;  %v1860_v42 = vpop.f32.mrf.mxu2 }
 0x342   :  { %v1933_v17 = vpop.f32.mrf.mxu3 }
 0x343   :  { %v1934_v46 = vadd.f32 %v1933_v17, %v1860_v42  ;;  %v2452_v54 = vpop.f32.mrf.mxu0  ;;  %v2888_v17 = vrot.slane %v2886_v10, 1 }
 0x344   :  { %v2525_v36 = vpop.f32.mrf.mxu1 }
 0x345   :  { %v11712_v21 = vadd.f32 %v1934_v46, %v15305_v63  ;;  %v2526_v55 = vadd.f32 %v2525_v36, %v2452_v54  ;;  %v2891_v46 = vrot.slane %v2889_v61, 2  ;;  %v2897_v36 = vrot.slane %v2895_v49, 1  ;;  %v15311_v49 = vld [vmem:[#allocation28_spill] sm:$0xff] }
 0x346   :  { %2577 = vmatmul.bf16.gmra.mxu2 %v11121_v34  ;;  %3225 = vmatmul.bf16.gmra.mxu0 %v11706_v51  ;;  %v2900_v63 = vrot.slane %v2898_v57, 2 }
 0x347   :  { %15306 = vst [vmem:[#allocation43_spill] sm:$0xff] %v11712_v21  ;;  %v11717_v12 = vadd.f32 %v2526_v55, %v15307_v59  ;;  %2650 = vmatmul.bf16.gmra.mxu3 %v11126_v29  ;;  %3298 = vmatmul.bf16.gmra.mxu1 %v11709_v56  ;;  %v15309_v29 = vld [vmem:[#allocation57_spill] sm:$0xff]  ;;  %v2892_v25 = vor.u32 %v2891_v46, %v2888_v17 }
 0x348   :  { %v2901_v45 = vor.u32 %v2900_v63, %v2897_v36 }
 0x349   :  { %15308 = vst [vmem:[#allocation44_spill] sm:$0xff] %v11717_v12  ;;  %v1863_v1 = vpop.f32.mrf.mxu2  ;;  %v15310_v12 = vld [vmem:[#allocation59_spill] sm:$0xff] }
 0x34a   :  { %v1936_v42 = vpop.f32.mrf.mxu3  ;;  %v11735_v61 = vsel %vm2778_vm2, %v2883_v35, %v2901_v45  ;;  %v2916_v35 = vshll.u32 %v11164_v39, 16 }
 0x34b   :  { %v1937_v34 = vadd.f32 %v1936_v42, %v1863_v1  ;;  %v2454_v2 = vpop.f32.mrf.mxu0  ;;  %v11732_v1 = vsel %vm2778_vm2, %v2874_v18, %v2892_v25  ;;  %v2913_v18 = vshrl.u32 %v11164_v39, 16 }
 0x34c   :  { %v2527_v54 = vpop.f32.mrf.mxu1 }
 0x34d   :  { %v11726_v55 = vadd.f32 %v1937_v34, %v15309_v29  ;;  %v2528_v59 = vadd.f32 %v2527_v54, %v2454_v2 }
 0x34f   :  { %v11729_v21 = vadd.f32 %v2528_v59, %v15310_v12  ;;  %v2904_v12 = vshrl.u32 %v11160_v14, 16 }
 0x351   :  { %v1865_v44 = vpop.f32.mrf.mxu2  ;;  %v2906_v29 = vrot.slane %v2904_v12, 1 }
 0x352   :  { %v1938_v40 = vpop.f32.mrf.mxu3 }
 0x353   :  { %v1939_v33 = vadd.f32 %v1938_v40, %v1865_v44  ;;  %v2457_v0 = vpop.f32.mrf.mxu0  ;;  %v2907_v40 = vshll.u32 %v11160_v14, 16  ;;  %v15312_v44 = vld [vmem:[#allocation29_spill] sm:$0xff] }
 0x354   :  { %v2530_v10 = vpop.f32.mrf.mxu1 }
 0x355   :  { %v11738_v57 = vadd.f32 %v1939_v33, %v15311_v49  ;;  %v2531_v42 = vadd.f32 %v2530_v10, %v2457_v0  ;;  %v8896_v33 = vld [vmem:[%s14912_s1 + $0x424] sm:$0xf]  ;;  %v2909_v59 = vrot.slane %v2907_v40, 2  ;;  %v2915_v49 = vrot.slane %v2913_v18, 1 }
 0x356   :  { %2582 = vmatmul.bf16.gmra.mxu2 %v11179_v7  ;;  %3230 = vmatmul.bf16.gmra.mxu0 %v11732_v1  ;;  %v7962_v7 = vld [vmem:[%s14912_s1 + $0x428] sm:$0xf0]  ;;  %v8912_v0 = vld [vmem:[%s14912_s1 + $0x4a4] sm:$0xf] }
 0x357   :  { %v11745_v34 = vadd.f32 %v2531_v42, %v15312_v44  ;;  %2655 = vmatmul.bf16.gmra.mxu3 %v11184_v22  ;;  %3303 = vmatmul.bf16.gmra.mxu1 %v11735_v61  ;;  %v7965_v2 = vor.u32 %v8896_v33, %v7962_v7  ;;  %v8026_v22 = vld [vmem:[%s14912_s1 + $0x4a8] sm:$0xf0]  ;;  %v2918_v42 = vrot.slane %v2916_v35, 2  ;;  %v8128_v7 = vld [vmem:[%s14912_s1 + $0x570] sm:$0xf]  ;;  %v2910_v40 = vor.u32 %v2909_v59, %v2906_v29 }
 0x358   :  { %v8029_v46 = vor.u32 %v8912_v0, %v8026_v22  ;;  %v8939_v0 = vld [vmem:[%s14912_s1 + $0x574] sm:$0xf0]  ;;  %v15313_v22 = vld [vmem:[#allocation60_spill] sm:$0xff]  ;;  %v8192_v29 = vld [vmem:[%s14912_s1 + $0x5f0] sm:$0xf] }
 0x359   :  { %v1868_v17 = vpop.f32.mrf.mxu2  ;;  %3348 = vmatpush.bf16.msrb.mxu2 %v7965_v2  ;;  %v8129_v2 = vor.u32 %v8939_v0, %v8128_v7  ;;  %v8955_v59 = vld [vmem:[%s14912_s1 + $0x5f4] sm:$0xf0]  ;;  %v2931_v0 = vshrl.u32 %v11216_v11, 16 }
 0x35a   :  { %v1941_v54 = vpop.f32.mrf.mxu3  ;;  %3421 = vmatpush.bf16.msrb.mxu3 %v8029_v46 }
 0x35b   :  { %v1942_v36 = vadd.f32 %v1941_v54, %v1868_v17  ;;  %v2459_v63 = vpop.f32.mrf.mxu0  ;;  %v2919_v17 = vor.u32 %v2918_v42, %v2915_v49  ;;  %3814 = vmatpush.bf16.msrb.mxu0 %v8129_v2  ;;  %v11776_v54 = vsel %vm2778_vm2, %v2892_v25, %v2910_v40  ;;  %v8193_v25 = vor.u32 %v8955_v59, %v8192_v29  ;;  %v15315_v49 = vld [vmem:[#allocation31_spill] sm:$0xff] }
 0x35c   :  { %v2532_v10 = vpop.f32.mrf.mxu1  ;;  %v2922_v42 = vshrl.u32 %v11212_v32, 16  ;;  %v2934_v2 = vshll.u32 %v11216_v11, 16 }
 0x35d   :  { %v11764_v44 = vadd.f32 %v1942_v36, %v11162_v26  ;;  %v2533_v33 = vadd.f32 %v2532_v10, %v2459_v63  ;;  %v11779_v63 = vsel %vm2778_vm2, %v2901_v45, %v2919_v17  ;;  %v15314_v10 = vld [vmem:[#allocation61_spill] sm:$0xff]  ;;  %3887 = vmatpush.bf16.msrb.mxu1 %v8193_v25 }
 0x35f   :  { %v11773_v12 = vadd.f32 %v2533_v33, %v15313_v22  ;;  %v2925_v33 = vshll.u32 %v11212_v32, 16 }
 0x361   :  { %v1870_v18 = vpop.f32.mrf.mxu2 }
 0x362   :  { %v1943_v35 = vpop.f32.mrf.mxu3 }
 0x363   :  { %v1944_v26 = vadd.f32 %v1943_v35, %v1870_v18  ;;  %v2462_v46 = vpop.f32.mrf.mxu0 }
 0x364   :  { %v2535_v36 = vpop.f32.mrf.mxu1 }
 0x365   :  { %v11782_v39 = vadd.f32 %v1944_v26, %v15314_v10  ;;  %v2536_v7 = vadd.f32 %v2535_v36, %v2462_v46  ;;  %v2924_v26 = vrot.slane %v2922_v42, 1  ;;  %v2927_v46 = vrot.slane %v2925_v33, 2 }
 0x366   :  { %2587 = vmatmul.bf16.gmra.mxu2 %v11224_v13  ;;  %3235 = vmatmul.bf16.gmra.mxu0 %v11776_v54  ;;  %v2933_v10 = vrot.slane %v2931_v0, 1 }
 0x367   :  { %v11793_v45 = vadd.f32 %v2536_v7, %v15315_v49  ;;  %2660 = vmatmul.bf16.gmra.mxu3 %v11227_v38  ;;  %3308 = vmatmul.bf16.gmra.mxu1 %v11779_v63  ;;  %v2936_v38 = vrot.slane %v2934_v2, 2  ;;  %v2928_v49 = vor.u32 %v2927_v46, %v2924_v26  ;;  %v15318_v2 = vld [vmem:[#allocation66_spill] sm:$0xff] }
 0x369   :  { %15316 = vst [vmem:[#allocation46_spill] sm:$0xff] %v11793_v45  ;;  %v1873_v13 = vpop.f32.mrf.mxu2  ;;  %v2937_v32 = vor.u32 %v2936_v38, %v2933_v10 }
 0x36a   :  { %v1946_v22 = vpop.f32.mrf.mxu3 }
 0x36b   :  { %v1947_v18 = vadd.f32 %v1946_v22, %v1873_v13  ;;  %v2464_v35 = vpop.f32.mrf.mxu0  ;;  %v11808_v13 = vsel %vm2778_vm2, %v2910_v40, %v2928_v49  ;;  %v11811_v33 = vsel %vm2778_vm2, %v2919_v17, %v2937_v32  ;;  %v8018_v17 = vld [vmem:[%s14912_s1 + $0x498] sm:$0xf0]  ;;  %v15319_v22 = vld [vmem:[#allocation64_spill] sm:$0xff] }
 0x36c   :  { %v2537_v36 = vpop.f32.mrf.mxu1 }
 0x36d   :  { %v11802_v7 = vadd.f32 %v1947_v18, %v11214_v15  ;;  %v2538_v29 = vadd.f32 %v2537_v36, %v2464_v35  ;;  %v8894_v15 = vld [vmem:[%s14912_s1 + $0x414] sm:$0xf]  ;;  %v2940_v18 = vshrl.u32 %v15319_v22, 16  ;;  %v2943_v35 = vshll.u32 %v15319_v22, 16 }
 0x36f   :  { %v11805_v59 = vadd.f32 %v2538_v29, %v11219_v52  ;;  %v7954_v52 = vld [vmem:[%s14912_s1 + $0x418] sm:$0xf0] }
 0x370   :  { %v7957_v40 = vor.u32 %v8894_v15, %v7954_v52 }
 0x371   :  { %v1875_v11 = vpop.f32.mrf.mxu2 }
 0x372   :  { %v1948_v25 = vpop.f32.mrf.mxu3  ;;  %v8910_v11 = vld [vmem:[%s14912_s1 + $0x494] sm:$0xf]  ;;  %3349 = vmatpush.bf16.msrb.mxu2 %v7957_v40  ;;  %v8937_v40 = vld [vmem:[%s14912_s1 + $0x564] sm:$0xf0] }
 0x373   :  { %v2467_v45 = vpop.f32.mrf.mxu0  ;;  %v8021_v26 = vor.u32 %v8910_v11, %v8018_v17  ;;  %v2942_v25 = vrot.slane %v2940_v18, 1  ;;  %v8120_v11 = vld [vmem:[%s14912_s1 + $0x560] sm:$0xf] }
 0x374   :  { %v2540_v42 = vpop.f32.mrf.mxu1  ;;  %v8121_v17 = vor.u32 %v8937_v40, %v8120_v11  ;;  %v8184_v18 = vld [vmem:[%s14912_s1 + $0x5e0] sm:$0xf] }
 0x375   :  { %v2541_v0 = vadd.f32 %v2540_v42, %v2467_v45  ;;  %3422 = vmatpush.bf16.msrb.mxu3 %v8021_v26  ;;  %v2945_v42 = vrot.slane %v2943_v35, 2  ;;  %v8953_v35 = vld [vmem:[%s14912_s1 + $0x5e4] sm:$0xf0] }
 0x376   :  { %2592 = vmatmul.bf16.gmra.mxu2 %v11282_v9  ;;  %3240 = vmatmul.bf16.gmra.mxu0 %v11808_v13  ;;  %v15320_v9 = vld [vmem:[#allocation65_spill] sm:$0xff] }
 0x377   :  { %v11828_v45 = vadd.f32 %v2541_v0, %v11244_v47  ;;  %2665 = vmatmul.bf16.gmra.mxu3 %v15318_v2  ;;  %3313 = vmatmul.bf16.gmra.mxu1 %v11811_v33  ;;  %v2949_v46 = vshrl.u32 %v15320_v9, 16  ;;  %v2952_v36 = vshll.u32 %v15320_v9, 16  ;;  %v15321_v2 = vld [vmem:[#allocation32_spill] sm:$0xff]  ;;  %v2946_v26 = vor.u32 %v2945_v42, %v2942_v25  ;;  %v15327_v9 = vld [vmem:[#allocation70_spill] sm:$0xff] }
 0x378   :  { %3815 = vmatpush.bf16.msrb.mxu0 %v8121_v17  ;;  %v15330_v17 = vld [vmem:[#allocation71_spill] sm:$0xff] }
 0x379   :  { %15317 = vst [vmem:[#allocation47_spill] sm:$0xff] %v11828_v45  ;;  %v2553_v10 = vpop.f32.mrf.mxu2  ;;  %v2951_v15 = vrot.slane %v2949_v46, 1  ;;  %v2954_v52 = vrot.slane %v2952_v36, 2  ;;  %v8185_v36 = vor.u32 %v8953_v35, %v8184_v18  ;;  %v15332_v35 = vld [vmem:[#allocation69_spill] sm:$0xff] }
 0x37a   :  { %v2626_v38 = vpop.f32.mrf.mxu3 }
 0x37b   :  { %v2627_v29 = vadd.f32 %v2626_v38, %v2553_v10  ;;  %v2469_v47 = vpop.f32.mrf.mxu0  ;;  %v2955_v46 = vor.u32 %v2954_v52, %v2951_v15  ;;  %3888 = vmatpush.bf16.msrb.mxu1 %v8185_v36  ;;  %v15328_v15 = vld [vmem:[#allocation68_spill] sm:$0xff]  ;;  %v2967_v36 = vshrl.u32 %v15332_v35, 16 }
 0x37c   :  { %v2542_v0 = vpop.f32.mrf.mxu1 }
 0x37d   :  { %v11837_v45 = vadd.f32 %v2627_v29, %v15321_v2  ;;  %v11852_v0 = vsel %vm2778_vm2, %v2928_v49, %v2946_v26  ;;  %v11855_v42 = vsel %vm2778_vm2, %v2937_v32, %v2955_v46  ;;  %v15325_v2 = vld [vmem:[#allocation67_spill] sm:$0xff] }
 0x37e   :  { %15323 = vst [vmem:[#allocation24_spill] sm:$0xff] %v11852_v0  ;;  %v15331_v49 = vld [vmem:[#allocation35_spill] sm:$0xff] }
 0x37f   :  { %15322 = vst [vmem:[#allocation23_spill] sm:$0xff] %v11837_v45  ;;  %v2958_v18 = vshrl.u32 %v15331_v49, 16  ;;  %v2961_v32 = vshll.u32 %v15331_v49, 16  ;;  %v15335_v45 = vld [vmem:[#allocation34_spill] sm:$0xff] }
 0x380   :  { %15324 = vst [vmem:[#allocation25_spill] sm:$0xff] %v11855_v42 }
 0x381   :  { %v2555_v10 = vpop.f32.mrf.mxu2 }
 0x382   :  { %v2628_v38 = vpop.f32.mrf.mxu3 }
 0x383   :  { %v2629_v29 = vadd.f32 %v2628_v38, %v2555_v10  ;;  %v3206_v47 = vpop.f32.mrf.mxu0  ;;  %v2970_v10 = vshll.u32 %v15332_v35, 16  ;;  %v8892_v35 = vld [vmem:[%s14912_s1 + $0x404] sm:$0xf] }
 0x384   :  { %v3279_v25 = vpop.f32.mrf.mxu1 }
 0x385   :  { %v11858_v11 = vadd.f32 %v2629_v29, %v15325_v2  ;;  %v3280_v40 = vadd.f32 %v3279_v25, %v3206_v47  ;;  %v2960_v25 = vrot.slane %v2958_v18, 1  ;;  %v2963_v2 = vrot.slane %v2961_v32, 2  ;;  %v7946_v18 = vld [vmem:[%s14912_s1 + $0x408] sm:$0xf0]  ;;  %v8908_v32 = vld [vmem:[%s14912_s1 + $0x484] sm:$0xf] }
 0x386   :  { %2597 = vmatmul.bf16.gmra.mxu2 %v15327_v9  ;;  %3245 = vmatmul.bf16.gmra.mxu0 %v11852_v0 }
 0x387   :  { %15326 = vst [vmem:[#allocation51_spill] sm:$0xff] %v11858_v11  ;;  %v11863_v52 = vadd.f32 %v3280_v40, %v15328_v15  ;;  %2670 = vmatmul.bf16.gmra.mxu3 %v15330_v17  ;;  %3318 = vmatmul.bf16.gmra.mxu1 %v11855_v42  ;;  %v2969_v15 = vrot.slane %v2967_v36, 1  ;;  %v15333_v17 = vld [vmem:[#allocation33_spill] sm:$0xff]  ;;  %v11877_v49 = vor.u32 %v2963_v2, %v2960_v25 }
 0x389   :  { %15329 = vst [vmem:[#allocation52_spill] sm:$0xff] %v11863_v52  ;;  %v2558_v38 = vpop.f32.mrf.mxu2  ;;  %v2972_v52 = vrot.slane %v2970_v10, 2  ;;  %v7949_v10 = vor.u32 %v8892_v35, %v7946_v18  ;;  %v11895_v25 = vsel %vm2778_vm2, %v2946_v26, %v11877_v49  ;;  %v15339_v35 = vld [vmem:[#allocation18_spill] sm:$0xff]  ;;  %v2979_v18 = vshll.u32 %v11373_v19, 16  ;;  %v15341_v26 = vld [vmem:[#allocation19_spill] sm:$0xff] }
 0x38a   :  { %v2631_v29 = vpop.f32.mrf.mxu3  ;;  %15337 = vst [vmem:[#allocation55_spill] sm:$0xff] %v11895_v25 }
 0x38b   :  { %v2632_v9 = vadd.f32 %v2631_v29, %v2558_v38  ;;  %v3208_v47 = vpop.f32.mrf.mxu0  ;;  %v11888_v36 = vor.u32 %v2972_v52, %v2969_v15  ;;  %3350 = vmatpush.bf16.msrb.mxu2 %v7949_v10  ;;  %v15343_v10 = vld [vmem:[#allocation75_spill] sm:$0xff] }
 0x38c   :  { %v3281_v40 = vpop.f32.mrf.mxu1 }
 0x38d   :  { %v11872_v11 = vadd.f32 %v2632_v9, %v15333_v17  ;;  %v3282_v22 = vadd.f32 %v3281_v40, %v3208_v47  ;;  %v11899_v52 = vsel %vm2778_vm2, %v2955_v46, %v11888_v36  ;;  %v2976_v17 = vshrl.u32 %v11373_v19, 16  ;;  %v8112_v46 = vld [vmem:[%s14912_s1 + $0x550] sm:$0xf] }
 0x38e   :  { %15338 = vst [vmem:[#allocation57_spill] sm:$0xff] %v11899_v52 }
 0x38f   :  { %15334 = vst [vmem:[#allocation27_spill] sm:$0xff] %v11872_v11  ;;  %v11875_v42 = vadd.f32 %v3282_v22, %v15335_v45  ;;  %v8010_v45 = vld [vmem:[%s14912_s1 + $0x488] sm:$0xf0]  ;;  %v2978_v19 = vrot.slane %v2976_v17, 1  ;;  %v8104_v17 = vld [vmem:[%s14912_s1 + $0x540] sm:$0xf] }
 0x390   :  { %v8013_v38 = vor.u32 %v8908_v32, %v8010_v45  ;;  %v8176_v45 = vld [vmem:[%s14912_s1 + $0x5d0] sm:$0xf] }
 0x391   :  { %15336 = vst [vmem:[#allocation54_spill] sm:$0xff] %v11875_v42  ;;  %v2560_v22 = vpop.f32.mrf.mxu2 }
 0x392   :  { %v2633_v29 = vpop.f32.mrf.mxu3  ;;  %3423 = vmatpush.bf16.msrb.mxu3 %v8013_v38  ;;  %v2988_v38 = vshll.u32 %v11375_v30, 16 }
 0x393   :  { %v2634_v9 = vadd.f32 %v2633_v29, %v2560_v22  ;;  %v3211_v47 = vpop.f32.mrf.mxu0  ;;  %v2985_v22 = vshrl.u32 %v11375_v30, 16 }
 0x394   :  { %v3284_v2 = vpop.f32.mrf.mxu1 }
 0x395   :  { %v11902_v40 = vadd.f32 %v2634_v9, %v15339_v35  ;;  %v3285_v15 = vadd.f32 %v3284_v2, %v3211_v47  ;;  %v8951_v9 = vld [vmem:[%s14912_s1 + $0x5d4] sm:$0xf0]  ;;  %v2987_v30 = vrot.slane %v2985_v22, 1  ;;  %v8949_v22 = vld [vmem:[%s14912_s1 + $0x5c4] sm:$0xf0] }
 0x396   :  { %2602 = vmatmul.bf16.gmra.mxu2 %v11400_v53  ;;  %3250 = vmatmul.bf16.gmra.mxu0 %v11895_v25  ;;  %v8935_v53 = vld [vmem:[%s14912_s1 + $0x554] sm:$0xf0]  ;;  %v8177_v2 = vor.u32 %v8951_v9, %v8176_v45  ;;  %v15346_v45 = vld [vmem:[#allocation12_spill] sm:$0xff] }
 0x397   :  { %15340 = vst [vmem:[#allocation59_spill] sm:$0xff] %v11902_v40  ;;  %v11909_v32 = vadd.f32 %v3285_v15, %v15341_v26  ;;  %2675 = vmatmul.bf16.gmra.mxu3 %v15343_v10  ;;  %3323 = vmatmul.bf16.gmra.mxu1 %v11899_v52  ;;  %v8113_v29 = vor.u32 %v8935_v53, %v8112_v46  ;;  %v2740_v15 = vld [vmem:[%s14911_s0 + $0xd0] sm:$0x33]  ;;  %v2990_v46 = vrot.slane %v2988_v38, 2 }
 0x398   :  { %3889 = vmatpush.bf16.msrb.mxu1 %v8177_v2  ;;  %v15344_v53 = vld [vmem:[#allocation74_spill] sm:$0xff]  ;;  %v2774_v52 = vunpack.c.l.b16 %v2740_v15  ;;  %v2775_v25 = vunpack.c.h.b16 %v2740_v15 }
 0x399   :  { %15342 = vst [vmem:[#allocation28_spill] sm:$0xff] %v11909_v32  ;;  %v2563_v47 = vpop.f32.mrf.mxu2  ;;  %3816 = vmatpush.bf16.msrb.mxu0 %v8113_v29  ;;  %v2981_v32 = vrot.slane %v2979_v18, 2  ;;  %v11938_v0 = vor.u32 %v2990_v46, %v2987_v30  ;;  %v8933_v18 = vld [vmem:[%s14912_s1 + $0x544] sm:$0xf0] }
 0x39a   :  { %v2636_v35 = vpop.f32.mrf.mxu3  ;;  %v8105_v30 = vor.u32 %v8933_v18, %v8104_v17 }
 0x39b   :  { %v2637_v26 = vadd.f32 %v2636_v35, %v2563_v47  ;;  %v3213_v10 = vpop.f32.mrf.mxu0  ;;  %v11936_v29 = vor.u32 %v2981_v32, %v2978_v19  ;;  %v11968_v46 = vsel %vm2778_vm2, %v11888_v36, %v11938_v0  ;;  %v15355_v36 = vld [vmem:[#allocation78_spill] sm:$0xff] }
 0x39c   :  { %v3286_v40 = vpop.f32.mrf.mxu1  ;;  %15352 = vst [vmem:[#allocation66_spill] sm:$0xff] %v11968_v46 }
 0x39d   :  { %v11931_v42 = vadd.f32 %v2637_v26, %v15344_v53  ;;  %v3287_v11 = vadd.f32 %v3286_v40, %v3213_v10  ;;  %v8168_v40 = vld [vmem:[%s14912_s1 + $0x5c0] sm:$0xf]  ;;  %v11959_v35 = vsel %vm2778_vm2, %v11877_v49, %v11936_v29  ;;  %v15350_v26 = vunpack.c.h.b16 %v11410_v60  ;;  %3817 = vmatpush.bf16.msrb.mxu0 %v8105_v30  ;;  %v8096_v49 = vld [vmem:[%s14912_s1 + $0x530] sm:$0xf] }
 0x39e   :  { %v8169_v15 = vor.u32 %v8949_v22, %v8168_v40  ;;  %v15353_v53 = vld [vmem:[#allocation76_spill] sm:$0xff]  ;;  %v15358_v22 = vld [vmem:[#allocation79_spill] sm:$0xff] }
 0x39f   :  { %15345 = vst [vmem:[#allocation29_spill] sm:$0xff] %v11931_v42  ;;  %v11934_v9 = vadd.f32 %v3287_v11, %v15346_v45  ;;  %v15348_v11 = vunpack.c.l.b16 %v11410_v60  ;;  %v11963_v10 = vpack.c.b16 %v2775_v25, %v15350_v26  ;;  %v8931_v60 = vld [vmem:[%s14912_s1 + $0x534] sm:$0xf0]  ;;  %v8160_v25 = vld [vmem:[%s14912_s1 + $0x5b0] sm:$0xf] }
 0x3a0   :  { %3890 = vmatpush.bf16.msrb.mxu1 %v8169_v15  ;;  %v8097_v40 = vor.u32 %v8931_v60, %v8096_v49  ;;  %v8954_v15 = vld [vmem:[%s14912_s1 + $0x5f4] sm:$0xf]  ;;  %v8194_v49 = vld [vmem:[%s14912_s1 + $0x5f8] sm:$0xf0] }
 0x3a1   :  { %15347 = vst [vmem:[#allocation60_spill] sm:$0xff] %v11934_v9  ;;  %v2565_v47 = vpop.f32.mrf.mxu2  ;;  %v11951_v19 = vpack.c.b16 %v2774_v52, %v15348_v11  ;;  %v8947_v11 = vld [vmem:[%s14912_s1 + $0x5b4] sm:$0xf0]  ;;  %v15359_v9 = vld [vmem:[#allocation37_spill] sm:$0xff] }
 0x3a2   :  { %v2638_v32 = vpop.f32.mrf.mxu3  ;;  %15351 = vst [vmem:[#allocation31_spill] sm:$0xff] %v11963_v10  ;;  %v8161_v26 = vor.u32 %v8947_v11, %v8160_v25  ;;  %3818 = vmatpush.bf16.msrb.mxu0 %v8097_v40  ;;  %v8929_v25 = vld [vmem:[%s14912_s1 + $0x524] sm:$0xf0]  ;;  %v8152_v11 = vld [vmem:[%s14912_s1 + $0x5a0] sm:$0xf] }
 0x3a3   :  { %15349 = vst [vmem:[#allocation61_spill] sm:$0xff] %v11951_v19  ;;  %v2639_v38 = vadd.f32 %v2638_v32, %v2565_v47  ;;  %v3216_v2 = vpop.f32.mrf.mxu0  ;;  %v2994_v17 = vshrl.u32 %v11951_v19, 16  ;;  %v2997_v18 = vshll.u32 %v11951_v19, 16  ;;  %v15356_v32 = vld [vmem:[#allocation6_spill] sm:$0xff]  ;;  %v8945_v40 = vld [vmem:[%s14912_s1 + $0x5a4] sm:$0xf0] }
 0x3a4   :  { %v3289_v52 = vpop.f32.mrf.mxu1  ;;  %3891 = vmatpush.bf16.msrb.mxu1 %v8161_v26 }
 0x3a5   :  { %v11971_v45 = vadd.f32 %v2639_v38, %v15353_v53  ;;  %v3290_v47 = vadd.f32 %v3289_v52, %v3216_v2  ;;  %v8938_v38 = vld [vmem:[%s14912_s1 + $0x574] sm:$0xf]  ;;  %v8130_v2 = vld [vmem:[%s14912_s1 + $0x578] sm:$0xf0]  ;;  %v3003_v52 = vshrl.u32 %v11963_v10, 16  ;;  %v3006_v53 = vshll.u32 %v11963_v10, 16 }
 0x3a6   :  { %2607 = vmatmul.bf16.gmra.mxu2 %v15355_v36  ;;  %3255 = vmatmul.bf16.gmra.mxu0 %v11959_v35  ;;  %v8197_v36 = vor.u32 %v8954_v15, %v8194_v49  ;;  %v2996_v26 = vrot.slane %v2994_v17, 1  ;;  %v2999_v49 = vrot.slane %v2997_v18, 2  ;;  %v8153_v10 = vor.u32 %v8945_v40, %v8152_v11  ;;  %v8927_v17 = vld [vmem:[%s14912_s1 + $0x514] sm:$0xf0]  ;;  %v8144_v18 = vld [vmem:[%s14912_s1 + $0x590] sm:$0xf] }
 0x3a7   :  { %15354 = vst [vmem:[#allocation32_spill] sm:$0xff] %v11971_v45  ;;  %v11990_v30 = vadd.f32 %v3290_v47, %v15356_v32  ;;  %2680 = vmatmul.bf16.gmra.mxu3 %v15358_v22  ;;  %3328 = vmatmul.bf16.gmra.mxu1 %v11968_v46  ;;  %v8133_v47 = vor.u32 %v8938_v38, %v8130_v2  ;;  %v8088_v32 = vld [vmem:[%s14912_s1 + $0x520] sm:$0xf]  ;;  %v3008_v45 = vrot.slane %v3006_v53, 2  ;;  %v8925_v11 = vld [vmem:[%s14912_s1 + $0x504] sm:$0xf0] }
 0x3a8   :  { %v8089_v38 = vor.u32 %v8929_v25, %v8088_v32  ;;  %4033 = vmatpush.bf16.msra.mxu3 %v8197_v36  ;;  %3892 = vmatpush.bf16.msrb.mxu1 %v8153_v10  ;;  %v15360_v53 = vld [vmem:[#allocation20_spill] sm:$0xff]  ;;  %v12038_v10 = vor.u32 %v2999_v49, %v2996_v26 }
 0x3a9   :  { %15357 = vst [vmem:[#allocation67_spill] sm:$0xff] %v11990_v30  ;;  %v2568_v60 = vpop.f32.mrf.mxu2  ;;  %3960 = vmatpush.bf16.msra.mxu2 %v8133_v47  ;;  %v3005_v30 = vrot.slane %v3003_v52, 1  ;;  %v8080_v47 = vld [vmem:[%s14912_s1 + $0x510] sm:$0xf]  ;;  %v8072_v25 = vld [vmem:[%s14912_s1 + $0x500] sm:$0xf] }
 0x3aa   :  { %v2641_v22 = vpop.f32.mrf.mxu3  ;;  %3819 = vmatpush.bf16.msrb.mxu0 %v8089_v38  ;;  %v8081_v52 = vor.u32 %v8927_v17, %v8080_v47  ;;  %v8073_v38 = vor.u32 %v8925_v11, %v8072_v25  ;;  %v15362_v47 = vld [vmem:[#allocation36_spill] sm:$0xff] }
 0x3ab   :  { %v2642_v2 = vadd.f32 %v2641_v22, %v2568_v60  ;;  %v3218_v15 = vpop.f32.mrf.mxu0  ;;  %v12040_v36 = vor.u32 %v3008_v45, %v3005_v30  ;;  %v8941_v45 = vld [vmem:[%s14912_s1 + $0x584] sm:$0xf0] }
 0x3ac   :  { %v3291_v19 = vpop.f32.mrf.mxu1 }
 0x3ad   :  { %v12021_v42 = vadd.f32 %v2642_v2, %v15359_v9  ;;  %v3292_v46 = vadd.f32 %v3291_v19, %v3218_v15  ;;  %v8943_v9 = vld [vmem:[%s14912_s1 + $0x594] sm:$0xf0]  ;;  %15361 = vst [vmem:[#allocation70_spill] sm:$0xff] %v12040_v36  ;;  %v12057_v2 = vsel %vm2778_vm2, %v11936_v29, %v12038_v10  ;;  %v12062_v49 = vsel %vm2778_vm2, %v11938_v0, %v12040_v36 }
 0x3ae   :  { %v8145_v60 = vor.u32 %v8943_v9, %v8144_v18  ;;  %3820 = vmatpush.bf16.msrb.mxu0 %v8081_v52  ;;  %v15363_v52 = vld [vmem:[#allocation21_spill] sm:$0xff]  ;;  %v15364_v9 = vld [vmem:[#allocation14_spill] sm:$0xff] }
 0x3af   :  { %v12036_v19 = vadd.f32 %v3292_v46, %v15360_v53  ;;  %v8136_v46 = vld [vmem:[%s14912_s1 + $0x580] sm:$0xf]  ;;  %v15365_v53 = vld [vmem:[#allocation77_spill] sm:$0xff] }
 0x3b0   :  { %3893 = vmatpush.bf16.msrb.mxu1 %v8145_v60  ;;  %v8137_v15 = vor.u32 %v8941_v45, %v8136_v46  ;;  %v15366_v46 = vld [vmem:[#allocation8_spill] sm:$0xff]  ;;  %v15368_v45 = vld [vmem:[#allocation15_spill] sm:$0xff] }
 0x3b1   :  { %v2570_v32 = vpop.f32.mrf.mxu2 }
 0x3b2   :  { %v2643_v22 = vpop.f32.mrf.mxu3  ;;  %3821 = vmatpush.bf16.msrb.mxu0 %v8073_v38 }
 0x3b3   :  { %v2644_v30 = vadd.f32 %v2643_v22, %v2570_v32  ;;  %v3221_v40 = vpop.f32.mrf.mxu0 }
 0x3b4   :  { %v3294_v26 = vpop.f32.mrf.mxu1  ;;  %3894 = vmatpush.bf16.msrb.mxu1 %v8137_v15  ;;  %v8122_v15 = vld [vmem:[%s14912_s1 + $0x568] sm:$0xf0] }
 0x3b5   :  { %v12065_v17 = vadd.f32 %v2644_v30, %v15362_v47  ;;  %v3295_v18 = vadd.f32 %v3294_v26, %v3221_v40  ;;  %v8936_v40 = vld [vmem:[%s14912_s1 + $0x564] sm:$0xf] }
 0x3b6   :  { %2612 = vmatmul.bf16.gmra.mxu2 %v15363_v52  ;;  %3260 = vmatmul.bf16.gmra.mxu0 %v12057_v2  ;;  %v8952_v26 = vld [vmem:[%s14912_s1 + $0x5e4] sm:$0xf]  ;;  %v8125_v47 = vor.u32 %v8936_v40, %v8122_v15 }
 0x3b7   :  { %v12070_v29 = vadd.f32 %v3295_v18, %v15364_v9  ;;  %2685 = vmatmul.bf16.gmra.mxu3 %v15365_v53  ;;  %3333 = vmatmul.bf16.gmra.mxu1 %v12062_v49  ;;  %v8186_v18 = vld [vmem:[%s14912_s1 + $0x5e8] sm:$0xf0] }
 0x3b8   :  { %v8189_v9 = vor.u32 %v8952_v26, %v8186_v18  ;;  %3961 = vmatpush.bf16.msra.mxu2 %v8125_v47 }
 0x3b9   :  { %v2573_v60 = vpop.f32.mrf.mxu2 }
 0x3ba   :  { %v2646_v0 = vpop.f32.mrf.mxu3  ;;  %4034 = vmatpush.bf16.msra.mxu3 %v8189_v9 }
 0x3bb   :  { %v2647_v32 = vadd.f32 %v2646_v0, %v2573_v60  ;;  %v3223_v25 = vpop.f32.mrf.mxu0 }
 0x3bc   :  { %v3296_v11 = vpop.f32.mrf.mxu1 }
 0x3bd   :  { %v12075_v22 = vadd.f32 %v2647_v32, %v15366_v46  ;;  %v3297_v38 = vadd.f32 %v3296_v11, %v3223_v25  ;;  %v3539_v25 = vld [vmem:[%s14911_s0 + $0x8] sm:$0xcc]  ;;  %v15370_v11 = vld [vmem:[#allocation16_spill] sm:$0xff] }
 0x3be   :  { %v3573_v15 = vunpack.c.l.b16 %v3539_v25  ;;  %v3574_v26 = vunpack.c.h.b16 %v3539_v25  ;;  %v15377_v25 = vld [vmem:[#allocation11_spill] sm:$0xff] }
 0x3bf   :  { %15367 = vst [vmem:[#allocation68_spill] sm:$0xff] %v12075_v22  ;;  %v12078_v30 = vadd.f32 %v3297_v38, %v15368_v45  ;;  %v15372_v45 = vld [vmem:[#allocation10_spill] sm:$0xff] }
 0x3c1   :  { %15369 = vst [vmem:[#allocation71_spill] sm:$0xff] %v12078_v30  ;;  %v2575_v52 = vpop.f32.mrf.mxu2 }
 0x3c2   :  { %v2648_v53 = vpop.f32.mrf.mxu3 }
 0x3c3   :  { %v2649_v60 = vadd.f32 %v2648_v53, %v2575_v52  ;;  %v3226_v0 = vpop.f32.mrf.mxu0  ;;  %v15374_v53 = vld [vmem:[#allocation17_spill] sm:$0xff] }
 0x3c4   :  { %v3299_v32 = vpop.f32.mrf.mxu1 }
 0x3c5   :  { %v12096_v46 = vadd.f32 %v2649_v60, %v15370_v11  ;;  %v3300_v38 = vadd.f32 %v3299_v32, %v3226_v0  ;;  %v15375_v60 = vunpack.c.l.b16 %v15374_v53  ;;  %v15376_v11 = vunpack.c.h.b16 %v15374_v53  ;;  %v15379_v53 = vld [vmem:[#allocation7_spill] sm:$0xff] }
 0x3c6   :  { %3265 = vmatmul.bf16.gmra.mxu0 %v12038_v10  ;;  %3351 = vmatmul.bf16.vlgmr.msrb.gmra.mxu2 %v11566_v43 }
 0x3c7   :  { %15371 = vst [vmem:[#allocation33_spill] sm:$0xff] %v12096_v46  ;;  %v12101_v40 = vadd.f32 %v3300_v38, %v15372_v45  ;;  %3338 = vmatmul.bf16.gmra.mxu1 %v12040_v36  ;;  %3424 = vmatmul.bf16.vlgmr.msrb.gmra.mxu3 %v11569_v23  ;;  %v3575_v0 = vpack.c.b16 %v15375_v60, %v3573_v15  ;;  %v3579_v46 = vrot.slane %v15377_v25, 2  ;;  %v8114_v25 = vld [vmem:[%s14912_s1 + $0x558] sm:$0xf0] }
 0x3c8   :  { %v3576_v43 = vpack.c.b16 %v15376_v11, %v3574_v26 }
 0x3c9   :  { %15373 = vst [vmem:[#allocation34_spill] sm:$0xff] %v12101_v40  ;;  %v2578_v47 = vpop.f32.mrf.mxu2  ;;  %v3578_v23 = vrot.slane %v3575_v0, 2 }
 0x3ca   :  { %v2651_v18 = vpop.f32.mrf.mxu3 }
 0x3cb   :  { %v2652_v52 = vadd.f32 %v2651_v18, %v2578_v47  ;;  %v3228_v9 = vpop.f32.mrf.mxu0  ;;  %v3581_v47 = vrot.slane %v3576_v43, 2  ;;  %v15378_v18 = vld [vmem:[#allocation13_spill] sm:$0xff]  ;;  %v12118_v26 = vsel %vm3577_vm3, %v3578_v23, %v3579_v46 }
 0x3cc   :  { %v3301_v32 = vpop.f32.mrf.mxu1  ;;  %v3582_v30 = vrot.slane %v15378_v18, 2  ;;  %v15380_v23 = vld [vmem:[#allocation9_spill] sm:$0xff]  ;;  %v8178_v18 = vld [vmem:[%s14912_s1 + $0x5d8] sm:$0xf0] }
 0x3cd   :  { %v12110_v38 = vadd.f32 %v2652_v52, %v11560_v50  ;;  %v3302_v45 = vadd.f32 %v3301_v32, %v3228_v9 }
 0x3ce   :  { %v12121_v52 = vsel %vm3577_vm3, %v3581_v47, %v3582_v30 }
 0x3cf   :  { %v12113_v40 = vadd.f32 %v3302_v45, %v11563_v5 }
 0x3d1   :  { %v2580_v22 = vpop.f32.mrf.mxu2 }
 0x3d2   :  { %v2653_v15 = vpop.f32.mrf.mxu3 }
 0x3d3   :  { %v2654_v60 = vadd.f32 %v2653_v15, %v2580_v22  ;;  %v3231_v36 = vpop.f32.mrf.mxu0  ;;  %v15382_v15 = vld [vmem:[#allocation38_spill] sm:$0xff] }
 0x3d4   :  { %v3304_v50 = vpop.f32.mrf.mxu1 }
 0x3d5   :  { %v12124_v5 = vadd.f32 %v2654_v60, %v11572_v20  ;;  %v3305_v9 = vadd.f32 %v3304_v50, %v3231_v36  ;;  %v15383_v50 = vld [vmem:[#allocation5_spill] sm:$0xff] }
 0x3d6   :  { %3356 = vmatmul.bf16.gmra.mxu2 %v11604_v27  ;;  %3822 = vmatmul.bf16.vlgmr.msrb.gmra.mxu0 %v12118_v26  ;;  %v8934_v27 = vld [vmem:[%s14912_s1 + $0x554] sm:$0xf] }
 0x3d7   :  { %v12129_v0 = vadd.f32 %v3305_v9, %v15379_v53  ;;  %3429 = vmatmul.bf16.gmra.mxu3 %v11607_v16  ;;  %3895 = vmatmul.bf16.vlgmr.msrb.gmra.mxu1 %v12121_v52  ;;  %v8950_v16 = vld [vmem:[%s14912_s1 + $0x5d4] sm:$0xf]  ;;  %v8117_v47 = vor.u32 %v8934_v27, %v8114_v25  ;;  %v3584_v9 = vrot.slane %v15383_v50, 2 }
 0x3d8   :  { %v8181_v53 = vor.u32 %v8950_v16, %v8178_v18  ;;  %v15387_v16 = vld [vmem:[#allocation40_spill] sm:$0xff] }
 0x3d9   :  { %v2583_v22 = vpop.f32.mrf.mxu2  ;;  %3962 = vmatpush.bf16.msra.mxu2 %v8117_v47  ;;  %v12154_v27 = vsel %vm3577_vm3, %v3579_v46, %v3584_v9 }
 0x3da   :  { %v2656_v32 = vpop.f32.mrf.mxu3  ;;  %4035 = vmatpush.bf16.msra.mxu3 %v8181_v53 }
 0x3db   :  { %v2657_v11 = vadd.f32 %v2656_v32, %v2583_v22  ;;  %v3233_v43 = vpop.f32.mrf.mxu0  ;;  %v15384_v22 = vld [vmem:[#allocation42_spill] sm:$0xff] }
 0x3dc   :  { %v3306_v45 = vpop.f32.mrf.mxu1  ;;  %v3586_v32 = vrot.slane %v15384_v22, 2 }
 0x3dd   :  { %v12134_v20 = vadd.f32 %v2657_v11, %v15380_v23  ;;  %v3307_v36 = vadd.f32 %v3306_v45, %v3233_v43 }
 0x3df   :  { %15381 = vst [vmem:[#allocation18_spill] sm:$0xff] %v12134_v20  ;;  %v12149_v60 = vadd.f32 %v3307_v36, %v15382_v15  ;;  %v12157_v20 = vsel %vm3577_vm3, %v3582_v30, %v3586_v32  ;;  %v15385_v36 = vld [vmem:[#allocation39_spill] sm:$0xff] }
 0x3e1   :  { %v2585_v11 = vpop.f32.mrf.mxu2 }
 0x3e2   :  { %v2658_v43 = vpop.f32.mrf.mxu3 }
 0x3e3   :  { %v2659_v45 = vadd.f32 %v2658_v43, %v2585_v11  ;;  %v3236_v23 = vpop.f32.mrf.mxu0 }
 0x3e4   :  { %v3309_v25 = vpop.f32.mrf.mxu1 }
 0x3e5   :  { %v12160_v15 = vadd.f32 %v2659_v45, %v15385_v36  ;;  %v3310_v50 = vadd.f32 %v3309_v25, %v3236_v23  ;;  %v15389_v45 = vld [vmem:[#allocation22_spill] sm:$0xff]  ;;  %v15390_v25 = vld [vmem:[#allocation48_spill] sm:$0xff] }
 0x3e6   :  { %3361 = vmatmul.bf16.gmra.mxu2 %v11630_v28  ;;  %3827 = vmatmul.bf16.gmra.mxu0 %v12154_v27  ;;  %v3588_v23 = vrot.slane %v15389_v45, 2  ;;  %v3590_v36 = vrot.slane %v15390_v25, 2 }
 0x3e7   :  { %15386 = vst [vmem:[#allocation19_spill] sm:$0xff] %v12160_v15  ;;  %v12165_v47 = vadd.f32 %v3310_v50, %v15387_v16  ;;  %3434 = vmatmul.bf16.gmra.mxu3 %v11633_v24  ;;  %3900 = vmatmul.bf16.gmra.mxu1 %v12157_v20 }
 0x3e8   :  { %v12178_v15 = vsel %vm3577_vm3, %v3584_v9, %v3588_v23  ;;  %v8932_v9 = vld [vmem:[%s14912_s1 + $0x544] sm:$0xf] }
 0x3e9   :  { %15388 = vst [vmem:[#allocation75_spill] sm:$0xff] %v12165_v47  ;;  %v2588_v46 = vpop.f32.mrf.mxu2 }
 0x3ea   :  { %v2661_v18 = vpop.f32.mrf.mxu3 }
 0x3eb   :  { %v2662_v53 = vadd.f32 %v2661_v18, %v2588_v46  ;;  %v3238_v30 = vpop.f32.mrf.mxu0  ;;  %v12181_v18 = vsel %vm3577_vm3, %v3586_v32, %v3590_v36 }
 0x3ec   :  { %v3311_v22 = vpop.f32.mrf.mxu1 }
 0x3ed   :  { %v12170_v11 = vadd.f32 %v2662_v53, %v11624_v58  ;;  %v3312_v43 = vadd.f32 %v3311_v22, %v3238_v30 }
 0x3ef   :  { %v12173_v28 = vadd.f32 %v3312_v43, %v11627_v41 }
 0x3f1   :  { %v2590_v50 = vpop.f32.mrf.mxu2 }
 0x3f2   :  { %v2663_v24 = vpop.f32.mrf.mxu3 }
 0x3f3   :  { %v2664_v16 = vadd.f32 %v2663_v24, %v2590_v50  ;;  %v3241_v47 = vpop.f32.mrf.mxu0 }
 0x3f4   :  { %v3314_v46 = vpop.f32.mrf.mxu1 }
 0x3f5   :  { %v12184_v58 = vadd.f32 %v2664_v16, %v11636_v62  ;;  %v3315_v41 = vadd.f32 %v3314_v46, %v3241_v47  ;;  %v8106_v62 = vld [vmem:[%s14912_s1 + $0x548] sm:$0xf0] }
 0x3f6   :  { %3366 = vmatmul.bf16.gmra.mxu2 %v11668_v31  ;;  %3832 = vmatmul.bf16.gmra.mxu0 %v12178_v15  ;;  %v8948_v31 = vld [vmem:[%s14912_s1 + $0x5c4] sm:$0xf]  ;;  %v8109_v32 = vor.u32 %v8932_v9, %v8106_v62  ;;  %v15392_v16 = vld [vmem:[#allocation49_spill] sm:$0xff] }
 0x3f7   :  { %v12189_v53 = vadd.f32 %v3315_v41, %v11643_v8  ;;  %3439 = vmatmul.bf16.gmra.mxu3 %v11671_v4  ;;  %3905 = vmatmul.bf16.gmra.mxu1 %v12181_v18  ;;  %v8170_v8 = vld [vmem:[%s14912_s1 + $0x5c8] sm:$0xf0]  ;;  %v3592_v46 = vrot.slane %v15392_v16, 2  ;;  %v15393_v41 = vld [vmem:[#allocation50_spill] sm:$0xff] }
 0x3f8   :  { %v8173_v47 = vor.u32 %v8948_v31, %v8170_v8  ;;  %3963 = vmatpush.bf16.msra.mxu2 %v8109_v32  ;;  %v3594_v9 = vrot.slane %v15393_v41, 2  ;;  %v15395_v16 = vld [vmem:[#allocation26_spill] sm:$0xff]  ;;  %v15396_v41 = vld [vmem:[#allocation41_spill] sm:$0xff] }
 0x3f9   :  { %15391 = vst [vmem:[#allocation74_spill] sm:$0xff] %v12189_v53  ;;  %v2593_v4 = vpop.f32.mrf.mxu2  ;;  %v12214_v32 = vsel %vm3577_vm3, %v3588_v23, %v3592_v46 }
 0x3fa   :  { %v2666_v30 = vpop.f32.mrf.mxu3  ;;  %4036 = vmatpush.bf16.msra.mxu3 %v8173_v47  ;;  %v12217_v47 = vsel %vm3577_vm3, %v3590_v36, %v3594_v9 }
 0x3fb   :  { %v2667_v22 = vadd.f32 %v2666_v30, %v2593_v4  ;;  %v3243_v43 = vpop.f32.mrf.mxu0 }
 0x3fc   :  { %v3316_v45 = vpop.f32.mrf.mxu1 }
 0x3fd   :  { %v12206_v25 = vadd.f32 %v2667_v22, %v11662_v6  ;;  %v3317_v50 = vadd.f32 %v3316_v45, %v3243_v43  ;;  %v15394_v45 = vld [vmem:[#allocation45_spill] sm:$0xff] }
 0x3ff   :  { %v12209_v24 = vadd.f32 %v3317_v50, %v11665_v3 }
 0x401   :  { %v2595_v62 = vpop.f32.mrf.mxu2 }
 0x402   :  { %v2668_v53 = vpop.f32.mrf.mxu3 }
 0x403   :  { %v2669_v31 = vadd.f32 %v2668_v53, %v2595_v62  ;;  %v3246_v8 = vpop.f32.mrf.mxu0 }
 0x404   :  { %v3319_v4 = vpop.f32.mrf.mxu1 }
 0x405   :  { %v12220_v6 = vadd.f32 %v2669_v31, %v11674_v48  ;;  %v3320_v3 = vadd.f32 %v3319_v4, %v3246_v8  ;;  %v8946_v31 = vld [vmem:[%s14912_s1 + $0x5b4] sm:$0xf]  ;;  %v15398_v8 = vld [vmem:[#allocation53_spill] sm:$0xff] }
 0x406   :  { %3371 = vmatmul.bf16.gmra.mxu2 %v11706_v51  ;;  %3837 = vmatmul.bf16.gmra.mxu0 %v12214_v32  ;;  %v3596_v51 = vrot.slane %v15395_v16, 2  ;;  %v3598_v4 = vrot.slane %v15398_v8, 2  ;;  %v15399_v8 = vld [vmem:[#allocation43_spill] sm:$0xff] }
 0x407   :  { %v12225_v30 = vadd.f32 %v3320_v3, %v11679_v37  ;;  %3444 = vmatmul.bf16.gmra.mxu3 %v11709_v56  ;;  %3910 = vmatmul.bf16.gmra.mxu1 %v12217_v47  ;;  %v8930_v37 = vld [vmem:[%s14912_s1 + $0x534] sm:$0xf]  ;;  %v8098_v56 = vld [vmem:[%s14912_s1 + $0x538] sm:$0xf0] }
 0x408   :  { %v8101_v3 = vor.u32 %v8930_v37, %v8098_v56 }
 0x409   :  { %v2598_v23 = vpop.f32.mrf.mxu2 }
 0x40a   :  { %v2671_v53 = vpop.f32.mrf.mxu3  ;;  %3964 = vmatpush.bf16.msra.mxu2 %v8101_v3 }
 0x40b   :  { %v2672_v22 = vadd.f32 %v2671_v53, %v2598_v23  ;;  %v3248_v36 = vpop.f32.mrf.mxu0  ;;  %v8162_v23 = vld [vmem:[%s14912_s1 + $0x5b8] sm:$0xf0] }
 0x40c   :  { %v3321_v43 = vpop.f32.mrf.mxu1 }
 0x40d   :  { %v12230_v48 = vadd.f32 %v2672_v22, %v15394_v45  ;;  %v3322_v50 = vadd.f32 %v3321_v43, %v3248_v36  ;;  %v8165_v22 = vor.u32 %v8946_v31, %v8162_v23  ;;  %v15401_v31 = vld [vmem:[#allocation44_spill] sm:$0xff] }
 0x40f   :  { %v12234_v62 = vadd.f32 %v3322_v50, %v15396_v41  ;;  %v12250_v50 = vsel %vm3577_vm3, %v3592_v46, %v3596_v51  ;;  %4037 = vmatpush.bf16.msra.mxu3 %v8165_v22  ;;  %v12253_v41 = vsel %vm3577_vm3, %v3594_v9, %v3598_v4 }
 0x411   :  { %15397 = vst [vmem:[#allocation12_spill] sm:$0xff] %v12234_v62  ;;  %v2600_v53 = vpop.f32.mrf.mxu2 }
 0x412   :  { %v2673_v36 = vpop.f32.mrf.mxu3 }
 0x413   :  { %v2674_v43 = vadd.f32 %v2673_v36, %v2600_v53  ;;  %v3251_v45 = vpop.f32.mrf.mxu0 }
 0x414   :  { %v3324_v16 = vpop.f32.mrf.mxu1 }
 0x415   :  { %v12256_v37 = vadd.f32 %v2674_v43, %v15399_v8  ;;  %v3325_v56 = vadd.f32 %v3324_v16, %v3251_v45  ;;  %v15403_v45 = vld [vmem:[#allocation56_spill] sm:$0xff]  ;;  %v15404_v8 = vld [vmem:[#allocation58_spill] sm:$0xff] }
 0x416   :  { %3376 = vmatmul.bf16.gmra.mxu2 %v11732_v1  ;;  %3842 = vmatmul.bf16.gmra.mxu0 %v12250_v50  ;;  %v3600_v16 = vrot.slane %v15403_v45, 2 }
 0x417   :  { %15400 = vst [vmem:[#allocation76_spill] sm:$0xff] %v12256_v37  ;;  %v12261_v3 = vadd.f32 %v3325_v56, %v15401_v31  ;;  %3449 = vmatmul.bf16.gmra.mxu3 %v11735_v61  ;;  %3915 = vmatmul.bf16.gmra.mxu1 %v12253_v41  ;;  %v3602_v56 = vrot.slane %v15404_v8, 2 }
 0x418   :  { %v12274_v62 = vsel %vm3577_vm3, %v3596_v51, %v3600_v16  ;;  %v8928_v51 = vld [vmem:[%s14912_s1 + $0x524] sm:$0xf] }
 0x419   :  { %15402 = vst [vmem:[#allocation78_spill] sm:$0xff] %v12261_v3  ;;  %v2603_v46 = vpop.f32.mrf.mxu2 }
 0x41a   :  { %v2676_v23 = vpop.f32.mrf.mxu3 }
 0x41b   :  { %v2677_v53 = vadd.f32 %v2676_v23, %v2603_v46  ;;  %v3253_v9 = vpop.f32.mrf.mxu0  ;;  %v12277_v23 = vsel %vm3577_vm3, %v3598_v4, %v3602_v56 }
 0x41c   :  { %v3326_v22 = vpop.f32.mrf.mxu1 }
 0x41d   :  { %v12266_v36 = vadd.f32 %v2677_v53, %v11726_v55  ;;  %v3327_v43 = vadd.f32 %v3326_v22, %v3253_v9 }
 0x41f   :  { %v12269_v1 = vadd.f32 %v3327_v43, %v11729_v21 }
 0x421   :  { %v2605_v31 = vpop.f32.mrf.mxu2 }
 0x422   :  { %v2678_v61 = vpop.f32.mrf.mxu3 }
 0x423   :  { %v2679_v3 = vadd.f32 %v2678_v61, %v2605_v31  ;;  %v3256_v37 = vpop.f32.mrf.mxu0  ;;  %v8344_v31 = vld [vmem:[%s14912_s1 + $0x670] sm:$0xf]  ;;  %v8993_v61 = vld [vmem:[%s14912_s1 + $0x674] sm:$0xf0] }
 0x424   :  { %v3329_v46 = vpop.f32.mrf.mxu1 }
 0x425   :  { %v12280_v55 = vadd.f32 %v2679_v3, %v11738_v57  ;;  %v3330_v21 = vadd.f32 %v3329_v46, %v3256_v37  ;;  %v8090_v57 = vld [vmem:[%s14912_s1 + $0x528] sm:$0xf0]  ;;  %v8345_v46 = vor.u32 %v8993_v61, %v8344_v31 }
 0x426   :  { %3381 = vmatmul.bf16.gmra.mxu2 %v11776_v54  ;;  %3847 = vmatmul.bf16.gmra.mxu0 %v12274_v62  ;;  %v8944_v54 = vld [vmem:[%s14912_s1 + $0x5a4] sm:$0xf]  ;;  %v8093_v4 = vor.u32 %v8928_v51, %v8090_v57  ;;  %v3604_v51 = vrot.slane %v11160_v14, 2  ;;  %v15405_v57 = vld [vmem:[#allocation30_spill] sm:$0xff] }
 0x427   :  { %v12285_v53 = vadd.f32 %v3330_v21, %v11745_v34  ;;  %3454 = vmatmul.bf16.gmra.mxu3 %v11779_v63  ;;  %3920 = vmatmul.bf16.gmra.mxu1 %v12277_v23  ;;  %v8154_v34 = vld [vmem:[%s14912_s1 + $0x5a8] sm:$0xf0]  ;;  %v8408_v14 = vld [vmem:[%s14912_s1 + $0x6f0] sm:$0xf] }
 0x428   :  { %v8157_v37 = vor.u32 %v8944_v54, %v8154_v34  ;;  %3965 = vmatpush.bf16.msra.mxu2 %v8093_v4  ;;  %v3606_v54 = vrot.slane %v15405_v57, 2  ;;  %4554 = vmatpush.bf16.msra.mxu0 %v8345_v46 }
 0x429   :  { %v2608_v63 = vpop.f32.mrf.mxu2 }
 0x42a   :  { %v2681_v3 = vpop.f32.mrf.mxu3  ;;  %4038 = vmatpush.bf16.msra.mxu3 %v8157_v37  ;;  %v12316_v37 = vsel %vm3577_vm3, %v3600_v16, %v3604_v51 }
 0x42b   :  { %v2682_v9 = vadd.f32 %v2681_v3, %v2608_v63  ;;  %v3258_v22 = vpop.f32.mrf.mxu0 }
 0x42c   :  { %v3331_v43 = vpop.f32.mrf.mxu1 }
 0x42d   :  { %v12302_v45 = vadd.f32 %v2682_v9, %v11764_v44  ;;  %v3332_v8 = vadd.f32 %v3331_v43, %v3258_v22  ;;  %v12319_v9 = vsel %vm3577_vm3, %v3602_v56, %v3606_v54  ;;  %v9009_v43 = vld [vmem:[%s14912_s1 + $0x6f4] sm:$0xf0] }
 0x42e   :  { %v8409_v16 = vor.u32 %v9009_v43, %v8408_v14 }
 0x42f   :  { %v12311_v21 = vadd.f32 %v3332_v8, %v11773_v12  ;;  %v15406_v8 = vld [vmem:[#allocation46_spill] sm:$0xff] }
 0x430   :  { %4627 = vmatpush.bf16.msra.mxu1 %v8409_v16 }
 0x431   :  { %v2610_v44 = vpop.f32.mrf.mxu2 }
 0x432   :  { %v2683_v4 = vpop.f32.mrf.mxu3 }
 0x433   :  { %v2684_v34 = vadd.f32 %v2683_v4, %v2610_v44  ;;  %v3261_v63 = vpop.f32.mrf.mxu0 }
 0x434   :  { %v3334_v3 = vpop.f32.mrf.mxu1 }
 0x435   :  { %v12322_v22 = vadd.f32 %v2684_v34, %v11782_v39  ;;  %v3335_v12 = vadd.f32 %v3334_v3, %v3261_v63  ;;  %v15409_v34 = vld [vmem:[#allocation62_spill] sm:$0xff]  ;;  %v15410_v3 = vld [vmem:[#allocation63_spill] sm:$0xff] }
 0x436   :  { %3386 = vmatmul.bf16.gmra.mxu2 %v11808_v13  ;;  %3852 = vmatmul.bf16.gmra.mxu0 %v12316_v37  ;;  %v3608_v63 = vrot.slane %v15409_v34, 2  ;;  %v15415_v34 = vld [vmem:[#allocation25_spill] sm:$0xff] }
 0x437   :  { %v12333_v56 = vadd.f32 %v3335_v12, %v15406_v8  ;;  %3459 = vmatmul.bf16.gmra.mxu3 %v11811_v33  ;;  %3925 = vmatmul.bf16.gmra.mxu1 %v12319_v9  ;;  %v3610_v12 = vrot.slane %v15410_v3, 2 }
 0x438   :  { %v12346_v16 = vsel %vm3577_vm3, %v3604_v51, %v3608_v63 }
 0x439   :  { %v2613_v39 = vpop.f32.mrf.mxu2 }
 0x43a   :  { %v2686_v31 = vpop.f32.mrf.mxu3 }
 0x43b   :  { %v2687_v61 = vadd.f32 %v2686_v31, %v2613_v39  ;;  %v3263_v46 = vpop.f32.mrf.mxu0  ;;  %v12349_v39 = vsel %vm3577_vm3, %v3606_v54, %v3610_v12  ;;  %v8082_v31 = vld [vmem:[%s14912_s1 + $0x518] sm:$0xf0] }
 0x43c   :  { %v3336_v57 = vpop.f32.mrf.mxu1  ;;  %15411 = vst [vmem:[#allocation37_spill] sm:$0xff] %v12349_v39  ;;  %v8146_v54 = vld [vmem:[%s14912_s1 + $0x598] sm:$0xf0] }
 0x43d   :  { %v12338_v44 = vadd.f32 %v2687_v61, %v11802_v7  ;;  %v3337_v13 = vadd.f32 %v3336_v57, %v3263_v46  ;;  %v8942_v61 = vld [vmem:[%s14912_s1 + $0x594] sm:$0xf]  ;;  %v15412_v46 = vld [vmem:[#allocation24_spill] sm:$0xff]  ;;  %v15413_v57 = vld [vmem:[#allocation47_spill] sm:$0xff] }
 0x43e   :  { %v8149_v3 = vor.u32 %v8942_v61, %v8146_v54  ;;  %v15418_v61 = vld [vmem:[#allocation64_spill] sm:$0xff] }
 0x43f   :  { %15407 = vst [vmem:[#allocation6_spill] sm:$0xff] %v12338_v44  ;;  %v12341_v4 = vadd.f32 %v3337_v13, %v11805_v59  ;;  %v8926_v59 = vld [vmem:[%s14912_s1 + $0x514] sm:$0xf]  ;;  %v8400_v54 = vld [vmem:[%s14912_s1 + $0x6e0] sm:$0xf] }
 0x440   :  { %v8085_v51 = vor.u32 %v8926_v59, %v8082_v31  ;;  %4039 = vmatpush.bf16.msra.mxu3 %v8149_v3  ;;  %v15416_v59 = vld [vmem:[#allocation23_spill] sm:$0xff]  ;;  %v9007_v3 = vld [vmem:[%s14912_s1 + $0x6e4] sm:$0xf0] }
 0x441   :  { %15408 = vst [vmem:[#allocation79_spill] sm:$0xff] %v12341_v4  ;;  %v2615_v33 = vpop.f32.mrf.mxu2 }
 0x442   :  { %v2688_v14 = vpop.f32.mrf.mxu3  ;;  %3966 = vmatpush.bf16.msra.mxu2 %v8085_v51  ;;  %v3612_v51 = vrot.slane %v15418_v61, 2 }
 0x443   :  { %v3266_v43 = vpop.f32.mrf.mxu0 }
 0x444   :  { %v3339_v8 = vpop.f32.mrf.mxu1 }
 0x445   :  { %v3340_v7 = vadd.f32 %v3339_v8, %v3266_v43 }
 0x446   :  { %3391 = vmatmul.bf16.gmra.mxu2 %v15412_v46  ;;  %3857 = vmatmul.bf16.gmra.mxu0 %v12346_v16 }
 0x447   :  { %v12366_v13 = vadd.f32 %v3340_v7, %v15413_v57  ;;  %3464 = vmatmul.bf16.gmra.mxu3 %v15415_v34  ;;  %3930 = vmatmul.bf16.gmra.mxu1 %v12349_v39  ;;  %v8336_v7 = vld [vmem:[%s14912_s1 + $0x660] sm:$0xf]  ;;  %v8991_v57 = vld [vmem:[%s14912_s1 + $0x664] sm:$0xf0]  ;;  %v15424_v39 = vld [vmem:[#allocation55_spill] sm:$0xff] }
 0x448   :  { %v8337_v34 = vor.u32 %v8991_v57, %v8336_v7  ;;  %v12388_v7 = vsel %vm3577_vm3, %v3608_v63, %v3612_v51 }
 0x449   :  { %15414 = vst [vmem:[#allocation20_spill] sm:$0xff] %v12366_v13  ;;  %v3352_v33 = vpop.f32.mrf.mxu2  ;;  %v15422_v13 = vld [vmem:[#allocation51_spill] sm:$0xff] }
 0x44a   :  { %v3425_v14 = vpop.f32.mrf.mxu3  ;;  %4555 = vmatpush.bf16.msra.mxu0 %v8337_v34  ;;  %15420 = vst [vmem:[#allocation21_spill] sm:$0xff] %v12388_v7  ;;  %v15425_v34 = vld [vmem:[#allocation52_spill] sm:$0xff] }
 0x44b   :  { %v3426_v43 = vadd.f32 %v3425_v14, %v3352_v33  ;;  %v3268_v8 = vpop.f32.mrf.mxu0  ;;  %v15419_v33 = vld [vmem:[#allocation65_spill] sm:$0xff] }
 0x44c   :  { %v3341_v46 = vpop.f32.mrf.mxu1  ;;  %v3614_v14 = vrot.slane %v15419_v33, 2 }
 0x44d   :  { %v12371_v31 = vadd.f32 %v3426_v43, %v15416_v59  ;;  %v8401_v43 = vor.u32 %v9007_v3, %v8400_v54  ;;  %v15427_v3 = vld [vmem:[#allocation57_spill] sm:$0xff] }
 0x44e   :  { %v12391_v61 = vsel %vm3577_vm3, %v3610_v12, %v3614_v14 }
 0x44f   :  { %15417 = vst [vmem:[#allocation36_spill] sm:$0xff] %v12371_v31  ;;  %4628 = vmatpush.bf16.msra.mxu1 %v8401_v43 }
 0x450   :  { %15421 = vst [vmem:[#allocation14_spill] sm:$0xff] %v12391_v61 }
 0x451   :  { %v3354_v8 = vpop.f32.mrf.mxu2 }
 0x452   :  { %v3427_v46 = vpop.f32.mrf.mxu3 }
 0x453   :  { %v3428_v59 = vadd.f32 %v3427_v46, %v3354_v8  ;;  %v3823_v31 = vpop.f32.mrf.mxu0  ;;  %v15428_v46 = vld [vmem:[#allocation27_spill] sm:$0xff] }
 0x454   :  { %v3896_v57 = vpop.f32.mrf.mxu1 }
 0x455   :  { %v12394_v4 = vadd.f32 %v3428_v59, %v15422_v13  ;;  %v3897_v44 = vadd.f32 %v3896_v57, %v3823_v31  ;;  %v15430_v59 = vld [vmem:[#allocation35_spill] sm:$0xff]  ;;  %v15431_v57 = vld [vmem:[#allocation54_spill] sm:$0xff] }
 0x456   :  { %3396 = vmatmul.bf16.gmra.mxu2 %v15424_v39  ;;  %3862 = vmatmul.bf16.gmra.mxu0 %v12388_v7  ;;  %v3616_v39 = vrot.slane %v15430_v59, 2 }
 0x457   :  { %15423 = vst [vmem:[#allocation77_spill] sm:$0xff] %v12394_v4  ;;  %v12399_v54 = vadd.f32 %v3897_v44, %v15425_v34  ;;  %3469 = vmatmul.bf16.gmra.mxu3 %v15427_v3  ;;  %3935 = vmatmul.bf16.gmra.mxu1 %v12391_v61  ;;  %v8924_v44 = vld [vmem:[%s14912_s1 + $0x504] sm:$0xf]  ;;  %v8074_v34 = vld [vmem:[%s14912_s1 + $0x508] sm:$0xf0] }
 0x458   :  { %v8940_v3 = vld [vmem:[%s14912_s1 + $0x584] sm:$0xf] }
 0x459   :  { %15426 = vst [vmem:[#allocation8_spill] sm:$0xff] %v12399_v54  ;;  %v3357_v63 = vpop.f32.mrf.mxu2 }
 0x45a   :  { %v3430_v33 = vpop.f32.mrf.mxu3 }
 0x45b   :  { %v3431_v43 = vadd.f32 %v3430_v33, %v3357_v63  ;;  %v3825_v12 = vpop.f32.mrf.mxu0  ;;  %v15433_v63 = vld [vmem:[#allocation69_spill] sm:$0xff] }
 0x45c   :  { %v3898_v8 = vpop.f32.mrf.mxu1  ;;  %v3618_v33 = vrot.slane %v15433_v63, 2  ;;  %v15436_v63 = vld [vmem:[#allocation59_spill] sm:$0xff] }
 0x45d   :  { %v12404_v13 = vadd.f32 %v3431_v43, %v15428_v46  ;;  %v3899_v31 = vadd.f32 %v3898_v8, %v3825_v12  ;;  %v8077_v43 = vor.u32 %v8924_v44, %v8074_v34  ;;  %v8138_v12 = vld [vmem:[%s14912_s1 + $0x588] sm:$0xf0] }
 0x45e   :  { %v8141_v46 = vor.u32 %v8940_v3, %v8138_v12  ;;  %v12427_v54 = vsel %vm3577_vm3, %v3614_v14, %v3618_v33  ;;  %v15438_v3 = vld [vmem:[#allocation28_spill] sm:$0xff]  ;;  %v15440_v12 = vld [vmem:[#allocation66_spill] sm:$0xff]  ;;  %v8989_v14 = vld [vmem:[%s14912_s1 + $0x654] sm:$0xf0] }
 0x45f   :  { %15429 = vst [vmem:[#allocation15_spill] sm:$0xff] %v12404_v13  ;;  %v12408_v4 = vadd.f32 %v3899_v31, %v15431_v57  ;;  %3967 = vmatpush.bf16.msra.mxu2 %v8077_v43 }
 0x460   :  { %4040 = vmatpush.bf16.msra.mxu3 %v8141_v46  ;;  %15435 = vst [vmem:[#allocation17_spill] sm:$0xff] %v12427_v54 }
 0x461   :  { %15432 = vst [vmem:[#allocation16_spill] sm:$0xff] %v12408_v4  ;;  %v3359_v8 = vpop.f32.mrf.mxu2  ;;  %v12424_v4 = vsel %vm3577_vm3, %v3612_v51, %v3616_v39  ;;  %v8328_v51 = vld [vmem:[%s14912_s1 + $0x650] sm:$0xf] }
 0x462   :  { %v3432_v31 = vpop.f32.mrf.mxu3  ;;  %15434 = vst [vmem:[#allocation10_spill] sm:$0xff] %v12424_v4 }
 0x463   :  { %v3433_v59 = vadd.f32 %v3432_v31, %v3359_v8  ;;  %v3828_v57 = vpop.f32.mrf.mxu0  ;;  %v9005_v8 = vld [vmem:[%s14912_s1 + $0x6d4] sm:$0xf0] }
 0x464   :  { %v3901_v13 = vpop.f32.mrf.mxu1 }
 0x465   :  { %v12430_v44 = vadd.f32 %v3433_v59, %v15436_v63  ;;  %v3902_v34 = vadd.f32 %v3901_v13, %v3828_v57  ;;  %v8329_v13 = vor.u32 %v8989_v14, %v8328_v51  ;;  %v15444_v51 = vld [vmem:[#allocation72_spill] sm:$0xff] }
 0x466   :  { %3401 = vmatmul.bf16.gmra.mxu2 %v11959_v35  ;;  %3867 = vmatmul.bf16.gmra.mxu0 %v12424_v4  ;;  %v8392_v35 = vld [vmem:[%s14912_s1 + $0x6d0] sm:$0xf]  ;;  %v3620_v14 = vrot.slane %v15444_v51, 2  ;;  %v15445_v4 = vld [vmem:[#allocation73_spill] sm:$0xff] }
 0x467   :  { %15437 = vst [vmem:[#allocation11_spill] sm:$0xff] %v12430_v44  ;;  %v12435_v43 = vadd.f32 %v3902_v34, %v15438_v3  ;;  %3474 = vmatmul.bf16.gmra.mxu3 %v15440_v12  ;;  %3940 = vmatmul.bf16.gmra.mxu1 %v12427_v54  ;;  %v8393_v31 = vor.u32 %v9005_v8, %v8392_v35  ;;  %v15441_v3 = vld [vmem:[#allocation29_spill] sm:$0xff]  ;;  %v15442_v44 = vld [vmem:[#allocation60_spill] sm:$0xff]  ;;  %v15009_v61 = vrot.slane %v15445_v4, 2 }
 0x468   :  { %4556 = vmatpush.bf16.msra.mxu0 %v8329_v13  ;;  %v8320_v35 = vld [vmem:[%s14912_s1 + $0x640] sm:$0xf]  ;;  %v8987_v13 = vld [vmem:[%s14912_s1 + $0x644] sm:$0xf0] }
 0x469   :  { %15439 = vst [vmem:[#allocation13_spill] sm:$0xff] %v12435_v43  ;;  %v3362_v46 = vpop.f32.mrf.mxu2  ;;  %4629 = vmatpush.bf16.msra.mxu1 %v8393_v31  ;;  %v8384_v8 = vld [vmem:[%s14912_s1 + $0x6c0] sm:$0xf] }
 0x46a   :  { %v3435_v59 = vpop.f32.mrf.mxu3 }
 0x46b   :  { %v3436_v57 = vadd.f32 %v3435_v59, %v3362_v46  ;;  %v3830_v63 = vpop.f32.mrf.mxu0 }
 0x46c   :  { %v3903_v34 = vpop.f32.mrf.mxu1 }
 0x46d   :  { %v12452_v12 = vadd.f32 %v3436_v57, %v15441_v3  ;;  %v3904_v43 = vadd.f32 %v3903_v34, %v3830_v63  ;;  %v12474_v57 = vsel %vm3577_vm3, %v3616_v39, %v3620_v14  ;;  %v12479_v3 = vsel %vm3577_vm3, %v3618_v33, %v15009_v61  ;;  %v8985_v39 = vld [vmem:[%s14912_s1 + $0x634] sm:$0xf0] }
 0x46f   :  { %v12455_v54 = vadd.f32 %v3904_v43, %v15442_v44  ;;  %v8321_v44 = vor.u32 %v8987_v13, %v8320_v35  ;;  %v9003_v43 = vld [vmem:[%s14912_s1 + $0x6c4] sm:$0xf0]  ;;  %v15446_v35 = vld [vmem:[#allocation32_spill] sm:$0xff] }
 0x470   :  { %v8385_v63 = vor.u32 %v9003_v43, %v8384_v8  ;;  %v8376_v8 = vld [vmem:[%s14912_s1 + $0x6b0] sm:$0xf] }
 0x471   :  { %15443 = vst [vmem:[#allocation7_spill] sm:$0xff] %v12455_v54  ;;  %v3364_v7 = vpop.f32.mrf.mxu2  ;;  %4557 = vmatpush.bf16.msra.mxu0 %v8321_v44  ;;  %v15447_v44 = vld [vmem:[#allocation67_spill] sm:$0xff] }
 0x472   :  { %v3437_v46 = vpop.f32.mrf.mxu3  ;;  %4630 = vmatpush.bf16.msra.mxu1 %v8385_v63 }
 0x473   :  { %v3438_v31 = vadd.f32 %v3437_v46, %v3364_v7  ;;  %v3833_v59 = vpop.f32.mrf.mxu0  ;;  %v8312_v7 = vld [vmem:[%s14912_s1 + $0x630] sm:$0xf]  ;;  %v9001_v46 = vld [vmem:[%s14912_s1 + $0x6b4] sm:$0xf0] }
 0x474   :  { %v3906_v34 = vpop.f32.mrf.mxu1  ;;  %v8313_v33 = vor.u32 %v8985_v39, %v8312_v7  ;;  %v8377_v63 = vor.u32 %v9001_v46, %v8376_v8  ;;  %v8304_v7 = vld [vmem:[%s14912_s1 + $0x620] sm:$0xf]  ;;  %v8983_v39 = vld [vmem:[%s14912_s1 + $0x624] sm:$0xf0] }
 0x475   :  { %v12482_v13 = vadd.f32 %v3438_v31, %v15446_v35  ;;  %v3907_v54 = vadd.f32 %v3906_v34, %v3833_v59  ;;  %v8992_v31 = vld [vmem:[%s14912_s1 + $0x674] sm:$0xf]  ;;  %v8368_v8 = vld [vmem:[%s14912_s1 + $0x6a0] sm:$0xf] }
 0x476   :  { %3406 = vmatmul.bf16.gmra.mxu2 %v12057_v2  ;;  %3872 = vmatmul.bf16.gmra.mxu0 %v12474_v57  ;;  %v8346_v2 = vld [vmem:[%s14912_s1 + $0x678] sm:$0xf0]  ;;  %v9008_v59 = vld [vmem:[%s14912_s1 + $0x6f4] sm:$0xf] }
 0x477   :  { %v12499_v43 = vadd.f32 %v3907_v54, %v15447_v44  ;;  %3479 = vmatmul.bf16.gmra.mxu3 %v12062_v49  ;;  %3945 = vmatmul.bf16.gmra.mxu1 %v12479_v3  ;;  %v8349_v34 = vor.u32 %v8992_v31, %v8346_v2  ;;  %v8410_v49 = vld [vmem:[%s14912_s1 + $0x6f8] sm:$0xf0]  ;;  %v8305_v44 = vor.u32 %v8983_v39, %v8304_v7  ;;  %v8981_v7 = vld [vmem:[%s14912_s1 + $0x614] sm:$0xf0] }
 0x478   :  { %4558 = vmatpush.bf16.msra.mxu0 %v8313_v33  ;;  %v8413_v35 = vor.u32 %v9008_v59, %v8410_v49  ;;  %4631 = vmatpush.bf16.msra.mxu1 %v8377_v63  ;;  %v8999_v33 = vld [vmem:[%s14912_s1 + $0x6a4] sm:$0xf0] }
 0x479   :  { %v3367_v54 = vpop.f32.mrf.mxu2  ;;  %4700 = vmatpush.bf16.msrb.mxu2 %v8349_v34  ;;  %v8369_v59 = vor.u32 %v8999_v33, %v8368_v8  ;;  %v8296_v34 = vld [vmem:[%s14912_s1 + $0x610] sm:$0xf]  ;;  %v15449_v8 = vld [vmem:[#allocation61_spill] sm:$0xff]  ;;  %v15450_v33 = vld [vmem:[#allocation31_spill] sm:$0xff] }
 0x47a   :  { %v3440_v46 = vpop.f32.mrf.mxu3  ;;  %4773 = vmatpush.bf16.msrb.mxu3 %v8413_v35  ;;  %v8297_v35 = vor.u32 %v8981_v7, %v8296_v34  ;;  %v8995_v7 = vld [vmem:[%s14912_s1 + $0x684] sm:$0xf0] }
 0x47b   :  { %v3441_v31 = vadd.f32 %v3440_v46, %v3367_v54  ;;  %v3835_v2 = vpop.f32.mrf.mxu0  ;;  %v8360_v54 = vld [vmem:[%s14912_s1 + $0x690] sm:$0xf]  ;;  %v12546_v46 = vrot.slane %v15449_v8, 2 }
 0x47c   :  { %v3908_v63 = vpop.f32.mrf.mxu1  ;;  %4559 = vmatpush.bf16.msra.mxu0 %v8305_v44  ;;  %4632 = vmatpush.bf16.msra.mxu1 %v8369_v59  ;;  %v8288_v59 = vld [vmem:[%s14912_s1 + $0x600] sm:$0xf] }
 0x47d   :  { %v12528_v49 = vadd.f32 %v3441_v31, %v12021_v42  ;;  %v3909_v61 = vadd.f32 %v3908_v63, %v3835_v2  ;;  %v8997_v42 = vld [vmem:[%s14912_s1 + $0x694] sm:$0xf0]  ;;  %v12549_v31 = vrot.slane %v15450_v33, 2  ;;  %v8979_v63 = vld [vmem:[%s14912_s1 + $0x604] sm:$0xf0]  ;;  %v15452_v33 = vrot.slane %v15445_v4, 2 }
 0x47e   :  { %v8361_v44 = vor.u32 %v8997_v42, %v8360_v54  ;;  %v8289_v34 = vor.u32 %v8979_v63, %v8288_v59  ;;  %v12567_v42 = vsel %vm3577_vm3, %v3620_v14, %v12546_v46  ;;  %v15454_v14 = vld [vmem:[#allocation70_spill] sm:$0xff] }
 0x47f   :  { %v12543_v39 = vadd.f32 %v3909_v61, %v12036_v19  ;;  %15451 = vst [vmem:[#allocation38_spill] sm:$0xff] %v12549_v31  ;;  %v8352_v19 = vld [vmem:[%s14912_s1 + $0x680] sm:$0xf] }
 0x480   :  { %4560 = vmatpush.bf16.msra.mxu0 %v8297_v35  ;;  %4633 = vmatpush.bf16.msra.mxu1 %v8361_v44  ;;  %v8353_v8 = vor.u32 %v8995_v7, %v8352_v19 }
 0x481   :  { %15448 = vst [vmem:[#allocation9_spill] sm:$0xff] %v12543_v39  ;;  %v3369_v2 = vpop.f32.mrf.mxu2  ;;  %v12573_v39 = vsel %vm3577_vm3, %v15452_v33, %v12549_v31 }
 0x482   :  { %v3442_v61 = vpop.f32.mrf.mxu3 }
 0x483   :  { %v3443_v54 = vadd.f32 %v3442_v61, %v3369_v2  ;;  %v3838_v35 = vpop.f32.mrf.mxu0 }
 0x484   :  { %v3911_v44 = vpop.f32.mrf.mxu1  ;;  %4561 = vmatpush.bf16.msra.mxu0 %v8289_v34  ;;  %4634 = vmatpush.bf16.msra.mxu1 %v8353_v8  ;;  %v8338_v8 = vld [vmem:[%s14912_s1 + $0x668] sm:$0xf0] }
 0x485   :  { %v12576_v59 = vadd.f32 %v3443_v54, %v12065_v17  ;;  %v3912_v2 = vadd.f32 %v3911_v44, %v3838_v35  ;;  %v15455_v17 = vld [vmem:[#allocation68_spill] sm:$0xff]  ;;  %v15457_v35 = vld [vmem:[#allocation71_spill] sm:$0xff] }
 0x486   :  { %3411 = vmatmul.bf16.gmra.mxu2 %v12038_v10  ;;  %3877 = vmatmul.bf16.gmra.mxu0 %v12567_v42  ;;  %v9006_v44 = vld [vmem:[%s14912_s1 + $0x6e4] sm:$0xf] }
 0x487   :  { %v12581_v51 = vadd.f32 %v3912_v2, %v12070_v29  ;;  %3484 = vmatmul.bf16.gmra.mxu3 %v15454_v14  ;;  %3950 = vmatmul.bf16.gmra.mxu1 %v12573_v39  ;;  %v8990_v29 = vld [vmem:[%s14912_s1 + $0x664] sm:$0xf]  ;;  %v8402_v2 = vld [vmem:[%s14912_s1 + $0x6e8] sm:$0xf0] }
 0x488   :  { %v8341_v33 = vor.u32 %v8990_v29, %v8338_v8 }
 0x489   :  { %15453 = vst [vmem:[#allocation5_spill] sm:$0xff] %v12581_v51  ;;  %v3372_v4 = vpop.f32.mrf.mxu2 }
 0x48a   :  { %v3445_v63 = vpop.f32.mrf.mxu3  ;;  %4701 = vmatpush.bf16.msrb.mxu2 %v8341_v33 }
 0x48b   :  { %v3446_v19 = vadd.f32 %v3445_v63, %v3372_v4  ;;  %v3840_v61 = vpop.f32.mrf.mxu0  ;;  %v8405_v4 = vor.u32 %v9006_v44, %v8402_v2  ;;  %v15462_v44 = vld [vmem:[#allocation34_spill] sm:$0xff] }
 0x48c   :  { %v3913_v34 = vpop.f32.mrf.mxu1 }
 0x48d   :  { %v12586_v7 = vadd.f32 %v3446_v19, %v15455_v17  ;;  %v3914_v54 = vadd.f32 %v3913_v34, %v3840_v61  ;;  %4774 = vmatpush.bf16.msrb.mxu3 %v8405_v4  ;;  %v4156_v17 = vld [vmem:[%s14911_s0 + $0x10] sm:$0xcc]  ;;  %v8200_v4 = vld [vmem:[%s14911_s0 + $0x20] sm:$0xf] }
 0x48e   :  { %v4240_v2 = vunpack.c.l.b16 %v4156_v17 }
 0x48f   :  { %15456 = vst [vmem:[#allocation42_spill] sm:$0xff] %v12586_v7  ;;  %v12589_v10 = vadd.f32 %v3914_v54, %v15457_v35  ;;  %v12609_v54 = vld [vmem:[%s14911_s0 + $0x18] sm:$0xff]  ;;  %v15460_v35 = vld [vmem:[#allocation33_spill] sm:$0xff] }
 0x490   :  { %15459 = vst [vmem:[#allocation40_spill] sm:$0xff] %v12609_v54 }
 0x491   :  { %15458 = vst [vmem:[#allocation39_spill] sm:$0xff] %v12589_v10  ;;  %v3374_v14 = vpop.f32.mrf.mxu2 }
 0x492   :  { %v3447_v63 = vpop.f32.mrf.mxu3 }
 0x493   :  { %v3448_v19 = vadd.f32 %v3447_v63, %v3374_v14  ;;  %v3843_v61 = vpop.f32.mrf.mxu0  ;;  %v15011_v14 = vunpack.c.l.b16 %v12609_v54  ;;  %v8957_v63 = vld [vmem:[%s14911_s0 + $0x24] sm:$0xf0] }
 0x494   :  { %v3916_v34 = vpop.f32.mrf.mxu1 }
 0x495   :  { %v12612_v29 = vadd.f32 %v3448_v19, %v15460_v35  ;;  %v3917_v8 = vadd.f32 %v3916_v34, %v3843_v61  ;;  %v4241_v19 = vunpack.c.h.b16 %v4156_v17  ;;  %v8956_v34 = vld [vmem:[%s14911_s0 + $0x24] sm:$0xf] }
 0x496   :  { %3882 = vmatmul.bf16.gmra.mxu0 %v12546_v46  ;;  %3968 = vmatmul.bf16.vlgmr.msra.gmra.mxu2 %v12118_v26  ;;  %v15012_v26 = vunpack.c.h.b16 %v12609_v54 }
 0x497   :  { %15461 = vst [vmem:[#allocation22_spill] sm:$0xff] %v12612_v29  ;;  %v12617_v33 = vadd.f32 %v3917_v8, %v15462_v44  ;;  %3955 = vmatmul.bf16.gmra.mxu1 %v12549_v31  ;;  %4041 = vmatmul.bf16.vlgmr.msra.gmra.mxu3 %v12121_v52  ;;  %v8202_v52 = vld [vmem:[%s14911_s0 + $0x28] sm:$0xf0]  ;;  %v12639_v29 = vor.u32 %v8957_v63, %v8200_v4 }
 0x498   :  { %v12643_v10 = vpack.c.b16 %v15012_v26, %v4241_v19  ;;  %v12645_v7 = vor.u32 %v8956_v34, %v8202_v52 }
 0x499   :  { %15463 = vst [vmem:[#allocation48_spill] sm:$0xff] %v12617_v33  ;;  %v3377_v61 = vpop.f32.mrf.mxu2  ;;  %v12637_v33 = vpack.c.b16 %v15011_v14, %v4240_v2  ;;  %v4319_v2 = vrot.slane %v12639_v29, 2 }
 0x49a   :  { %v3450_v35 = vpop.f32.mrf.mxu3  ;;  %15464 = vst [vmem:[#allocation49_spill] sm:$0xff] %v12639_v29  ;;  %v4321_v4 = vrot.slane %v12643_v10, 2  ;;  %v4322_v63 = vrot.slane %v12645_v7, 2 }
 0x49b   :  { %v3451_v8 = vadd.f32 %v3450_v35, %v3377_v61  ;;  %v3845_v44 = vpop.f32.mrf.mxu0  ;;  %15465 = vst [vmem:[#allocation50_spill] sm:$0xff] %v12645_v7  ;;  %v4318_v35 = vrot.slane %v12637_v33, 2 }
 0x49c   :  { %v3918_v17 = vpop.f32.mrf.mxu1 }
 0x49d   :  { %v12648_v31 = vadd.f32 %v3451_v8, %v12110_v38  ;;  %v3919_v51 = vadd.f32 %v3918_v17, %v3845_v44  ;;  %v12658_v52 = vsel %vm3577_vm3, %v4318_v35, %v4319_v2  ;;  %v12661_v8 = vsel %vm3577_vm3, %v4321_v4, %v4322_v63 }
 0x49f   :  { %v12651_v61 = vadd.f32 %v3919_v51, %v12113_v40 }
 0x4a1   :  { %15466 = vst [vmem:[#allocation45_spill] sm:$0xff] %v12651_v61  ;;  %v3379_v14 = vpop.f32.mrf.mxu2 }
 0x4a2   :  { %v3452_v19 = vpop.f32.mrf.mxu3 }
 0x4a3   :  { %v3453_v26 = vadd.f32 %v3452_v19, %v3379_v14  ;;  %v3848_v34 = vpop.f32.mrf.mxu0  ;;  %v8208_v14 = vld [vmem:[%s14911_s0 + $0x30] sm:$0xf] }
 0x4a4   :  { %v3921_v38 = vpop.f32.mrf.mxu1 }
 0x4a5   :  { %v12664_v40 = vadd.f32 %v3453_v26, %v12124_v5  ;;  %v3922_v51 = vadd.f32 %v3921_v38, %v3848_v34  ;;  %v8959_v5 = vld [vmem:[%s14911_s0 + $0x34] sm:$0xf0]  ;;  %v15471_v38 = vld [vmem:[#allocation18_spill] sm:$0xff] }
 0x4a6   :  { %3973 = vmatmul.bf16.gmra.mxu2 %v12154_v27  ;;  %4562 = vmatmul.bf16.vlgmr.msra.gmra.mxu0 %v12658_v52  ;;  %v8958_v27 = vld [vmem:[%s14911_s0 + $0x34] sm:$0xf]  ;;  %v12685_v4 = vor.u32 %v8959_v5, %v8208_v14 }
 0x4a7   :  { %15467 = vst [vmem:[#allocation26_spill] sm:$0xff] %v12664_v40  ;;  %v12669_v44 = vadd.f32 %v3922_v51, %v12129_v0  ;;  %4046 = vmatmul.bf16.gmra.mxu3 %v12157_v20  ;;  %4635 = vmatmul.bf16.vlgmr.msra.gmra.mxu1 %v12661_v8  ;;  %v8210_v0 = vld [vmem:[%s14911_s0 + $0x38] sm:$0xf0]  ;;  %v9004_v14 = vld [vmem:[%s14912_s1 + $0x6d4] sm:$0xf] }
 0x4a8   :  { %15469 = vst [vmem:[#allocation53_spill] sm:$0xff] %v12685_v4  ;;  %v12687_v34 = vor.u32 %v8958_v27, %v8210_v0  ;;  %v8330_v40 = vld [vmem:[%s14912_s1 + $0x658] sm:$0xf0]  ;;  %v4324_v0 = vrot.slane %v12685_v4, 2 }
 0x4a9   :  { %15468 = vst [vmem:[#allocation41_spill] sm:$0xff] %v12669_v44  ;;  %v3382_v26 = vpop.f32.mrf.mxu2  ;;  %v8988_v44 = vld [vmem:[%s14912_s1 + $0x654] sm:$0xf] }
 0x4aa   :  { %v3455_v20 = vpop.f32.mrf.mxu3  ;;  %15470 = vst [vmem:[#allocation43_spill] sm:$0xff] %v12687_v34  ;;  %v8333_v5 = vor.u32 %v8988_v44, %v8330_v40  ;;  %v12710_v40 = vsel %vm3577_vm3, %v4319_v2, %v4324_v0  ;;  %v8216_v2 = vld [vmem:[%s14911_s0 + $0x40] sm:$0xf] }
 0x4ab   :  { %v3456_v17 = vadd.f32 %v3455_v20, %v3382_v26  ;;  %v3850_v35 = vpop.f32.mrf.mxu0  ;;  %v8394_v26 = vld [vmem:[%s14912_s1 + $0x6d8] sm:$0xf0] }
 0x4ac   :  { %v3923_v19 = vpop.f32.mrf.mxu1  ;;  %v8397_v20 = vor.u32 %v9004_v14, %v8394_v26  ;;  %4702 = vmatpush.bf16.msrb.mxu2 %v8333_v5  ;;  %v15476_v14 = vld [vmem:[#allocation75_spill] sm:$0xff]  ;;  %v8218_v26 = vld [vmem:[%s14911_s0 + $0x48] sm:$0xf0] }
 0x4ad   :  { %v12690_v51 = vadd.f32 %v3456_v17, %v15471_v38  ;;  %v3924_v54 = vadd.f32 %v3923_v19, %v3850_v35  ;;  %v4326_v17 = vrot.slane %v12687_v34, 2 }
 0x4ae   :  { %4775 = vmatpush.bf16.msrb.mxu3 %v8397_v20 }
 0x4af   :  { %15472 = vst [vmem:[#allocation44_spill] sm:$0xff] %v12690_v51  ;;  %v12705_v27 = vadd.f32 %v3924_v54, %v12149_v60  ;;  %v12713_v61 = vsel %vm3577_vm3, %v4322_v63, %v4326_v17  ;;  %v15474_v60 = vld [vmem:[#allocation19_spill] sm:$0xff]  ;;  %v8961_v63 = vld [vmem:[%s14911_s0 + $0x44] sm:$0xf0] }
 0x4b1   :  { %15473 = vst [vmem:[#allocation56_spill] sm:$0xff] %v12705_v27  ;;  %v3384_v35 = vpop.f32.mrf.mxu2 }
 0x4b2   :  { %v3457_v19 = vpop.f32.mrf.mxu3 }
 0x4b3   :  { %v3458_v38 = vadd.f32 %v3457_v19, %v3384_v35  ;;  %v3853_v51 = vpop.f32.mrf.mxu0  ;;  %v12737_v35 = vor.u32 %v8961_v63, %v8216_v2 }
 0x4b4   :  { %v3926_v44 = vpop.f32.mrf.mxu1 }
 0x4b5   :  { %v12716_v54 = vadd.f32 %v3458_v38, %v15474_v60  ;;  %v3927_v27 = vadd.f32 %v3926_v44, %v3853_v51  ;;  %15478 = vst [vmem:[#allocation46_spill] sm:$0xff] %v12737_v35 }
 0x4b6   :  { %3978 = vmatmul.bf16.gmra.mxu2 %v12178_v15  ;;  %4567 = vmatmul.bf16.gmra.mxu0 %v12710_v40  ;;  %v8960_v15 = vld [vmem:[%s14911_s0 + $0x44] sm:$0xf] }
 0x4b7   :  { %15475 = vst [vmem:[#allocation58_spill] sm:$0xff] %v12716_v54  ;;  %v12721_v5 = vadd.f32 %v3927_v27, %v15476_v14  ;;  %4051 = vmatmul.bf16.gmra.mxu3 %v12181_v18  ;;  %4640 = vmatmul.bf16.gmra.mxu1 %v12713_v61  ;;  %v12739_v38 = vor.u32 %v8960_v15, %v8218_v26  ;;  %v15483_v26 = vld [vmem:[#allocation74_spill] sm:$0xff] }
 0x4b9   :  { %15477 = vst [vmem:[#allocation30_spill] sm:$0xff] %v12721_v5  ;;  %v3387_v51 = vpop.f32.mrf.mxu2  ;;  %v4328_v5 = vrot.slane %v12737_v35, 2  ;;  %v4330_v54 = vrot.slane %v12739_v38, 2 }
 0x4ba   :  { %v3460_v18 = vpop.f32.mrf.mxu3  ;;  %15479 = vst [vmem:[#allocation62_spill] sm:$0xff] %v12739_v38 }
 0x4bb   :  { %v3461_v27 = vadd.f32 %v3460_v18, %v3387_v51  ;;  %v3855_v20 = vpop.f32.mrf.mxu0  ;;  %v12750_v2 = vsel %vm3577_vm3, %v4324_v0, %v4328_v5  ;;  %v12753_v15 = vsel %vm3577_vm3, %v4326_v17, %v4330_v54  ;;  %v8386_v17 = vld [vmem:[%s14912_s1 + $0x6c8] sm:$0xf0] }
 0x4bc   :  { %v3928_v19 = vpop.f32.mrf.mxu1 }
 0x4bd   :  { %v12742_v44 = vadd.f32 %v3461_v27, %v12170_v11  ;;  %v3929_v60 = vadd.f32 %v3928_v19, %v3855_v20  ;;  %v8962_v19 = vld [vmem:[%s14911_s0 + $0x54] sm:$0xf] }
 0x4bf   :  { %15480 = vst [vmem:[#allocation63_spill] sm:$0xff] %v12742_v44  ;;  %v12745_v14 = vadd.f32 %v3929_v60, %v12173_v28  ;;  %v8226_v60 = vld [vmem:[%s14911_s0 + $0x58] sm:$0xf0] }
 0x4c1   :  { %15481 = vst [vmem:[#allocation24_spill] sm:$0xff] %v12745_v14  ;;  %v3389_v34 = vpop.f32.mrf.mxu2 }
 0x4c2   :  { %v3462_v4 = vpop.f32.mrf.mxu3 }
 0x4c3   :  { %v3463_v51 = vadd.f32 %v3462_v4, %v3389_v34  ;;  %v3858_v18 = vpop.f32.mrf.mxu0  ;;  %v8986_v4 = vld [vmem:[%s14912_s1 + $0x644] sm:$0xf]  ;;  %v8224_v34 = vld [vmem:[%s14911_s0 + $0x50] sm:$0xf] }
 0x4c4   :  { %v3931_v63 = vpop.f32.mrf.mxu1 }
 0x4c5   :  { %v12756_v11 = vadd.f32 %v3463_v51, %v12184_v58  ;;  %v3932_v28 = vadd.f32 %v3931_v63, %v3858_v18  ;;  %v8322_v58 = vld [vmem:[%s14912_s1 + $0x648] sm:$0xf0] }
 0x4c6   :  { %3983 = vmatmul.bf16.gmra.mxu2 %v12214_v32  ;;  %4572 = vmatmul.bf16.gmra.mxu0 %v12750_v2  ;;  %v9002_v32 = vld [vmem:[%s14912_s1 + $0x6c4] sm:$0xf]  ;;  %v8325_v0 = vor.u32 %v8986_v4, %v8322_v58  ;;  %v12791_v58 = vor.u32 %v8962_v19, %v8226_v60 }
 0x4c7   :  { %15482 = vst [vmem:[#allocation47_spill] sm:$0xff] %v12756_v11  ;;  %v12761_v27 = vadd.f32 %v3932_v28, %v15483_v26  ;;  %4056 = vmatmul.bf16.gmra.mxu3 %v12217_v47  ;;  %4645 = vmatmul.bf16.gmra.mxu1 %v12753_v15  ;;  %v8963_v47 = vld [vmem:[%s14911_s0 + $0x54] sm:$0xf0]  ;;  %v8389_v51 = vor.u32 %v9002_v32, %v8386_v17 }
 0x4c8   :  { %4703 = vmatpush.bf16.msrb.mxu2 %v8325_v0  ;;  %v12789_v26 = vor.u32 %v8963_v47, %v8224_v34  ;;  %15486 = vst [vmem:[#allocation64_spill] sm:$0xff] %v12791_v58  ;;  %v4334_v32 = vrot.slane %v12791_v58, 2 }
 0x4c9   :  { %15484 = vst [vmem:[#allocation25_spill] sm:$0xff] %v12761_v27  ;;  %v3392_v20 = vpop.f32.mrf.mxu2  ;;  %4776 = vmatpush.bf16.msrb.mxu3 %v8389_v51 }
 0x4ca   :  { %v3465_v18 = vpop.f32.mrf.mxu3  ;;  %15485 = vst [vmem:[#allocation23_spill] sm:$0xff] %v12789_v26  ;;  %v4332_v44 = vrot.slane %v12789_v26, 2  ;;  %v12805_v60 = vsel %vm3577_vm3, %v4330_v54, %v4334_v32  ;;  %v8232_v54 = vld [vmem:[%s14911_s0 + $0x60] sm:$0xf] }
 0x4cb   :  { %v3466_v63 = vadd.f32 %v3465_v18, %v3392_v20  ;;  %v3860_v28 = vpop.f32.mrf.mxu0 }
 0x4cc   :  { %v3933_v4 = vpop.f32.mrf.mxu1  ;;  %v12802_v47 = vsel %vm3577_vm3, %v4328_v5, %v4332_v44 }
 0x4cd   :  { %v12794_v27 = vadd.f32 %v3466_v63, %v12206_v25  ;;  %v3934_v11 = vadd.f32 %v3933_v4, %v3860_v28 }
 0x4cf   :  { %v12797_v14 = vadd.f32 %v3934_v11, %v12209_v24 }
 0x4d1   :  { %v3394_v0 = vpop.f32.mrf.mxu2 }
 0x4d2   :  { %v3467_v17 = vpop.f32.mrf.mxu3 }
 0x4d3   :  { %v3468_v20 = vadd.f32 %v3467_v17, %v3394_v0  ;;  %v3863_v34 = vpop.f32.mrf.mxu0 }
 0x4d4   :  { %v3936_v19 = vpop.f32.mrf.mxu1 }
 0x4d5   :  { %v12808_v25 = vadd.f32 %v3468_v20, %v12220_v6  ;;  %v3937_v24 = vadd.f32 %v3936_v19, %v3863_v34  ;;  %v8965_v6 = vld [vmem:[%s14911_s0 + $0x64] sm:$0xf0]  ;;  %v15490_v34 = vld [vmem:[#allocation12_spill] sm:$0xff] }
 0x4d6   :  { %3988 = vmatmul.bf16.gmra.mxu2 %v12250_v50  ;;  %4577 = vmatmul.bf16.gmra.mxu0 %v12802_v47  ;;  %v8964_v50 = vld [vmem:[%s14911_s0 + $0x64] sm:$0xf]  ;;  %v12829_v51 = vor.u32 %v8965_v6, %v8232_v54  ;;  %v8314_v54 = vld [vmem:[%s14912_s1 + $0x638] sm:$0xf0]  ;;  %v9000_v6 = vld [vmem:[%s14912_s1 + $0x6b4] sm:$0xf] }
 0x4d7   :  { %v12813_v11 = vadd.f32 %v3937_v24, %v12225_v30  ;;  %4061 = vmatmul.bf16.gmra.mxu3 %v12253_v41  ;;  %4650 = vmatmul.bf16.gmra.mxu1 %v12805_v60  ;;  %v8234_v30 = vld [vmem:[%s14911_s0 + $0x68] sm:$0xf0]  ;;  %v8984_v24 = vld [vmem:[%s14912_s1 + $0x634] sm:$0xf] }
 0x4d8   :  { %15487 = vst [vmem:[#allocation65_spill] sm:$0xff] %v12829_v51  ;;  %v12831_v4 = vor.u32 %v8964_v50, %v8234_v30  ;;  %v4336_v20 = vrot.slane %v12829_v51, 2  ;;  %v8378_v50 = vld [vmem:[%s14912_s1 + $0x6b8] sm:$0xf0] }
 0x4d9   :  { %v3397_v5 = vpop.f32.mrf.mxu2 }
 0x4da   :  { %v3470_v41 = vpop.f32.mrf.mxu3  ;;  %15488 = vst [vmem:[#allocation51_spill] sm:$0xff] %v12831_v4 }
 0x4db   :  { %v3471_v18 = vadd.f32 %v3470_v41, %v3397_v5  ;;  %v3865_v63 = vpop.f32.mrf.mxu0  ;;  %v8317_v5 = vor.u32 %v8984_v24, %v8314_v54  ;;  %v8381_v41 = vor.u32 %v9000_v6, %v8378_v50  ;;  %v15494_v6 = vld [vmem:[#allocation78_spill] sm:$0xff]  ;;  %v8242_v50 = vld [vmem:[%s14911_s0 + $0x78] sm:$0xf0] }
 0x4dc   :  { %v3938_v28 = vpop.f32.mrf.mxu1 }
 0x4dd   :  { %v12834_v0 = vadd.f32 %v3471_v18, %v12230_v48  ;;  %v3939_v17 = vadd.f32 %v3938_v28, %v3865_v63  ;;  %v4338_v48 = vrot.slane %v12831_v4, 2  ;;  %4704 = vmatpush.bf16.msrb.mxu2 %v8317_v5  ;;  %4777 = vmatpush.bf16.msrb.mxu3 %v8381_v41 }
 0x4df   :  { %15489 = vst [vmem:[#allocation55_spill] sm:$0xff] %v12834_v0  ;;  %v12838_v19 = vadd.f32 %v3939_v17, %v15490_v34  ;;  %v12854_v17 = vsel %vm3577_vm3, %v4332_v44, %v4336_v20  ;;  %v15492_v0 = vld [vmem:[#allocation76_spill] sm:$0xff]  ;;  %v8240_v44 = vld [vmem:[%s14911_s0 + $0x70] sm:$0xf] }
 0x4e1   :  { %15491 = vst [vmem:[#allocation52_spill] sm:$0xff] %v12838_v19  ;;  %v3399_v30 = vpop.f32.mrf.mxu2  ;;  %v12857_v19 = vsel %vm3577_vm3, %v4334_v32, %v4338_v48  ;;  %v8967_v32 = vld [vmem:[%s14911_s0 + $0x74] sm:$0xf0] }
 0x4e2   :  { %v3472_v18 = vpop.f32.mrf.mxu3 }
 0x4e3   :  { %v3473_v63 = vadd.f32 %v3472_v18, %v3399_v30  ;;  %v3868_v28 = vpop.f32.mrf.mxu0  ;;  %v12881_v18 = vor.u32 %v8967_v32, %v8240_v44 }
 0x4e4   :  { %v3941_v34 = vpop.f32.mrf.mxu1 }
 0x4e5   :  { %v12860_v24 = vadd.f32 %v3473_v63, %v15492_v0  ;;  %v3942_v54 = vadd.f32 %v3941_v34, %v3868_v28  ;;  %15496 = vst [vmem:[#allocation35_spill] sm:$0xff] %v12881_v18 }
 0x4e6   :  { %3993 = vmatmul.bf16.gmra.mxu2 %v12274_v62  ;;  %4582 = vmatmul.bf16.gmra.mxu0 %v12854_v17  ;;  %v8966_v62 = vld [vmem:[%s14911_s0 + $0x74] sm:$0xf] }
 0x4e7   :  { %15493 = vst [vmem:[#allocation57_spill] sm:$0xff] %v12860_v24  ;;  %v12865_v5 = vadd.f32 %v3942_v54, %v15494_v6  ;;  %4066 = vmatmul.bf16.gmra.mxu3 %v12277_v23  ;;  %4655 = vmatmul.bf16.gmra.mxu1 %v12857_v19  ;;  %v12883_v28 = vor.u32 %v8966_v62, %v8242_v50 }
 0x4e9   :  { %15495 = vst [vmem:[#allocation27_spill] sm:$0xff] %v12865_v5  ;;  %v3402_v0 = vpop.f32.mrf.mxu2  ;;  %v4340_v5 = vrot.slane %v12881_v18, 2  ;;  %v4342_v24 = vrot.slane %v12883_v28, 2 }
 0x4ea   :  { %v3475_v23 = vpop.f32.mrf.mxu3  ;;  %15497 = vst [vmem:[#allocation54_spill] sm:$0xff] %v12883_v28 }
 0x4eb   :  { %v3476_v30 = vadd.f32 %v3475_v23, %v3402_v0  ;;  %v3870_v41 = vpop.f32.mrf.mxu0  ;;  %v12894_v44 = vsel %vm3577_vm3, %v4336_v20, %v4340_v5  ;;  %v12897_v62 = vsel %vm3577_vm3, %v4338_v48, %v4342_v24  ;;  %v8370_v20 = vld [vmem:[%s14912_s1 + $0x6a8] sm:$0xf0] }
 0x4ec   :  { %v3943_v63 = vpop.f32.mrf.mxu1 }
 0x4ed   :  { %v12886_v34 = vadd.f32 %v3476_v30, %v12266_v36  ;;  %v3944_v54 = vadd.f32 %v3943_v63, %v3870_v41  ;;  %v8968_v30 = vld [vmem:[%s14911_s0 + $0x84] sm:$0xf]  ;;  %v8250_v41 = vld [vmem:[%s14911_s0 + $0x88] sm:$0xf0] }
 0x4ef   :  { %v12889_v6 = vadd.f32 %v3944_v54, %v12269_v1 }
 0x4f1   :  { %v3404_v4 = vpop.f32.mrf.mxu2 }
 0x4f2   :  { %v3477_v51 = vpop.f32.mrf.mxu3 }
 0x4f3   :  { %v3478_v0 = vadd.f32 %v3477_v51, %v3404_v4  ;;  %v3873_v23 = vpop.f32.mrf.mxu0  ;;  %v8982_v51 = vld [vmem:[%s14912_s1 + $0x624] sm:$0xf] }
 0x4f4   :  { %v3946_v32 = vpop.f32.mrf.mxu1 }
 0x4f5   :  { %v12900_v36 = vadd.f32 %v3478_v0, %v12280_v55  ;;  %v3947_v1 = vadd.f32 %v3946_v32, %v3873_v23  ;;  %v8306_v55 = vld [vmem:[%s14912_s1 + $0x628] sm:$0xf0] }
 0x4f6   :  { %3998 = vmatmul.bf16.gmra.mxu2 %v12316_v37  ;;  %4587 = vmatmul.bf16.gmra.mxu0 %v12894_v44  ;;  %v8998_v37 = vld [vmem:[%s14912_s1 + $0x6a4] sm:$0xf]  ;;  %v8309_v4 = vor.u32 %v8982_v51, %v8306_v55  ;;  %v12935_v51 = vor.u32 %v8968_v30, %v8250_v41 }
 0x4f7   :  { %15498 = vst [vmem:[#allocation69_spill] sm:$0xff] %v12900_v36  ;;  %v12905_v50 = vadd.f32 %v3947_v1, %v12285_v53  ;;  %4071 = vmatmul.bf16.gmra.mxu3 %v12319_v9  ;;  %4660 = vmatmul.bf16.gmra.mxu1 %v12897_v62  ;;  %v8248_v53 = vld [vmem:[%s14911_s0 + $0x80] sm:$0xf]  ;;  %v8969_v9 = vld [vmem:[%s14911_s0 + $0x84] sm:$0xf0]  ;;  %v8373_v63 = vor.u32 %v8998_v37, %v8370_v20 }
 0x4f8   :  { %4705 = vmatpush.bf16.msrb.mxu2 %v8309_v4  ;;  %v12933_v32 = vor.u32 %v8969_v9, %v8248_v53  ;;  %15501 = vst [vmem:[#allocation66_spill] sm:$0xff] %v12935_v51  ;;  %v8472_v36 = vld [vmem:[%s14912_s1 + $0x770] sm:$0xf]  ;;  %v9025_v37 = vld [vmem:[%s14912_s1 + $0x774] sm:$0xf0]  ;;  %v4346_v20 = vrot.slane %v12935_v51, 2 }
 0x4f9   :  { %15499 = vst [vmem:[#allocation59_spill] sm:$0xff] %v12905_v50  ;;  %v3407_v48 = vpop.f32.mrf.mxu2  ;;  %4778 = vmatpush.bf16.msrb.mxu3 %v8373_v63  ;;  %v8473_v4 = vor.u32 %v9025_v37, %v8472_v36  ;;  %v8971_v37 = vld [vmem:[%s14911_s0 + $0x94] sm:$0xf0] }
 0x4fa   :  { %v3480_v54 = vpop.f32.mrf.mxu3  ;;  %15500 = vst [vmem:[#allocation28_spill] sm:$0xff] %v12933_v32  ;;  %v4344_v9 = vrot.slane %v12933_v32, 2 }
 0x4fb   :  { %v3481_v0 = vadd.f32 %v3480_v54, %v3407_v48  ;;  %v3875_v23 = vpop.f32.mrf.mxu0  ;;  %5353 = vmatpush.bf16.msrb.mxu0 %v8473_v4  ;;  %v8970_v4 = vld [vmem:[%s14911_s0 + $0x94] sm:$0xf] }
 0x4fc   :  { %v3948_v1 = vpop.f32.mrf.mxu1  ;;  %v12952_v63 = vsel %vm3577_vm3, %v4340_v5, %v4344_v9 }
 0x4fd   :  { %v12938_v55 = vadd.f32 %v3481_v0, %v12302_v45  ;;  %v3949_v50 = vadd.f32 %v3948_v1, %v3875_v23  ;;  %v12955_v0 = vsel %vm3577_vm3, %v4342_v24, %v4346_v20  ;;  %v9041_v23 = vld [vmem:[%s14912_s1 + $0x7f4] sm:$0xf0]  ;;  %v15506_v1 = vld [vmem:[#allocation37_spill] sm:$0xff] }
 0x4ff   :  { %15502 = vst [vmem:[#allocation29_spill] sm:$0xff] %v12938_v55  ;;  %v12947_v53 = vadd.f32 %v3949_v50, %v12311_v21  ;;  %v8536_v50 = vld [vmem:[%s14912_s1 + $0x7f0] sm:$0xf] }
 0x500   :  { %v8537_v5 = vor.u32 %v9041_v23, %v8536_v50  ;;  %v15509_v50 = vld [vmem:[#allocation6_spill] sm:$0xff] }
 0x501   :  { %15503 = vst [vmem:[#allocation60_spill] sm:$0xff] %v12947_v53  ;;  %v3409_v45 = vpop.f32.mrf.mxu2 }
 0x502   :  { %v3482_v48 = vpop.f32.mrf.mxu3  ;;  %5426 = vmatpush.bf16.msrb.mxu1 %v8537_v5 }
 0x503   :  { %v3483_v30 = vadd.f32 %v3482_v48, %v3409_v45  ;;  %v3878_v41 = vpop.f32.mrf.mxu0 }
 0x504   :  { %v3951_v54 = vpop.f32.mrf.mxu1 }
 0x505   :  { %v12958_v36 = vadd.f32 %v3483_v30, %v12322_v22  ;;  %v3952_v21 = vadd.f32 %v3951_v54, %v3878_v41  ;;  %v8256_v22 = vld [vmem:[%s14911_s0 + $0x90] sm:$0xf] }
 0x506   :  { %4003 = vmatmul.bf16.gmra.mxu2 %v12346_v16  ;;  %4592 = vmatmul.bf16.gmra.mxu0 %v12952_v63  ;;  %v12985_v41 = vor.u32 %v8971_v37, %v8256_v22 }
 0x507   :  { %15504 = vst [vmem:[#allocation72_spill] sm:$0xff] %v12958_v36  ;;  %v12969_v24 = vadd.f32 %v3952_v21, %v12333_v56  ;;  %4076 = vmatmul.bf16.gmra.mxu3 %v15506_v1  ;;  %4665 = vmatmul.bf16.gmra.mxu1 %v12955_v0  ;;  %v8258_v56 = vld [vmem:[%s14911_s0 + $0x98] sm:$0xf0] }
 0x508   :  { %15507 = vst [vmem:[#allocation32_spill] sm:$0xff] %v12985_v41  ;;  %v12987_v21 = vor.u32 %v8970_v4, %v8258_v56  ;;  %v15511_v1 = vld [vmem:[#allocation79_spill] sm:$0xff]  ;;  %v4348_v36 = vrot.slane %v12985_v41, 2  ;;  %v15525_v41 = vld [vmem:[#allocation10_spill] sm:$0xff] }
 0x509   :  { %15505 = vst [vmem:[#allocation73_spill] sm:$0xff] %v12969_v24  ;;  %v3412_v16 = vpop.f32.mrf.mxu2 }
 0x50a   :  { %v3485_v45 = vpop.f32.mrf.mxu3  ;;  %15508 = vst [vmem:[#allocation67_spill] sm:$0xff] %v12987_v21  ;;  %v4350_v53 = vrot.slane %v12987_v21, 2  ;;  %v12998_v22 = vsel %vm3577_vm3, %v4344_v9, %v4348_v36 }
 0x50b   :  { %v3486_v48 = vadd.f32 %v3485_v45, %v3412_v16  ;;  %v3880_v30 = vpop.f32.mrf.mxu0  ;;  %v8980_v45 = vld [vmem:[%s14912_s1 + $0x614] sm:$0xf] }
 0x50c   :  { %v3953_v54 = vpop.f32.mrf.mxu1  ;;  %v13001_v4 = vsel %vm3577_vm3, %v4346_v20, %v4350_v53  ;;  %v8362_v20 = vld [vmem:[%s14912_s1 + $0x698] sm:$0xf0] }
 0x50d   :  { %v12990_v23 = vadd.f32 %v3486_v48, %v15509_v50  ;;  %v3954_v5 = vadd.f32 %v3953_v54, %v3880_v30  ;;  %v8298_v48 = vld [vmem:[%s14912_s1 + $0x618] sm:$0xf0]  ;;  %v15514_v30 = vld [vmem:[#allocation20_spill] sm:$0xff]  ;;  %v15516_v50 = vld [vmem:[#allocation14_spill] sm:$0xff] }
 0x50e   :  { %v8301_v9 = vor.u32 %v8980_v45, %v8298_v48  ;;  %v8266_v45 = vld [vmem:[%s14911_s0 + $0xa8] sm:$0xf0] }
 0x50f   :  { %15510 = vst [vmem:[#allocation61_spill] sm:$0xff] %v12990_v23  ;;  %v12993_v24 = vadd.f32 %v3954_v5, %v15511_v1  ;;  %v8264_v1 = vld [vmem:[%s14911_s0 + $0xa0] sm:$0xf]  ;;  %v9023_v23 = vld [vmem:[%s14912_s1 + $0x764] sm:$0xf0] }
 0x510   :  { %4706 = vmatpush.bf16.msrb.mxu2 %v8301_v9 }
 0x511   :  { %15512 = vst [vmem:[#allocation31_spill] sm:$0xff] %v12993_v24  ;;  %v3414_v55 = vpop.f32.mrf.mxu2  ;;  %v8464_v24 = vld [vmem:[%s14912_s1 + $0x760] sm:$0xf] }
 0x512   :  { %v3487_v51 = vpop.f32.mrf.mxu3  ;;  %v15513_v55 = vld [vmem:[#allocation21_spill] sm:$0xff] }
 0x513   :  { %v3883_v16 = vpop.f32.mrf.mxu0  ;;  %v8996_v51 = vld [vmem:[%s14912_s1 + $0x694] sm:$0xf] }
 0x514   :  { %v3956_v37 = vpop.f32.mrf.mxu1  ;;  %v8365_v5 = vor.u32 %v8996_v51, %v8362_v20 }
 0x515   :  { %v3957_v56 = vadd.f32 %v3956_v37, %v3883_v16  ;;  %v8973_v16 = vld [vmem:[%s14911_s0 + $0xa4] sm:$0xf0] }
 0x516   :  { %4008 = vmatmul.bf16.gmra.mxu2 %v15513_v55  ;;  %4597 = vmatmul.bf16.gmra.mxu0 %v12998_v22  ;;  %v13034_v20 = vor.u32 %v8973_v16, %v8264_v1  ;;  %v8528_v1 = vld [vmem:[%s14912_s1 + $0x7e0] sm:$0xf] }
 0x517   :  { %v13018_v54 = vadd.f32 %v3957_v56, %v15514_v30  ;;  %4081 = vmatmul.bf16.gmra.mxu3 %v15516_v50  ;;  %4670 = vmatmul.bf16.gmra.mxu1 %v13001_v4  ;;  %v8972_v56 = vld [vmem:[%s14911_s0 + $0xa4] sm:$0xf] }
 0x518   :  { %4779 = vmatpush.bf16.msrb.mxu3 %v8365_v5  ;;  %15517 = vst [vmem:[#allocation68_spill] sm:$0xff] %v13034_v20  ;;  %v13036_v50 = vor.u32 %v8972_v56, %v8266_v45  ;;  %v8465_v5 = vor.u32 %v9023_v23, %v8464_v24 }
 0x519   :  { %15515 = vst [vmem:[#allocation70_spill] sm:$0xff] %v13018_v54  ;;  %v3969_v37 = vpop.f32.mrf.mxu2  ;;  %v15519_v54 = vld [vmem:[#allocation36_spill] sm:$0xff] }
 0x51a   :  { %v4042_v48 = vpop.f32.mrf.mxu3  ;;  %15518 = vst [vmem:[#allocation71_spill] sm:$0xff] %v13036_v50  ;;  %v4354_v16 = vrot.slane %v13036_v50, 2  ;;  %5354 = vmatpush.bf16.msrb.mxu0 %v8465_v5  ;;  %v15526_v5 = vld [vmem:[#allocation8_spill] sm:$0xff] }
 0x51b   :  { %v4043_v51 = vadd.f32 %v4042_v48, %v3969_v37  ;;  %v3885_v55 = vpop.f32.mrf.mxu0  ;;  %v4352_v37 = vrot.slane %v13034_v20, 2  ;;  %v15533_v50 = vld [vmem:[#allocation16_spill] sm:$0xff] }
 0x51c   :  { %v3958_v30 = vpop.f32.mrf.mxu1 }
 0x51d   :  { %v13039_v9 = vadd.f32 %v4043_v51, %v15519_v54  ;;  %v9039_v54 = vld [vmem:[%s14912_s1 + $0x7e4] sm:$0xf0]  ;;  %v13056_v24 = vsel %vm3577_vm3, %v4348_v36, %v4352_v37  ;;  %v13059_v30 = vsel %vm3577_vm3, %v4350_v53, %v4354_v16  ;;  %v8272_v53 = vld [vmem:[%s14911_s0 + $0xb0] sm:$0xf]  ;;  %v8975_v36 = vld [vmem:[%s14911_s0 + $0xb4] sm:$0xf0] }
 0x51e   :  { %v8529_v56 = vor.u32 %v9039_v54, %v8528_v1  ;;  %15521 = vst [vmem:[#allocation34_spill] sm:$0xff] %v13056_v24  ;;  %v15528_v54 = vld [vmem:[#allocation17_spill] sm:$0xff] }
 0x51f   :  { %15520 = vst [vmem:[#allocation33_spill] sm:$0xff] %v13039_v9  ;;  %v15523_v9 = vld [vmem:[#allocation77_spill] sm:$0xff] }
 0x520   :  { %5427 = vmatpush.bf16.msrb.mxu1 %v8529_v56  ;;  %15522 = vst [vmem:[#allocation18_spill] sm:$0xff] %v13059_v30 }
 0x521   :  { %v3971_v45 = vpop.f32.mrf.mxu2 }
 0x522   :  { %v4044_v48 = vpop.f32.mrf.mxu3 }
 0x523   :  { %v4045_v51 = vadd.f32 %v4044_v48, %v3971_v45  ;;  %v4563_v55 = vpop.f32.mrf.mxu0  ;;  %v13083_v45 = vor.u32 %v8975_v36, %v8272_v53  ;;  %v8290_v53 = vld [vmem:[%s14912_s1 + $0x608] sm:$0xf0]  ;;  %v8994_v36 = vld [vmem:[%s14912_s1 + $0x684] sm:$0xf] }
 0x524   :  { %v4636_v23 = vpop.f32.mrf.mxu1 }
 0x525   :  { %v13062_v20 = vadd.f32 %v4045_v51, %v15523_v9  ;;  %v4637_v21 = vadd.f32 %v4636_v23, %v4563_v55  ;;  %15529 = vst [vmem:[#allocation74_spill] sm:$0xff] %v13083_v45 }
 0x526   :  { %4013 = vmatmul.bf16.gmra.mxu2 %v15525_v41  ;;  %4602 = vmatmul.bf16.gmra.mxu0 %v13056_v24  ;;  %v8974_v41 = vld [vmem:[%s14911_s0 + $0xb4] sm:$0xf]  ;;  %v8978_v24 = vld [vmem:[%s14912_s1 + $0x604] sm:$0xf] }
 0x527   :  { %15524 = vst [vmem:[#allocation19_spill] sm:$0xff] %v13062_v20  ;;  %v13067_v1 = vadd.f32 %v4637_v21, %v15526_v5  ;;  %4086 = vmatmul.bf16.gmra.mxu3 %v15528_v54  ;;  %4675 = vmatmul.bf16.gmra.mxu1 %v13059_v30  ;;  %v8274_v21 = vld [vmem:[%s14911_s0 + $0xb8] sm:$0xf0]  ;;  %v4356_v20 = vrot.slane %v13083_v45, 2 }
 0x528   :  { %v13085_v23 = vor.u32 %v8974_v41, %v8274_v21  ;;  %v15531_v5 = vld [vmem:[#allocation15_spill] sm:$0xff]  ;;  %v8293_v41 = vor.u32 %v8978_v24, %v8290_v53 }
 0x529   :  { %15527 = vst [vmem:[#allocation75_spill] sm:$0xff] %v13067_v1  ;;  %v3974_v9 = vpop.f32.mrf.mxu2  ;;  %v15543_v45 = vld [vmem:[#allocation7_spill] sm:$0xff] }
 0x52a   :  { %v4047_v56 = vpop.f32.mrf.mxu3  ;;  %15530 = vst [vmem:[#allocation12_spill] sm:$0xff] %v13085_v23  ;;  %4707 = vmatpush.bf16.msrb.mxu2 %v8293_v41 }
 0x52b   :  { %v4048_v48 = vadd.f32 %v4047_v56, %v3974_v9  ;;  %v4565_v51 = vpop.f32.mrf.mxu0  ;;  %v4358_v9 = vrot.slane %v13085_v23, 2 }
 0x52c   :  { %v4638_v55 = vpop.f32.mrf.mxu1 }
 0x52d   :  { %v13088_v54 = vadd.f32 %v4048_v48, %v15531_v5  ;;  %v4639_v1 = vadd.f32 %v4638_v55, %v4565_v51  ;;  %v13108_v55 = vsel %vm3577_vm3, %v4352_v37, %v4356_v20  ;;  %v8280_v37 = vld [vmem:[%s14911_s0 + $0xc0] sm:$0xf] }
 0x52e   :  { %15535 = vst [vmem:[#allocation37_spill] sm:$0xff] %v13108_v55 }
 0x52f   :  { %15532 = vst [vmem:[#allocation76_spill] sm:$0xff] %v13088_v54  ;;  %v13092_v30 = vadd.f32 %v4639_v1, %v15533_v50  ;;  %v8354_v50 = vld [vmem:[%s14912_s1 + $0x688] sm:$0xf0]  ;;  %v15537_v54 = vld [vmem:[#allocation11_spill] sm:$0xff] }
 0x530   :  { %v8357_v21 = vor.u32 %v8994_v36, %v8354_v50  ;;  %v15539_v36 = vld [vmem:[#allocation13_spill] sm:$0xff] }
 0x531   :  { %15534 = vst [vmem:[#allocation78_spill] sm:$0xff] %v13092_v30  ;;  %v3976_v1 = vpop.f32.mrf.mxu2  ;;  %v13111_v30 = vsel %vm3577_vm3, %v4354_v16, %v4358_v9  ;;  %v8456_v16 = vld [vmem:[%s14912_s1 + $0x750] sm:$0xf] }
 0x532   :  { %v4049_v56 = vpop.f32.mrf.mxu3  ;;  %4780 = vmatpush.bf16.msrb.mxu3 %v8357_v21  ;;  %15536 = vst [vmem:[#allocation6_spill] sm:$0xff] %v13111_v30 }
 0x533   :  { %v4050_v48 = vadd.f32 %v4049_v56, %v3976_v1  ;;  %v4568_v51 = vpop.f32.mrf.mxu0  ;;  %v9037_v1 = vld [vmem:[%s14912_s1 + $0x7d4] sm:$0xf0]  ;;  %v8976_v56 = vld [vmem:[%s14911_s0 + $0xc4] sm:$0xf] }
 0x534   :  { %v4641_v5 = vpop.f32.mrf.mxu1 }
 0x535   :  { %v13114_v24 = vadd.f32 %v4050_v48, %v15537_v54  ;;  %v4642_v53 = vadd.f32 %v4641_v5, %v4568_v51  ;;  %v8977_v54 = vld [vmem:[%s14911_s0 + $0xc4] sm:$0xf0]  ;;  %v8282_v48 = vld [vmem:[%s14911_s0 + $0xc8] sm:$0xf0] }
 0x536   :  { %4018 = vmatmul.bf16.gmra.mxu2 %v12474_v57  ;;  %4607 = vmatmul.bf16.gmra.mxu0 %v13108_v55  ;;  %v9021_v57 = vld [vmem:[%s14912_s1 + $0x754] sm:$0xf0] }
 0x537   :  { %15538 = vst [vmem:[#allocation79_spill] sm:$0xff] %v13114_v24  ;;  %v13119_v41 = vadd.f32 %v4642_v53, %v15539_v36  ;;  %4091 = vmatmul.bf16.gmra.mxu3 %v12479_v3  ;;  %4680 = vmatmul.bf16.gmra.mxu1 %v13111_v30  ;;  %v8457_v50 = vor.u32 %v9021_v57, %v8456_v16  ;;  %v8520_v3 = vld [vmem:[%s14912_s1 + $0x7d0] sm:$0xf] }
 0x538   :  { %v8521_v51 = vor.u32 %v9037_v1, %v8520_v3  ;;  %v13147_v16 = vor.u32 %v8977_v54, %v8280_v37  ;;  %v8448_v37 = vld [vmem:[%s14912_s1 + $0x740] sm:$0xf]  ;;  %v9019_v54 = vld [vmem:[%s14912_s1 + $0x744] sm:$0xf0] }
 0x539   :  { %15540 = vst [vmem:[#allocation21_spill] sm:$0xff] %v13119_v41  ;;  %v3979_v21 = vpop.f32.mrf.mxu2  ;;  %5355 = vmatpush.bf16.msrb.mxu0 %v8457_v50  ;;  %v13149_v41 = vor.u32 %v8976_v56, %v8282_v48 }
 0x53a   :  { %v4052_v5 = vpop.f32.mrf.mxu3  ;;  %15541 = vst [vmem:[#allocation20_spill] sm:$0xff] %v13147_v16  ;;  %5428 = vmatpush.bf16.msrb.mxu1 %v8521_v51  ;;  %v15042_v55 = vrot.slane %v13147_v16, 2 }
 0x53b   :  { %v4053_v53 = vadd.f32 %v4052_v5, %v3979_v21  ;;  %v4570_v36 = vpop.f32.mrf.mxu0  ;;  %15542 = vst [vmem:[#allocation14_spill] sm:$0xff] %v13149_v41  ;;  %v15041_v3 = vrot.slane %v13149_v41, 2 }
 0x53c   :  { %v4643_v57 = vpop.f32.mrf.mxu1  ;;  %v13174_v48 = vsel %vm3577_vm3, %v4356_v20, %v15042_v55 }
 0x53d   :  { %v13152_v24 = vadd.f32 %v4053_v53, %v12452_v12  ;;  %v4644_v23 = vadd.f32 %v4643_v57, %v4570_v36  ;;  %v8512_v12 = vld [vmem:[%s14912_s1 + $0x7c0] sm:$0xf]  ;;  %v13179_v53 = vsel %vm3577_vm3, %v4358_v9, %v15041_v3  ;;  %v13184_v36 = vld [vmem:[%s14911_s0 + $0xd0] sm:$0xff]  ;;  %v4181_v57 = vld [vmem:[%s14911_s0 + $0xd8] sm:$0x33] }
 0x53e   :  { %v8440_v9 = vld [vmem:[%s14912_s1 + $0x730] sm:$0xf]  ;;  %v8432_v3 = vld [vmem:[%s14912_s1 + $0x720] sm:$0xf] }
 0x53f   :  { %v13155_v30 = vadd.f32 %v4644_v23, %v15543_v45  ;;  %v8449_v45 = vor.u32 %v9019_v54, %v8448_v37  ;;  %v9035_v23 = vld [vmem:[%s14912_s1 + $0x7c4] sm:$0xf0]  ;;  %v9017_v37 = vld [vmem:[%s14912_s1 + $0x734] sm:$0xf0]  ;;  %v8504_v54 = vld [vmem:[%s14912_s1 + $0x7b0] sm:$0xf] }
 0x540   :  { %v8513_v51 = vor.u32 %v9035_v23, %v8512_v12  ;;  %v9033_v12 = vld [vmem:[%s14912_s1 + $0x7b4] sm:$0xf0]  ;;  %v4290_v23 = vunpack.c.l.b16 %v4181_v57 }
 0x541   :  { %v3981_v50 = vpop.f32.mrf.mxu2  ;;  %5356 = vmatpush.bf16.msrb.mxu0 %v8449_v45  ;;  %v15044_v45 = vunpack.c.l.b16 %v13184_v36 }
 0x542   :  { %v4054_v1 = vpop.f32.mrf.mxu3  ;;  %5429 = vmatpush.bf16.msrb.mxu1 %v8513_v51  ;;  %v4291_v51 = vunpack.c.h.b16 %v4181_v57  ;;  %v8496_v57 = vld [vmem:[%s14912_s1 + $0x7a0] sm:$0xf] }
 0x543   :  { %v4055_v21 = vadd.f32 %v4054_v1, %v3981_v50  ;;  %v4573_v56 = vpop.f32.mrf.mxu0 }
 0x544   :  { %v4646_v5 = vpop.f32.mrf.mxu1 }
 0x545   :  { %v13190_v20 = vadd.f32 %v4055_v21, %v12482_v13  ;;  %v4647_v50 = vadd.f32 %v4646_v5, %v4573_v56  ;;  %v8441_v13 = vor.u32 %v9017_v37, %v8440_v9  ;;  %v8474_v21 = vld [vmem:[%s14912_s1 + $0x778] sm:$0xf0]  ;;  %v8505_v56 = vor.u32 %v9033_v12, %v8504_v54  ;;  %v9015_v54 = vld [vmem:[%s14912_s1 + $0x724] sm:$0xf0] }
 0x546   :  { %4023 = vmatmul.bf16.gmra.mxu2 %v12567_v42  ;;  %4612 = vmatmul.bf16.gmra.mxu0 %v13174_v48  ;;  %v9024_v42 = vld [vmem:[%s14912_s1 + $0x774] sm:$0xf] }
 0x547   :  { %15544 = vst [vmem:[#allocation36_spill] sm:$0xff] %v13190_v20  ;;  %v13207_v1 = vadd.f32 %v4647_v50, %v12499_v43  ;;  %4096 = vmatmul.bf16.gmra.mxu3 %v12573_v39  ;;  %4685 = vmatmul.bf16.gmra.mxu1 %v13179_v53  ;;  %v9040_v43 = vld [vmem:[%s14912_s1 + $0x7f4] sm:$0xf]  ;;  %v15043_v39 = vunpack.c.h.b16 %v13184_v36  ;;  %v8477_v5 = vor.u32 %v9024_v42, %v8474_v21  ;;  %v8538_v50 = vld [vmem:[%s14912_s1 + $0x7f8] sm:$0xf0] }
 0x548   :  { %5357 = vmatpush.bf16.msrb.mxu0 %v8441_v13  ;;  %v8541_v37 = vor.u32 %v9040_v43, %v8538_v50  ;;  %5430 = vmatpush.bf16.msrb.mxu1 %v8505_v56  ;;  %v8433_v42 = vor.u32 %v9015_v54, %v8432_v3  ;;  %v9031_v13 = vld [vmem:[%s14912_s1 + $0x7a4] sm:$0xf0]  ;;  %v4316_v56 = vpack.c.b16 %v4290_v23, %v15044_v45  ;;  %v9013_v23 = vld [vmem:[%s14912_s1 + $0x714] sm:$0xf0] }
 0x549   :  { %15545 = vst [vmem:[#allocation77_spill] sm:$0xff] %v13207_v1  ;;  %v3984_v9 = vpop.f32.mrf.mxu2  ;;  %5499 = vmatpush.bf16.msra.mxu2 %v8477_v5  ;;  %v8497_v50 = vor.u32 %v9031_v13, %v8496_v57  ;;  %v4317_v1 = vpack.c.b16 %v4291_v51, %v15043_v39  ;;  %v8424_v5 = vld [vmem:[%s14912_s1 + $0x710] sm:$0xf]  ;;  %v15547_v51 = vld [vmem:[#allocation9_spill] sm:$0xff]  ;;  %v8416_v13 = vld [vmem:[%s14912_s1 + $0x700] sm:$0xf] }
 0x54a   :  { %v4057_v12 = vpop.f32.mrf.mxu3  ;;  %5572 = vmatpush.bf16.msra.mxu3 %v8541_v37  ;;  %v8425_v37 = vor.u32 %v9013_v23, %v8424_v5  ;;  %v13259_v54 = vrot.slane %v4316_v56, 2  ;;  %v15551_v23 = vrot.slane %v13147_v16, 2 }
 0x54b   :  { %v4058_v21 = vadd.f32 %v4057_v12, %v3984_v9  ;;  %v4575_v43 = vpop.f32.mrf.mxu0  ;;  %v8488_v9 = vld [vmem:[%s14912_s1 + $0x790] sm:$0xf]  ;;  %v13261_v12 = vrot.slane %v4317_v1, 2  ;;  %v9027_v1 = vld [vmem:[%s14912_s1 + $0x784] sm:$0xf0] }
 0x54c   :  { %v4648_v55 = vpop.f32.mrf.mxu1  ;;  %5358 = vmatpush.bf16.msrb.mxu0 %v8433_v42  ;;  %5431 = vmatpush.bf16.msrb.mxu1 %v8497_v50  ;;  %15549 = vst [vmem:[#allocation17_spill] sm:$0xff] %v13259_v54 }
 0x54d   :  { %v13242_v20 = vadd.f32 %v4058_v21, %v12528_v49  ;;  %v4649_v3 = vadd.f32 %v4648_v55, %v4575_v43  ;;  %v9029_v49 = vld [vmem:[%s14912_s1 + $0x794] sm:$0xf0]  ;;  %15550 = vst [vmem:[#allocation15_spill] sm:$0xff] %v13261_v12  ;;  %v9011_v21 = vld [vmem:[%s14912_s1 + $0x704] sm:$0xf0] }
 0x54e   :  { %v8489_v57 = vor.u32 %v9029_v49, %v8488_v9  ;;  %v8480_v43 = vld [vmem:[%s14912_s1 + $0x780] sm:$0xf]  ;;  %v8417_v50 = vor.u32 %v9011_v21, %v8416_v13  ;;  %v13279_v9 = vsel %vm3577_vm3, %v15551_v23, %v13259_v54  ;;  %v15554_v21 = vld [vmem:[#allocation5_spill] sm:$0xff] }
 0x54f   :  { %15546 = vst [vmem:[#allocation10_spill] sm:$0xff] %v13242_v20  ;;  %v13257_v55 = vadd.f32 %v4649_v3, %v15547_v51  ;;  %v15552_v51 = vrot.slane %v13149_v41, 2 }
 0x550   :  { %5359 = vmatpush.bf16.msrb.mxu0 %v8425_v37  ;;  %5432 = vmatpush.bf16.msrb.mxu1 %v8489_v57  ;;  %v8481_v37 = vor.u32 %v9027_v1, %v8480_v43  ;;  %v15556_v43 = vld [vmem:[#allocation38_spill] sm:$0xff] }
 0x551   :  { %15548 = vst [vmem:[#allocation8_spill] sm:$0xff] %v13257_v55  ;;  %v3986_v42 = vpop.f32.mrf.mxu2  ;;  %v13285_v57 = vsel %vm3577_vm3, %v15552_v51, %v13261_v12 }
 0x552   :  { %v4059_v56 = vpop.f32.mrf.mxu3 }
 0x553   :  { %v4060_v3 = vadd.f32 %v4059_v56, %v3986_v42  ;;  %v4578_v5 = vpop.f32.mrf.mxu0 }
 0x554   :  { %v4651_v49 = vpop.f32.mrf.mxu1  ;;  %5360 = vmatpush.bf16.msrb.mxu0 %v8417_v50  ;;  %5433 = vmatpush.bf16.msrb.mxu1 %v8481_v37  ;;  %v15559_v37 = vld [vmem:[#allocation39_spill] sm:$0xff] }
 0x555   :  { %v13288_v13 = vadd.f32 %v4060_v3, %v12576_v59  ;;  %v4652_v42 = vadd.f32 %v4651_v49, %v4578_v5  ;;  %v15557_v59 = vld [vmem:[#allocation42_spill] sm:$0xff]  ;;  %v9022_v49 = vld [vmem:[%s14912_s1 + $0x764] sm:$0xf] }
 0x556   :  { %4028 = vmatmul.bf16.gmra.mxu2 %v12546_v46  ;;  %4617 = vmatmul.bf16.gmra.mxu0 %v13279_v9 }
 0x557   :  { %15553 = vst [vmem:[#allocation16_spill] sm:$0xff] %v13288_v13  ;;  %v13293_v56 = vadd.f32 %v4652_v42, %v15554_v21  ;;  %4101 = vmatmul.bf16.gmra.mxu3 %v15556_v43  ;;  %4690 = vmatmul.bf16.gmra.mxu1 %v13285_v57  ;;  %v8466_v42 = vld [vmem:[%s14912_s1 + $0x768] sm:$0xf0]  ;;  %v9038_v21 = vld [vmem:[%s14912_s1 + $0x7e4] sm:$0xf] }
 0x558   :  { %v8469_v43 = vor.u32 %v9022_v49, %v8466_v42  ;;  %v4936_v49 = vshrl.u32 %v12637_v33, 16  ;;  %v15563_v42 = vld [vmem:[#allocation48_spill] sm:$0xff]  ;;  %v15565_v13 = vld [vmem:[#allocation45_spill] sm:$0xff] }
 0x559   :  { %15555 = vst [vmem:[#allocation11_spill] sm:$0xff] %v13293_v56  ;;  %v3989_v1 = vpop.f32.mrf.mxu2 }
 0x55a   :  { %v4062_v23 = vpop.f32.mrf.mxu3  ;;  %5500 = vmatpush.bf16.msra.mxu2 %v8469_v43  ;;  %v4944_v43 = vshrl.u32 %v12639_v29, 16 }
 0x55b   :  { %v4063_v51 = vadd.f32 %v4062_v23, %v3989_v1  ;;  %v4580_v50 = vpop.f32.mrf.mxu0 }
 0x55c   :  { %v4653_v39 = vpop.f32.mrf.mxu1 }
 0x55d   :  { %v13298_v3 = vadd.f32 %v4063_v51, %v15557_v59  ;;  %v4654_v5 = vadd.f32 %v4653_v39, %v4580_v50  ;;  %v8530_v39 = vld [vmem:[%s14912_s1 + $0x7e8] sm:$0xf0] }
 0x55e   :  { %v8533_v23 = vor.u32 %v9038_v21, %v8530_v39  ;;  %v4939_v21 = vshll.u32 %v12637_v33, 16  ;;  %v4947_v39 = vshll.u32 %v12639_v29, 16 }
 0x55f   :  { %15558 = vst [vmem:[#allocation13_spill] sm:$0xff] %v13298_v3  ;;  %v13301_v46 = vadd.f32 %v4654_v5, %v15559_v37  ;;  %v15561_v37 = vld [vmem:[#allocation22_spill] sm:$0xff] }
 0x560   :  { %5573 = vmatpush.bf16.msra.mxu3 %v8533_v23  ;;  %v4956_v23 = vshll.u32 %v12643_v10, 16  ;;  %v4949_v33 = vrot.slane %v4947_v39, 3 }
 0x561   :  { %15560 = vst [vmem:[#allocation7_spill] sm:$0xff] %v13301_v46  ;;  %v3991_v1 = vpop.f32.mrf.mxu2 }
 0x562   :  { %v4064_v51 = vpop.f32.mrf.mxu3 }
 0x563   :  { %v4065_v50 = vadd.f32 %v4064_v51, %v3991_v1  ;;  %v4583_v59 = vpop.f32.mrf.mxu0  ;;  %v4953_v1 = vshrl.u32 %v12643_v10, 16  ;;  %v4964_v51 = vshll.u32 %v12645_v7, 16 }
 0x564   :  { %v4656_v5 = vpop.f32.mrf.mxu1 }
 0x565   :  { %v13316_v45 = vadd.f32 %v4065_v50, %v15561_v37  ;;  %v4657_v46 = vadd.f32 %v4656_v5, %v4583_v59  ;;  %v4938_v59 = vrot.slane %v4936_v49, 2  ;;  %v4966_v56 = vrot.slane %v4964_v51, 3  ;;  %v15569_v51 = vld [vmem:[#allocation43_spill] sm:$0xff] }
 0x566   :  { %4622 = vmatmul.bf16.gmra.mxu0 %v13259_v54  ;;  %4708 = vmatmul.bf16.vlgmr.msrb.gmra.mxu2 %v12658_v52  ;;  %v4961_v52 = vshrl.u32 %v12645_v7, 16 }
 0x567   :  { %15562 = vst [vmem:[#allocation9_spill] sm:$0xff] %v13316_v45  ;;  %v13322_v3 = vadd.f32 %v4657_v46, %v15563_v42  ;;  %4695 = vmatmul.bf16.gmra.mxu1 %v13261_v12  ;;  %4781 = vmatmul.bf16.vlgmr.msrb.gmra.mxu3 %v12661_v8  ;;  %v4941_v8 = vrot.slane %v4939_v21, 3  ;;  %v4946_v42 = vrot.slane %v4944_v43, 2  ;;  %v4955_v45 = vrot.slane %v4953_v1, 2 }
 0x568   :  { %v4958_v12 = vrot.slane %v4956_v23, 3  ;;  %v4963_v29 = vrot.slane %v4961_v52, 2 }
 0x569   :  { %15564 = vst [vmem:[#allocation5_spill] sm:$0xff] %v13322_v3  ;;  %v3994_v46 = vpop.f32.mrf.mxu2  ;;  %v4942_v7 = vor.u32 %v4941_v8, %v4938_v59  ;;  %v4950_v20 = vor.u32 %v4949_v33, %v4946_v42  ;;  %v4979_v59 = vshrl.u32 %v15569_v51, 16 }
 0x56a   :  { %v4067_v50 = vpop.f32.mrf.mxu3  ;;  %v4959_v49 = vor.u32 %v4958_v12, %v4955_v45 }
 0x56b   :  { %v4068_v5 = vadd.f32 %v4067_v50, %v3994_v46  ;;  %v4585_v37 = vpop.f32.mrf.mxu0  ;;  %v4967_v46 = vor.u32 %v4966_v56, %v4963_v29  ;;  %v13340_v1 = vsel %vm4934_vm4, %v4942_v7, %v4950_v20  ;;  %v15567_v29 = vld [vmem:[#allocation41_spill] sm:$0xff] }
 0x56c   :  { %v4658_v3 = vpop.f32.mrf.mxu1  ;;  %v15568_v7 = vld [vmem:[#allocation53_spill] sm:$0xff] }
 0x56d   :  { %v13334_v54 = vadd.f32 %v4068_v5, %v12648_v31  ;;  %v4659_v10 = vadd.f32 %v4658_v3, %v4585_v37  ;;  %v13343_v31 = vsel %vm4934_vm4, %v4959_v49, %v4967_v46  ;;  %v15566_v3 = vld [vmem:[#allocation26_spill] sm:$0xff]  ;;  %v4970_v12 = vshrl.u32 %v15568_v7, 16 }
 0x56e   :  { %v4973_v56 = vshll.u32 %v15568_v7, 16  ;;  %v4982_v5 = vshll.u32 %v15569_v51, 16  ;;  %v15574_v7 = vld [vmem:[#allocation58_spill] sm:$0xff] }
 0x56f   :  { %v13337_v55 = vadd.f32 %v4659_v10, %v15565_v13  ;;  %v4972_v33 = vrot.slane %v4970_v12, 2  ;;  %v8522_v12 = vld [vmem:[%s14912_s1 + $0x7d8] sm:$0xf0] }
 0x570   :  { %v4975_v10 = vrot.slane %v4973_v56, 3  ;;  %v15572_v56 = vld [vmem:[#allocation56_spill] sm:$0xff] }
 0x571   :  { %v3996_v21 = vpop.f32.mrf.mxu2 }
 0x572   :  { %v4069_v43 = vpop.f32.mrf.mxu3 }
 0x573   :  { %v4070_v39 = vadd.f32 %v4069_v43, %v3996_v21  ;;  %v4588_v50 = vpop.f32.mrf.mxu0  ;;  %v4981_v21 = vrot.slane %v4979_v59, 2  ;;  %v4984_v43 = vrot.slane %v4982_v5, 3  ;;  %v4976_v5 = vor.u32 %v4975_v10, %v4972_v33  ;;  %v15576_v33 = vld [vmem:[#allocation30_spill] sm:$0xff] }
 0x574   :  { %v4661_v23 = vpop.f32.mrf.mxu1 }
 0x575   :  { %v13346_v52 = vadd.f32 %v4070_v39, %v15566_v3  ;;  %v4662_v13 = vadd.f32 %v4661_v23, %v4588_v50  ;;  %v9020_v23 = vld [vmem:[%s14912_s1 + $0x754] sm:$0xf]  ;;  %v8458_v3 = vld [vmem:[%s14912_s1 + $0x758] sm:$0xf0]  ;;  %v13378_v51 = vsel %vm4934_vm4, %v4950_v20, %v4976_v5  ;;  %v4988_v20 = vshrl.u32 %v12737_v35, 16 }
 0x576   :  { %4713 = vmatmul.bf16.gmra.mxu2 %v12710_v40  ;;  %5361 = vmatmul.bf16.vlgmr.msrb.gmra.mxu0 %v13340_v1 }
 0x577   :  { %v13351_v45 = vadd.f32 %v4662_v13, %v15567_v29  ;;  %4786 = vmatmul.bf16.gmra.mxu3 %v12713_v61  ;;  %5434 = vmatmul.bf16.vlgmr.msrb.gmra.mxu1 %v13343_v31  ;;  %v15570_v61 = vld [vmem:[#allocation44_spill] sm:$0xff]  ;;  %v9036_v13 = vld [vmem:[%s14912_s1 + $0x7d4] sm:$0xf]  ;;  %v8461_v29 = vor.u32 %v9020_v23, %v8458_v3 }
 0x579   :  { %v3999_v37 = vpop.f32.mrf.mxu2  ;;  %5501 = vmatpush.bf16.msra.mxu2 %v8461_v29 }
 0x57a   :  { %v4072_v8 = vpop.f32.mrf.mxu3 }
 0x57b   :  { %v4073_v40 = vadd.f32 %v4072_v8, %v3999_v37  ;;  %v4590_v42 = vpop.f32.mrf.mxu0  ;;  %v8525_v37 = vor.u32 %v9036_v13, %v8522_v12  ;;  %v4985_v8 = vor.u32 %v4984_v43, %v4981_v21  ;;  %v4997_v21 = vshrl.u32 %v12739_v38, 16 }
 0x57c   :  { %v4663_v49 = vpop.f32.mrf.mxu1  ;;  %v4990_v12 = vrot.slane %v4988_v20, 2 }
 0x57d   :  { %v13360_v39 = vadd.f32 %v4073_v40, %v15570_v61  ;;  %v4664_v50 = vadd.f32 %v4663_v49, %v4590_v42  ;;  %5574 = vmatpush.bf16.msra.mxu3 %v8525_v37  ;;  %v13381_v3 = vsel %vm4934_vm4, %v4967_v46, %v4985_v8  ;;  %v4991_v46 = vshll.u32 %v12737_v35, 16 }
 0x57f   :  { %15571 = vst [vmem:[#allocation38_spill] sm:$0xff] %v13360_v39  ;;  %v13375_v59 = vadd.f32 %v4664_v50, %v15572_v56  ;;  %v4993_v56 = vrot.slane %v4991_v46, 3 }
 0x581   :  { %15573 = vst [vmem:[#allocation42_spill] sm:$0xff] %v13375_v59  ;;  %v4001_v40 = vpop.f32.mrf.mxu2 }
 0x582   :  { %v4074_v42 = vpop.f32.mrf.mxu3 }
 0x583   :  { %v4075_v49 = vadd.f32 %v4074_v42, %v4001_v40  ;;  %v4593_v61 = vpop.f32.mrf.mxu0  ;;  %v4999_v40 = vrot.slane %v4997_v21, 2  ;;  %v15580_v21 = vld [vmem:[#allocation47_spill] sm:$0xff] }
 0x584   :  { %v4666_v23 = vpop.f32.mrf.mxu1 }
 0x585   :  { %v13384_v39 = vadd.f32 %v4075_v49, %v15574_v7  ;;  %v4667_v50 = vadd.f32 %v4666_v23, %v4593_v61  ;;  %v5000_v7 = vshll.u32 %v12739_v38, 16  ;;  %v15579_v23 = vld [vmem:[#allocation24_spill] sm:$0xff] }
 0x586   :  { %4718 = vmatmul.bf16.gmra.mxu2 %v12750_v2  ;;  %5366 = vmatmul.bf16.gmra.mxu0 %v13378_v51 }
 0x587   :  { %15575 = vst [vmem:[#allocation39_spill] sm:$0xff] %v13384_v39  ;;  %v13389_v10 = vadd.f32 %v4667_v50, %v15576_v33  ;;  %4791 = vmatmul.bf16.gmra.mxu3 %v12753_v15  ;;  %5439 = vmatmul.bf16.gmra.mxu1 %v13381_v3  ;;  %v5002_v42 = vrot.slane %v5000_v7, 3  ;;  %v15578_v15 = vld [vmem:[#allocation63_spill] sm:$0xff]  ;;  %v4994_v33 = vor.u32 %v4993_v56, %v4990_v12 }
 0x589   :  { %15577 = vst [vmem:[#allocation22_spill] sm:$0xff] %v13389_v10  ;;  %v4004_v43 = vpop.f32.mrf.mxu2  ;;  %v5003_v35 = vor.u32 %v5002_v42, %v4999_v40 }
 0x58a   :  { %v4077_v13 = vpop.f32.mrf.mxu3 }
 0x58b   :  { %v4078_v2 = vadd.f32 %v4077_v13, %v4004_v43  ;;  %v4595_v29 = vpop.f32.mrf.mxu0  ;;  %v13404_v43 = vsel %vm4934_vm4, %v4976_v5, %v4994_v33  ;;  %v13407_v46 = vsel %vm4934_vm4, %v4985_v8, %v5003_v35  ;;  %v5015_v5 = vshrl.u32 %v12791_v58, 16 }
 0x58c   :  { %v4668_v37 = vpop.f32.mrf.mxu1  ;;  %v5018_v8 = vshll.u32 %v12791_v58, 16 }
 0x58d   :  { %v13398_v49 = vadd.f32 %v4078_v2, %v15578_v15  ;;  %v4669_v61 = vadd.f32 %v4668_v37, %v4595_v29  ;;  %v5006_v2 = vshrl.u32 %v12789_v26, 16 }
 0x58f   :  { %v13401_v50 = vadd.f32 %v4669_v61, %v15579_v23  ;;  %v5008_v61 = vrot.slane %v5006_v2, 2 }
 0x591   :  { %v4006_v10 = vpop.f32.mrf.mxu2 }
 0x592   :  { %v4079_v38 = vpop.f32.mrf.mxu3 }
 0x593   :  { %v4080_v39 = vadd.f32 %v4079_v38, %v4006_v10  ;;  %v4598_v59 = vpop.f32.mrf.mxu0  ;;  %v5009_v38 = vshll.u32 %v12789_v26, 16  ;;  %v15581_v10 = vld [vmem:[#allocation25_spill] sm:$0xff] }
 0x594   :  { %v4671_v20 = vpop.f32.mrf.mxu1 }
 0x595   :  { %v13410_v7 = vadd.f32 %v4080_v39, %v15580_v21  ;;  %v4672_v13 = vadd.f32 %v4671_v20, %v4598_v59  ;;  %v9018_v39 = vld [vmem:[%s14912_s1 + $0x744] sm:$0xf]  ;;  %v5011_v23 = vrot.slane %v5009_v38, 3  ;;  %v5017_v21 = vrot.slane %v5015_v5, 2 }
 0x596   :  { %4723 = vmatmul.bf16.gmra.mxu2 %v12802_v47  ;;  %5371 = vmatmul.bf16.gmra.mxu0 %v13404_v43  ;;  %v8450_v47 = vld [vmem:[%s14912_s1 + $0x748] sm:$0xf0]  ;;  %v9034_v59 = vld [vmem:[%s14912_s1 + $0x7c4] sm:$0xf] }
 0x597   :  { %v13417_v29 = vadd.f32 %v4672_v13, %v15581_v10  ;;  %4796 = vmatmul.bf16.gmra.mxu3 %v12805_v60  ;;  %5444 = vmatmul.bf16.gmra.mxu1 %v13407_v46  ;;  %v8453_v12 = vor.u32 %v9018_v39, %v8450_v47  ;;  %v8514_v60 = vld [vmem:[%s14912_s1 + $0x7c8] sm:$0xf0]  ;;  %v5020_v13 = vrot.slane %v5018_v8, 3  ;;  %v5012_v58 = vor.u32 %v5011_v23, %v5008_v61 }
 0x598   :  { %v8517_v37 = vor.u32 %v9034_v59, %v8514_v60 }
 0x599   :  { %v4009_v56 = vpop.f32.mrf.mxu2  ;;  %5502 = vmatpush.bf16.msra.mxu2 %v8453_v12  ;;  %v5021_v26 = vor.u32 %v5020_v13, %v5017_v21  ;;  %v13442_v2 = vsel %vm4934_vm4, %v4994_v33, %v5012_v58  ;;  %v15582_v33 = vld [vmem:[#allocation65_spill] sm:$0xff] }
 0x59a   :  { %v4082_v40 = vpop.f32.mrf.mxu3  ;;  %5575 = vmatpush.bf16.msra.mxu3 %v8517_v37  ;;  %v5024_v37 = vshrl.u32 %v15582_v33, 16 }
 0x59b   :  { %v4083_v42 = vadd.f32 %v4082_v40, %v4009_v56  ;;  %v4600_v15 = vpop.f32.mrf.mxu0  ;;  %v13445_v5 = vsel %vm4934_vm4, %v5003_v35, %v5021_v26  ;;  %v5027_v35 = vshll.u32 %v15582_v33, 16  ;;  %v15583_v40 = vld [vmem:[#allocation51_spill] sm:$0xff] }
 0x59c   :  { %v4673_v20 = vpop.f32.mrf.mxu1 }
 0x59d   :  { %v13436_v10 = vadd.f32 %v4083_v42, %v12794_v27  ;;  %v4674_v39 = vadd.f32 %v4673_v20, %v4600_v15  ;;  %v5033_v42 = vshrl.u32 %v15583_v40, 16  ;;  %v5026_v20 = vrot.slane %v5024_v37, 2  ;;  %v8442_v37 = vld [vmem:[%s14912_s1 + $0x738] sm:$0xf0] }
 0x59e   :  { %v5029_v21 = vrot.slane %v5027_v35, 3  ;;  %v9032_v35 = vld [vmem:[%s14912_s1 + $0x7b4] sm:$0xf] }
 0x59f   :  { %v13439_v47 = vadd.f32 %v4674_v39, %v12797_v14  ;;  %v5035_v13 = vrot.slane %v5033_v42, 2 }
 0x5a1   :  { %v4011_v59 = vpop.f32.mrf.mxu2 }
 0x5a2   :  { %v4084_v60 = vpop.f32.mrf.mxu3 }
 0x5a3   :  { %v4085_v12 = vadd.f32 %v4084_v60, %v4011_v59  ;;  %v4603_v56 = vpop.f32.mrf.mxu0 }
 0x5a4   :  { %v4676_v38 = vpop.f32.mrf.mxu1 }
 0x5a5   :  { %v13448_v27 = vadd.f32 %v4085_v12, %v12808_v25  ;;  %v4677_v8 = vadd.f32 %v4676_v38, %v4603_v56  ;;  %v5036_v25 = vshll.u32 %v15583_v40, 16  ;;  %v15585_v12 = vld [vmem:[#allocation52_spill] sm:$0xff]  ;;  %v5030_v38 = vor.u32 %v5029_v21, %v5026_v20 }
 0x5a6   :  { %4728 = vmatmul.bf16.gmra.mxu2 %v12854_v17  ;;  %5376 = vmatmul.bf16.gmra.mxu0 %v13442_v2 }
 0x5a7   :  { %v13453_v14 = vadd.f32 %v4677_v8, %v12813_v11  ;;  %4801 = vmatmul.bf16.gmra.mxu3 %v12857_v19  ;;  %5449 = vmatmul.bf16.gmra.mxu1 %v13445_v5  ;;  %v5038_v39 = vrot.slane %v5036_v25, 3  ;;  %v15584_v19 = vld [vmem:[#allocation55_spill] sm:$0xff]  ;;  %v9016_v8 = vld [vmem:[%s14912_s1 + $0x734] sm:$0xf] }
 0x5a8   :  { %v8445_v25 = vor.u32 %v9016_v8, %v8442_v37  ;;  %v15589_v8 = vld [vmem:[#allocation27_spill] sm:$0xff] }
 0x5a9   :  { %v4014_v15 = vpop.f32.mrf.mxu2  ;;  %v5039_v42 = vor.u32 %v5038_v39, %v5035_v13  ;;  %v15587_v13 = vld [vmem:[#allocation57_spill] sm:$0xff] }
 0x5aa   :  { %v4087_v61 = vpop.f32.mrf.mxu3  ;;  %5503 = vmatpush.bf16.msra.mxu2 %v8445_v25  ;;  %v5054_v25 = vshll.u32 %v12883_v28, 16 }
 0x5ab   :  { %v4088_v17 = vadd.f32 %v4087_v61, %v4014_v15  ;;  %v4605_v23 = vpop.f32.mrf.mxu0  ;;  %v8506_v15 = vld [vmem:[%s14912_s1 + $0x7b8] sm:$0xf0] }
 0x5ac   :  { %v4678_v11 = vpop.f32.mrf.mxu1 }
 0x5ad   :  { %v13462_v59 = vadd.f32 %v4088_v17, %v15584_v19  ;;  %v4679_v60 = vadd.f32 %v4678_v11, %v4605_v23  ;;  %v8509_v17 = vor.u32 %v9032_v35, %v8506_v15  ;;  %v13480_v11 = vsel %vm4934_vm4, %v5012_v58, %v5030_v38 }
 0x5ae   :  { %v5042_v58 = vshrl.u32 %v12881_v18, 16  ;;  %v5051_v35 = vshrl.u32 %v12883_v28, 16 }
 0x5af   :  { %v13465_v56 = vadd.f32 %v4679_v60, %v15585_v12  ;;  %5576 = vmatpush.bf16.msra.mxu3 %v8509_v17  ;;  %v13483_v60 = vsel %vm4934_vm4, %v5021_v26, %v5039_v42  ;;  %v5045_v26 = vshll.u32 %v12881_v18, 16 }
 0x5b1   :  { %15586 = vst [vmem:[#allocation48_spill] sm:$0xff] %v13465_v56  ;;  %v4016_v61 = vpop.f32.mrf.mxu2 }
 0x5b2   :  { %v4089_v23 = vpop.f32.mrf.mxu3 }
 0x5b3   :  { %v4090_v20 = vadd.f32 %v4089_v23, %v4016_v61  ;;  %v4608_v21 = vpop.f32.mrf.mxu0  ;;  %v5044_v23 = vrot.slane %v5042_v58, 2 }
 0x5b4   :  { %v4681_v19 = vpop.f32.mrf.mxu1 }
 0x5b5   :  { %v13486_v39 = vadd.f32 %v4090_v20, %v15587_v13  ;;  %v4682_v12 = vadd.f32 %v4681_v19, %v4608_v21  ;;  %v5047_v20 = vrot.slane %v5045_v26, 3  ;;  %v5053_v19 = vrot.slane %v5051_v35, 2  ;;  %v15591_v35 = vld [vmem:[#allocation69_spill] sm:$0xff] }
 0x5b6   :  { %4733 = vmatmul.bf16.gmra.mxu2 %v12894_v44  ;;  %5381 = vmatmul.bf16.gmra.mxu0 %v13480_v11  ;;  %v5056_v13 = vrot.slane %v5054_v25, 3 }
 0x5b7   :  { %15588 = vst [vmem:[#allocation45_spill] sm:$0xff] %v13486_v39  ;;  %v13491_v37 = vadd.f32 %v4682_v12, %v15589_v8  ;;  %4806 = vmatmul.bf16.gmra.mxu3 %v12897_v62  ;;  %5454 = vmatmul.bf16.gmra.mxu1 %v13483_v60  ;;  %v5048_v18 = vor.u32 %v5047_v20, %v5044_v23 }
 0x5b9   :  { %15590 = vst [vmem:[#allocation26_spill] sm:$0xff] %v13491_v37  ;;  %v4019_v15 = vpop.f32.mrf.mxu2  ;;  %v5057_v37 = vor.u32 %v5056_v13, %v5053_v19 }
 0x5ba   :  { %v4092_v61 = vpop.f32.mrf.mxu3 }
 0x5bb   :  { %v4093_v44 = vadd.f32 %v4092_v61, %v4019_v15  ;;  %v4610_v17 = vpop.f32.mrf.mxu0  ;;  %v13506_v15 = vsel %vm4934_vm4, %v5030_v38, %v5048_v18  ;;  %v13509_v26 = vsel %vm4934_vm4, %v5039_v42, %v5057_v37  ;;  %v15594_v38 = vld [vmem:[#allocation66_spill] sm:$0xff] }
 0x5bc   :  { %v4683_v21 = vpop.f32.mrf.mxu1  ;;  %v5069_v42 = vshrl.u32 %v15594_v38, 16 }
 0x5bd   :  { %v13500_v62 = vadd.f32 %v4093_v44, %v12886_v34  ;;  %v4684_v12 = vadd.f32 %v4683_v21, %v4610_v17  ;;  %v5072_v44 = vshll.u32 %v15594_v38, 16 }
 0x5bf   :  { %v13503_v8 = vadd.f32 %v4684_v12, %v12889_v6  ;;  %v5060_v6 = vshrl.u32 %v12933_v32, 16 }
 0x5c1   :  { %v4021_v39 = vpop.f32.mrf.mxu2  ;;  %v5062_v12 = vrot.slane %v5060_v6, 2 }
 0x5c2   :  { %v4094_v28 = vpop.f32.mrf.mxu3 }
 0x5c3   :  { %v4095_v40 = vadd.f32 %v4094_v28, %v4021_v39  ;;  %v4613_v56 = vpop.f32.mrf.mxu0  ;;  %v5063_v28 = vshll.u32 %v12933_v32, 16  ;;  %v15592_v39 = vld [vmem:[#allocation59_spill] sm:$0xff]  ;;  %v15595_v32 = vld [vmem:[#allocation29_spill] sm:$0xff] }
 0x5c4   :  { %v4686_v58 = vpop.f32.mrf.mxu1 }
 0x5c5   :  { %v13512_v34 = vadd.f32 %v4095_v40, %v15591_v35  ;;  %v4687_v25 = vadd.f32 %v4686_v58, %v4613_v56  ;;  %v9014_v40 = vld [vmem:[%s14912_s1 + $0x724] sm:$0xf]  ;;  %v5065_v58 = vrot.slane %v5063_v28, 3 }
 0x5c6   :  { %4738 = vmatmul.bf16.gmra.mxu2 %v12952_v63  ;;  %5386 = vmatmul.bf16.gmra.mxu0 %v13506_v15  ;;  %v8434_v63 = vld [vmem:[%s14912_s1 + $0x728] sm:$0xf0]  ;;  %v9030_v56 = vld [vmem:[%s14912_s1 + $0x7a4] sm:$0xf] }
 0x5c7   :  { %v13519_v61 = vadd.f32 %v4687_v25, %v15592_v39  ;;  %4811 = vmatmul.bf16.gmra.mxu3 %v12955_v0  ;;  %5459 = vmatmul.bf16.gmra.mxu1 %v13509_v26  ;;  %v8437_v17 = vor.u32 %v9014_v40, %v8434_v63  ;;  %v8498_v0 = vld [vmem:[%s14912_s1 + $0x7a8] sm:$0xf0]  ;;  %v5071_v25 = vrot.slane %v5069_v42, 2  ;;  %v5074_v39 = vrot.slane %v5072_v44, 3  ;;  %v8600_v63 = vld [vmem:[%s14912_s1 + $0x870] sm:$0xf] }
 0x5c8   :  { %v8501_v20 = vor.u32 %v9030_v56, %v8498_v0  ;;  %v9057_v56 = vld [vmem:[%s14912_s1 + $0x874] sm:$0xf0]  ;;  %v15597_v0 = vld [vmem:[#allocation60_spill] sm:$0xff]  ;;  %v5066_v28 = vor.u32 %v5065_v58, %v5062_v12  ;;  %v8664_v12 = vld [vmem:[%s14912_s1 + $0x8f0] sm:$0xf] }
 0x5c9   :  { %15593 = vst [vmem:[#allocation41_spill] sm:$0xff] %v13519_v61  ;;  %v4024_v23 = vpop.f32.mrf.mxu2  ;;  %5504 = vmatpush.bf16.msra.mxu2 %v8437_v17  ;;  %v8601_v17 = vor.u32 %v9057_v56, %v8600_v63  ;;  %v9073_v58 = vld [vmem:[%s14912_s1 + $0x8f4] sm:$0xf0] }
 0x5ca   :  { %v4097_v21 = vpop.f32.mrf.mxu3  ;;  %5577 = vmatpush.bf16.msra.mxu3 %v8501_v20 }
 0x5cb   :  { %v4098_v19 = vadd.f32 %v4097_v21, %v4024_v23  ;;  %v4615_v13 = vpop.f32.mrf.mxu0  ;;  %v5075_v23 = vor.u32 %v5074_v39, %v5071_v25  ;;  %5970 = vmatpush.bf16.msra.mxu0 %v8601_v17  ;;  %v13550_v21 = vsel %vm4934_vm4, %v5048_v18, %v5066_v28  ;;  %v8665_v18 = vor.u32 %v9073_v58, %v8664_v12  ;;  %v15602_v25 = vld [vmem:[#allocation73_spill] sm:$0xff]  ;;  %v15604_v39 = vld [vmem:[#allocation32_spill] sm:$0xff]  ;;  %v15605_v17 = vld [vmem:[#allocation67_spill] sm:$0xff] }
 0x5cc   :  { %v4688_v35 = vpop.f32.mrf.mxu1  ;;  %v5081_v56 = vshll.u32 %v15604_v39, 16  ;;  %v15606_v58 = vld [vmem:[#allocation61_spill] sm:$0xff] }
 0x5cd   :  { %v13538_v61 = vadd.f32 %v4098_v19, %v15595_v32  ;;  %v4689_v40 = vadd.f32 %v4688_v35, %v4615_v13  ;;  %v13553_v13 = vsel %vm4934_vm4, %v5057_v37, %v5075_v23  ;;  %v15600_v35 = vld [vmem:[#allocation72_spill] sm:$0xff]  ;;  %6043 = vmatpush.bf16.msra.mxu1 %v8665_v18 }
 0x5ce   :  { %15599 = vst [vmem:[#allocation58_spill] sm:$0xff] %v13553_v13 }
 0x5cf   :  { %15596 = vst [vmem:[#allocation44_spill] sm:$0xff] %v13538_v61  ;;  %v13547_v6 = vadd.f32 %v4689_v40, %v15597_v0  ;;  %v5078_v40 = vshrl.u32 %v15604_v39, 16  ;;  %v5087_v0 = vshrl.u32 %v15605_v17, 16 }
 0x5d1   :  { %15598 = vst [vmem:[#allocation56_spill] sm:$0xff] %v13547_v6  ;;  %v4026_v42 = vpop.f32.mrf.mxu2  ;;  %v5089_v12 = vrot.slane %v5087_v0, 2 }
 0x5d2   :  { %v4099_v44 = vpop.f32.mrf.mxu3 }
 0x5d3   :  { %v4100_v32 = vadd.f32 %v4099_v44, %v4026_v42  ;;  %v4618_v20 = vpop.f32.mrf.mxu0  ;;  %v5090_v42 = vshll.u32 %v15605_v17, 16 }
 0x5d4   :  { %v4691_v19 = vpop.f32.mrf.mxu1 }
 0x5d5   :  { %v13556_v38 = vadd.f32 %v4100_v32, %v15600_v35  ;;  %v4692_v63 = vadd.f32 %v4691_v19, %v4618_v20  ;;  %v5080_v19 = vrot.slane %v5078_v40, 2  ;;  %v5083_v35 = vrot.slane %v5081_v56, 3 }
 0x5d6   :  { %4743 = vmatmul.bf16.gmra.mxu2 %v12998_v22  ;;  %5391 = vmatmul.bf16.gmra.mxu0 %v13550_v21 }
 0x5d7   :  { %15601 = vst [vmem:[#allocation30_spill] sm:$0xff] %v13556_v38  ;;  %v13567_v37 = vadd.f32 %v4692_v63, %v15602_v25  ;;  %4816 = vmatmul.bf16.gmra.mxu3 %v13001_v4  ;;  %5464 = vmatmul.bf16.gmra.mxu1 %v13553_v13  ;;  %v5092_v4 = vrot.slane %v5090_v42, 3  ;;  %v15608_v38 = vld [vmem:[#allocation31_spill] sm:$0xff]  ;;  %v5084_v6 = vor.u32 %v5083_v35, %v5080_v19  ;;  %v9012_v42 = vld [vmem:[%s14912_s1 + $0x714] sm:$0xf] }
 0x5d9   :  { %15603 = vst [vmem:[#allocation63_spill] sm:$0xff] %v13567_v37  ;;  %v4029_v22 = vpop.f32.mrf.mxu2  ;;  %v5093_v61 = vor.u32 %v5092_v4, %v5089_v12  ;;  %v15615_v12 = vld [vmem:[#allocation71_spill] sm:$0xff] }
 0x5da   :  { %v4102_v44 = vpop.f32.mrf.mxu3  ;;  %v5105_v4 = vshrl.u32 %v15615_v12, 16 }
 0x5db   :  { %v4103_v32 = vadd.f32 %v4102_v44, %v4029_v22  ;;  %v4620_v20 = vpop.f32.mrf.mxu0  ;;  %v13582_v22 = vsel %vm4934_vm4, %v5066_v28, %v5084_v6  ;;  %v13585_v56 = vsel %vm4934_vm4, %v5075_v23, %v5093_v61  ;;  %v8490_v23 = vld [vmem:[%s14912_s1 + $0x798] sm:$0xf0] }
 0x5dc   :  { %v4693_v63 = vpop.f32.mrf.mxu1 }
 0x5dd   :  { %v13576_v25 = vadd.f32 %v4103_v32, %v15606_v58  ;;  %v4694_v37 = vadd.f32 %v4693_v63, %v4620_v20  ;;  %v15613_v32 = vld [vmem:[#allocation18_spill] sm:$0xff]  ;;  %v15614_v20 = vld [vmem:[#allocation68_spill] sm:$0xff]  ;;  %v5108_v58 = vshll.u32 %v15615_v12, 16  ;;  %v15621_v12 = vld [vmem:[#allocation37_spill] sm:$0xff] }
 0x5de   :  { %v5096_v19 = vshrl.u32 %v15614_v20, 16  ;;  %v5099_v35 = vshll.u32 %v15614_v20, 16 }
 0x5df   :  { %15607 = vst [vmem:[#allocation24_spill] sm:$0xff] %v13576_v25  ;;  %v13579_v39 = vadd.f32 %v4694_v37, %v15608_v38  ;;  %v8426_v38 = vld [vmem:[%s14912_s1 + $0x718] sm:$0xf0]  ;;  %v9028_v37 = vld [vmem:[%s14912_s1 + $0x794] sm:$0xf] }
 0x5e0   :  { %v8429_v28 = vor.u32 %v9012_v42, %v8426_v38  ;;  %v8493_v63 = vor.u32 %v9028_v37, %v8490_v23  ;;  %v5098_v38 = vrot.slane %v5096_v19, 2  ;;  %v8592_v37 = vld [vmem:[%s14912_s1 + $0x860] sm:$0xf] }
 0x5e1   :  { %15609 = vst [vmem:[#allocation47_spill] sm:$0xff] %v13579_v39  ;;  %v4031_v17 = vpop.f32.mrf.mxu2  ;;  %v15616_v39 = vld [vmem:[#allocation33_spill] sm:$0xff]  ;;  %v8656_v19 = vld [vmem:[%s14912_s1 + $0x8e0] sm:$0xf] }
 0x5e2   :  { %v4104_v18 = vpop.f32.mrf.mxu3  ;;  %v15610_v17 = vld [vmem:[#allocation34_spill] sm:$0xff]  ;;  %5505 = vmatpush.bf16.msra.mxu2 %v8429_v28  ;;  %5578 = vmatpush.bf16.msra.mxu3 %v8493_v63  ;;  %v9055_v28 = vld [vmem:[%s14912_s1 + $0x864] sm:$0xf0] }
 0x5e3   :  { %v4623_v13 = vpop.f32.mrf.mxu0  ;;  %v8593_v23 = vor.u32 %v9055_v28, %v8592_v37 }
 0x5e4   :  { %v4696_v40 = vpop.f32.mrf.mxu1 }
 0x5e5   :  { %v4697_v0 = vadd.f32 %v4696_v40, %v4623_v13  ;;  %v15611_v13 = vld [vmem:[#allocation70_spill] sm:$0xff]  ;;  %5971 = vmatpush.bf16.msra.mxu0 %v8593_v23 }
 0x5e6   :  { %4748 = vmatmul.bf16.gmra.mxu2 %v15610_v17  ;;  %5396 = vmatmul.bf16.gmra.mxu0 %v13582_v22  ;;  %v5101_v17 = vrot.slane %v5099_v35, 3  ;;  %v9071_v35 = vld [vmem:[%s14912_s1 + $0x8e4] sm:$0xf0]  ;;  %v15624_v23 = vld [vmem:[#allocation6_spill] sm:$0xff] }
 0x5e7   :  { %v13602_v44 = vadd.f32 %v4697_v0, %v15611_v13  ;;  %4821 = vmatmul.bf16.gmra.mxu3 %v15613_v32  ;;  %5469 = vmatmul.bf16.gmra.mxu1 %v13585_v56  ;;  %v5107_v32 = vrot.slane %v5105_v4, 2  ;;  %v8657_v4 = vor.u32 %v9071_v35, %v8656_v19  ;;  %v15626_v35 = vld [vmem:[#allocation12_spill] sm:$0xff] }
 0x5e8   :  { %v5102_v63 = vor.u32 %v5101_v17, %v5098_v38 }
 0x5e9   :  { %15612 = vst [vmem:[#allocation25_spill] sm:$0xff] %v13602_v44  ;;  %v4709_v18 = vpop.f32.mrf.mxu2  ;;  %v5110_v44 = vrot.slane %v5108_v58, 3  ;;  %6044 = vmatpush.bf16.msra.mxu1 %v8657_v4  ;;  %v5123_v4 = vshrl.u32 %v15626_v35, 16 }
 0x5ea   :  { %v4782_v40 = vpop.f32.mrf.mxu3 }
 0x5eb   :  { %v4783_v42 = vadd.f32 %v4782_v40, %v4709_v18  ;;  %v4625_v0 = vpop.f32.mrf.mxu0 }
 0x5ec   :  { %v4698_v13 = vpop.f32.mrf.mxu1  ;;  %v13626_v0 = vsel %vm4934_vm4, %v5084_v6, %v5102_v63  ;;  %v15625_v6 = vld [vmem:[#allocation74_spill] sm:$0xff] }
 0x5ed   :  { %v13611_v25 = vadd.f32 %v4783_v42, %v15616_v39  ;;  %v5111_v39 = vor.u32 %v5110_v44, %v5107_v32  ;;  %v15619_v13 = vld [vmem:[#allocation19_spill] sm:$0xff]  ;;  %v5114_v19 = vshrl.u32 %v15625_v6, 16 }
 0x5ee   :  { %v15622_v44 = vld [vmem:[#allocation75_spill] sm:$0xff] }
 0x5ef   :  { %15617 = vst [vmem:[#allocation65_spill] sm:$0xff] %v13611_v25  ;;  %v13629_v17 = vsel %vm4934_vm4, %v5093_v61, %v5111_v39  ;;  %v5117_v61 = vshll.u32 %v15625_v6, 16  ;;  %v15629_v25 = vld [vmem:[#allocation78_spill] sm:$0xff] }
 0x5f0   :  { %15618 = vst [vmem:[#allocation55_spill] sm:$0xff] %v13629_v17 }
 0x5f1   :  { %v4711_v58 = vpop.f32.mrf.mxu2 }
 0x5f2   :  { %v4784_v18 = vpop.f32.mrf.mxu3 }
 0x5f3   :  { %v4785_v40 = vadd.f32 %v4784_v18, %v4711_v58  ;;  %v5362_v42 = vpop.f32.mrf.mxu0  ;;  %v5126_v58 = vshll.u32 %v15626_v35, 16  ;;  %v9010_v35 = vld [vmem:[%s14912_s1 + $0x704] sm:$0xf] }
 0x5f4   :  { %v5435_v38 = vpop.f32.mrf.mxu1 }
 0x5f5   :  { %v13632_v37 = vadd.f32 %v4785_v40, %v15619_v13  ;;  %v5436_v28 = vadd.f32 %v5435_v38, %v5362_v42  ;;  %v5116_v38 = vrot.slane %v5114_v19, 2  ;;  %v5119_v13 = vrot.slane %v5117_v61, 3  ;;  %v8418_v19 = vld [vmem:[%s14912_s1 + $0x708] sm:$0xf0]  ;;  %v9026_v61 = vld [vmem:[%s14912_s1 + $0x784] sm:$0xf] }
 0x5f6   :  { %4753 = vmatmul.bf16.gmra.mxu2 %v15621_v12  ;;  %5401 = vmatmul.bf16.gmra.mxu0 %v13626_v0 }
 0x5f7   :  { %15620 = vst [vmem:[#allocation52_spill] sm:$0xff] %v13632_v37  ;;  %v13637_v32 = vadd.f32 %v5436_v28, %v15622_v44  ;;  %4826 = vmatmul.bf16.gmra.mxu3 %v15624_v23  ;;  %5474 = vmatmul.bf16.gmra.mxu1 %v13629_v17  ;;  %v5125_v44 = vrot.slane %v5123_v4, 2  ;;  %v15627_v23 = vld [vmem:[#allocation76_spill] sm:$0xff]  ;;  %v13651_v6 = vor.u32 %v5119_v13, %v5116_v38 }
 0x5f9   :  { %15623 = vst [vmem:[#allocation57_spill] sm:$0xff] %v13637_v32  ;;  %v4714_v18 = vpop.f32.mrf.mxu2  ;;  %v5128_v32 = vrot.slane %v5126_v58, 3  ;;  %v8421_v58 = vor.u32 %v9010_v35, %v8418_v19  ;;  %v13669_v38 = vsel %vm4934_vm4, %v5102_v63, %v13651_v6  ;;  %v15631_v35 = vld [vmem:[#allocation79_spill] sm:$0xff]  ;;  %v5135_v19 = vshll.u32 %v13147_v16, 16  ;;  %v15633_v63 = vld [vmem:[#allocation21_spill] sm:$0xff] }
 0x5fa   :  { %v4787_v40 = vpop.f32.mrf.mxu3 }
 0x5fb   :  { %v4788_v12 = vadd.f32 %v4787_v40, %v4714_v18  ;;  %v5364_v42 = vpop.f32.mrf.mxu0  ;;  %v13662_v4 = vor.u32 %v5128_v32, %v5125_v44  ;;  %5506 = vmatpush.bf16.msra.mxu2 %v8421_v58  ;;  %v8648_v58 = vld [vmem:[%s14912_s1 + $0x8d0] sm:$0xf] }
 0x5fc   :  { %v5437_v28 = vpop.f32.mrf.mxu1 }
 0x5fd   :  { %v13646_v37 = vadd.f32 %v4788_v12, %v15627_v23  ;;  %v5438_v20 = vadd.f32 %v5437_v28, %v5364_v42  ;;  %v13673_v32 = vsel %vm4934_vm4, %v5111_v39, %v13662_v4  ;;  %v5132_v23 = vshrl.u32 %v13147_v16, 16  ;;  %v8584_v39 = vld [vmem:[%s14912_s1 + $0x850] sm:$0xf] }
 0x5ff   :  { %15628 = vst [vmem:[#allocation27_spill] sm:$0xff] %v13646_v37  ;;  %v13649_v17 = vadd.f32 %v5438_v20, %v15629_v25  ;;  %v8482_v25 = vld [vmem:[%s14912_s1 + $0x788] sm:$0xf0] }
 0x600   :  { %v8485_v18 = vor.u32 %v9026_v61, %v8482_v25  ;;  %v5141_v25 = vshrl.u32 %v13149_v41, 16 }
 0x601   :  { %15630 = vst [vmem:[#allocation69_spill] sm:$0xff] %v13649_v17  ;;  %v4716_v20 = vpop.f32.mrf.mxu2 }
 0x602   :  { %v4789_v40 = vpop.f32.mrf.mxu3  ;;  %5579 = vmatpush.bf16.msra.mxu3 %v8485_v18 }
 0x603   :  { %v4790_v12 = vadd.f32 %v4789_v40, %v4716_v20  ;;  %v5367_v42 = vpop.f32.mrf.mxu0  ;;  %v5144_v20 = vshll.u32 %v13149_v41, 16  ;;  %v5143_v41 = vrot.slane %v5141_v25, 2 }
 0x604   :  { %v5440_v13 = vpop.f32.mrf.mxu1 }
 0x605   :  { %v13676_v28 = vadd.f32 %v4790_v12, %v15631_v35  ;;  %v5441_v44 = vadd.f32 %v5440_v13, %v5367_v42  ;;  %v4896_v13 = vld [vmem:[%s14911_s0 + $0xd8] sm:$0x77] }
 0x606   :  { %4758 = vmatmul.bf16.gmra.mxu2 %v13174_v48  ;;  %5406 = vmatmul.bf16.gmra.mxu0 %v13669_v38  ;;  %v9053_v48 = vld [vmem:[%s14912_s1 + $0x854] sm:$0xf0]  ;;  %v4930_v17 = vunpack.c.l.b16 %v4896_v13 }
 0x607   :  { %15632 = vst [vmem:[#allocation59_spill] sm:$0xff] %v13676_v28  ;;  %v13683_v61 = vadd.f32 %v5441_v44, %v15633_v63  ;;  %4831 = vmatmul.bf16.gmra.mxu3 %v13179_v53  ;;  %5479 = vmatmul.bf16.gmra.mxu1 %v13673_v32  ;;  %v8585_v18 = vor.u32 %v9053_v48, %v8584_v39  ;;  %v9069_v53 = vld [vmem:[%s14912_s1 + $0x8d4] sm:$0xf0]  ;;  %v5134_v63 = vrot.slane %v5132_v23, 2  ;;  %v5146_v39 = vrot.slane %v5144_v20, 3 }
 0x608   :  { %v8649_v12 = vor.u32 %v9069_v53, %v8648_v58  ;;  %v4931_v53 = vunpack.c.h.b16 %v4896_v13  ;;  %v8576_v23 = vld [vmem:[%s14912_s1 + $0x840] sm:$0xf]  ;;  %v15638_v13 = vunpack.c.h.b16 %v13184_v36 }
 0x609   :  { %15634 = vst [vmem:[#allocation29_spill] sm:$0xff] %v13683_v61  ;;  %v4719_v40 = vpop.f32.mrf.mxu2  ;;  %5972 = vmatpush.bf16.msra.mxu0 %v8585_v18  ;;  %v5137_v61 = vrot.slane %v5135_v19, 3  ;;  %v13712_v37 = vor.u32 %v5146_v39, %v5143_v41 }
 0x60a   :  { %v4792_v42 = vpop.f32.mrf.mxu3  ;;  %6045 = vmatpush.bf16.msra.mxu1 %v8649_v12 }
 0x60b   :  { %v4793_v35 = vadd.f32 %v4792_v42, %v4719_v40  ;;  %v5369_v44 = vpop.f32.mrf.mxu0  ;;  %v13710_v18 = vor.u32 %v5137_v61, %v5134_v63  ;;  %v9067_v61 = vld [vmem:[%s14912_s1 + $0x8c4] sm:$0xf0]  ;;  %v15640_v63 = vld [vmem:[#allocation36_spill] sm:$0xff] }
 0x60c   :  { %v5442_v16 = vpop.f32.mrf.mxu1 }
 0x60d   :  { %v13705_v48 = vadd.f32 %v4793_v35, %v13152_v24  ;;  %v5443_v28 = vadd.f32 %v5442_v16, %v5369_v44  ;;  %v9051_v24 = vld [vmem:[%s14912_s1 + $0x844] sm:$0xf0]  ;;  %v8640_v16 = vld [vmem:[%s14912_s1 + $0x8c0] sm:$0xf]  ;;  %v13733_v12 = vsel %vm4934_vm4, %v13651_v6, %v13710_v18  ;;  %v13737_v35 = vpack.c.b16 %v4931_v53, %v15638_v13  ;;  %v8568_v6 = vld [vmem:[%s14912_s1 + $0x830] sm:$0xf] }
 0x60e   :  { %v8577_v41 = vor.u32 %v9051_v24, %v8576_v23  ;;  %v8641_v42 = vor.u32 %v9067_v61, %v8640_v16  ;;  %v13742_v44 = vsel %vm4934_vm4, %v13662_v4, %v13712_v37  ;;  %v8632_v53 = vld [vmem:[%s14912_s1 + $0x8b0] sm:$0xf]  ;;  %v9065_v16 = vld [vmem:[%s14912_s1 + $0x8b4] sm:$0xf0]  ;;  %v9072_v61 = vld [vmem:[%s14912_s1 + $0x8f4] sm:$0xf] }
 0x60f   :  { %v13708_v58 = vadd.f32 %v5443_v28, %v13155_v30  ;;  %v15636_v30 = vunpack.c.l.b16 %v13184_v36  ;;  %15639 = vst [vmem:[#allocation73_spill] sm:$0xff] %v13737_v35  ;;  %v9049_v36 = vld [vmem:[%s14912_s1 + $0x834] sm:$0xf0]  ;;  %v8666_v13 = vld [vmem:[%s14912_s1 + $0x8f8] sm:$0xf0] }
 0x610   :  { %5973 = vmatpush.bf16.msra.mxu0 %v8577_v41  ;;  %6046 = vmatpush.bf16.msra.mxu1 %v8641_v42  ;;  %v8569_v24 = vor.u32 %v9049_v36, %v8568_v6  ;;  %v8602_v41 = vld [vmem:[%s14912_s1 + $0x878] sm:$0xf0]  ;;  %v5162_v42 = vshll.u32 %v13737_v35, 16  ;;  %v9047_v6 = vld [vmem:[%s14912_s1 + $0x824] sm:$0xf0] }
 0x611   :  { %15635 = vst [vmem:[#allocation60_spill] sm:$0xff] %v13708_v58  ;;  %v4721_v40 = vpop.f32.mrf.mxu2  ;;  %v13725_v28 = vpack.c.b16 %v4930_v17, %v15636_v30  ;;  %v15642_v30 = vld [vmem:[#allocation77_spill] sm:$0xff]  ;;  %v8624_v36 = vld [vmem:[%s14912_s1 + $0x8a0] sm:$0xf] }
 0x612   :  { %v4794_v19 = vpop.f32.mrf.mxu3  ;;  %v5164_v58 = vrot.slane %v5162_v42, 3  ;;  %v15645_v42 = vld [vmem:[#allocation8_spill] sm:$0xff] }
 0x613   :  { %15637 = vst [vmem:[#allocation72_spill] sm:$0xff] %v13725_v28  ;;  %v4795_v25 = vadd.f32 %v4794_v19, %v4721_v40  ;;  %v5372_v20 = vpop.f32.mrf.mxu0  ;;  %v5150_v4 = vshrl.u32 %v13725_v28, 16  ;;  %v5153_v23 = vshll.u32 %v13725_v28, 16 }
 0x614   :  { %v5445_v17 = vpop.f32.mrf.mxu1  ;;  %5974 = vmatpush.bf16.msra.mxu0 %v8569_v24  ;;  %v9063_v24 = vld [vmem:[%s14912_s1 + $0x8a4] sm:$0xf0] }
 0x615   :  { %v13745_v39 = vadd.f32 %v4795_v25, %v15640_v63  ;;  %v5446_v40 = vadd.f32 %v5445_v17, %v5372_v20  ;;  %v8633_v25 = vor.u32 %v9065_v16, %v8632_v53  ;;  %v5159_v20 = vshrl.u32 %v13737_v35, 16  ;;  %v15644_v35 = vld [vmem:[#allocation10_spill] sm:$0xff] }
 0x616   :  { %4763 = vmatmul.bf16.gmra.mxu2 %v13279_v9  ;;  %5411 = vmatmul.bf16.gmra.mxu0 %v13733_v12  ;;  %v9056_v9 = vld [vmem:[%s14912_s1 + $0x874] sm:$0xf]  ;;  %v8669_v63 = vor.u32 %v9072_v61, %v8666_v13  ;;  %v5155_v61 = vrot.slane %v5153_v23, 3  ;;  %v8616_v23 = vld [vmem:[%s14912_s1 + $0x890] sm:$0xf] }
 0x617   :  { %15641 = vst [vmem:[#allocation61_spill] sm:$0xff] %v13745_v39  ;;  %v13764_v19 = vadd.f32 %v5446_v40, %v15642_v30  ;;  %4836 = vmatmul.bf16.gmra.mxu3 %v13285_v57  ;;  %5484 = vmatmul.bf16.gmra.mxu1 %v13742_v44  ;;  %v8605_v57 = vor.u32 %v9056_v9, %v8602_v41  ;;  %v8560_v40 = vld [vmem:[%s14912_s1 + $0x820] sm:$0xf]  ;;  %v5152_v41 = vrot.slane %v5150_v4, 2  ;;  %v9045_v4 = vld [vmem:[%s14912_s1 + $0x814] sm:$0xf0] }
 0x618   :  { %6047 = vmatpush.bf16.msra.mxu1 %v8633_v25  ;;  %v8561_v16 = vor.u32 %v9047_v6, %v8560_v40  ;;  %6189 = vmatpush.bf16.msrb.mxu3 %v8669_v63  ;;  %v8625_v25 = vor.u32 %v9063_v24, %v8624_v36 }
 0x619   :  { %15643 = vst [vmem:[#allocation31_spill] sm:$0xff] %v13764_v19  ;;  %v4724_v17 = vpop.f32.mrf.mxu2  ;;  %6116 = vmatpush.bf16.msrb.mxu2 %v8605_v57  ;;  %v5161_v19 = vrot.slane %v5159_v20, 2  ;;  %v8552_v57 = vld [vmem:[%s14912_s1 + $0x810] sm:$0xf]  ;;  %v13812_v63 = vor.u32 %v5155_v61, %v5152_v41 }
 0x61a   :  { %v4797_v53 = vpop.f32.mrf.mxu3  ;;  %5975 = vmatpush.bf16.msra.mxu0 %v8561_v16  ;;  %v8553_v20 = vor.u32 %v9045_v4, %v8552_v57  ;;  %v9043_v16 = vld [vmem:[%s14912_s1 + $0x804] sm:$0xf0]  ;;  %v15647_v57 = vld [vmem:[#allocation16_spill] sm:$0xff] }
 0x61b   :  { %v4798_v30 = vadd.f32 %v4797_v53, %v4724_v17  ;;  %v5374_v9 = vpop.f32.mrf.mxu0  ;;  %v13814_v6 = vor.u32 %v5164_v58, %v5161_v19  ;;  %v8544_v53 = vld [vmem:[%s14912_s1 + $0x800] sm:$0xf]  ;;  %v9059_v58 = vld [vmem:[%s14912_s1 + $0x884] sm:$0xf0]  ;;  %v13831_v41 = vsel %vm4934_vm4, %v13710_v18, %v13812_v63 }
 0x61c   :  { %v5447_v13 = vpop.f32.mrf.mxu1  ;;  %6048 = vmatpush.bf16.msra.mxu1 %v8625_v25 }
 0x61d   :  { %v13795_v28 = vadd.f32 %v4798_v30, %v15644_v35  ;;  %v5448_v39 = vadd.f32 %v5447_v13, %v5374_v9  ;;  %v9061_v35 = vld [vmem:[%s14912_s1 + $0x894] sm:$0xf0]  ;;  %v8545_v30 = vor.u32 %v9043_v16, %v8544_v53  ;;  %v13836_v13 = vsel %vm4934_vm4, %v13712_v37, %v13814_v6 }
 0x61e   :  { %v8617_v40 = vor.u32 %v9061_v35, %v8616_v23  ;;  %5976 = vmatpush.bf16.msra.mxu0 %v8553_v20  ;;  %v15648_v20 = vld [vmem:[#allocation17_spill] sm:$0xff]  ;;  %v15649_v35 = vld [vmem:[#allocation11_spill] sm:$0xff] }
 0x61f   :  { %v13810_v17 = vadd.f32 %v5448_v39, %v15645_v42  ;;  %v8608_v39 = vld [vmem:[%s14912_s1 + $0x880] sm:$0xf]  ;;  %v15651_v42 = vld [vmem:[#allocation15_spill] sm:$0xff] }
 0x620   :  { %6049 = vmatpush.bf16.msra.mxu1 %v8617_v40  ;;  %v8609_v61 = vor.u32 %v9059_v58, %v8608_v39  ;;  %v15652_v39 = vld [vmem:[#allocation13_spill] sm:$0xff]  ;;  %v15653_v58 = vld [vmem:[#allocation7_spill] sm:$0xff] }
 0x621   :  { %15646 = vst [vmem:[#allocation34_spill] sm:$0xff] %v13810_v17  ;;  %v4726_v36 = vpop.f32.mrf.mxu2 }
 0x622   :  { %v4799_v24 = vpop.f32.mrf.mxu3  ;;  %5977 = vmatpush.bf16.msra.mxu0 %v8545_v30 }
 0x623   :  { %v4800_v19 = vadd.f32 %v4799_v24, %v4726_v36  ;;  %v5377_v9 = vpop.f32.mrf.mxu0 }
 0x624   :  { %v5450_v25 = vpop.f32.mrf.mxu1  ;;  %6050 = vmatpush.bf16.msra.mxu1 %v8609_v61  ;;  %v8594_v61 = vld [vmem:[%s14912_s1 + $0x868] sm:$0xf0] }
 0x625   :  { %v13839_v4 = vadd.f32 %v4800_v19, %v15647_v57  ;;  %v5451_v23 = vadd.f32 %v5450_v25, %v5377_v9  ;;  %v9054_v9 = vld [vmem:[%s14912_s1 + $0x864] sm:$0xf] }
 0x626   :  { %4768 = vmatmul.bf16.gmra.mxu2 %v15648_v20  ;;  %5416 = vmatmul.bf16.gmra.mxu0 %v13831_v41  ;;  %v9070_v25 = vld [vmem:[%s14912_s1 + $0x8e4] sm:$0xf]  ;;  %v8597_v57 = vor.u32 %v9054_v9, %v8594_v61 }
 0x627   :  { %v13844_v18 = vadd.f32 %v5451_v23, %v15649_v35  ;;  %4841 = vmatmul.bf16.gmra.mxu3 %v15651_v42  ;;  %5489 = vmatmul.bf16.gmra.mxu1 %v13836_v13  ;;  %v8658_v23 = vld [vmem:[%s14912_s1 + $0x8e8] sm:$0xf0] }
 0x628   :  { %v8661_v35 = vor.u32 %v9070_v25, %v8658_v23  ;;  %6117 = vmatpush.bf16.msrb.mxu2 %v8597_v57 }
 0x629   :  { %15650 = vst [vmem:[#allocation70_spill] sm:$0xff] %v13844_v18  ;;  %v4729_v40 = vpop.f32.mrf.mxu2 }
 0x62a   :  { %v4802_v37 = vpop.f32.mrf.mxu3  ;;  %6190 = vmatpush.bf16.msrb.mxu3 %v8661_v35 }
 0x62b   :  { %v4803_v36 = vadd.f32 %v4802_v37, %v4729_v40  ;;  %v5379_v53 = vpop.f32.mrf.mxu0 }
 0x62c   :  { %v5452_v16 = vpop.f32.mrf.mxu1 }
 0x62d   :  { %v13849_v24 = vadd.f32 %v4803_v36, %v15652_v39  ;;  %v5453_v30 = vadd.f32 %v5452_v16, %v5379_v53  ;;  %v5695_v53 = vld [vmem:[%s14911_s0 + $0x10] sm:$0x88]  ;;  %v15655_v16 = vld [vmem:[#allocation9_spill] sm:$0xff] }
 0x62e   :  { %v5729_v61 = vunpack.c.l.b16 %v5695_v53  ;;  %v5730_v25 = vunpack.c.h.b16 %v5695_v53  ;;  %v15662_v53 = vld [vmem:[#allocation49_spill] sm:$0xff] }
 0x62f   :  { %v13852_v19 = vadd.f32 %v5453_v30, %v15653_v58  ;;  %v15657_v58 = vld [vmem:[#allocation5_spill] sm:$0xff] }
 0x631   :  { %15654 = vst [vmem:[#allocation18_spill] sm:$0xff] %v13852_v19  ;;  %v4731_v20 = vpop.f32.mrf.mxu2  ;;  %v5735_v19 = vrot.slane %v15662_v53, 3  ;;  %v8650_v53 = vld [vmem:[%s14912_s1 + $0x8d8] sm:$0xf0] }
 0x632   :  { %v4804_v42 = vpop.f32.mrf.mxu3 }
 0x633   :  { %v4805_v40 = vadd.f32 %v4804_v42, %v4731_v20  ;;  %v5382_v37 = vpop.f32.mrf.mxu0  ;;  %v15659_v42 = vld [vmem:[#allocation40_spill] sm:$0xff] }
 0x634   :  { %v5455_v36 = vpop.f32.mrf.mxu1 }
 0x635   :  { %v13870_v39 = vadd.f32 %v4805_v40, %v15655_v16  ;;  %v5456_v30 = vadd.f32 %v5455_v36, %v5382_v37  ;;  %v15660_v40 = vunpack.c.l.b16 %v15659_v42  ;;  %v15661_v16 = vunpack.c.h.b16 %v15659_v42 }
 0x636   :  { %5421 = vmatmul.bf16.gmra.mxu0 %v13812_v63  ;;  %5507 = vmatmul.bf16.vlgmr.msra.gmra.mxu2 %v13340_v1 }
 0x637   :  { %15656 = vst [vmem:[#allocation33_spill] sm:$0xff] %v13870_v39  ;;  %v13875_v9 = vadd.f32 %v5456_v30, %v15657_v58  ;;  %5494 = vmatmul.bf16.gmra.mxu1 %v13814_v6  ;;  %5580 = vmatmul.bf16.vlgmr.msra.gmra.mxu3 %v13343_v31  ;;  %v5731_v37 = vpack.c.b16 %v15660_v40, %v5729_v61 }
 0x638   :  { %v5732_v1 = vpack.c.b16 %v15661_v16, %v5730_v25 }
 0x639   :  { %15658 = vst [vmem:[#allocation19_spill] sm:$0xff] %v13875_v9  ;;  %v4734_v57 = vpop.f32.mrf.mxu2  ;;  %v5734_v31 = vrot.slane %v5731_v37, 3 }
 0x63a   :  { %v4807_v23 = vpop.f32.mrf.mxu3 }
 0x63b   :  { %v4808_v20 = vadd.f32 %v4807_v23, %v4734_v57  ;;  %v5384_v35 = vpop.f32.mrf.mxu0  ;;  %v5737_v57 = vrot.slane %v5732_v1, 3  ;;  %v15663_v23 = vld [vmem:[#allocation50_spill] sm:$0xff]  ;;  %v13892_v25 = vsel %vm5733_vm5, %v5734_v31, %v5735_v19 }
 0x63c   :  { %v5457_v36 = vpop.f32.mrf.mxu1  ;;  %v5738_v18 = vrot.slane %v15663_v23, 3 }
 0x63d   :  { %v13884_v30 = vadd.f32 %v4808_v20, %v13334_v54  ;;  %v5458_v58 = vadd.f32 %v5457_v36, %v5384_v35 }
 0x63e   :  { %v13895_v20 = vsel %vm5733_vm5, %v5737_v57, %v5738_v18  ;;  %v15665_v57 = vld [vmem:[#allocation42_spill] sm:$0xff] }
 0x63f   :  { %v13887_v9 = vadd.f32 %v5458_v58, %v13337_v55  ;;  %v15664_v58 = vld [vmem:[#allocation38_spill] sm:$0xff] }
 0x641   :  { %v4736_v17 = vpop.f32.mrf.mxu2 }
 0x642   :  { %v4809_v61 = vpop.f32.mrf.mxu3 }
 0x643   :  { %v4810_v40 = vadd.f32 %v4809_v61, %v4736_v17  ;;  %v5387_v39 = vpop.f32.mrf.mxu0  ;;  %v15667_v61 = vld [vmem:[#allocation53_spill] sm:$0xff] }
 0x644   :  { %v5460_v54 = vpop.f32.mrf.mxu1 }
 0x645   :  { %v13898_v55 = vadd.f32 %v4810_v40, %v13346_v52  ;;  %v5461_v35 = vadd.f32 %v5460_v54, %v5387_v39  ;;  %v5740_v40 = vrot.slane %v15667_v61, 3 }
 0x646   :  { %5512 = vmatmul.bf16.gmra.mxu2 %v13378_v51  ;;  %5978 = vmatmul.bf16.vlgmr.msra.gmra.mxu0 %v13892_v25  ;;  %v9052_v51 = vld [vmem:[%s14912_s1 + $0x854] sm:$0xf] }
 0x647   :  { %v13903_v42 = vadd.f32 %v5461_v35, %v13351_v45  ;;  %5585 = vmatmul.bf16.gmra.mxu3 %v13381_v3  ;;  %6051 = vmatmul.bf16.vlgmr.msra.gmra.mxu1 %v13895_v20  ;;  %v8586_v45 = vld [vmem:[%s14912_s1 + $0x858] sm:$0xf0]  ;;  %v9068_v3 = vld [vmem:[%s14912_s1 + $0x8d4] sm:$0xf] }
 0x648   :  { %v8589_v31 = vor.u32 %v9052_v51, %v8586_v45  ;;  %v8653_v54 = vor.u32 %v9068_v3, %v8650_v53  ;;  %v15668_v35 = vld [vmem:[#allocation43_spill] sm:$0xff]  ;;  %v15670_v3 = vld [vmem:[#allocation22_spill] sm:$0xff] }
 0x649   :  { %v4739_v17 = vpop.f32.mrf.mxu2 }
 0x64a   :  { %v4812_v37 = vpop.f32.mrf.mxu3  ;;  %6118 = vmatpush.bf16.msrb.mxu2 %v8589_v31  ;;  %6191 = vmatpush.bf16.msrb.mxu3 %v8653_v54 }
 0x64b   :  { %v4813_v36 = vadd.f32 %v4812_v37, %v4739_v17  ;;  %v5389_v16 = vpop.f32.mrf.mxu0  ;;  %v5742_v17 = vrot.slane %v15668_v35, 3 }
 0x64c   :  { %v5462_v1 = vpop.f32.mrf.mxu1 }
 0x64d   :  { %v13908_v52 = vadd.f32 %v4813_v36, %v15664_v58  ;;  %v5463_v39 = vadd.f32 %v5462_v1, %v5389_v16  ;;  %v13928_v58 = vsel %vm5733_vm5, %v5735_v19, %v5740_v40  ;;  %v13931_v45 = vsel %vm5733_vm5, %v5738_v18, %v5742_v17 }
 0x64f   :  { %v13923_v23 = vadd.f32 %v5463_v39, %v15665_v57  ;;  %v15669_v39 = vld [vmem:[#allocation39_spill] sm:$0xff] }
 0x651   :  { %15666 = vst [vmem:[#allocation37_spill] sm:$0xff] %v13923_v23  ;;  %v4741_v37 = vpop.f32.mrf.mxu2 }
 0x652   :  { %v4814_v36 = vpop.f32.mrf.mxu3 }
 0x653   :  { %v4815_v16 = vadd.f32 %v4814_v36, %v4741_v37  ;;  %v5392_v1 = vpop.f32.mrf.mxu0 }
 0x654   :  { %v5465_v51 = vpop.f32.mrf.mxu1 }
 0x655   :  { %v13934_v57 = vadd.f32 %v4815_v16, %v15669_v39  ;;  %v5466_v61 = vadd.f32 %v5465_v51, %v5392_v1  ;;  %v15672_v16 = vld [vmem:[#allocation46_spill] sm:$0xff] }
 0x656   :  { %5517 = vmatmul.bf16.gmra.mxu2 %v13404_v43  ;;  %5983 = vmatmul.bf16.gmra.mxu0 %v13928_v58  ;;  %v5744_v1 = vrot.slane %v15672_v16, 3  ;;  %v15673_v51 = vld [vmem:[#allocation62_spill] sm:$0xff] }
 0x657   :  { %v13939_v31 = vadd.f32 %v5466_v61, %v15670_v3  ;;  %5590 = vmatmul.bf16.gmra.mxu3 %v13407_v46  ;;  %6056 = vmatmul.bf16.gmra.mxu1 %v13931_v45  ;;  %v5746_v39 = vrot.slane %v15673_v51, 3 }
 0x658   :  { %v13952_v23 = vsel %vm5733_vm5, %v5740_v40, %v5744_v1  ;;  %v9050_v40 = vld [vmem:[%s14912_s1 + $0x844] sm:$0xf] }
 0x659   :  { %15671 = vst [vmem:[#allocation75_spill] sm:$0xff] %v13939_v31  ;;  %v4744_v19 = vpop.f32.mrf.mxu2 }
 0x65a   :  { %v4817_v53 = vpop.f32.mrf.mxu3 }
 0x65b   :  { %v4818_v54 = vadd.f32 %v4817_v53, %v4744_v19  ;;  %v5394_v18 = vpop.f32.mrf.mxu0  ;;  %v13955_v53 = vsel %vm5733_vm5, %v5742_v17, %v5746_v39 }
 0x65c   :  { %v5467_v35 = vpop.f32.mrf.mxu1 }
 0x65d   :  { %v13944_v37 = vadd.f32 %v4818_v54, %v13398_v49  ;;  %v5468_v36 = vadd.f32 %v5467_v35, %v5394_v18 }
 0x65f   :  { %v13947_v43 = vadd.f32 %v5468_v36, %v13401_v50 }
 0x661   :  { %v4746_v61 = vpop.f32.mrf.mxu2 }
 0x662   :  { %v4819_v46 = vpop.f32.mrf.mxu3 }
 0x663   :  { %v4820_v3 = vadd.f32 %v4819_v46, %v4746_v61  ;;  %v5397_v31 = vpop.f32.mrf.mxu0 }
 0x664   :  { %v5470_v19 = vpop.f32.mrf.mxu1 }
 0x665   :  { %v13958_v49 = vadd.f32 %v4820_v3, %v13410_v7  ;;  %v5471_v50 = vadd.f32 %v5470_v19, %v5397_v31  ;;  %v8578_v7 = vld [vmem:[%s14912_s1 + $0x848] sm:$0xf0]  ;;  %v15675_v3 = vld [vmem:[#allocation23_spill] sm:$0xff] }
 0x666   :  { %5522 = vmatmul.bf16.gmra.mxu2 %v13442_v2  ;;  %5988 = vmatmul.bf16.gmra.mxu0 %v13952_v23  ;;  %v9066_v2 = vld [vmem:[%s14912_s1 + $0x8c4] sm:$0xf]  ;;  %v8581_v17 = vor.u32 %v9050_v40, %v8578_v7  ;;  %v5748_v19 = vrot.slane %v15675_v3, 3 }
 0x667   :  { %v13963_v54 = vadd.f32 %v5471_v50, %v13417_v29  ;;  %5595 = vmatmul.bf16.gmra.mxu3 %v13445_v5  ;;  %6061 = vmatmul.bf16.gmra.mxu1 %v13955_v53  ;;  %v8642_v29 = vld [vmem:[%s14912_s1 + $0x8c8] sm:$0xf0]  ;;  %v15676_v50 = vld [vmem:[#allocation64_spill] sm:$0xff] }
 0x668   :  { %v8645_v31 = vor.u32 %v9066_v2, %v8642_v29  ;;  %6119 = vmatpush.bf16.msrb.mxu2 %v8581_v17  ;;  %v5750_v40 = vrot.slane %v15676_v50, 3  ;;  %v13988_v17 = vsel %vm5733_vm5, %v5744_v1, %v5748_v19  ;;  %v9064_v50 = vld [vmem:[%s14912_s1 + $0x8b4] sm:$0xf] }
 0x669   :  { %15674 = vst [vmem:[#allocation6_spill] sm:$0xff] %v13963_v54  ;;  %v4749_v5 = vpop.f32.mrf.mxu2 }
 0x66a   :  { %v4822_v18 = vpop.f32.mrf.mxu3  ;;  %6192 = vmatpush.bf16.msrb.mxu3 %v8645_v31  ;;  %v13991_v31 = vsel %vm5733_vm5, %v5746_v39, %v5750_v40 }
 0x66b   :  { %v4823_v35 = vadd.f32 %v4822_v18, %v4749_v5  ;;  %v5399_v36 = vpop.f32.mrf.mxu0 }
 0x66c   :  { %v5472_v16 = vpop.f32.mrf.mxu1 }
 0x66d   :  { %v13980_v51 = vadd.f32 %v4823_v35, %v13436_v10  ;;  %v5473_v61 = vadd.f32 %v5472_v16, %v5399_v36 }
 0x66f   :  { %v13983_v46 = vadd.f32 %v5473_v61, %v13439_v47  ;;  %v15678_v61 = vld [vmem:[#allocation48_spill] sm:$0xff] }
 0x671   :  { %v4751_v7 = vpop.f32.mrf.mxu2 }
 0x672   :  { %v4824_v54 = vpop.f32.mrf.mxu3 }
 0x673   :  { %v4825_v2 = vadd.f32 %v4824_v54, %v4751_v7  ;;  %v5402_v29 = vpop.f32.mrf.mxu0 }
 0x674   :  { %v5475_v5 = vpop.f32.mrf.mxu1 }
 0x675   :  { %v13994_v10 = vadd.f32 %v4825_v2, %v13448_v27  ;;  %v5476_v47 = vadd.f32 %v5475_v5, %v5402_v29 }
 0x676   :  { %5527 = vmatmul.bf16.gmra.mxu2 %v13480_v11  ;;  %5993 = vmatmul.bf16.gmra.mxu0 %v13988_v17  ;;  %v5752_v11 = vrot.slane %v15582_v33, 3  ;;  %v8634_v33 = vld [vmem:[%s14912_s1 + $0x8b8] sm:$0xf0] }
 0x677   :  { %v13999_v18 = vadd.f32 %v5476_v47, %v13453_v14  ;;  %5600 = vmatmul.bf16.gmra.mxu3 %v13483_v60  ;;  %6066 = vmatmul.bf16.gmra.mxu1 %v13991_v31  ;;  %v9048_v14 = vld [vmem:[%s14912_s1 + $0x834] sm:$0xf]  ;;  %v8570_v60 = vld [vmem:[%s14912_s1 + $0x838] sm:$0xf0]  ;;  %v8637_v5 = vor.u32 %v9064_v50, %v8634_v33 }
 0x678   :  { %v8573_v2 = vor.u32 %v9048_v14, %v8570_v60  ;;  %v15682_v60 = vld [vmem:[#allocation26_spill] sm:$0xff] }
 0x679   :  { %15677 = vst [vmem:[#allocation76_spill] sm:$0xff] %v13999_v18  ;;  %v4754_v1 = vpop.f32.mrf.mxu2  ;;  %6193 = vmatpush.bf16.msrb.mxu3 %v8637_v5 }
 0x67a   :  { %v4827_v54 = vpop.f32.mrf.mxu3  ;;  %6120 = vmatpush.bf16.msrb.mxu2 %v8573_v2 }
 0x67b   :  { %v4828_v35 = vadd.f32 %v4827_v54, %v4754_v1  ;;  %v5404_v39 = vpop.f32.mrf.mxu0 }
 0x67c   :  { %v5477_v36 = vpop.f32.mrf.mxu1 }
 0x67d   :  { %v14004_v27 = vadd.f32 %v4828_v35, %v13462_v59  ;;  %v5478_v16 = vadd.f32 %v5477_v36, %v5404_v39  ;;  %v15680_v59 = vld [vmem:[#allocation51_spill] sm:$0xff]  ;;  %v14024_v35 = vsel %vm5733_vm5, %v5748_v19, %v5752_v11 }
 0x67e   :  { %v5754_v7 = vrot.slane %v15680_v59, 3 }
 0x67f   :  { %v14008_v3 = vadd.f32 %v5478_v16, %v15678_v61  ;;  %v15681_v16 = vld [vmem:[#allocation45_spill] sm:$0xff] }
 0x680   :  { %v14027_v36 = vsel %vm5733_vm5, %v5750_v40, %v5754_v7 }
 0x681   :  { %15679 = vst [vmem:[#allocation78_spill] sm:$0xff] %v14008_v3  ;;  %v4756_v29 = vpop.f32.mrf.mxu2  ;;  %v15701_v3 = vld [vmem:[#allocation32_spill] sm:$0xff] }
 0x682   :  { %v4829_v47 = vpop.f32.mrf.mxu3 }
 0x683   :  { %v4830_v1 = vadd.f32 %v4829_v47, %v4756_v29  ;;  %v5407_v54 = vpop.f32.mrf.mxu0  ;;  %v15685_v47 = vld [vmem:[#allocation35_spill] sm:$0xff] }
 0x684   :  { %v5480_v39 = vpop.f32.mrf.mxu1 }
 0x685   :  { %v14030_v61 = vadd.f32 %v4830_v1, %v15681_v16  ;;  %v5481_v14 = vadd.f32 %v5480_v39, %v5407_v54  ;;  %v5756_v1 = vrot.slane %v15685_v47, 3  ;;  %v15686_v54 = vld [vmem:[#allocation54_spill] sm:$0xff] }
 0x686   :  { %5532 = vmatmul.bf16.gmra.mxu2 %v13506_v15  ;;  %5998 = vmatmul.bf16.gmra.mxu0 %v14024_v35  ;;  %v5758_v39 = vrot.slane %v15686_v54, 3 }
 0x687   :  { %v14035_v50 = vadd.f32 %v5481_v14, %v15682_v60  ;;  %5605 = vmatmul.bf16.gmra.mxu3 %v13509_v26  ;;  %6071 = vmatmul.bf16.gmra.mxu1 %v14027_v36 }
 0x689   :  { %15683 = vst [vmem:[#allocation79_spill] sm:$0xff] %v14035_v50  ;;  %v4759_v19 = vpop.f32.mrf.mxu2  ;;  %v14048_v50 = vsel %vm5733_vm5, %v5752_v11, %v5756_v1  ;;  %v9046_v11 = vld [vmem:[%s14912_s1 + $0x824] sm:$0xf] }
 0x68a   :  { %v4832_v59 = vpop.f32.mrf.mxu3 }
 0x68b   :  { %v4833_v2 = vadd.f32 %v4832_v59, %v4759_v19  ;;  %v5409_v40 = vpop.f32.mrf.mxu0  ;;  %v14051_v59 = vsel %vm5733_vm5, %v5754_v7, %v5758_v39 }
 0x68c   :  { %v5482_v33 = vpop.f32.mrf.mxu1 }
 0x68d   :  { %v14040_v29 = vadd.f32 %v4833_v2, %v13500_v62  ;;  %v5483_v5 = vadd.f32 %v5482_v33, %v5409_v40  ;;  %v15687_v2 = vld [vmem:[#allocation41_spill] sm:$0xff]  ;;  %v15689_v33 = vld [vmem:[#allocation58_spill] sm:$0xff] }
 0x68f   :  { %v14043_v15 = vadd.f32 %v5483_v5, %v13503_v8  ;;  %v8626_v5 = vld [vmem:[%s14912_s1 + $0x8a8] sm:$0xf0] }
 0x691   :  { %15684 = vst [vmem:[#allocation21_spill] sm:$0xff] %v14043_v15  ;;  %v4761_v16 = vpop.f32.mrf.mxu2 }
 0x692   :  { %v4834_v26 = vpop.f32.mrf.mxu3 }
 0x693   :  { %v4835_v14 = vadd.f32 %v4834_v26, %v4761_v16  ;;  %v5412_v60 = vpop.f32.mrf.mxu0 }
 0x694   :  { %v5485_v19 = vpop.f32.mrf.mxu1 }
 0x695   :  { %v14054_v62 = vadd.f32 %v4835_v14, %v13512_v34  ;;  %v5486_v8 = vadd.f32 %v5485_v19, %v5412_v60  ;;  %v8562_v34 = vld [vmem:[%s14912_s1 + $0x828] sm:$0xf0]  ;;  %v15690_v19 = vld [vmem:[#allocation44_spill] sm:$0xff] }
 0x696   :  { %5537 = vmatmul.bf16.gmra.mxu2 %v13550_v21  ;;  %6003 = vmatmul.bf16.gmra.mxu0 %v14048_v50  ;;  %v9062_v21 = vld [vmem:[%s14912_s1 + $0x8a4] sm:$0xf]  ;;  %v8565_v7 = vor.u32 %v9046_v11, %v8562_v34 }
 0x697   :  { %v14059_v40 = vadd.f32 %v5486_v8, %v15687_v2  ;;  %5610 = vmatmul.bf16.gmra.mxu3 %v15689_v33  ;;  %6076 = vmatmul.bf16.gmra.mxu1 %v14051_v59  ;;  %v8629_v54 = vor.u32 %v9062_v21, %v8626_v5  ;;  %v6433_v33 = vld [vmem:[%s14914_s3 + $0x78] sm:$0xff]  ;;  %v15691_v11 = vld [vmem:[#allocation56_spill] sm:$0xff]  ;;  %v15694_v5 = vld [vmem:[#allocation66_spill] sm:$0xff] }
 0x698   :  { %6121 = vmatpush.bf16.msrb.mxu2 %v8565_v7  ;;  %6522 = vmatpush.msrb.mxu0 %v6433_v33  ;;  %v5762_v7 = vrot.slane %v15694_v5, 3 }
 0x699   :  { %15688 = vst [vmem:[#allocation36_spill] sm:$0xff] %v14059_v40  ;;  %v4764_v47 = vpop.f32.mrf.mxu2  ;;  %6194 = vmatpush.bf16.msrb.mxu3 %v8629_v54  ;;  %v15693_v40 = vld [vmem:[#allocation28_spill] sm:$0xff] }
 0x69a   :  { %v4837_v16 = vpop.f32.mrf.mxu3  ;;  %v5760_v21 = vrot.slane %v15693_v40, 3  ;;  %v6441_v40 = vld [vmem:[%s14914_s3 + $0xb8] sm:$0xff] }
 0x69b   :  { %v4838_v26 = vadd.f32 %v4837_v16, %v4764_v47  ;;  %v5414_v14 = vpop.f32.mrf.mxu0  ;;  %6622 = vmatpush.msrb.mxu1 %v6441_v40 }
 0x69c   :  { %v5487_v60 = vpop.f32.mrf.mxu1 }
 0x69d   :  { %v14076_v8 = vadd.f32 %v4838_v26, %v15690_v19  ;;  %v5488_v2 = vadd.f32 %v5487_v60, %v5414_v14  ;;  %v14087_v26 = vsel %vm5733_vm5, %v5756_v1, %v5760_v21  ;;  %v14090_v60 = vsel %vm5733_vm5, %v5758_v39, %v5762_v7  ;;  %v15695_v19 = vld [vmem:[#allocation30_spill] sm:$0xff] }
 0x69f   :  { %v14082_v34 = vadd.f32 %v5488_v2, %v15691_v11  ;;  %v15696_v11 = vld [vmem:[#allocation63_spill] sm:$0xff] }
 0x6a1   :  { %15692 = vst [vmem:[#allocation77_spill] sm:$0xff] %v14082_v34  ;;  %v4766_v47 = vpop.f32.mrf.mxu2 }
 0x6a2   :  { %v4839_v16 = vpop.f32.mrf.mxu3 }
 0x6a3   :  { %v4840_v54 = vadd.f32 %v4839_v16, %v4766_v47  ;;  %v5417_v15 = vpop.f32.mrf.mxu0 }
 0x6a4   :  { %v5490_v14 = vpop.f32.mrf.mxu1 }
 0x6a5   :  { %v14093_v33 = vadd.f32 %v4840_v54, %v15695_v19  ;;  %v5491_v2 = vadd.f32 %v5490_v14, %v5417_v15  ;;  %v15698_v54 = vld [vmem:[#allocation24_spill] sm:$0xff] }
 0x6a6   :  { %5542 = vmatmul.bf16.gmra.mxu2 %v13582_v22  ;;  %6008 = vmatmul.bf16.gmra.mxu0 %v14087_v26  ;;  %v15699_v22 = vld [vmem:[#allocation47_spill] sm:$0xff] }
 0x6a7   :  { %v14101_v5 = vadd.f32 %v5491_v2, %v15696_v11  ;;  %5615 = vmatmul.bf16.gmra.mxu3 %v13585_v56  ;;  %6081 = vmatmul.bf16.gmra.mxu1 %v14090_v60  ;;  %v5764_v2 = vrot.slane %v15701_v3, 3  ;;  %v6432_v56 = vld [vmem:[%s14914_s3 + $0x70] sm:$0xff]  ;;  %v15702_v11 = vld [vmem:[#allocation67_spill] sm:$0xff] }
 0x6a8   :  { %v5766_v40 = vrot.slane %v15702_v11, 3  ;;  %6523 = vmatpush.msrb.mxu0 %v6432_v56  ;;  %v9044_v3 = vld [vmem:[%s14912_s1 + $0x814] sm:$0xf]  ;;  %v15705_v56 = vld [vmem:[#allocation55_spill] sm:$0xff] }
 0x6a9   :  { %15697 = vst [vmem:[#allocation10_spill] sm:$0xff] %v14101_v5  ;;  %v4769_v1 = vpop.f32.mrf.mxu2  ;;  %v14117_v18 = vsel %vm5733_vm5, %v5760_v21, %v5764_v2 }
 0x6aa   :  { %v4842_v39 = vpop.f32.mrf.mxu3 }
 0x6ab   :  { %v4843_v47 = vadd.f32 %v4842_v39, %v4769_v1  ;;  %v5419_v15 = vpop.f32.mrf.mxu0 }
 0x6ac   :  { %v5492_v16 = vpop.f32.mrf.mxu1 }
 0x6ad   :  { %v14106_v14 = vadd.f32 %v4843_v47, %v15698_v54  ;;  %v5493_v19 = vadd.f32 %v5492_v16, %v5419_v15  ;;  %v14120_v15 = vsel %vm5733_vm5, %v5762_v7, %v5766_v40  ;;  %v8554_v54 = vld [vmem:[%s14912_s1 + $0x818] sm:$0xf0] }
 0x6ae   :  { %v8557_v21 = vor.u32 %v9044_v3, %v8554_v54  ;;  %v8618_v7 = vld [vmem:[%s14912_s1 + $0x898] sm:$0xf0]  ;;  %v15706_v3 = vld [vmem:[#allocation65_spill] sm:$0xff] }
 0x6af   :  { %v14109_v34 = vadd.f32 %v5493_v19, %v15699_v22  ;;  %v15703_v19 = vld [vmem:[#allocation25_spill] sm:$0xff] }
 0x6b0   :  { %6122 = vmatpush.bf16.msrb.mxu2 %v8557_v21  ;;  %v15709_v21 = vld [vmem:[#allocation71_spill] sm:$0xff] }
 0x6b1   :  { %15700 = vst [vmem:[#allocation8_spill] sm:$0xff] %v14109_v34  ;;  %v4771_v5 = vpop.f32.mrf.mxu2 }
 0x6b2   :  { %v4844_v1 = vpop.f32.mrf.mxu3  ;;  %v9060_v5 = vld [vmem:[%s14912_s1 + $0x894] sm:$0xf] }
 0x6b3   :  { %v5422_v39 = vpop.f32.mrf.mxu0  ;;  %v8621_v11 = vor.u32 %v9060_v5, %v8618_v7  ;;  %v6440_v5 = vld [vmem:[%s14914_s3 + $0xb0] sm:$0xff]  ;;  %v5770_v7 = vrot.slane %v15709_v21, 3 }
 0x6b4   :  { %v5495_v47 = vpop.f32.mrf.mxu1  ;;  %6623 = vmatpush.msrb.mxu1 %v6440_v5  ;;  %v15714_v5 = vld [vmem:[#allocation57_spill] sm:$0xff] }
 0x6b5   :  { %v5496_v16 = vadd.f32 %v5495_v47, %v5422_v39  ;;  %6195 = vmatpush.bf16.msrb.mxu3 %v8621_v11 }
 0x6b6   :  { %5547 = vmatmul.bf16.gmra.mxu2 %v13626_v0  ;;  %6013 = vmatmul.bf16.gmra.mxu0 %v14117_v18 }
 0x6b7   :  { %v14137_v22 = vadd.f32 %v5496_v16, %v15703_v19  ;;  %5620 = vmatmul.bf16.gmra.mxu3 %v15705_v56  ;;  %6086 = vmatmul.bf16.gmra.mxu1 %v14120_v15  ;;  %v6431_v16 = vld [vmem:[%s14914_s3 + $0x68] sm:$0xff]  ;;  %v15708_v19 = vld [vmem:[#allocation68_spill] sm:$0xff] }
 0x6b8   :  { %6524 = vmatpush.msrb.mxu0 %v6431_v16  ;;  %v5768_v56 = vrot.slane %v15708_v19, 3  ;;  %v15712_v16 = vld [vmem:[#allocation52_spill] sm:$0xff] }
 0x6b9   :  { %15704 = vst [vmem:[#allocation16_spill] sm:$0xff] %v14137_v22  ;;  %v5508_v1 = vpop.f32.mrf.mxu2 }
 0x6ba   :  { %v5581_v39 = vpop.f32.mrf.mxu3 }
 0x6bb   :  { %v5582_v0 = vadd.f32 %v5581_v39, %v5508_v1  ;;  %v5424_v47 = vpop.f32.mrf.mxu0 }
 0x6bc   :  { %v5497_v34 = vpop.f32.mrf.mxu1 }
 0x6bd   :  { %v14142_v54 = vadd.f32 %v5582_v0, %v15706_v3  ;;  %v14153_v0 = vsel %vm5733_vm5, %v5764_v2, %v5768_v56  ;;  %v14156_v3 = vsel %vm5733_vm5, %v5766_v40, %v5770_v7  ;;  %v6430_v2 = vld [vmem:[%s14914_s3 + $0x60] sm:$0xff] }
 0x6be   :  { %15710 = vst [vmem:[#allocation11_spill] sm:$0xff] %v14153_v0  ;;  %6525 = vmatpush.msrb.mxu0 %v6430_v2  ;;  %v8546_v2 = vld [vmem:[%s14912_s1 + $0x808] sm:$0xf0] }
 0x6bf   :  { %15707 = vst [vmem:[#allocation17_spill] sm:$0xff] %v14142_v54  ;;  %v9042_v54 = vld [vmem:[%s14912_s1 + $0x804] sm:$0xf] }
 0x6c0   :  { %15711 = vst [vmem:[#allocation15_spill] sm:$0xff] %v14156_v3 }
 0x6c1   :  { %v5510_v11 = vpop.f32.mrf.mxu2 }
 0x6c2   :  { %v5583_v1 = vpop.f32.mrf.mxu3 }
 0x6c3   :  { %v5584_v34 = vadd.f32 %v5583_v1, %v5510_v11  ;;  %v5979_v39 = vpop.f32.mrf.mxu0 }
 0x6c4   :  { %v6052_v47 = vpop.f32.mrf.mxu1 }
 0x6c5   :  { %v14159_v19 = vadd.f32 %v5584_v34, %v15712_v16  ;;  %v6053_v22 = vadd.f32 %v6052_v47, %v5979_v39 }
 0x6c6   :  { %5552 = vmatmul.bf16.gmra.mxu2 %v13669_v38  ;;  %6018 = vmatmul.bf16.gmra.mxu0 %v14153_v0  ;;  %v15715_v38 = vld [vmem:[#allocation27_spill] sm:$0xff] }
 0x6c7   :  { %15713 = vst [vmem:[#allocation13_spill] sm:$0xff] %v14159_v19  ;;  %v14164_v21 = vadd.f32 %v6053_v22, %v15714_v5  ;;  %5625 = vmatmul.bf16.gmra.mxu3 %v13673_v32  ;;  %6091 = vmatmul.bf16.gmra.mxu1 %v14156_v3  ;;  %v15717_v22 = vld [vmem:[#allocation74_spill] sm:$0xff]  ;;  %v15718_v19 = vld [vmem:[#allocation69_spill] sm:$0xff] }
 0x6c8   :  { %v5772_v5 = vrot.slane %v15717_v22, 3 }
 0x6c9   :  { %v5513_v40 = vpop.f32.mrf.mxu2 }
 0x6ca   :  { %v5586_v11 = vpop.f32.mrf.mxu3  ;;  %v14194_v3 = vsel %vm5733_vm5, %v5768_v56, %v5772_v5  ;;  %v6429_v56 = vld [vmem:[%s14914_s3 + $0x58] sm:$0xff] }
 0x6cb   :  { %v5587_v1 = vadd.f32 %v5586_v11, %v5513_v40  ;;  %v5981_v34 = vpop.f32.mrf.mxu0  ;;  %v9058_v40 = vld [vmem:[%s14912_s1 + $0x884] sm:$0xf]  ;;  %15720 = vst [vmem:[#allocation9_spill] sm:$0xff] %v14194_v3  ;;  %6526 = vmatpush.msrb.mxu0 %v6429_v56  ;;  %v6428_v56 = vld [vmem:[%s14914_s3 + $0x50] sm:$0xff] }
 0x6cc   :  { %v6054_v39 = vpop.f32.mrf.mxu1  ;;  %v15719_v11 = vld [vmem:[#allocation12_spill] sm:$0xff] }
 0x6cd   :  { %v14172_v47 = vadd.f32 %v5587_v1, %v15715_v38  ;;  %v6055_v16 = vadd.f32 %v6054_v39, %v5981_v34  ;;  %v5774_v1 = vrot.slane %v15719_v11, 3  ;;  %v8549_v34 = vor.u32 %v9042_v54, %v8546_v2  ;;  %v15722_v54 = vld [vmem:[#allocation59_spill] sm:$0xff]  ;;  %6527 = vmatpush.msrb.mxu0 %v6428_v56 }
 0x6cf   :  { %15716 = vst [vmem:[#allocation7_spill] sm:$0xff] %v14172_v47  ;;  %v14176_v32 = vadd.f32 %v6055_v16, %v15718_v19  ;;  %v8610_v19 = vld [vmem:[%s14912_s1 + $0x888] sm:$0xf0]  ;;  %6123 = vmatpush.bf16.msrb.mxu2 %v8549_v34  ;;  %v14199_v11 = vsel %vm5733_vm5, %v5770_v7, %v5774_v1 }
 0x6d0   :  { %v8613_v38 = vor.u32 %v9058_v40, %v8610_v19  ;;  %15721 = vst [vmem:[#allocation5_spill] sm:$0xff] %v14199_v11  ;;  %v6439_v7 = vld [vmem:[%s14914_s3 + $0xa8] sm:$0xff] }
 0x6d1   :  { %v5515_v39 = vpop.f32.mrf.mxu2  ;;  %6624 = vmatpush.msrb.mxu1 %v6439_v7 }
 0x6d2   :  { %v5588_v16 = vpop.f32.mrf.mxu3  ;;  %6196 = vmatpush.bf16.msrb.mxu3 %v8613_v38  ;;  %v15725_v38 = vld [vmem:[#allocation20_spill] sm:$0xff] }
 0x6d3   :  { %v5589_v22 = vadd.f32 %v5588_v16, %v5515_v39  ;;  %v14191_v47 = vpop.f32.mrf.mxu0  ;;  %v5776_v16 = vrot.slane %v15725_v38, 3 }
 0x6d4   :  { %v14196_v0 = vpop.f32.mrf.mxu1 }
 0x6d5   :  { %v14202_v2 = vadd.f32 %v5589_v22, %v15722_v54  ;;  %v15726_v22 = vld [vmem:[#allocation14_spill] sm:$0xff] }
 0x6d6   :  { %5557 = vmatmul.bf16.gmra.mxu2 %v13733_v12  ;;  %6023 = vmatmul.bf16.gmra.mxu0 %v14194_v3  ;;  %v5778_v54 = vrot.slane %v15726_v22, 3  ;;  %v15729_v22 = vld [vmem:[#allocation61_spill] sm:$0xff] }
 0x6d7   :  { %15723 = vst [vmem:[#allocation40_spill] sm:$0xff] %v14202_v2  ;;  %5630 = vmatmul.bf16.gmra.mxu3 %v13742_v44  ;;  %6096 = vmatmul.bf16.gmra.mxu1 %v14199_v11 }
 0x6d8   :  { %v14237_v38 = vsel %vm5733_vm5, %v5774_v1, %v5778_v54 }
 0x6d9   :  { %v5518_v40 = vpop.f32.mrf.mxu2  ;;  %15728 = vst [vmem:[#allocation38_spill] sm:$0xff] %v14237_v38 }
 0x6da   :  { %v5591_v34 = vpop.f32.mrf.mxu3 }
 0x6db   :  { %v5592_v19 = vadd.f32 %v5591_v34, %v5518_v40  ;;  %v14214_v12 = vpop.f32.mrf.mxu0  ;;  %v14229_v34 = vsel %vm5733_vm5, %v5772_v5, %v5776_v16  ;;  %v6425_v5 = vld [vmem:[%s14914_s3 + $0x38] sm:$0xff] }
 0x6dc   :  { %v14216_v39 = vpop.f32.mrf.mxu1  ;;  %15727 = vst [vmem:[#allocation50_spill] sm:$0xff] %v14229_v34 }
 0x6dd   :  { %v14219_v44 = vadd.f32 %v5592_v19, %v13705_v48  ;;  %v6427_v48 = vld [vmem:[%s14914_s3 + $0x48] sm:$0xff] }
 0x6de   :  { %6528 = vmatpush.msrb.mxu0 %v6427_v48 }
 0x6df   :  { %15724 = vst [vmem:[#allocation49_spill] sm:$0xff] %v14219_v44 }
 0x6e1   :  { %v5520_v2 = vpop.f32.mrf.mxu2 }
 0x6e2   :  { %v5593_v7 = vpop.f32.mrf.mxu3 }
 0x6e3   :  { %v5594_v11 = vadd.f32 %v5593_v7, %v5520_v2  ;;  %v14226_v40 = vpop.f32.mrf.mxu0  ;;  %v6426_v2 = vld [vmem:[%s14914_s3 + $0x40] sm:$0xff] }
 0x6e4   :  { %v14234_v19 = vpop.f32.mrf.mxu1  ;;  %6529 = vmatpush.msrb.mxu0 %v6426_v2  ;;  %v6422_v2 = vld [vmem:[%s14914_s3 + $0x20] sm:$0xff] }
 0x6e5   :  { %v14240_v44 = vadd.f32 %v5594_v11, %v15729_v22  ;;  %v6424_v11 = vld [vmem:[%s14914_s3 + $0x30] sm:$0xff] }
 0x6e6   :  { %5562 = vmatmul.bf16.gmra.mxu2 %v13831_v41  ;;  %6028 = vmatmul.bf16.gmra.mxu0 %v14229_v34 }
 0x6e7   :  { %15730 = vst [vmem:[#allocation42_spill] sm:$0xff] %v14240_v44  ;;  %5635 = vmatmul.bf16.gmra.mxu3 %v13836_v13  ;;  %6101 = vmatmul.bf16.gmra.mxu1 %v14237_v38  ;;  %v6423_v13 = vld [vmem:[%s14914_s3 + $0x28] sm:$0xff]  ;;  %v15732_v44 = vld [vmem:[#allocation72_spill] sm:$0xff] }
 0x6e8   :  { %6530 = vmatpush.msrb.mxu0 %v6425_v5  ;;  %v14269_v5 = vrot.slane %v15732_v44, 3 }
 0x6e9   :  { %v5523_v1 = vpop.f32.mrf.mxu2 }
 0x6ea   :  { %v5596_v56 = vpop.f32.mrf.mxu3  ;;  %6531 = vmatpush.msrb.mxu0 %v6424_v11  ;;  %15733 = vst [vmem:[#allocation43_spill] sm:$0xff] %v14269_v5  ;;  %v15734_v11 = vld [vmem:[#allocation73_spill] sm:$0xff]  ;;  %v14287_v34 = vsel %vm5733_vm5, %v5776_v16, %v14269_v5  ;;  %v6418_v16 = vld [vmem:[%s14914_s3] sm:$0xff] }
 0x6eb   :  { %v5597_v7 = vadd.f32 %v5596_v56, %v5523_v1  ;;  %v14255_v41 = vpop.f32.mrf.mxu0  ;;  %v6421_v1 = vld [vmem:[%s14914_s3 + $0x18] sm:$0xff]  ;;  %v6438_v56 = vld [vmem:[%s14914_s3 + $0xa0] sm:$0xff]  ;;  %v14278_v38 = vrot.slane %v15734_v11, 3  ;;  %15736 = vst [vmem:[#allocation22_spill] sm:$0xff] %v14287_v34 }
 0x6ec   :  { %v14260_v48 = vpop.f32.mrf.mxu1  ;;  %6532 = vmatpush.msrb.mxu0 %v6423_v13  ;;  %6625 = vmatpush.msrb.mxu1 %v6438_v56 }
 0x6ed   :  { %v14263_v22 = vadd.f32 %v5597_v7, %v13795_v28  ;;  %15735 = vst [vmem:[#allocation39_spill] sm:$0xff] %v14278_v38  ;;  %v6420_v7 = vld [vmem:[%s14914_s3 + $0x10] sm:$0xff] }
 0x6ee   :  { %6533 = vmatpush.msrb.mxu0 %v6422_v2  ;;  %v14293_v2 = vsel %vm5733_vm5, %v5778_v54, %v14278_v38 }
 0x6ef   :  { %15731 = vst [vmem:[#allocation53_spill] sm:$0xff] %v14263_v22 }
 0x6f0   :  { %6534 = vmatpush.msrb.mxu0 %v6421_v1  ;;  %15737 = vst [vmem:[#allocation46_spill] sm:$0xff] %v14293_v2  ;;  %v6419_v1 = vld [vmem:[%s14914_s3 + $0x8] sm:$0xff] }
 0x6f1   :  { %v5525_v28 = vpop.f32.mrf.mxu2 }
 0x6f2   :  { %v5598_v44 = vpop.f32.mrf.mxu3  ;;  %6535 = vmatpush.msrb.mxu0 %v6420_v7 }
 0x6f3   :  { %v5599_v13 = vadd.f32 %v5598_v44, %v5525_v28  ;;  %v14283_v22 = vpop.f32.mrf.mxu0 }
 0x6f4   :  { %v14289_v3 = vpop.f32.mrf.mxu1  ;;  %6536 = vmatpush.msrb.mxu0 %v6419_v1 }
 0x6f5   :  { %v14296_v56 = vadd.f32 %v5599_v13, %v13839_v4 }
 0x6f6   :  { %5567 = vmatmul.bf16.gmra.mxu2 %v13812_v63  ;;  %6033 = vmatmul.bf16.gmra.mxu0 %v14287_v34  ;;  %v15740_v34 = vld [vmem:[#allocation33_spill] sm:$0xff] }
 0x6f7   :  { %15738 = vst [vmem:[#allocation62_spill] sm:$0xff] %v14296_v56  ;;  %5640 = vmatmul.bf16.gmra.mxu3 %v13814_v6  ;;  %6106 = vmatmul.bf16.gmra.mxu1 %v14293_v2 }
 0x6f8   :  { %6537 = vmatpush.msrb.mxu0 %v6418_v16 }
 0x6f9   :  { %v5528_v54 = vpop.f32.mrf.mxu2 }
 0x6fa   :  { %v5601_v4 = vpop.f32.mrf.mxu3 }
 0x6fb   :  { %v5602_v11 = vadd.f32 %v5601_v4, %v5528_v54  ;;  %v14308_v28 = vpop.f32.mrf.mxu0 }
 0x6fc   :  { %v14310_v7 = vpop.f32.mrf.mxu1 }
 0x6fd   :  { %v14313_v63 = vadd.f32 %v5602_v11, %v13849_v24  ;;  %v14329_v24 = vld [vmem:[%s14913_s2] sm:$0x3] }
 0x6ff   :  { %15739 = vst [vmem:[#allocation23_spill] sm:$0xff] %v14313_v63 }
 0x701   :  { %v5530_v44 = vpop.f32.mrf.mxu2 }
 0x702   :  { %v5603_v6 = vpop.f32.mrf.mxu3 }
 0x703   :  { %v5604_v13 = vadd.f32 %v5603_v6, %v5530_v44  ;;  %v14315_v56 = vpop.f32.mrf.mxu0 }
 0x704   :  { %v14317_v2 = vpop.f32.mrf.mxu1 }
 0x705   :  { %v14320_v1 = vadd.f32 %v5604_v13, %v15740_v34  ;;  %v14334_v34 = vperm.slane %v14329_v24, 0 }
 0x706   :  { %6038 = vmatmul.bf16.gmra.mxu0 %v14269_v5  ;;  %6124 = vmatmul.bf16.vlgmr.msrb.gmra.mxu2 %v13892_v25 }
 0x707   :  { %15741 = vst [vmem:[#allocation64_spill] sm:$0xff] %v14320_v1  ;;  %6111 = vmatmul.bf16.gmra.mxu1 %v14278_v38  ;;  %6197 = vmatmul.bf16.vlgmr.msrb.gmra.mxu3 %v13895_v20  ;;  %v6437_v20 = vld [vmem:[%s14914_s3 + $0x98] sm:$0xff]  ;;  %v6318_v6 = vadd.f32 %v14334_v34, %v14164_v21  ;;  %v6320_v21 = vadd.f32 %v14334_v34, %v14176_v32 }
 0x708   :  { %6626 = vmatpush.msrb.mxu1 %v6437_v20 }
 0x709   :  { %v5533_v16 = vpop.f32.mrf.mxu2  ;;  %v6368_v63 = vmax.f32 %v6318_v6, 0.0 }
 0x70a   :  { %v5606_v54 = vpop.f32.mrf.mxu3 }
 0x70b   :  { %v5607_v4 = vadd.f32 %v5606_v54, %v5533_v16  ;;  %v14331_v11 = vpop.f32.mrf.mxu0 }
 0x70c   :  { %v14336_v44 = vpop.f32.mrf.mxu1 }
 0x70d   :  { %v14339_v25 = vadd.f32 %v5607_v4, %v13884_v30  ;;  %v6058_v30 = vadd.f32 %v14196_v0, %v14191_v47 }
 0x70f   :  { %15742 = vst [vmem:[#allocation48_spill] sm:$0xff] %v14339_v25 }
 0x711   :  { %v5535_v13 = vpop.f32.mrf.mxu2 }
 0x712   :  { %v5608_v16 = vpop.f32.mrf.mxu3 }
 0x713   :  { %v5609_v54 = vadd.f32 %v5608_v16, %v5535_v13  ;;  %v14346_v1 = vpop.f32.mrf.mxu0  ;;  %v15744_v16 = vld [vmem:[#allocation29_spill] sm:$0xff] }
 0x714   :  { %v14348_v38 = vpop.f32.mrf.mxu1  ;;  %v6266_v25 = vadd.f32 %v6058_v30, %v15744_v16 }
 0x715   :  { %v14351_v5 = vadd.f32 %v5609_v54, %v13898_v55  ;;  %v6370_v54 = vmax.f32 %v6320_v21, 0.0 }
 0x716   :  { %6129 = vmatmul.bf16.gmra.mxu2 %v13928_v58  ;;  %6538 = vmatmul.f32.vlgmr.msrb.gmra.mxu0 %v6368_v63  ;;  %v6322_v0 = vadd.f32 %v14334_v34, %v6266_v25 }
 0x717   :  { %15743 = vst [vmem:[#allocation51_spill] sm:$0xff] %v14351_v5  ;;  %6202 = vmatmul.bf16.gmra.mxu3 %v13931_v45  ;;  %v6060_v45 = vadd.f32 %v14216_v39, %v14214_v12  ;;  %v6063_v12 = vadd.f32 %v14234_v19, %v14226_v40  ;;  %v6065_v40 = vadd.f32 %v14260_v48, %v14255_v41 }
 0x718   :  { %v6372_v16 = vmax.f32 %v6322_v0, 0.0 }
 0x719   :  { %v5538_v4 = vpop.f32.mrf.mxu2 }
 0x71a   :  { %v5611_v20 = vpop.f32.mrf.mxu3 }
 0x71b   :  { %v5612_v13 = vadd.f32 %v5611_v20, %v5538_v4  ;;  %v14359_v6 = vpop.f32.mrf.mxu0  ;;  %v15745_v20 = vld [vmem:[#allocation60_spill] sm:$0xff] }
 0x71c   :  { %v14362_v55 = vpop.f32.mrf.mxu1  ;;  %v6268_v5 = vadd.f32 %v6060_v45, %v15745_v20  ;;  %v15746_v45 = vld [vmem:[#allocation31_spill] sm:$0xff] }
 0x71d   :  { %v14365_v58 = vadd.f32 %v5612_v13, %v13908_v52  ;;  %v6436_v52 = vld [vmem:[%s14914_s3 + $0x90] sm:$0xff] }
 0x71e   :  { %6541 = vmatmul.f32.gmra.mxu0 %v6370_v54  ;;  %v6324_v39 = vadd.f32 %v14334_v34, %v6268_v5  ;;  %6627 = vmatpush.msrb.mxu1 %v6436_v52 }
 0x721   :  { %v5540_v47 = vpop.f32.mrf.mxu2 }
 0x722   :  { %v5613_v32 = vpop.f32.mrf.mxu3 }
 0x723   :  { %v5614_v63 = vadd.f32 %v5613_v32, %v5540_v47  ;;  %v14370_v4 = vpop.f32.mrf.mxu0 }
 0x724   :  { %v14373_v30 = vpop.f32.mrf.mxu1 }
 0x725   :  { %v14376_v21 = vadd.f32 %v5614_v63, %v13934_v57 }
 0x726   :  { %6134 = vmatmul.bf16.gmra.mxu2 %v13952_v23  ;;  %6544 = vmatmul.f32.gmra.mxu0 %v6372_v16  ;;  %v6270_v23 = vadd.f32 %v6063_v12, %v15746_v45  ;;  %v15747_v16 = vld [vmem:[#allocation34_spill] sm:$0xff] }
 0x727   :  { %6207 = vmatmul.bf16.gmra.mxu3 %v13955_v53  ;;  %v6374_v53 = vmax.f32 %v6324_v39, 0.0  ;;  %v6272_v52 = vadd.f32 %v6065_v40, %v15747_v16  ;;  %v15749_v16 = vld [vmem:[#allocation18_spill] sm:$0xff] }
 0x728   :  { %v6326_v19 = vadd.f32 %v14334_v34, %v6270_v23  ;;  %v15748_v23 = vld [vmem:[#allocation70_spill] sm:$0xff] }
 0x729   :  { %v5543_v25 = vpop.f32.mrf.mxu2  ;;  %v6328_v41 = vadd.f32 %v14334_v34, %v6272_v52 }
 0x72a   :  { %v5616_v13 = vpop.f32.mrf.mxu3 }
 0x72b   :  { %v5617_v54 = vadd.f32 %v5616_v13, %v5543_v25  ;;  %v14386_v57 = vpop.f32.mrf.mxu0  ;;  %v6376_v25 = vmax.f32 %v6326_v19, 0.0 }
 0x72c   :  { %v14389_v0 = vpop.f32.mrf.mxu1 }
 0x72d   :  { %v14392_v47 = vadd.f32 %v5617_v54, %v13944_v37  ;;  %v6068_v37 = vadd.f32 %v14289_v3, %v14283_v22  ;;  %v6070_v3 = vadd.f32 %v14310_v7, %v14308_v28  ;;  %v6073_v28 = vadd.f32 %v14317_v2, %v14315_v56 }
 0x72e   :  { %6547 = vmatmul.f32.gmra.mxu0 %v6374_v53 }
 0x72f   :  { %v6274_v53 = vadd.f32 %v6068_v37, %v15748_v23  ;;  %v6276_v52 = vadd.f32 %v6070_v3, %v15749_v16  ;;  %v15750_v23 = vld [vmem:[#allocation19_spill] sm:$0xff] }
 0x731   :  { %v5545_v5 = vpop.f32.mrf.mxu2  ;;  %v6330_v22 = vadd.f32 %v14334_v34, %v6274_v53  ;;  %v6332_v7 = vadd.f32 %v14334_v34, %v6276_v52  ;;  %v6278_v53 = vadd.f32 %v6073_v28, %v15750_v23 }
 0x732   :  { %v5618_v32 = vpop.f32.mrf.mxu3 }
 0x733   :  { %v5619_v63 = vadd.f32 %v5618_v32, %v5545_v5  ;;  %v14397_v20 = vpop.f32.mrf.mxu0  ;;  %v6334_v2 = vadd.f32 %v14334_v34, %v6278_v53  ;;  %v15751_v53 = vld [vmem:[#allocation37_spill] sm:$0xff] }
 0x734   :  { %v14400_v12 = vpop.f32.mrf.mxu1 }
 0x735   :  { %v14403_v39 = vadd.f32 %v5619_v63, %v13958_v49  ;;  %v6378_v49 = vmax.f32 %v6328_v41, 0.0 }
 0x736   :  { %6139 = vmatmul.bf16.gmra.mxu2 %v13988_v17  ;;  %6550 = vmatmul.f32.gmra.mxu0 %v6376_v25  ;;  %v6380_v25 = vmax.f32 %v6330_v22, 0.0 }
 0x737   :  { %6212 = vmatmul.bf16.gmra.mxu3 %v13991_v31  ;;  %v6435_v31 = vld [vmem:[%s14914_s3 + $0x88] sm:$0xff] }
 0x738   :  { %6628 = vmatpush.msrb.mxu1 %v6435_v31 }
 0x739   :  { %v5548_v48 = vpop.f32.mrf.mxu2 }
 0x73a   :  { %v5621_v13 = vpop.f32.mrf.mxu3 }
 0x73b   :  { %v5622_v54 = vadd.f32 %v5621_v13, %v5548_v48  ;;  %v14410_v45 = vpop.f32.mrf.mxu0 }
 0x73c   :  { %v14413_v40 = vpop.f32.mrf.mxu1 }
 0x73d   :  { %v14416_v17 = vadd.f32 %v5622_v54, %v13980_v51 }
 0x73e   :  { %6553 = vmatmul.f32.gmra.mxu0 %v6378_v49 }
 0x741   :  { %v5550_v19 = vpop.f32.mrf.mxu2 }
 0x742   :  { %v5623_v5 = vpop.f32.mrf.mxu3 }
 0x743   :  { %v5624_v32 = vadd.f32 %v5623_v5, %v5550_v19  ;;  %v14424_v63 = vpop.f32.mrf.mxu0 }
 0x744   :  { %v14427_v51 = vpop.f32.mrf.mxu1 }
 0x745   :  { %v14430_v37 = vadd.f32 %v5624_v32, %v13994_v10  ;;  %v6382_v10 = vmax.f32 %v6332_v7, 0.0  ;;  %v6384_v32 = vmax.f32 %v6334_v2, 0.0 }
 0x746   :  { %6144 = vmatmul.bf16.gmra.mxu2 %v14024_v35  ;;  %6556 = vmatmul.f32.gmra.mxu0 %v6380_v25 }
 0x747   :  { %6217 = vmatmul.bf16.gmra.mxu3 %v14027_v36  ;;  %v6075_v36 = vadd.f32 %v14336_v44, %v14331_v11  ;;  %v6078_v11 = vadd.f32 %v14348_v38, %v14346_v1  ;;  %v6080_v38 = vadd.f32 %v14362_v55, %v14359_v6 }
 0x749   :  { %v5553_v41 = vpop.f32.mrf.mxu2  ;;  %v6280_v19 = vadd.f32 %v6075_v36, %v13887_v9 }
 0x74a   :  { %v5626_v48 = vpop.f32.mrf.mxu3 }
 0x74b   :  { %v5627_v13 = vadd.f32 %v5626_v48, %v5553_v41  ;;  %v14437_v54 = vpop.f32.mrf.mxu0  ;;  %v6336_v9 = vadd.f32 %v14334_v34, %v6280_v19  ;;  %v15752_v19 = vld [vmem:[#allocation75_spill] sm:$0xff] }
 0x74c   :  { %v14440_v49 = vpop.f32.mrf.mxu1 }
 0x74d   :  { %v14443_v35 = vadd.f32 %v5627_v13, %v14004_v27  ;;  %v6434_v27 = vld [vmem:[%s14914_s3 + $0x80] sm:$0xff] }
 0x74e   :  { %6559 = vmatmul.f32.gmra.mxu0 %v6382_v10  ;;  %6629 = vmatpush.msrb.mxu1 %v6434_v27  ;;  %v6284_v10 = vadd.f32 %v6080_v38, %v15751_v53 }
 0x750   :  { %v6340_v6 = vadd.f32 %v14334_v34, %v6284_v10 }
 0x751   :  { %v5555_v56 = vpop.f32.mrf.mxu2 }
 0x752   :  { %v5628_v31 = vpop.f32.mrf.mxu3 }
 0x753   :  { %v5629_v3 = vadd.f32 %v5628_v31, %v5555_v56  ;;  %v14448_v22 = vpop.f32.mrf.mxu0 }
 0x754   :  { %v14451_v5 = vpop.f32.mrf.mxu1 }
 0x755   :  { %v14454_v16 = vadd.f32 %v5629_v3, %v14030_v61 }
 0x756   :  { %6149 = vmatmul.bf16.gmra.mxu2 %v14048_v50  ;;  %6562 = vmatmul.f32.gmra.mxu0 %v6384_v32  ;;  %v6282_v50 = vadd.f32 %v6078_v11, %v13903_v42 }
 0x757   :  { %6222 = vmatmul.bf16.gmra.mxu3 %v14051_v59  ;;  %v6386_v59 = vmax.f32 %v6336_v9, 0.0 }
 0x758   :  { %v6338_v1 = vadd.f32 %v14334_v34, %v6282_v50 }
 0x759   :  { %v5558_v44 = vpop.f32.mrf.mxu2 }
 0x75a   :  { %v5631_v52 = vpop.f32.mrf.mxu3  ;;  %v6388_v36 = vmax.f32 %v6338_v1, 0.0 }
 0x75b   :  { %v5632_v25 = vadd.f32 %v5631_v52, %v5558_v44  ;;  %v14464_v61 = vpop.f32.mrf.mxu0 }
 0x75c   :  { %v14467_v28 = vpop.f32.mrf.mxu1 }
 0x75d   :  { %v14470_v7 = vadd.f32 %v5632_v25, %v14040_v29  ;;  %v6083_v29 = vadd.f32 %v14373_v30, %v14370_v4 }
 0x75e   :  { %6565 = vmatmul.f32.gmra.mxu0 %v6386_v59 }
 0x75f   :  { %v6286_v32 = vadd.f32 %v6083_v29, %v15752_v19 }
 0x761   :  { %v5560_v41 = vpop.f32.mrf.mxu2  ;;  %v6342_v4 = vadd.f32 %v14334_v34, %v6286_v32  ;;  %v14534_v32 = vperm.slane %v14329_v24, 1 }
 0x762   :  { %v5633_v48 = vpop.f32.mrf.mxu3 }
 0x763   :  { %v5634_v13 = vadd.f32 %v5633_v48, %v5560_v41  ;;  %v14475_v23 = vpop.f32.mrf.mxu0  ;;  %v6392_v50 = vmax.f32 %v6342_v4, 0.0  ;;  %v15753_v41 = vld [vmem:[#allocation6_spill] sm:$0xff] }
 0x764   :  { %v14478_v42 = vpop.f32.mrf.mxu1 }
 0x765   :  { %v14481_v2 = vadd.f32 %v5634_v13, %v14054_v62  ;;  %v6390_v62 = vmax.f32 %v6340_v6, 0.0 }
 0x766   :  { %6154 = vmatmul.bf16.gmra.mxu2 %v14087_v26  ;;  %6568 = vmatmul.f32.gmra.mxu0 %v6388_v36 }
 0x767   :  { %6227 = vmatmul.bf16.gmra.mxu3 %v14090_v60  ;;  %v6085_v60 = vadd.f32 %v14389_v0, %v14386_v57 }
 0x769   :  { %v5563_v55 = vpop.f32.mrf.mxu2  ;;  %v6288_v52 = vadd.f32 %v6085_v60, %v13947_v43 }
 0x76a   :  { %v5636_v56 = vpop.f32.mrf.mxu3 }
 0x76b   :  { %v5637_v31 = vadd.f32 %v5636_v56, %v5563_v55  ;;  %v14488_v3 = vpop.f32.mrf.mxu0  ;;  %v6344_v57 = vadd.f32 %v14334_v34, %v6288_v52  ;;  %v15754_v55 = vld [vmem:[#allocation11_spill] sm:$0xff]  ;;  %v6093_v56 = vadd.f32 %v14427_v51, %v14424_v63  ;;  %v6095_v63 = vadd.f32 %v14440_v49, %v14437_v54  ;;  %v15761_v54 = vld [vmem:[#allocation5_spill] sm:$0xff] }
 0x76c   :  { %v14491_v27 = vpop.f32.mrf.mxu1  ;;  %v6098_v49 = vadd.f32 %v14451_v5, %v14448_v22 }
 0x76d   :  { %v14494_v26 = vadd.f32 %v5637_v31, %v14076_v8  ;;  %v6088_v8 = vadd.f32 %v14400_v12, %v14397_v20 }
 0x76e   :  { %6571 = vmatmul.f32.gmra.mxu0 %v6390_v62  ;;  %v15756_v62 = vld [vmem:[#allocation76_spill] sm:$0xff] }
 0x76f   :  { %v6290_v48 = vadd.f32 %v6088_v8, %v15753_v41  ;;  %v6294_v60 = vadd.f32 %v6093_v56, %v15756_v62  ;;  %v15759_v41 = vld [vmem:[#allocation13_spill] sm:$0xff] }
 0x771   :  { %v5565_v30 = vpop.f32.mrf.mxu2  ;;  %v6346_v20 = vadd.f32 %v14334_v34, %v6290_v48  ;;  %v6350_v51 = vadd.f32 %v14334_v34, %v6294_v60 }
 0x772   :  { %v5638_v11 = vpop.f32.mrf.mxu3 }
 0x773   :  { %v5639_v9 = vadd.f32 %v5638_v11, %v5565_v30  ;;  %v14499_v44 = vpop.f32.mrf.mxu0  ;;  %v6396_v6 = vmax.f32 %v6346_v20, 0.0  ;;  %v15757_v11 = vld [vmem:[#allocation17_spill] sm:$0xff] }
 0x774   :  { %v14502_v25 = vpop.f32.mrf.mxu1 }
 0x775   :  { %v14505_v59 = vadd.f32 %v5639_v9, %v14093_v33  ;;  %v6394_v33 = vmax.f32 %v6344_v57, 0.0 }
 0x776   :  { %6159 = vmatmul.bf16.gmra.mxu2 %v14117_v18  ;;  %6574 = vmatmul.f32.gmra.mxu0 %v6392_v50 }
 0x777   :  { %6232 = vmatmul.bf16.gmra.mxu3 %v14120_v15  ;;  %v6090_v15 = vadd.f32 %v14413_v40, %v14410_v45 }
 0x779   :  { %v5568_v0 = vpop.f32.mrf.mxu2  ;;  %v6292_v36 = vadd.f32 %v6090_v15, %v13983_v46 }
 0x77a   :  { %v5641_v38 = vpop.f32.mrf.mxu3 }
 0x77b   :  { %v5642_v1 = vadd.f32 %v5641_v38, %v5568_v0  ;;  %v14512_v43 = vpop.f32.mrf.mxu0  ;;  %v6348_v45 = vadd.f32 %v14334_v34, %v6292_v36  ;;  %v15758_v0 = vld [vmem:[#allocation78_spill] sm:$0xff] }
 0x77c   :  { %v14515_v13 = vpop.f32.mrf.mxu1  ;;  %v6296_v38 = vadd.f32 %v6095_v63, %v15758_v0  ;;  %v15766_v63 = vld [vmem:[#allocation50_spill] sm:$0xff] }
 0x77d   :  { %v14518_v18 = vadd.f32 %v5642_v1, %v14106_v14  ;;  %v15755_v14 = vld [vmem:[#allocation15_spill] sm:$0xff]  ;;  %v6398_v4 = vmax.f32 %v6348_v45, 0.0  ;;  %v6400_v1 = vmax.f32 %v6350_v51, 0.0 }
 0x77e   :  { %6577 = vmatmul.f32.gmra.mxu0 %v6394_v33  ;;  %v15760_v33 = vld [vmem:[#allocation9_spill] sm:$0xff]  ;;  %v6352_v20 = vadd.f32 %v14334_v34, %v6296_v38  ;;  %v15763_v45 = vld [vmem:[#allocation7_spill] sm:$0xff]  ;;  %v15768_v38 = vld [vmem:[#allocation36_spill] sm:$0xff] }
 0x780   :  { %v6402_v56 = vmax.f32 %v6352_v20, 0.0 }
 0x781   :  { %v5570_v12 = vpop.f32.mrf.mxu2 }
 0x782   :  { %v5643_v53 = vpop.f32.mrf.mxu3 }
 0x783   :  { %v14523_v10 = vpop.f32.mrf.mxu0 }
 0x784   :  { %v14526_v29 = vpop.f32.mrf.mxu1 }
 0x786   :  { %6164 = vmatmul.bf16.gmra.mxu2 %v15754_v55  ;;  %6580 = vmatmul.f32.gmra.mxu0 %v6396_v6  ;;  %v15762_v55 = vld [vmem:[#allocation79_spill] sm:$0xff] }
 0x787   :  { %6237 = vmatmul.bf16.gmra.mxu3 %v15755_v14  ;;  %v6298_v14 = vadd.f32 %v6098_v49, %v15762_v55  ;;  %v15771_v55 = vld [vmem:[#allocation42_spill] sm:$0xff] }
 0x789   :  { %v6125_v40 = vpop.f32.mrf.mxu2  ;;  %v6354_v22 = vadd.f32 %v14334_v34, %v6298_v14 }
 0x78a   :  { %v6198_v31 = vpop.f32.mrf.mxu3 }
 0x78b   :  { %v6199_v19 = vadd.f32 %v6198_v31, %v6125_v40  ;;  %v6041_v46 = vpop.f32.mrf.mxu0 }
 0x78c   :  { %v6114_v30 = vpop.f32.mrf.mxu1 }
 0x78d   :  { %v6263_v9 = vadd.f32 %v6199_v19, %v15757_v11  ;;  %v6100_v19 = vadd.f32 %v14467_v28, %v14464_v61  ;;  %v6404_v11 = vmax.f32 %v6354_v22, 0.0  ;;  %v6103_v61 = vadd.f32 %v14478_v42, %v14475_v23 }
 0x78e   :  { %6583 = vmatmul.f32.gmra.mxu0 %v6398_v4  ;;  %v15764_v4 = vld [vmem:[#allocation21_spill] sm:$0xff] }
 0x78f   :  { %v6319_v52 = vadd.f32 %v14534_v32, %v6263_v9  ;;  %v6300_v30 = vadd.f32 %v6100_v19, %v15764_v4  ;;  %v15765_v9 = vld [vmem:[#allocation40_spill] sm:$0xff]  ;;  %v15775_v4 = vld [vmem:[#allocation53_spill] sm:$0xff] }
 0x791   :  { %v6369_v50 = vmax.f32 %v6319_v52, 0.0  ;;  %v6127_v8 = vpop.f32.mrf.mxu2  ;;  %v6356_v28 = vadd.f32 %v14334_v34, %v6300_v30 }
 0x792   :  { %v6200_v24 = vpop.f32.mrf.mxu3 }
 0x793   :  { %v6201_v57 = vadd.f32 %v6200_v24, %v6127_v8  ;;  %8670 = vmatmul.msk.f32.vlgmr.msrb.gmra.mxu1 %vm6446_vm6, %v6369_v50  ;;  %v15767_v50 = vld [vmem:[#allocation38_spill] sm:$0xff] }
 0x795   :  { %v6265_v48 = vadd.f32 %v6201_v57, %v15759_v41  ;;  %v6406_v41 = vmax.f32 %v6356_v28, 0.0 }
 0x796   :  { %6169 = vmatmul.bf16.gmra.mxu2 %v15760_v33  ;;  %6586 = vmatmul.f32.gmra.mxu0 %v6400_v1  ;;  %v6302_v1 = vadd.f32 %v6103_v61, %v15768_v38  ;;  %v15779_v38 = vld [vmem:[#allocation39_spill] sm:$0xff] }
 0x797   :  { %v6321_v15 = vadd.f32 %v14534_v32, %v6265_v48  ;;  %6242 = vmatmul.bf16.gmra.mxu3 %v15761_v54  ;;  %v15769_v48 = vld [vmem:[#allocation49_spill] sm:$0xff]  ;;  %v6105_v54 = vadd.f32 %v14491_v27, %v14488_v3  ;;  %v6108_v3 = vadd.f32 %v14502_v25, %v14499_v44 }
 0x798   :  { %v6358_v23 = vadd.f32 %v14334_v34, %v6302_v1 }
 0x799   :  { %v6371_v12 = vmax.f32 %v6321_v15, 0.0  ;;  %v6130_v53 = vpop.f32.mrf.mxu2 }
 0x79a   :  { %v6203_v36 = vpop.f32.mrf.mxu3 }
 0x79b   :  { %v6204_v6 = vadd.f32 %v6203_v36, %v6130_v53  ;;  %8671 = vmatmul.msk.f32.gmra.mxu1 %vm6446_vm6, %v6371_v12  ;;  %v15770_v53 = vld [vmem:[#allocation77_spill] sm:$0xff] }
 0x79c   :  { %v6304_v36 = vadd.f32 %v6105_v54, %v15770_v53 }
 0x79d   :  { %v6267_v40 = vadd.f32 %v6204_v6, %v15763_v45  ;;  %v6408_v6 = vmax.f32 %v6358_v23, 0.0 }
 0x79e   :  { %6589 = vmatmul.f32.gmra.mxu0 %v6402_v56  ;;  %v15772_v56 = vld [vmem:[#allocation22_spill] sm:$0xff]  ;;  %v6360_v27 = vadd.f32 %v14334_v34, %v6304_v36 }
 0x79f   :  { %v6323_v31 = vadd.f32 %v14534_v32, %v6267_v40  ;;  %v15773_v40 = vld [vmem:[#allocation46_spill] sm:$0xff] }
 0x7a1   :  { %v6373_v5 = vmax.f32 %v6323_v31, 0.0  ;;  %v6132_v46 = vpop.f32.mrf.mxu2 }
 0x7a2   :  { %v6205_v62 = vpop.f32.mrf.mxu3 }
 0x7a3   :  { %v6206_v60 = vadd.f32 %v6205_v62, %v6132_v46  ;;  %8672 = vmatmul.msk.f32.gmra.mxu1 %vm6446_vm6, %v6373_v5  ;;  %v15774_v46 = vld [vmem:[#allocation10_spill] sm:$0xff] }
 0x7a4   :  { %v6306_v62 = vadd.f32 %v6108_v3, %v15774_v46 }
 0x7a5   :  { %v6269_v52 = vadd.f32 %v6206_v60, %v15765_v9  ;;  %v6410_v60 = vmax.f32 %v6360_v27, 0.0  ;;  %v6110_v9 = vadd.f32 %v14515_v13, %v14512_v43  ;;  %v6113_v43 = vadd.f32 %v14526_v29, %v14523_v10 }
 0x7a6   :  { %6174 = vmatmul.bf16.gmra.mxu2 %v15766_v63  ;;  %6592 = vmatmul.f32.gmra.mxu0 %v6404_v11  ;;  %v6362_v44 = vadd.f32 %v14334_v34, %v6306_v62 }
 0x7a7   :  { %v6325_v51 = vadd.f32 %v14534_v32, %v6269_v52  ;;  %6247 = vmatmul.bf16.gmra.mxu3 %v15767_v50  ;;  %v15776_v50 = vld [vmem:[#allocation8_spill] sm:$0xff] }
 0x7a8   :  { %v6308_v61 = vadd.f32 %v6110_v9, %v15776_v50  ;;  %v6412_v28 = vmax.f32 %v6362_v44, 0.0 }
 0x7a9   :  { %v6375_v8 = vmax.f32 %v6325_v51, 0.0  ;;  %v6135_v24 = vpop.f32.mrf.mxu2 }
 0x7aa   :  { %v6208_v57 = vpop.f32.mrf.mxu3  ;;  %v6364_v13 = vadd.f32 %v14334_v34, %v6308_v61 }
 0x7ab   :  { %v6209_v0 = vadd.f32 %v6208_v57, %v6135_v24  ;;  %8673 = vmatmul.msk.f32.gmra.mxu1 %vm6446_vm6, %v6375_v8  ;;  %v15777_v8 = vld [vmem:[#allocation62_spill] sm:$0xff]  ;;  %v15778_v57 = vld [vmem:[#allocation43_spill] sm:$0xff] }
 0x7ac   :  { %v6414_v23 = vmax.f32 %v6364_v13, 0.0 }
 0x7ad   :  { %v6271_v33 = vadd.f32 %v6209_v0, %v15769_v48 }
 0x7ae   :  { %6595 = vmatmul.f32.gmra.mxu0 %v6406_v41 }
 0x7af   :  { %v6327_v15 = vadd.f32 %v14534_v32, %v6271_v33 }
 0x7b1   :  { %v6377_v42 = vmax.f32 %v6327_v15, 0.0  ;;  %v6137_v49 = vpop.f32.mrf.mxu2  ;;  %v15780_v15 = vld [vmem:[#allocation16_spill] sm:$0xff] }
 0x7b2   :  { %v6210_v20 = vpop.f32.mrf.mxu3  ;;  %v6310_v54 = vadd.f32 %v6113_v43, %v15780_v15 }
 0x7b3   :  { %v6211_v12 = vadd.f32 %v6210_v20, %v6137_v49  ;;  %8674 = vmatmul.msk.f32.gmra.mxu1 %vm6446_vm6, %v6377_v42  ;;  %v15781_v42 = vld [vmem:[#allocation23_spill] sm:$0xff] }
 0x7b5   :  { %v6273_v14 = vadd.f32 %v6211_v12, %v15771_v55  ;;  %v6366_v12 = vadd.f32 %v14334_v34, %v6310_v54  ;;  %v15782_v55 = vld [vmem:[#allocation64_spill] sm:$0xff] }
 0x7b6   :  { %6179 = vmatmul.bf16.gmra.mxu2 %v15772_v56  ;;  %6598 = vmatmul.f32.gmra.mxu0 %v6408_v6  ;;  %v6539_v56 = vpop.f32.mrf.mxu0  ;;  %v15783_v34 = vld [vmem:[#allocation48_spill] sm:$0xff] }
 0x7b7   :  { %v6329_v45 = vadd.f32 %v14534_v32, %v6273_v14  ;;  %6252 = vmatmul.bf16.gmra.mxu3 %v15773_v40  ;;  %v6416_v6 = vmax.f32 %v6366_v12, 0.0 }
 0x7b9   :  { %v6379_v31 = vmax.f32 %v6329_v45, 0.0  ;;  %v6140_v19 = vpop.f32.mrf.mxu2 }
 0x7ba   :  { %v6213_v22 = vpop.f32.mrf.mxu3 }
 0x7bb   :  { %v6214_v5 = vadd.f32 %v6213_v22, %v6140_v19  ;;  %8675 = vmatmul.msk.f32.gmra.mxu1 %vm6446_vm6, %v6379_v31 }
 0x7bd   :  { %v6275_v30 = vadd.f32 %v6214_v5, %v15775_v4  ;;  %v15784_v4 = vld [vmem:[#allocation51_spill] sm:$0xff] }
 0x7be   :  { %6601 = vmatmul.f32.gmra.mxu0 %v6410_v60  ;;  %v6542_v9 = vpop.f32.mrf.mxu0 }
 0x7bf   :  { %v6331_v11 = vadd.f32 %v14534_v32, %v6275_v30 }
 0x7c1   :  { %v6381_v25 = vmax.f32 %v6331_v11, 0.0  ;;  %v6142_v52 = vpop.f32.mrf.mxu2 }
 0x7c2   :  { %v6215_v63 = vpop.f32.mrf.mxu3 }
 0x7c3   :  { %v6216_v51 = vadd.f32 %v6215_v63, %v6142_v52  ;;  %8676 = vmatmul.msk.f32.gmra.mxu1 %vm6446_vm6, %v6381_v25 }
 0x7c5   :  { %v6277_v24 = vadd.f32 %v6216_v51, %v15777_v8 }
 0x7c6   :  { %6184 = vmatmul.bf16.gmra.mxu2 %v15778_v57  ;;  %6604 = vmatmul.f32.gmra.mxu0 %v6412_v28  ;;  %v6545_v8 = vpop.f32.mrf.mxu0 }
 0x7c7   :  { %v6333_v0 = vadd.f32 %v14534_v32, %v6277_v24  ;;  %6257 = vmatmul.bf16.gmra.mxu3 %v15779_v38 }
 0x7c9   :  { %v6383_v1 = vmax.f32 %v6333_v0, 0.0  ;;  %v6145_v41 = vpop.f32.mrf.mxu2 }
 0x7ca   :  { %v6218_v48 = vpop.f32.mrf.mxu3 }
 0x7cb   :  { %v6219_v33 = vadd.f32 %v6218_v48, %v6145_v41  ;;  %8677 = vmatmul.msk.f32.gmra.mxu1 %vm6446_vm6, %v6383_v1 }
 0x7cd   :  { %v6279_v49 = vadd.f32 %v6219_v33, %v15781_v42 }
 0x7ce   :  { %6607 = vmatmul.f32.gmra.mxu0 %v6414_v23 }
 0x7cf   :  { %v6335_v20 = vadd.f32 %v14534_v32, %v6279_v49 }
 0x7d1   :  { %v6385_v53 = vmax.f32 %v6335_v20, 0.0  ;;  %v6147_v10 = vpop.f32.mrf.mxu2 }
 0x7d2   :  { %v6220_v29 = vpop.f32.mrf.mxu3 }
 0x7d3   :  { %v6221_v36 = vadd.f32 %v6220_v29, %v6147_v10  ;;  %8678 = vmatmul.msk.f32.gmra.mxu1 %vm6446_vm6, %v6385_v53 }
 0x7d5   :  { %v6281_v14 = vadd.f32 %v6221_v36, %v15782_v55 }
 0x7d6   :  { %6610 = vmatmul.f32.gmra.mxu0 %v6416_v6 }
 0x7d7   :  { %v6337_v45 = vadd.f32 %v14534_v32, %v6281_v14 }
 0x7d9   :  { %v6387_v40 = vmax.f32 %v6337_v45, 0.0  ;;  %v6150_v3 = vpop.f32.mrf.mxu2 }
 0x7da   :  { %v6223_v27 = vpop.f32.mrf.mxu3 }
 0x7db   :  { %v6224_v31 = vadd.f32 %v6223_v27, %v6150_v3  ;;  %8679 = vmatmul.msk.f32.gmra.mxu1 %vm6446_vm6, %v6387_v40 }
 0x7dd   :  { %v6283_v19 = vadd.f32 %v6224_v31, %v15783_v34 }
 0x7df   :  { %v6339_v22 = vadd.f32 %v14534_v32, %v6283_v19 }
 0x7e1   :  { %v6389_v5 = vmax.f32 %v6339_v22, 0.0  ;;  %v6152_v46 = vpop.f32.mrf.mxu2 }
 0x7e2   :  { %v6225_v62 = vpop.f32.mrf.mxu3 }
 0x7e3   :  { %v6226_v60 = vadd.f32 %v6225_v62, %v6152_v46  ;;  %8680 = vmatmul.msk.f32.gmra.mxu1 %vm6446_vm6, %v6389_v5 }
 0x7e5   :  { %v6285_v30 = vadd.f32 %v6226_v60, %v15784_v4 }
 0x7e7   :  { %v6341_v11 = vadd.f32 %v14534_v32, %v6285_v30 }
 0x7e9   :  { %v6391_v44 = vmax.f32 %v6341_v11, 0.0  ;;  %v6155_v25 = vpop.f32.mrf.mxu2 }
 0x7ea   :  { %v6228_v52 = vpop.f32.mrf.mxu3 }
 0x7eb   :  { %v6229_v63 = vadd.f32 %v6228_v52, %v6155_v25  ;;  %8681 = vmatmul.msk.f32.gmra.mxu1 %vm6446_vm6, %v6391_v44 }
 0x7ed   :  { %v6287_v51 = vadd.f32 %v6229_v63, %v14365_v58  ;;  %v14620_v58 = vpop.f32.mrf.mxu0 }
 0x7ef   :  { %v6343_v50 = vadd.f32 %v14534_v32, %v6287_v51 }
 0x7f1   :  { %v6393_v61 = vmax.f32 %v6343_v50, 0.0  ;;  %v6157_v28 = vpop.f32.mrf.mxu2 }
 0x7f2   :  { %v6230_v24 = vpop.f32.mrf.mxu3 }
 0x7f3   :  { %v6231_v57 = vadd.f32 %v6230_v24, %v6157_v28  ;;  %8682 = vmatmul.msk.f32.gmra.mxu1 %vm6446_vm6, %v6393_v61 }
 0x7f5   :  { %v6289_v0 = vadd.f32 %v6231_v57, %v14376_v21  ;;  %v14626_v49 = vpop.f32.mrf.mxu0 }
 0x7f7   :  { %v6345_v38 = vadd.f32 %v14534_v32, %v6289_v0 }
 0x7f9   :  { %v6395_v43 = vmax.f32 %v6345_v38, 0.0  ;;  %v6160_v13 = vpop.f32.mrf.mxu2 }
 0x7fa   :  { %v6233_v1 = vpop.f32.mrf.mxu3 }
 0x7fb   :  { %v6234_v41 = vadd.f32 %v6233_v1, %v6160_v13  ;;  %8683 = vmatmul.msk.f32.gmra.mxu1 %vm6446_vm6, %v6395_v43 }
 0x7fd   :  { %v6291_v48 = vadd.f32 %v6234_v41, %v14392_v47  ;;  %v14632_v47 = vld [vmem:[%s14915_s4] ss:$0 sm:$0xff]  ;;  %v14638_v55 = vpop.f32.mrf.mxu0 }
 0x7fe   :  { %v6540_v6 = vadd.f32 %v14632_v47, %v6539_v56  ;;  %v6543_v56 = vadd.f32 %v14632_v47, %v6542_v9  ;;  %v6546_v9 = vadd.f32 %v14632_v47, %v6545_v8  ;;  %v6549_v1 = vadd.f32 %v14632_v47, %v14620_v58 }
 0x7ff   :  { %v6347_v33 = vadd.f32 %v14534_v32, %v6291_v48 }
 0x801   :  { %v6397_v15 = vmax.f32 %v6347_v33, 0.0  ;;  %v6162_v54 = vpop.f32.mrf.mxu2  ;;  %v14669_v33 = vld [vmem:[%s14916_s5] ss:$0 sm:$0xff] }
 0x802   :  { %v6235_v23 = vpop.f32.mrf.mxu3  ;;  %vm6710_vm9 = vcmp.ne.f32.partialorder %v14669_v33, 0.0 }
 0x803   :  { %v6236_v42 = vadd.f32 %v6235_v23, %v6162_v54  ;;  %8684 = vmatmul.msk.f32.gmra.mxu1 %vm6446_vm6, %v6397_v15 }
 0x805   :  { %v6293_v21 = vadd.f32 %v6236_v42, %v14403_v39  ;;  %v14649_v60 = vpop.f32.mrf.mxu0 }
 0x807   :  { %v6349_v20 = vadd.f32 %v14534_v32, %v6293_v21 }
 0x809   :  { %v6399_v12 = vmax.f32 %v6349_v20, 0.0  ;;  %v6165_v53 = vpop.f32.mrf.mxu2 }
 0x80a   :  { %v6238_v10 = vpop.f32.mrf.mxu3 }
 0x80b   :  { %v6239_v29 = vadd.f32 %v6238_v10, %v6165_v53  ;;  %8685 = vmatmul.msk.f32.gmra.mxu1 %vm6446_vm6, %v6399_v12 }
 0x80d   :  { %v6295_v36 = vadd.f32 %v6239_v29, %v14416_v17  ;;  %v14660_v43 = vpop.f32.mrf.mxu0 }
 0x80f   :  { %v6351_v39 = vadd.f32 %v14534_v32, %v6295_v36 }
 0x810   :  { %v6631_v14 = vpop.f32.mrf.mxu1 }
 0x811   :  { %v6401_v45 = vmax.f32 %v6351_v39, 0.0  ;;  %v14640_v40 = vadd.f32 %v6631_v14, %v6540_v6  ;;  %v6167_v3 = vpop.f32.mrf.mxu2 }
 0x812   :  { %v6240_v27 = vpop.f32.mrf.mxu3 }
 0x813   :  { %v8695_v31 = vmul.f32 -1.442695, %v14640_v40  ;;  %v6241_v34 = vadd.f32 %v6240_v27, %v6167_v3  ;;  %8686 = vmatmul.msk.f32.gmra.mxu1 %vm6446_vm6, %v6401_v45 }
 0x815   :  { %9095 = vpow2.f32 %v8695_v31  ;;  %v6297_v17 = vadd.f32 %v6241_v34, %v14430_v37  ;;  %v14678_v3 = vpop.f32.mrf.mxu0  ;;  %v6552_v31 = vadd.f32 %v14632_v47, %v14626_v49 }
 0x817   :  { %v6353_v19 = vadd.f32 %v14534_v32, %v6297_v17 }
 0x818   :  { %v6634_v22 = vpop.f32.mrf.mxu1 }
 0x819   :  { %v6403_v5 = vmax.f32 %v6353_v19, 0.0  ;;  %v14647_v46 = vadd.f32 %v6634_v22, %v6543_v56  ;;  %v6170_v62 = vpop.f32.mrf.mxu2 }
 0x81a   :  { %v6243_v4 = vpop.f32.mrf.mxu3 }
 0x81b   :  { %v9096_v30 = vpop.eup %9095  ;;  %v8696_v11 = vmul.f32 -1.442695, %v14647_v46  ;;  %v6244_v44 = vadd.f32 %v6243_v4, %v6170_v62  ;;  %8687 = vmatmul.msk.f32.gmra.mxu1 %vm6446_vm6, %v6403_v5 }
 0x81c   :  { %v6786_v25 = vadd.f32 1.0, %v9096_v30 }
 0x81d   :  { %9097 = vpow2.f32 %v8696_v11  ;;  %v6299_v37 = vadd.f32 %v6244_v44, %v14443_v35 }
 0x81e   :  { %9099 = vrcp.f32 %v6786_v25  ;;  %v6820_v15 = vand.u32 2147483647, %v6786_v25  ;;  %v6822_v54 = vand.u32 2147483648, %v6786_v25  ;;  %vm6816_vm8 = vweird.f32 %v6786_v25 }
 0x81f   :  { %v6355_v52 = vadd.f32 %v14534_v32, %v6299_v37 }
 0x820   :  { %v6637_v63 = vpop.f32.mrf.mxu1  ;;  %v6823_v6 = vor.u32 1.1754944e-38, %v6822_v54  ;;  %vm6821_vm11 = vcmp.eq.f32.partialorder %v6820_v15, 8.507059e+37 }
 0x821   :  { %v6405_v51 = vmax.f32 %v6355_v52, 0.0  ;;  %v14656_v50 = vadd.f32 %v6637_v63, %v6546_v9  ;;  %v6172_v61 = vpop.f32.mrf.mxu2 }
 0x822   :  { %v6245_v28 = vpop.f32.mrf.mxu3 }
 0x823   :  { %v9098_v24 = vpop.eup %9097  ;;  %v8697_v57 = vmul.f32 -1.442695, %v14656_v50  ;;  %v6246_v0 = vadd.f32 %v6245_v28, %v6172_v61  ;;  %8688 = vmatmul.msk.f32.gmra.mxu1 %vm6446_vm6, %v6405_v51 }
 0x824   :  { %v9100_v38 = vpop.eup %9099  ;;  %v6787_v35 = vadd.f32 1.0, %v9098_v24  ;;  %v6555_v24 = vadd.f32 %v14632_v47, %v14638_v55 }
 0x825   :  { %v6812_v13 = vmul.f32 %v9100_v38, %v6786_v25  ;;  %9101 = vpow2.f32 %v8697_v57  ;;  %v6301_v8 = vadd.f32 %v6246_v0, %v14454_v16  ;;  %vm6817_vm7 = vweird.f32 %v9100_v38 }
 0x826   :  { %9103 = vrcp.f32 %v6787_v35  ;;  %vm6818_vm10 = vmor %vm6816_vm8, %vm6817_vm7  ;;  %v6835_v19 = vand.u32 2147483647, %v6787_v35  ;;  %v6837_v22 = vand.u32 2147483648, %v6787_v35  ;;  %vm6831_vm13 = vweird.f32 %v6787_v35 }
 0x827   :  { %v6813_v41 = vsub.f32 1.0, %v6812_v13  ;;  %v6357_v48 = vadd.f32 %v14534_v32, %v6301_v8 }
 0x828   :  { %v6640_v23 = vpop.f32.mrf.mxu1  ;;  %v6838_v52 = vor.u32 1.1754944e-38, %v6837_v22  ;;  %vm6836_vm15 = vcmp.eq.f32.partialorder %v6835_v19, 8.507059e+37 }
 0x829   :  { %v6814_v42 = vmul.f32 %v9100_v38, %v6813_v41  ;;  %v6407_v21 = vmax.f32 %v6357_v48, 0.0  ;;  %v14671_v20 = vadd.f32 %v6640_v23, %v6549_v1  ;;  %v6175_v16 = vpop.f32.mrf.mxu2 }
 0x82a   :  { %v6248_v12 = vpop.f32.mrf.mxu3 }
 0x82b   :  { %v9102_v53 = vpop.eup %9101  ;;  %v6815_v58 = vadd.f32 %v9100_v38, %v6814_v42  ;;  %v8698_v10 = vmul.f32 -1.442695, %v14671_v20  ;;  %v6249_v29 = vadd.f32 %v6248_v12, %v6175_v16  ;;  %8689 = vmatmul.msk.f32.gmra.mxu1 %vm6446_vm6, %v6407_v21 }
 0x82c   :  { %v9104_v36 = vpop.eup %9103  ;;  %v14676_v39 = vadd.f32 1.0, %v9102_v53 }
 0x82d   :  { %v6819_v14 = vsel %vm6818_vm10, %v9100_v38, %v6815_v58  ;;  %v6827_v45 = vmul.f32 %v9104_v36, %v6787_v35  ;;  %9105 = vpow2.f32 %v8698_v10  ;;  %v6303_v56 = vadd.f32 %v6249_v29, %v14470_v7  ;;  %v14702_v35 = vpop.f32.mrf.mxu0 }
 0x82e   :  { %v6824_v27 = vsel %vm6821_vm11, %v6823_v6, %v6819_v14  ;;  %9107 = vrcp.f32 %v14676_v39  ;;  %vm6832_vm12 = vweird.f32 %v9104_v36  ;;  %v6850_v13 = vand.u32 2147483647, %v14676_v39 }
 0x82f   :  { %v7186_v34 = vsel %vm6710_vm9, %v6824_v27, %v14640_v40  ;;  %v6828_v17 = vsub.f32 1.0, %v6827_v45  ;;  %v6359_v4 = vadd.f32 %v14534_v32, %v6303_v56  ;;  %vm6833_vm14 = vmor %vm6831_vm13, %vm6832_vm12  ;;  %v6852_v8 = vand.u32 2147483648, %v14676_v39 }
 0x830   :  { %7211 = vst [vmem:[#allocation2] sm:$0xff] %v7186_v34  ;;  %v6643_v5 = vpop.f32.mrf.mxu1  ;;  %vm6846_vm1 = vweird.f32 %v14676_v39  ;;  %vm6851_vm3 = vcmp.eq.f32.partialorder %v6850_v13, 8.507059e+37 }
 0x831   :  { %v6829_v62 = vmul.f32 %v9104_v36, %v6828_v17  ;;  %v14688_v30 = vadd.f32 %v6643_v5, %v6552_v31  ;;  %v6177_v11 = vpop.f32.mrf.mxu2  ;;  %v6409_v37 = vmax.f32 %v6359_v4, 0.0  ;;  %v6853_v12 = vor.u32 1.1754944e-38, %v6852_v8 }
 0x832   :  { %v6250_v49 = vpop.f32.mrf.mxu3 }
 0x833   :  { %v9106_v44 = vpop.eup %9105  ;;  %v6830_v25 = vadd.f32 %v9104_v36, %v6829_v62  ;;  %v8699_v40 = vmul.f32 -1.442695, %v14688_v30  ;;  %v6251_v9 = vadd.f32 %v6250_v49, %v6177_v11  ;;  %8690 = vmatmul.msk.f32.gmra.mxu1 %vm6446_vm6, %v6409_v37 }
 0x834   :  { %v9108_v7 = vpop.eup %9107  ;;  %v14691_v63 = vadd.f32 1.0, %v9106_v44 }
 0x835   :  { %v6834_v51 = vsel %vm6833_vm14, %v9104_v36, %v6830_v25  ;;  %v6842_v61 = vmul.f32 %v9108_v7, %v14676_v39  ;;  %9109 = vpow2.f32 %v8699_v40  ;;  %v6305_v38 = vadd.f32 %v6251_v9, %v14481_v2  ;;  %v14727_v19 = vpop.f32.mrf.mxu0 }
 0x836   :  { %v6839_v28 = vsel %vm6836_vm15, %v6838_v52, %v6834_v51  ;;  %9111 = vrcp.f32 %v14691_v63  ;;  %vm6847_vm0 = vweird.f32 %v9108_v7  ;;  %v6558_v36 = vadd.f32 %v14632_v47, %v14649_v60 }
 0x837   :  { %v7187_v57 = vsel %vm6710_vm9, %v6839_v28, %v14647_v46  ;;  %v6843_v0 = vsub.f32 1.0, %v6842_v61  ;;  %v6361_v48 = vadd.f32 %v14534_v32, %v6305_v38  ;;  %vm6848_vm2 = vmor %vm6846_vm1, %vm6847_vm0  ;;  %v6865_v45 = vand.u32 2147483647, %v14691_v63 }
 0x838   :  { %7212 = vst [vmem:[#allocation2 + $0x8] sm:$0xff] %v7187_v57  ;;  %v6646_v1 = vpop.f32.mrf.mxu1  ;;  %v6867_v27 = vand.u32 2147483648, %v14691_v63  ;;  %vm6861_vm5 = vweird.f32 %v14691_v63  ;;  %v6561_v9 = vadd.f32 %v14632_v47, %v14660_v43 }
 0x839   :  { %v6844_v41 = vmul.f32 %v9108_v7, %v6843_v0  ;;  %v14707_v55 = vadd.f32 %v6646_v1, %v6555_v24  ;;  %v6180_v15 = vpop.f32.mrf.mxu2  ;;  %v6411_v23 = vmax.f32 %v6361_v48, 0.0  ;;  %vm6866_vm8 = vcmp.eq.f32.partialorder %v6865_v45, 8.507059e+37 }
 0x83a   :  { %v6253_v46 = vpop.f32.mrf.mxu3  ;;  %v6868_v49 = vor.u32 1.1754944e-38, %v6867_v27 }
 0x83b   :  { %v9110_v54 = vpop.eup %9109  ;;  %v6845_v2 = vadd.f32 %v9108_v7, %v6844_v41  ;;  %v8700_v42 = vmul.f32 -1.442695, %v14707_v55  ;;  %v6254_v21 = vadd.f32 %v6253_v46, %v6180_v15  ;;  %8691 = vmatmul.msk.f32.gmra.mxu1 %vm6446_vm6, %v6411_v23 }
 0x83c   :  { %v9112_v16 = vpop.eup %9111  ;;  %v14711_v53 = vadd.f32 1.0, %v9110_v54 }
 0x83d   :  { %v6849_v58 = vsel %vm6848_vm2, %v9108_v7, %v6845_v2  ;;  %v6857_v10 = vmul.f32 %v9112_v16, %v14691_v63  ;;  %9113 = vpow2.f32 %v8700_v42  ;;  %v6307_v14 = vadd.f32 %v6254_v21, %v14494_v26  ;;  %v14749_v48 = vpop.f32.mrf.mxu0 }
 0x83e   :  { %v6854_v29 = vsel %vm6851_vm3, %v6853_v12, %v6849_v58  ;;  %9115 = vrcp.f32 %v14711_v53  ;;  %vm6862_vm4 = vweird.f32 %v9112_v16  ;;  %v6880_v51 = vand.u32 2147483647, %v14711_v53 }
 0x83f   :  { %v7188_v6 = vsel %vm6710_vm9, %v6854_v29, %v14656_v50  ;;  %v6858_v39 = vsub.f32 1.0, %v6857_v10  ;;  %v6363_v17 = vadd.f32 %v14534_v32, %v6307_v14  ;;  %vm6863_vm7 = vmor %vm6861_vm5, %vm6862_vm4  ;;  %v6882_v61 = vand.u32 2147483648, %v14711_v53 }
 0x840   :  { %7213 = vst [vmem:[#allocation2 + $0x10] sm:$0xff] %v7188_v6  ;;  %v6649_v31 = vpop.f32.mrf.mxu1  ;;  %vm6876_vm11 = vweird.f32 %v14711_v53  ;;  %vm6881_vm13 = vcmp.eq.f32.partialorder %v6880_v51, 8.507059e+37  ;;  %v6564_v42 = vadd.f32 %v14632_v47, %v14678_v3  ;;  %v6570_v51 = vadd.f32 %v14632_v47, %v14727_v19 }
 0x841   :  { %v6859_v34 = vmul.f32 %v9112_v16, %v6858_v39  ;;  %v14725_v56 = vadd.f32 %v6649_v31, %v6558_v36  ;;  %v6182_v60 = vpop.f32.mrf.mxu2  ;;  %v6413_v5 = vmax.f32 %v6363_v17, 0.0  ;;  %v6883_v15 = vor.u32 1.1754944e-38, %v6882_v61 }
 0x842   :  { %v6255_v50 = vpop.f32.mrf.mxu3 }
 0x843   :  { %v9114_v22 = vpop.eup %9113  ;;  %v6860_v26 = vadd.f32 %v9112_v16, %v6859_v34  ;;  %v8701_v62 = vmul.f32 -1.442695, %v14725_v56  ;;  %v6256_v4 = vadd.f32 %v6255_v50, %v6182_v60  ;;  %8692 = vmatmul.msk.f32.gmra.mxu1 %vm6446_vm6, %v6413_v5 }
 0x844   :  { %v9116_v11 = vpop.eup %9115  ;;  %v14731_v44 = vadd.f32 1.0, %v9114_v22  ;;  %v6567_v22 = vadd.f32 %v14632_v47, %v14702_v35 }
 0x845   :  { %v6864_v25 = vsel %vm6863_vm7, %v9112_v16, %v6860_v26  ;;  %v6872_v37 = vmul.f32 %v9116_v11, %v14711_v53  ;;  %9117 = vpow2.f32 %v8701_v62  ;;  %v6309_v63 = vadd.f32 %v6256_v4, %v14505_v59 }
 0x846   :  { %v6869_v40 = vsel %vm6866_vm8, %v6868_v49, %v6864_v25  ;;  %9119 = vrcp.f32 %v14731_v44  ;;  %vm6877_vm10 = vweird.f32 %v9116_v11  ;;  %v6895_v53 = vand.u32 2147483647, %v14731_v44 }
 0x847   :  { %v7189_v7 = vsel %vm6710_vm9, %v6869_v40, %v14671_v20  ;;  %v6873_v52 = vsub.f32 1.0, %v6872_v37  ;;  %v6365_v57 = vadd.f32 %v14534_v32, %v6309_v63  ;;  %vm6878_vm12 = vmor %vm6876_vm11, %vm6877_vm10  ;;  %v6897_v58 = vand.u32 2147483648, %v14731_v44 }
 0x848   :  { %7214 = vst [vmem:[#allocation2 + $0x18] sm:$0xff] %v7189_v7  ;;  %v6652_v28 = vpop.f32.mrf.mxu1  ;;  %vm6891_vm15 = vweird.f32 %v14731_v44  ;;  %vm6896_vm1 = vcmp.eq.f32.partialorder %v6895_v53, 8.507059e+37 }
 0x849   :  { %v6874_v24 = vmul.f32 %v9116_v11, %v6873_v52  ;;  %v14745_v0 = vadd.f32 %v6652_v28, %v6561_v9  ;;  %v6185_v43 = vpop.f32.mrf.mxu2  ;;  %v6415_v8 = vmax.f32 %v6365_v57, 0.0  ;;  %v6898_v31 = vor.u32 1.1754944e-38, %v6897_v58 }
 0x84a   :  { %v6258_v38 = vpop.f32.mrf.mxu3 }
 0x84b   :  { %v9118_v20 = vpop.eup %9117  ;;  %v6875_v13 = vadd.f32 %v9116_v11, %v6874_v24  ;;  %v8702_v59 = vmul.f32 -1.442695, %v14745_v0  ;;  %v6259_v1 = vadd.f32 %v6258_v38, %v6185_v43  ;;  %8693 = vmatmul.msk.f32.gmra.mxu1 %vm6446_vm6, %v6415_v8 }
 0x84c   :  { %v9120_v41 = vpop.eup %9119  ;;  %v6792_v46 = vadd.f32 1.0, %v9118_v20 }
 0x84d   :  { %v6879_v54 = vsel %vm6878_vm12, %v9116_v11, %v6875_v13  ;;  %v6887_v2 = vmul.f32 %v9120_v41, %v14731_v44  ;;  %9121 = vpow2.f32 %v8702_v59  ;;  %v6311_v12 = vadd.f32 %v6259_v1, %v14518_v18 }
 0x84e   :  { %v6884_v23 = vsel %vm6881_vm13, %v6883_v15, %v6879_v54  ;;  %9123 = vrcp.f32 %v6792_v46  ;;  %vm6892_vm14 = vweird.f32 %v9120_v41  ;;  %v6912_v62 = vand.u32 2147483648, %v6792_v46 }
 0x84f   :  { %v7190_v21 = vsel %vm6710_vm9, %v6884_v23, %v14688_v30  ;;  %v6888_v16 = vsub.f32 1.0, %v6887_v2  ;;  %v6367_v36 = vadd.f32 %v14534_v32, %v6311_v12  ;;  %vm6893_vm0 = vmor %vm6891_vm15, %vm6892_vm14  ;;  %v14767_v32 = vpop.f32.mrf.mxu0  ;;  %v6910_v49 = vand.u32 2147483647, %v6792_v46 }
 0x850   :  { %7215 = vst [vmem:[#allocation2 + $0x20] sm:$0xff] %v7190_v21  ;;  %v6655_v10 = vpop.f32.mrf.mxu1  ;;  %v6913_v35 = vor.u32 1.1754944e-38, %v6912_v62  ;;  %v6573_v2 = vadd.f32 %v14632_v47, %v14749_v48 }
 0x851   :  { %v6889_v29 = vmul.f32 %v9120_v41, %v6888_v16  ;;  %v14762_v6 = vadd.f32 %v6655_v10, %v6564_v42  ;;  %v6187_v3 = vpop.f32.mrf.mxu2  ;;  %v6417_v30 = vmax.f32 %v6367_v36, 0.0  ;;  %vm6911_vm4 = vcmp.eq.f32.partialorder %v6910_v49, 8.507059e+37 }
 0x852   :  { %v6260_v39 = vpop.f32.mrf.mxu3 }
 0x853   :  { %v9122_v14 = vpop.eup %9121  ;;  %v6890_v45 = vadd.f32 %v9120_v41, %v6889_v29  ;;  %v8703_v18 = vmul.f32 -1.442695, %v14762_v6  ;;  %8694 = vmatmul.msk.f32.gmra.mxu1 %vm6446_vm6, %v6417_v30  ;;  %vm6906_vm6 = vweird.f32 %v6792_v46 }
 0x854   :  { %v9124_v27 = vpop.eup %9123  ;;  %v6793_v34 = vadd.f32 1.0, %v9122_v14 }
 0x855   :  { %v6894_v17 = vsel %vm6893_vm0, %v9120_v41, %v6890_v45  ;;  %v6902_v60 = vmul.f32 %v9124_v27, %v6792_v46  ;;  %9125 = vpow2.f32 %v8703_v18  ;;  %vm6907_vm2 = vweird.f32 %v9124_v27 }
 0x856   :  { %v6899_v50 = vsel %vm6896_vm1, %v6898_v31, %v6894_v17  ;;  %9127 = vrcp.f32 %v6793_v34  ;;  %vm6908_vm3 = vmor %vm6906_vm6, %vm6907_vm2  ;;  %v6927_v57 = vand.u32 2147483648, %v6793_v34  ;;  %v6925_v20 = vand.u32 2147483647, %v6793_v34 }
 0x857   :  { %v7191_v26 = vsel %vm6710_vm9, %v6899_v50, %v14707_v55  ;;  %v6903_v5 = vsub.f32 1.0, %v6902_v60  ;;  %v14782_v24 = vpop.f32.mrf.mxu0  ;;  %vm6921_vm7 = vweird.f32 %v6793_v34  ;;  %v6576_v18 = vadd.f32 %v14632_v47, %v14767_v32 }
 0x858   :  { %7216 = vst [vmem:[#allocation2 + $0x28] sm:$0xff] %v7191_v26  ;;  %v6658_v4 = vpop.f32.mrf.mxu1  ;;  %v6928_v41 = vor.u32 1.1754944e-38, %v6927_v57  ;;  %vm6926_vm10 = vcmp.eq.f32.partialorder %v6925_v20, 8.507059e+37 }
 0x859   :  { %v6904_v11 = vmul.f32 %v9124_v27, %v6903_v5  ;;  %v14774_v44 = vadd.f32 %v6658_v4, %v6567_v22 }
 0x85b   :  { %v9126_v25 = vpop.eup %9125  ;;  %v6905_v37 = vadd.f32 %v9124_v27, %v6904_v11  ;;  %v8704_v40 = vmul.f32 -1.442695, %v14774_v44 }
 0x85c   :  { %v9128_v9 = vpop.eup %9127  ;;  %v6794_v7 = vadd.f32 1.0, %v9126_v25 }
 0x85d   :  { %v6909_v52 = vsel %vm6908_vm3, %v9124_v27, %v6905_v37  ;;  %v6917_v55 = vmul.f32 %v9128_v9, %v6793_v34  ;;  %9129 = vpow2.f32 %v8704_v40  ;;  %vm6922_vm5 = vweird.f32 %v9128_v9 }
 0x85e   :  { %v6914_v63 = vsel %vm6911_vm4, %v6913_v35, %v6909_v52  ;;  %9131 = vrcp.f32 %v6794_v7  ;;  %vm6923_vm8 = vmor %vm6921_vm7, %vm6922_vm5  ;;  %v6942_v21 = vand.u32 2147483648, %v6794_v7  ;;  %v6940_v53 = vand.u32 2147483647, %v6794_v7 }
 0x85f   :  { %v7192_v61 = vsel %vm6710_vm9, %v6914_v63, %v14725_v56  ;;  %v6918_v28 = vsub.f32 1.0, %v6917_v55  ;;  %v14794_v10 = vpop.f32.mrf.mxu0  ;;  %vm6936_vm12 = vweird.f32 %v6794_v7  ;;  %v6579_v40 = vadd.f32 %v14632_v47, %v14782_v24 }
 0x860   :  { %7217 = vst [vmem:[#allocation2 + $0x30] sm:$0xff] %v7192_v61  ;;  %v6661_v43 = vpop.f32.mrf.mxu1  ;;  %v6943_v39 = vor.u32 1.1754944e-38, %v6942_v21  ;;  %vm6941_vm14 = vcmp.eq.f32.partialorder %v6940_v53, 8.507059e+37 }
 0x861   :  { %v6919_v38 = vmul.f32 %v9128_v9, %v6918_v28  ;;  %v14784_v13 = vadd.f32 %v6661_v43, %v6570_v51 }
 0x863   :  { %v9130_v8 = vpop.eup %9129  ;;  %v6920_v59 = vadd.f32 %v9128_v9, %v6919_v38  ;;  %v8705_v19 = vmul.f32 -1.442695, %v14784_v13 }
 0x864   :  { %v9132_v1 = vpop.eup %9131  ;;  %v6795_v56 = vadd.f32 1.0, %v9130_v8 }
 0x865   :  { %v6924_v15 = vsel %vm6923_vm8, %v9128_v9, %v6920_v59  ;;  %v6932_v46 = vmul.f32 %v9132_v1, %v6794_v7  ;;  %9133 = vpow2.f32 %v8705_v19  ;;  %vm6937_vm11 = vweird.f32 %v9132_v1 }
 0x866   :  { %v6929_v54 = vsel %vm6926_vm10, %v6928_v41, %v6924_v15  ;;  %9135 = vrcp.f32 %v6795_v56  ;;  %vm6938_vm13 = vmor %vm6936_vm12, %vm6937_vm11  ;;  %v6957_v34 = vand.u32 2147483648, %v6795_v56  ;;  %v6955_v50 = vand.u32 2147483647, %v6795_v56 }
 0x867   :  { %v7193_v23 = vsel %vm6710_vm9, %v6929_v54, %v14745_v0  ;;  %v6933_v42 = vsub.f32 1.0, %v6932_v46  ;;  %vm6951_vm0 = vweird.f32 %v6795_v56  ;;  %v6584_v32 = vpop.f32.mrf.mxu0  ;;  %v6582_v19 = vadd.f32 %v14632_v47, %v14794_v10 }
 0x868   :  { %7218 = vst [vmem:[#allocation2 + $0x38] sm:$0xff] %v7193_v23  ;;  %v6664_v16 = vpop.f32.mrf.mxu1  ;;  %v6958_v11 = vor.u32 1.1754944e-38, %v6957_v34  ;;  %vm6956_vm2 = vcmp.eq.f32.partialorder %v6955_v50, 8.507059e+37 }
 0x869   :  { %v6934_v12 = vmul.f32 %v9132_v1, %v6933_v42  ;;  %v14792_v58 = vadd.f32 %v6664_v16, %v6573_v2 }
 0x86b   :  { %v9134_v29 = vpop.eup %9133  ;;  %v6935_v36 = vadd.f32 %v9132_v1, %v6934_v12  ;;  %v8706_v48 = vmul.f32 -1.442695, %v14792_v58 }
 0x86c   :  { %v9136_v3 = vpop.eup %9135  ;;  %v6796_v0 = vadd.f32 1.0, %v9134_v29 }
 0x86d   :  { %v6939_v14 = vsel %vm6938_vm13, %v9132_v1, %v6935_v36  ;;  %v6947_v45 = vmul.f32 %v9136_v3, %v6795_v56  ;;  %9137 = vpow2.f32 %v8706_v48  ;;  %vm6952_vm15 = vweird.f32 %v9136_v3 }
 0x86e   :  { %v6944_v30 = vsel %vm6941_vm14, %v6943_v39, %v6939_v14  ;;  %9139 = vrcp.f32 %v6796_v0  ;;  %vm6953_vm1 = vmor %vm6951_vm0, %vm6952_vm15  ;;  %v6972_v7 = vand.u32 2147483648, %v6796_v0  ;;  %v6970_v63 = vand.u32 2147483647, %v6796_v0 }
 0x86f   :  { %v7194_v27 = vsel %vm6710_vm9, %v6944_v30, %v14762_v6  ;;  %v6948_v31 = vsub.f32 1.0, %v6947_v45  ;;  %vm6966_vm3 = vweird.f32 %v6796_v0  ;;  %v6587_v8 = vpop.f32.mrf.mxu0  ;;  %v6585_v36 = vadd.f32 %v14632_v47, %v6584_v32 }
 0x870   :  { %7219 = vst [vmem:[#allocation2 + $0x40] sm:$0xff] %v7194_v27  ;;  %v6667_v17 = vpop.f32.mrf.mxu1  ;;  %v6973_v24 = vor.u32 1.1754944e-38, %v6972_v7  ;;  %vm6971_vm5 = vcmp.eq.f32.partialorder %v6970_v63, 8.507059e+37 }
 0x871   :  { %v6949_v60 = vmul.f32 %v9136_v3, %v6948_v31  ;;  %v14802_v22 = vadd.f32 %v6667_v17, %v6576_v18 }
 0x873   :  { %v9138_v26 = vpop.eup %9137  ;;  %v6950_v5 = vadd.f32 %v9136_v3, %v6949_v60  ;;  %v8707_v62 = vmul.f32 -1.442695, %v14802_v22 }
 0x874   :  { %v9140_v4 = vpop.eup %9139  ;;  %v6797_v49 = vadd.f32 1.0, %v9138_v26 }
 0x875   :  { %v6954_v6 = vsel %vm6953_vm1, %v9136_v3, %v6950_v5  ;;  %v6962_v25 = vmul.f32 %v9140_v4, %v6796_v0  ;;  %9141 = vpow2.f32 %v8707_v62  ;;  %vm6967_vm6 = vweird.f32 %v9140_v4 }
 0x876   :  { %v6959_v37 = vsel %vm6956_vm2, %v6958_v11, %v6954_v6  ;;  %9143 = vrcp.f32 %v6797_v49  ;;  %vm6968_vm4 = vmor %vm6966_vm3, %vm6967_vm6  ;;  %v6987_v56 = vand.u32 2147483648, %v6797_v49  ;;  %v6985_v54 = vand.u32 2147483647, %v6797_v49 }
 0x877   :  { %v7195_v9 = vsel %vm6710_vm9, %v6959_v37, %v14774_v44  ;;  %v6963_v35 = vsub.f32 1.0, %v6962_v25  ;;  %vm6981_vm8 = vweird.f32 %v6797_v49  ;;  %v6590_v39 = vpop.f32.mrf.mxu0  ;;  %v6588_v62 = vadd.f32 %v14632_v47, %v6587_v8 }
 0x878   :  { %7220 = vst [vmem:[#allocation2 + $0x48] sm:$0xff] %v7195_v9  ;;  %v6670_v52 = vpop.f32.mrf.mxu1  ;;  %v6988_v12 = vor.u32 1.1754944e-38, %v6987_v56  ;;  %vm6986_vm11 = vcmp.eq.f32.partialorder %v6985_v54, 8.507059e+37 }
 0x879   :  { %v6964_v55 = vmul.f32 %v9140_v4, %v6963_v35  ;;  %v14810_v51 = vadd.f32 %v6670_v52, %v6579_v40 }
 0x87b   :  { %v9142_v61 = vpop.eup %9141  ;;  %v6965_v28 = vadd.f32 %v9140_v4, %v6964_v55  ;;  %v8708_v57 = vmul.f32 -1.442695, %v14810_v51 }
 0x87c   :  { %v9144_v43 = vpop.eup %9143  ;;  %v6798_v38 = vadd.f32 1.0, %v9142_v61 }
 0x87d   :  { %v6969_v20 = vsel %vm6968_vm4, %v9140_v4, %v6965_v28  ;;  %v6977_v44 = vmul.f32 %v9144_v43, %v6797_v49  ;;  %9145 = vpow2.f32 %v8708_v57  ;;  %vm6982_vm7 = vweird.f32 %v9144_v43 }
 0x87e   :  { %v6974_v59 = vsel %vm6971_vm5, %v6973_v24, %v6969_v20  ;;  %9147 = vrcp.f32 %v6798_v38  ;;  %vm6983_vm10 = vmor %vm6981_vm8, %vm6982_vm7  ;;  %v7002_v0 = vand.u32 2147483648, %v6798_v38  ;;  %v7000_v30 = vand.u32 2147483647, %v6798_v38 }
 0x87f   :  { %v7196_v1 = vsel %vm6710_vm9, %v6974_v59, %v14784_v13  ;;  %v6978_v41 = vsub.f32 1.0, %v6977_v44  ;;  %vm6996_vm13 = vweird.f32 %v6798_v38  ;;  %v6593_v40 = vpop.f32.mrf.mxu0  ;;  %v6591_v57 = vadd.f32 %v14632_v47, %v6590_v39 }
 0x880   :  { %7221 = vst [vmem:[#allocation2 + $0x50] sm:$0xff] %v7196_v1  ;;  %v6673_v15 = vpop.f32.mrf.mxu1  ;;  %v7003_v60 = vor.u32 1.1754944e-38, %v7002_v0  ;;  %vm7001_vm15 = vcmp.eq.f32.partialorder %v7000_v30, 8.507059e+37 }
 0x881   :  { %v6979_v46 = vmul.f32 %v9144_v43, %v6978_v41  ;;  %v14818_v2 = vadd.f32 %v6673_v15, %v6582_v19 }
 0x883   :  { %v9146_v23 = vpop.eup %9145  ;;  %v6980_v42 = vadd.f32 %v9144_v43, %v6979_v46  ;;  %v8709_v21 = vmul.f32 -1.442695, %v14818_v2 }
 0x884   :  { %v9148_v16 = vpop.eup %9147  ;;  %v6799_v53 = vadd.f32 1.0, %v9146_v23 }
 0x885   :  { %v6984_v10 = vsel %vm6983_vm10, %v9144_v43, %v6980_v42  ;;  %v6992_v13 = vmul.f32 %v9148_v16, %v6798_v38  ;;  %9149 = vpow2.f32 %v8709_v21  ;;  %vm6997_vm12 = vweird.f32 %v9148_v16 }
 0x886   :  { %v6989_v29 = vsel %vm6986_vm11, %v6988_v12, %v6984_v10  ;;  %9151 = vrcp.f32 %v6799_v53  ;;  %vm6998_vm14 = vmor %vm6996_vm13, %vm6997_vm12  ;;  %v7017_v11 = vand.u32 2147483648, %v6799_v53  ;;  %v7015_v25 = vand.u32 2147483647, %v6799_v53 }
 0x887   :  { %v7197_v48 = vsel %vm6710_vm9, %v6989_v29, %v14792_v58  ;;  %v6993_v3 = vsub.f32 1.0, %v6992_v13  ;;  %vm7011_vm1 = vweird.f32 %v6799_v53  ;;  %v6596_v15 = vpop.f32.mrf.mxu0  ;;  %v6594_v21 = vadd.f32 %v14632_v47, %v6593_v40 }
 0x888   :  { %7222 = vst [vmem:[#allocation2 + $0x58] sm:$0xff] %v7197_v48  ;;  %v6676_v14 = vpop.f32.mrf.mxu1  ;;  %v7018_v55 = vor.u32 1.1754944e-38, %v7017_v11  ;;  %vm7016_vm6 = vcmp.eq.f32.partialorder %v7015_v25, 8.507059e+37 }
 0x889   :  { %v6994_v45 = vmul.f32 %v9148_v16, %v6993_v3  ;;  %v14825_v18 = vadd.f32 %v6676_v14, %v6585_v36 }
 0x88b   :  { %v9150_v27 = vpop.eup %9149  ;;  %v6995_v31 = vadd.f32 %v9148_v16, %v6994_v45  ;;  %v8710_v34 = vmul.f32 -1.442695, %v14825_v18 }
 0x88c   :  { %v9152_v17 = vpop.eup %9151  ;;  %v6800_v50 = vadd.f32 1.0, %v9150_v27 }
 0x88d   :  { %v6999_v58 = vsel %vm6998_vm14, %v9148_v16, %v6995_v31  ;;  %v7007_v26 = vmul.f32 %v9152_v17, %v6799_v53  ;;  %9153 = vpow2.f32 %v8710_v34  ;;  %vm7012_vm0 = vweird.f32 %v9152_v17 }
 0x88e   :  { %v7004_v5 = vsel %vm7001_vm15, %v7003_v60, %v6999_v58  ;;  %9155 = vrcp.f32 %v6800_v50  ;;  %vm7013_vm2 = vmor %vm7011_vm1, %vm7012_vm0  ;;  %v7032_v38 = vand.u32 2147483648, %v6800_v50  ;;  %v7030_v8 = vand.u32 2147483647, %v6800_v50 }
 0x88f   :  { %v7198_v4 = vsel %vm6710_vm9, %v7004_v5, %v14802_v22  ;;  %v7008_v32 = vsub.f32 1.0, %v7007_v26  ;;  %vm7026_vm4 = vweird.f32 %v6800_v50  ;;  %v6599_v27 = vpop.f32.mrf.mxu0  ;;  %v6597_v34 = vadd.f32 %v14632_v47, %v6596_v15 }
 0x890   :  { %7223 = vst [vmem:[#allocation2 + $0x60] sm:$0xff] %v7198_v4  ;;  %v6679_v49 = vpop.f32.mrf.mxu1  ;;  %v7033_v46 = vor.u32 1.1754944e-38, %v7032_v38  ;;  %vm7031_vm7 = vcmp.eq.f32.partialorder %v7030_v8, 8.507059e+37 }
 0x891   :  { %v7009_v6 = vmul.f32 %v9152_v17, %v7008_v32  ;;  %v14832_v37 = vadd.f32 %v6679_v49, %v6588_v62 }
 0x893   :  { %v9154_v9 = vpop.eup %9153  ;;  %v7010_v35 = vadd.f32 %v9152_v17, %v7009_v6  ;;  %v8711_v7 = vmul.f32 -1.442695, %v14832_v37 }
 0x894   :  { %v9156_v52 = vpop.eup %9155  ;;  %v6801_v63 = vadd.f32 1.0, %v9154_v9 }
 0x895   :  { %v7014_v22 = vsel %vm7013_vm2, %v9152_v17, %v7010_v35  ;;  %v7022_v61 = vmul.f32 %v9156_v52, %v6800_v50  ;;  %9157 = vpow2.f32 %v8711_v7  ;;  %vm7027_vm3 = vweird.f32 %v9156_v52 }
 0x896   :  { %v7019_v28 = vsel %vm7016_vm6, %v7018_v55, %v7014_v22  ;;  %9159 = vrcp.f32 %v6801_v63  ;;  %vm7028_vm5 = vmor %vm7026_vm4, %vm7027_vm3  ;;  %v7047_v53 = vand.u32 2147483648, %v6801_v63  ;;  %v7045_v29 = vand.u32 2147483647, %v6801_v63  ;;  %v14862_v55 = vld [vmem:[%s14915_s4] ss:$0 sm:$0xff]  ;;  %s9222_s4 = smov [#allocation2]  }
 0x897   :  { %v7199_v43 = vsel %vm6710_vm9, %v7019_v28, %v14810_v51  ;;  %v7023_v24 = vsub.f32 1.0, %v7022_v61  ;;  %vm7041_vm10 = vweird.f32 %v6801_v63  ;;  %v6602_v7 = vpop.f32.mrf.mxu0  ;;  %s7240_s30 = sshll.u32 %s9222_s4, 4  ;;  %s7241_s30 = int_to_ptr.vmem [resolvable:$true] %s7240_s30 }
 0x898   :  { %7224 = vst [vmem:[#allocation2 + $0x68] sm:$0xff] %v7199_v43  ;;  %v6682_v20 = vpop.f32.mrf.mxu1  ;;  %v7048_v14 = vor.u32 1.1754944e-38, %v7047_v53  ;;  %vm7046_vm12 = vcmp.eq.f32.partialorder %v7045_v29, 8.507059e+37 }
 0x899   :  { %v7024_v44 = vmul.f32 %v9156_v52, %v7023_v24  ;;  %v14839_v59 = vadd.f32 %v6682_v20, %v6591_v57 }
 0x89b   :  { %v9158_v19 = vpop.eup %9157  ;;  %v7025_v1 = vadd.f32 %v9156_v52, %v7024_v44  ;;  %v8712_v41 = vmul.f32 -1.442695, %v14839_v59 }
 0x89c   :  { %v9160_v56 = vpop.eup %9159  ;;  %v6802_v54 = vadd.f32 1.0, %v9158_v19 }
 0x89d   :  { %v7029_v51 = vsel %vm7028_vm5, %v9156_v52, %v7025_v1  ;;  %v7037_v23 = vmul.f32 %v9160_v56, %v6801_v63  ;;  %9161 = vpow2.f32 %v8712_v41  ;;  %vm7042_vm8 = vweird.f32 %v9160_v56 }
 0x89e   :  { %v7034_v42 = vsel %vm7031_vm7, %v7033_v46, %v7029_v51  ;;  %9163 = vrcp.f32 %v6802_v54  ;;  %vm7043_vm11 = vmor %vm7041_vm10, %vm7042_vm8  ;;  %v7062_v50 = vand.u32 2147483648, %v6802_v54  ;;  %v7060_v5 = vand.u32 2147483647, %v6802_v54 }
 0x89f   :  { %v7200_v16 = vsel %vm6710_vm9, %v7034_v42, %v14818_v2  ;;  %v7038_v12 = vsub.f32 1.0, %v7037_v23  ;;  %vm7056_vm14 = vweird.f32 %v6802_v54  ;;  %v6600_v63 = vadd.f32 %v14862_v55, %v6599_v27  ;;  %v6605_v23 = vpop.f32.mrf.mxu0 }
 0x8a0   :  { %7225 = vst [vmem:[#allocation2 + $0x70] sm:$0xff] %v7200_v16  ;;  %v6685_v10 = vpop.f32.mrf.mxu1  ;;  %v7063_v47 = vor.u32 1.1754944e-38, %v7062_v50  ;;  %vm7061_vm0 = vcmp.eq.f32.partialorder %v7060_v5, 8.507059e+37  ;;  %v6603_v46 = vadd.f32 %v14862_v55, %v6602_v7 }
 0x8a1   :  { %v7039_v13 = vmul.f32 %v9160_v56, %v7038_v12  ;;  %v14846_v36 = vadd.f32 %v6685_v10, %v6594_v21 }
 0x8a3   :  { %v9162_v48 = vpop.eup %9161  ;;  %v7040_v3 = vadd.f32 %v9160_v56, %v7039_v13  ;;  %v8713_v39 = vmul.f32 -1.442695, %v14846_v36 }
 0x8a4   :  { %v9164_v0 = vpop.eup %9163  ;;  %v6803_v45 = vadd.f32 1.0, %v9162_v48 }
 0x8a5   :  { %v7044_v30 = vsel %vm7043_vm11, %v9160_v56, %v7040_v3  ;;  %v7052_v2 = vmul.f32 %v9164_v0, %v6802_v54  ;;  %9165 = vpow2.f32 %v8713_v39  ;;  %vm7057_vm13 = vweird.f32 %v9164_v0 }
 0x8a6   :  { %v7049_v31 = vsel %vm7046_vm12, %v7048_v14, %v7044_v30  ;;  %9167 = vrcp.f32 %v6803_v45  ;;  %vm7058_vm15 = vmor %vm7056_vm14, %vm7057_vm13  ;;  %v7077_v52 = vand.u32 2147483648, %v6803_v45  ;;  %v7075_v61 = vand.u32 2147483647, %v6803_v45 }
 0x8a7   :  { %v7201_v17 = vsel %vm6710_vm9, %v7049_v31, %v14825_v18  ;;  %v7053_v60 = vsub.f32 1.0, %v7052_v2  ;;  %vm7071_vm2 = vweird.f32 %v6803_v45 }
 0x8a8   :  { %7226 = vst [vmem:[#allocation2 + $0x78] sm:$0xff] %v7201_v17  ;;  %v6688_v58 = vpop.f32.mrf.mxu1  ;;  %v7078_v38 = vor.u32 1.1754944e-38, %v7077_v52  ;;  %vm7076_vm3 = vcmp.eq.f32.partialorder %v7075_v61, 8.507059e+37  ;;  %v6608_v17 = vpop.f32.mrf.mxu0 }
 0x8a9   :  { %v7054_v26 = vmul.f32 %v9164_v0, %v7053_v60  ;;  %v14853_v62 = vadd.f32 %v6688_v58, %v6597_v34 }
 0x8ab   :  { %v9166_v4 = vpop.eup %9165  ;;  %v7055_v32 = vadd.f32 %v9164_v0, %v7054_v26  ;;  %v8714_v11 = vmul.f32 -1.442695, %v14853_v62 }
 0x8ac   :  { %v9168_v49 = vpop.eup %9167  ;;  %v6804_v6 = vadd.f32 1.0, %v9166_v4 }
 0x8ad   :  { %v7059_v25 = vsel %vm7058_vm15, %v9164_v0, %v7055_v32  ;;  %v7067_v18 = vmul.f32 %v9168_v49, %v6803_v45  ;;  %9169 = vpow2.f32 %v8714_v11  ;;  %vm7072_vm1 = vweird.f32 %v9168_v49 }
 0x8ae   :  { %v7064_v40 = vsel %vm7061_vm0, %v7063_v47, %v7059_v25  ;;  %9171 = vrcp.f32 %v6804_v6  ;;  %vm7073_vm6 = vmor %vm7071_vm2, %vm7072_vm1  ;;  %v7092_v15 = vand.u32 2147483648, %v6804_v6  ;;  %v7090_v51 = vand.u32 2147483647, %v6804_v6 }
 0x8af   :  { %v7202_v9 = vsel %vm6710_vm9, %v7064_v40, %v14832_v37  ;;  %v7068_v35 = vsub.f32 1.0, %v7067_v18  ;;  %vm7086_vm5 = vweird.f32 %v6804_v6  ;;  %v6606_v45 = vadd.f32 %v14862_v55, %v6605_v23 }
 0x8b0   :  { %7227 = vst [vmem:[#allocation2 + $0x80] sm:$0xff] %v7202_v9  ;;  %v6691_v28 = vpop.f32.mrf.mxu1  ;;  %v7093_v53 = vor.u32 1.1754944e-38, %v7092_v15  ;;  %vm7091_vm8 = vcmp.eq.f32.partialorder %v7090_v51, 8.507059e+37 }
 0x8b1   :  { %v7069_v22 = vmul.f32 %v9168_v49, %v7068_v35  ;;  %v14865_v24 = vadd.f32 %v6691_v28, %v6600_v63  ;;  %v6611_v63 = vpop.f32.mrf.mxu0 }
 0x8b3   :  { %v9170_v57 = vpop.eup %9169  ;;  %v7070_v43 = vadd.f32 %v9168_v49, %v7069_v22  ;;  %v8715_v19 = vmul.f32 -1.442695, %v14865_v24 }
 0x8b4   :  { %v9172_v37 = vpop.eup %9171  ;;  %v6805_v20 = vadd.f32 1.0, %v9170_v57 }
 0x8b5   :  { %v7074_v44 = vsel %vm7073_vm6, %v9168_v49, %v7070_v43  ;;  %v7082_v8 = vmul.f32 %v9172_v37, %v6804_v6  ;;  %vm7087_vm4 = vweird.f32 %v9172_v37  ;;  %v6609_v49 = vadd.f32 %v14862_v55, %v6608_v17 }
 0x8b6   :  { %v7079_v1 = vsel %vm7076_vm3, %v7078_v38, %v7074_v44  ;;  %9173 = vrcp.f32 %v6805_v20  ;;  %vm7088_vm7 = vmor %vm7086_vm5, %vm7087_vm4  ;;  %v7107_v14 = vand.u32 2147483648, %v6805_v20  ;;  %v7105_v2 = vand.u32 2147483647, %v6805_v20 }
 0x8b7   :  { %v7203_v41 = vsel %vm6710_vm9, %v7079_v1, %v14839_v59  ;;  %v7083_v56 = vsub.f32 1.0, %v7082_v8  ;;  %9175 = vpow2.f32 %v8715_v19  ;;  %vm7101_vm11 = vweird.f32 %v6805_v20 }
 0x8b8   :  { %7228 = vst [vmem:[#allocation2 + $0x88] sm:$0xff] %v7203_v41  ;;  %v6694_v42 = vpop.f32.mrf.mxu1  ;;  %v7108_v60 = vor.u32 1.1754944e-38, %v7107_v14  ;;  %vm7106_vm13 = vcmp.eq.f32.partialorder %v7105_v2, 8.507059e+37 }
 0x8b9   :  { %v7084_v54 = vmul.f32 %v9172_v37, %v7083_v56  ;;  %v14872_v16 = vadd.f32 %v6694_v42, %v6603_v46 }
 0x8bb   :  { %v7085_v21 = vadd.f32 %v9172_v37, %v7084_v54  ;;  %v8716_v29 = vmul.f32 -1.442695, %v14872_v16 }
 0x8bc   :  { %v9174_v12 = vpop.eup %9173 }
 0x8bd   :  { %v9176_v10 = vpop.eup %9175  ;;  %v7089_v59 = vsel %vm7088_vm7, %v9172_v37, %v7085_v21  ;;  %v7097_v13 = vmul.f32 %v9174_v12, %v6805_v20  ;;  %9177 = vpow2.f32 %v8716_v29  ;;  %vm7102_vm10 = vweird.f32 %v9174_v12 }
 0x8be   :  { %v7094_v48 = vsel %vm7091_vm8, %v7093_v53, %v7089_v59  ;;  %v6806_v3 = vadd.f32 1.0, %v9176_v10  ;;  %vm7103_vm12 = vmor %vm7101_vm11, %vm7102_vm10  ;;  %v6612_v37 = vadd.f32 %v14862_v55, %v6611_v63 }
 0x8bf   :  { %v7204_v39 = vsel %vm6710_vm9, %v7094_v48, %v14846_v36  ;;  %v7098_v0 = vsub.f32 1.0, %v7097_v13 }
 0x8c0   :  { %7229 = vst [vmem:[#allocation2 + $0x90] sm:$0xff] %v7204_v39  ;;  %9179 = vrcp.f32 %v6806_v3  ;;  %v6697_v27 = vpop.f32.mrf.mxu1  ;;  %v7122_v6 = vand.u32 2147483648, %v6806_v3  ;;  %v7120_v40 = vand.u32 2147483647, %v6806_v3  ;;  %vm7116_vm15 = vweird.f32 %v6806_v3 }
 0x8c1   :  { %v7099_v30 = vmul.f32 %v9174_v12, %v7098_v0  ;;  %v14879_v34 = vadd.f32 %v6697_v27, %v6606_v45 }
 0x8c2   :  { %v7123_v22 = vor.u32 1.1754944e-38, %v7122_v6  ;;  %vm7121_vm1 = vcmp.eq.f32.partialorder %v7120_v40, 8.507059e+37 }
 0x8c3   :  { %v7100_v31 = vadd.f32 %v9174_v12, %v7099_v30  ;;  %v9178_v50 = vpop.eup %9177  ;;  %v8717_v58 = vmul.f32 -1.442695, %v14879_v34 }
 0x8c4   :  { %v6807_v4 = vadd.f32 1.0, %v9178_v50 }
 0x8c5   :  { %v7104_v36 = vsel %vm7103_vm12, %v9174_v12, %v7100_v31  ;;  %9181 = vpow2.f32 %v8717_v58 }
 0x8c6   :  { %v9180_v26 = vpop.eup %9179  ;;  %v7109_v5 = vsel %vm7106_vm13, %v7108_v60, %v7104_v36  ;;  %9183 = vrcp.f32 %v6807_v4  ;;  %v7137_v44 = vand.u32 2147483648, %v6807_v4  ;;  %v7135_v1 = vand.u32 2147483647, %v6807_v4 }
 0x8c7   :  { %v7205_v32 = vsel %vm6710_vm9, %v7109_v5, %v14853_v62  ;;  %v7112_v11 = vmul.f32 %v9180_v26, %v6806_v3  ;;  %vm7117_vm14 = vweird.f32 %v9180_v26  ;;  %vm7131_vm6 = vweird.f32 %v6807_v4 }
 0x8c8   :  { %7230 = vst [vmem:[#allocation2 + $0x98] sm:$0xff] %v7205_v32  ;;  %v6700_v25 = vpop.f32.mrf.mxu1  ;;  %vm7118_vm0 = vmor %vm7116_vm15, %vm7117_vm14  ;;  %v7138_v55 = vor.u32 1.1754944e-38, %v7137_v44  ;;  %vm7136_vm4 = vcmp.eq.f32.partialorder %v7135_v1, 8.507059e+37 }
 0x8c9   :  { %v7113_v47 = vsub.f32 1.0, %v7112_v11  ;;  %v14886_v9 = vadd.f32 %v6700_v25, %v6609_v49 }
 0x8cb   :  { %v7114_v18 = vmul.f32 %v9180_v26, %v7113_v47  ;;  %v9182_v35 = vpop.eup %9181  ;;  %v8718_v52 = vmul.f32 -1.442695, %v14886_v9 }
 0x8cc   :  { %v9184_v62 = vpop.eup %9183  ;;  %v6808_v61 = vadd.f32 1.0, %v9182_v35 }
 0x8cd   :  { %v7115_v7 = vadd.f32 %v9180_v26, %v7114_v18  ;;  %v7127_v57 = vmul.f32 %v9184_v62, %v6807_v4  ;;  %9185 = vpow2.f32 %v8718_v52  ;;  %vm7132_vm2 = vweird.f32 %v9184_v62 }
 0x8ce   :  { %9187 = vrcp.f32 %v6808_v61  ;;  %vm7133_vm3 = vmor %vm7131_vm6, %vm7132_vm2  ;;  %v7152_v53 = vand.u32 2147483648, %v6808_v61  ;;  %v7150_v59 = vand.u32 2147483647, %v6808_v61  ;;  %vm7146_vm7 = vweird.f32 %v6808_v61 }
 0x8cf   :  { %v7119_v28 = vsel %vm7118_vm0, %v9180_v26, %v7115_v7  ;;  %v7128_v20 = vsub.f32 1.0, %v7127_v57 }
 0x8d0   :  { %v7124_v43 = vsel %vm7121_vm1, %v7123_v22, %v7119_v28  ;;  %v6703_v8 = vpop.f32.mrf.mxu1  ;;  %v7153_v3 = vor.u32 1.1754944e-38, %v7152_v53  ;;  %vm7151_vm10 = vcmp.eq.f32.partialorder %v7150_v59, 8.507059e+37 }
 0x8d1   :  { %v7206_v38 = vsel %vm6710_vm9, %v7124_v43, %v14865_v24  ;;  %v7129_v19 = vmul.f32 %v9184_v62, %v7128_v20  ;;  %v14893_v41 = vadd.f32 %v6703_v8, %v6612_v37 }
 0x8d2   :  { %7231 = vst [vmem:[#allocation2 + $0xa0] sm:$0xff] %v7206_v38 }
 0x8d3   :  { %v9186_v56 = vpop.eup %9185  ;;  %v7130_v15 = vadd.f32 %v9184_v62, %v7129_v19  ;;  %v8719_v46 = vmul.f32 -1.442695, %v14893_v41 }
 0x8d4   :  { %v9188_v54 = vpop.eup %9187  ;;  %v6809_v51 = vadd.f32 1.0, %v9186_v56 }
 0x8d5   :  { %v7134_v23 = vsel %vm7133_vm3, %v9184_v62, %v7130_v15  ;;  %v7142_v24 = vmul.f32 %v9188_v54, %v6808_v61  ;;  %9189 = vpow2.f32 %v8719_v46  ;;  %vm7147_vm5 = vweird.f32 %v9188_v54 }
 0x8d6   :  { %v7139_v42 = vsel %vm7136_vm4, %v7138_v55, %v7134_v23  ;;  %9191 = vrcp.f32 %v6809_v51  ;;  %vm7148_vm8 = vmor %vm7146_vm7, %vm7147_vm5  ;;  %v7167_v2 = vand.u32 2147483648, %v6809_v51  ;;  %v7165_v31 = vand.u32 2147483647, %v6809_v51 }
 0x8d7   :  { %v7207_v21 = vsel %vm6710_vm9, %v7139_v42, %v14872_v16  ;;  %v7143_v12 = vsub.f32 1.0, %v7142_v24  ;;  %vm7161_vm12 = vweird.f32 %v6809_v51 }
 0x8d8   :  { %7232 = vst [vmem:[#allocation2 + $0xa8] sm:$0xff] %v7207_v21  ;;  %v7168_v50 = vor.u32 1.1754944e-38, %v7167_v2  ;;  %vm7166_vm14 = vcmp.eq.f32.partialorder %v7165_v31, 8.507059e+37 }
 0x8d9   :  { %v7144_v10 = vmul.f32 %v9188_v54, %v7143_v12 }
 0x8db   :  { %v9190_v13 = vpop.eup %9189  ;;  %v7145_v29 = vadd.f32 %v9188_v54, %v7144_v10 }
 0x8dc   :  { %v9192_v48 = vpop.eup %9191  ;;  %v6810_v39 = vadd.f32 1.0, %v9190_v13 }
 0x8dd   :  { %v7149_v0 = vsel %vm7148_vm8, %v9188_v54, %v7145_v29  ;;  %v7157_v14 = vmul.f32 %v9192_v48, %v6809_v51  ;;  %vm7162_vm11 = vweird.f32 %v9192_v48 }
 0x8de   :  { %v7154_v45 = vsel %vm7151_vm10, %v7153_v3, %v7149_v0  ;;  %9193 = vrcp.f32 %v6810_v39  ;;  %vm7163_vm13 = vmor %vm7161_vm12, %vm7162_vm11  ;;  %v7182_v4 = vand.u32 2147483648, %v6810_v39  ;;  %v7180_v11 = vand.u32 2147483647, %v6810_v39 }
 0x8df   :  { %v7208_v16 = vsel %vm6710_vm9, %v7154_v45, %v14879_v34  ;;  %v7158_v30 = vsub.f32 1.0, %v7157_v14  ;;  %vm7176_vm0 = vweird.f32 %v6810_v39 }
 0x8e0   :  { %7233 = vst [vmem:[#allocation2 + $0xb0] sm:$0xff] %v7208_v16  ;;  %v7183_v47 = vor.u32 1.1754944e-38, %v7182_v4  ;;  %vm7181_vm2 = vcmp.eq.f32.partialorder %v7180_v11, 8.507059e+37 }
 0x8e1   :  { %v7159_v27 = vmul.f32 %v9192_v48, %v7158_v30 }
 0x8e3   :  { %v7160_v17 = vadd.f32 %v9192_v48, %v7159_v27 }
 0x8e4   :  { %v9194_v60 = vpop.eup %9193 }
 0x8e5   :  { %v7164_v36 = vsel %vm7163_vm13, %v9192_v48, %v7160_v17  ;;  %v7172_v58 = vmul.f32 %v9194_v60, %v6810_v39  ;;  %vm7177_vm15 = vweird.f32 %v9194_v60 }
 0x8e6   :  { %v7169_v26 = vsel %vm7166_vm14, %v7168_v50, %v7164_v36  ;;  %vm7178_vm1 = vmor %vm7176_vm0, %vm7177_vm15 }
 0x8e7   :  { %v7209_v5 = vsel %vm6710_vm9, %v7169_v26, %v14886_v9  ;;  %v7173_v34 = vsub.f32 1.0, %v7172_v58 }
 0x8e8   :  { %7234 = vst [vmem:[#allocation2 + $0xb8] sm:$0xff] %v7209_v5 }
 0x8e9   :  { %v7174_v32 = vmul.f32 %v9194_v60, %v7173_v34 }
 0x8eb   :  { %v7175_v49 = vadd.f32 %v9194_v60, %v7174_v32 }
 0x8ed   :  { %v7179_v6 = vsel %vm7178_vm1, %v9194_v60, %v7175_v49 }
 0x8ee   :  { %v7184_v25 = vsel %vm7181_vm2, %v7183_v47, %v7179_v6 }
 0x8ef   :  { %v7210_v18 = vsel %vm6710_vm9, %v7184_v25, %v14893_v41 }
 0x8f0   :  { %7235 = vst [vmem:[#allocation2 + $0xc0] sm:$0xff] %v7210_v18 }
 0x8f1   :  { %7248 = dma.vmem_to_hbm [thread:$0]  %s7241_s30, 3200, %s7243_s8, [#allocation3], %s9223_s9, %s9223_s9, %s9224_s10  }
 0x8f2   :  { %9220 = dma.done.wait [#allocation3], 3200  }
 0x8f3   :  { %9221 = vsyncadd [#allocation3], 4294964096 }
 0x8f4   :  { %7253 = vsyncpa [#allocation3], 1 }

</bundles_post_ra>
